<compile_context>
chip_gen: v6e
topology: v6e:2x2x1
jax: 0.10.0
libtpu: 0.0.40
codegen_flags: <defaults>
</compile_context>

<pallas_src>
import functools

import jax
import jax.numpy as jnp
from jax.experimental import pallas as pl
from jax.experimental.pallas import tpu as pltpu

EPS = 1e-5  # PyTorch InstanceNorm2d default


def _round_up(x, m):
    return (x + m - 1) // m * m


# --------------------------------------------------------------------------
# Full-K GEMM (+ optional bias / ReLU epilogue) — the MXU workhorse
# --------------------------------------------------------------------------
def _gemm_kernel(*refs, has_bias, relu):
    if has_bias:
        x_ref, w_ref, b_ref, o_ref = refs
    else:
        x_ref, w_ref, o_ref = refs
    y = jnp.dot(x_ref[...], w_ref[...], preferred_element_type=jnp.float32)
    if has_bias:
        y = y + b_ref[...]
    if relu:
        y = jnp.maximum(y, 0.0)
    o_ref[...] = y.astype(o_ref.dtype)


def matmul_bias(x, w, b=None, *, relu=False, out_dtype=jnp.float32):
    """x: (M, K) @ w: (K, N) [+ b (N,)] -> (M, N). bf16 MXU, f32 accumulate.

    K and N blocks span the full dims (weight stays VMEM-resident); the only
    grid axis is M, marked "parallel" so v7x's two TensorCores shard it.
    """
    M, K = x.shape
    N = w.shape[1]

    tm_target = 1024 if K <= 1536 else 512        # keep x double-buffer <= ~5 MiB
    tm = tm_target if M >= tm_target else _round_up(M, 8)
    Mp = _round_up(M, tm)

    xb = x if x.dtype == jnp.bfloat16 else x.astype(jnp.bfloat16)
    if Mp != M:
        xb = jnp.pad(xb, ((0, Mp - M), (0, 0)))
    wb = w.astype(jnp.bfloat16)

    in_specs = [pl.BlockSpec((tm, K), lambda i: (i, 0)),
                pl.BlockSpec((K, N), lambda i: (0, 0))]
    args = [xb, wb]
    has_bias = b is not None
    if has_bias:
        in_specs.append(pl.BlockSpec((1, N), lambda i: (0, 0)))
        args.append(b.reshape(1, N).astype(jnp.float32))

    out = pl.pallas_call(
        functools.partial(_gemm_kernel, has_bias=has_bias, relu=relu),
        out_shape=jax.ShapeDtypeStruct((Mp, N), out_dtype),
        grid=(Mp // tm,),
        in_specs=in_specs,
        out_specs=pl.BlockSpec((tm, N), lambda i: (i, 0)),
        compiler_params=pltpu.CompilerParams(
            dimension_semantics=("parallel",)),
    )(*args)
    return out[:M] if Mp != M else out


# --------------------------------------------------------------------------
# InstanceNorm2d kernels
#   Layout contract: x is (N, T, L) with L a multiple of C and column j
#   holding channel j % C (lane-group packing or deconv phase-major layout).
# --------------------------------------------------------------------------
def _in_stats_kernel(x_ref, sum_ref, sq_ref):
    @pl.when(pl.program_id(1) == 0)
    def _():
        sum_ref[...] = jnp.zeros_like(sum_ref)
        sq_ref[...] = jnp.zeros_like(sq_ref)

    x = x_ref[...].astype(jnp.float32)                  # (1, t, L)
    sum_ref[...] += jnp.sum(x, axis=1, keepdims=True)
    sq_ref[...] += jnp.sum(x * x, axis=1, keepdims=True)


def _in_apply_kernel(*refs, relu, has_res):
    if has_res:
        x_ref, scale_ref, shift_ref, r_ref, o_ref = refs
    else:
        x_ref, scale_ref, shift_ref, o_ref = refs
    y = x_ref[...].astype(jnp.float32) * scale_ref[...] + shift_ref[...]
    if relu:
        y = jnp.maximum(y, 0.0)
    if has_res:
        y = y + r_ref[...].astype(jnp.float32)
    o_ref[...] = y.astype(o_ref.dtype)


def _in_fused_kernel(*refs, relu, has_res, inv_count):
    if has_res:
        x_ref, g_ref, b_ref, r_ref, o_ref = refs
    else:
        x_ref, g_ref, b_ref, o_ref = refs
    x = x_ref[...].astype(jnp.float32)                  # (1, T, C)
    mean = jnp.sum(x, axis=1, keepdims=True) * inv_count
    var = jnp.maximum(
        jnp.sum(x * x, axis=1, keepdims=True) * inv_count - mean * mean, 0.0)
    scale = jax.lax.rsqrt(var + EPS) * g_ref[...]
    shift = b_ref[...] - mean * scale
    y = x * scale + shift
    if relu:
        y = jnp.maximum(y, 0.0)
    if has_res:
        y = y + r_ref[...].astype(jnp.float32)
    o_ref[...] = y.astype(o_ref.dtype)


def instance_norm(x, C, gamma, beta, *, relu=False, residual=None):
    """Per-(image, channel) InstanceNorm with affine + fused ReLU / residual.

    x: (N, T, L) with L % C == 0 and channel(col j) == j % C (see contract
    above).  Statistics pool over all T rows and all L // C lane groups.
    Returns bf16, same shape as x.
    """
    N, T_in, L_in = x.shape
    has_res = residual is not None

    # Lane-dense packing for narrow channel counts (C in {32, 64} here): a free
    # contiguous reshape turning masked 32/64-lane stores into full 128-lane ones.
    if L_in == C and C < 128 and 128 % C == 0 and T_in % (128 // C) == 0:
        g = 128 // C
        x = x.reshape(N, T_in // g, 128)
        if has_res:
            residual = residual.reshape(N, T_in // g, 128)
    N, T, L = x.shape
    groups = L // C
    count = T * groups
    gamma_f = gamma.reshape(1, C).astype(jnp.float32)
    beta_f = beta.reshape(1, C).astype(jnp.float32)

    # ---- single-pass fused path (whole per-image slab VMEM-resident) --------
    if L == C and T * L * x.dtype.itemsize <= (2 << 20):
        in_specs = [pl.BlockSpec((1, T, L), lambda n: (n, 0, 0)),
                    pl.BlockSpec((1, 1, L), lambda n: (0, 0, 0)),
                    pl.BlockSpec((1, 1, L), lambda n: (0, 0, 0))]
        args = [x, gamma_f.reshape(1, 1, C), beta_f.reshape(1, 1, C)]
        if has_res:
            in_specs.append(pl.BlockSpec((1, T, L), lambda n: (n, 0, 0)))
            args.append(residual)
        out = pl.pallas_call(
            functools.partial(_in_fused_kernel, relu=relu, has_res=has_res,
                              inv_count=1.0 / count),
            out_shape=jax.ShapeDtypeStruct((N, T, L), jnp.bfloat16),
            grid=(N,),
            in_specs=in_specs,
            out_specs=pl.BlockSpec((1, T, L), lambda n: (n, 0, 0)),
            compiler_params=pltpu.CompilerParams(
                dimension_semantics=("parallel",)),
        )(*args)
        return out.reshape(N, T_in, L_in)

    # ---- two-pass path: tiled partial sums, then fused normalize ------------
    if T <= 1024:
        t_hw, Tp = T, T                                  # single row tile
    else:
        t_hw = 1024
        Tp = _round_up(T, t_hw)                          # pad tail (zeros are
    if Tp != T:                                          # harmless for sums)
        x = jnp.pad(x, ((0, 0), (0, Tp - T), (0, 0)))
        if has_res:
            residual = jnp.pad(residual, ((0, 0), (0, Tp - T), (0, 0)))
    n_t = Tp // t_hw

    sums, sqs = pl.pallas_call(
        _in_stats_kernel,
        out_shape=(jax.ShapeDtypeStruct((N, 1, L), jnp.float32),
                   jax.ShapeDtypeStruct((N, 1, L), jnp.float32)),
        grid=(N, n_t),
        in_specs=[pl.BlockSpec((1, t_hw, L), lambda n, t: (n, t, 0))],
        out_specs=(pl.BlockSpec((1, 1, L), lambda n, t: (n, 0, 0)),
                   pl.BlockSpec((1, 1, L), lambda n, t: (n, 0, 0))),
        compiler_params=pltpu.CompilerParams(
            dimension_semantics=("parallel", "arbitrary")),
    )(x)

    # Tiny JAX finalize: fold lane groups, compute mean / rstd, tile back.
    s = sums.reshape(N, groups, C).sum(axis=1)
    q = sqs.reshape(N, groups, C).sum(axis=1)
    mean = s / count
    var = jnp.maximum(q / count - mean * mean, 0.0)      # biased variance
    rstd = jax.lax.rsqrt(var + EPS)
    scale = rstd * gamma_f                               # (N, C)
    shift = beta_f - mean * scale
    scale_t = jnp.tile(scale.reshape(N, 1, C), (1, 1, groups))   # (N, 1, L)
    shift_t = jnp.tile(shift.reshape(N, 1, C), (1, 1, groups))

    in_specs = [pl.BlockSpec((1, t_hw, L), lambda n, t: (n, t, 0)),
                pl.BlockSpec((1, 1, L), lambda n, t: (n, 0, 0)),
                pl.BlockSpec((1, 1, L), lambda n, t: (n, 0, 0))]
    args = [x, scale_t, shift_t]
    if has_res:
        in_specs.append(pl.BlockSpec((1, t_hw, L), lambda n, t: (n, t, 0)))
        args.append(residual)

    out = pl.pallas_call(
        functools.partial(_in_apply_kernel, relu=relu, has_res=has_res),
        out_shape=jax.ShapeDtypeStruct((N, Tp, L), jnp.bfloat16),
        grid=(N, n_t),
        in_specs=in_specs,
        out_specs=pl.BlockSpec((1, t_hw, L), lambda n, t: (n, t, 0)),
        compiler_params=pltpu.CompilerParams(
            dimension_semantics=("parallel", "parallel")),
    )(*args)
    if Tp != T:
        out = out[:, :T]
    return out.reshape(N, T_in, L_in)


# --------------------------------------------------------------------------
# JAX glue: reflection pad / patch extraction / polyphase deconv weights
# --------------------------------------------------------------------------
def _im2col(x, kh, kw, stride, k_pad=0):
    """x: (N, Hp, Wp, C) -> ((N*Ho*Wo, kh*kw*C + k_pad), Ho, Wo)."""
    N, Hp, Wp, C = x.shape
    Ho = (Hp - kh) // stride + 1
    Wo = (Wp - kw) // stride + 1
    cols = []
    for i in range(kh):
        for j in range(kw):
            cols.append(
                x[:, i:i + stride * (Ho - 1) + 1:stride,
                     j:j + stride * (Wo - 1) + 1:stride, :])
    if k_pad:
        cols.append(jnp.zeros((N, Ho, Wo, k_pad), x.dtype))  # lane-align K
    cols = jnp.concatenate(cols, axis=-1)
    return cols.reshape(N * Ho * Wo, kh * kw * C + k_pad), Ho, Wo


def conv2d_gemm(x, w, b, stride, reflect_pad, out_dtype):
    """x: (N,H,W,Cin), w HWIO, b: (Cout,) or None. Returns ((M, Cout), Ho, Wo)."""
    kh, kw, Cin, Cout = w.shape
    if reflect_pad > 0:
        x = jnp.pad(
            x, ((0, 0), (reflect_pad,) * 2, (reflect_pad,) * 2, (0, 0)),
            mode="reflect")
    K = kh * kw * Cin
    Kp = _round_up(K, 128)
    cols, Ho, Wo = _im2col(x, kh, kw, stride, k_pad=Kp - K)
    wmat = w.reshape(K, Cout)
    if Kp != K:
        wmat = jnp.pad(wmat, ((0, Kp - K), (0, 0)))
    out = matmul_bias(cols, wmat, b, out_dtype=out_dtype)
    return out, Ho, Wo


def _deconv_poly_weight(w_t):
    """Combined polyphase weight (4*Cin, 4*Cout) for k=3, s=2, p=1, op=1.
    Taps t0..t3 = x[m,p], x[m,p+1], x[m+1,p], x[m+1,p+1];
    phases q0..q3 = (even,even), (even,odd), (odd,even), (odd,odd)."""
    Cin, Cout, _, _ = w_t.shape
    Z = jnp.zeros((Cin, Cout), w_t.dtype)

    def w(ky, kx):
        return w_t[:, :, ky, kx]

    row_t0 = jnp.concatenate([w(1, 1), w(1, 2), w(2, 1), w(2, 2)], axis=1)
    row_t1 = jnp.concatenate([Z,       w(1, 0), Z,       w(2, 0)], axis=1)
    row_t2 = jnp.concatenate([Z,       Z,       w(0, 1), w(0, 2)], axis=1)
    row_t3 = jnp.concatenate([Z,       Z,       Z,       w(0, 0)], axis=1)
    return jnp.concatenate([row_t0, row_t1, row_t2, row_t3], axis=0)


# --------------------------------------------------------------------------
# Layers
# --------------------------------------------------------------------------
def conv_layer(x, p, stride, *, norm=True, relu=False, residual=None):
    """ReflectionPad + Conv2d (+ InstanceNorm + ReLU + residual)."""
    k = p["w"].shape[0]
    Cout = p["w"].shape[3]
    N = x.shape[0]
    # Bias is a per-channel constant -> exactly removed by InstanceNorm's mean
    # subtraction, so skip it for normalized layers.
    bias = None if norm else p["b"]
    out_dtype = jnp.bfloat16 if norm else jnp.float32
    y, Ho, Wo = conv2d_gemm(x, p["w"], bias, stride, k // 2, out_dtype)
    if not norm:
        return y.reshape(N, Ho, Wo, Cout)
    res = None if residual is None else residual.reshape(N, Ho * Wo, Cout)
    y = instance_norm(y.reshape(N, Ho * Wo, Cout), Cout,
                      p["gamma"], p["beta"], relu=relu, residual=res)
    return y.reshape(N, Ho, Wo, Cout)


def deconv_layer(x, p, *, relu=True):
    """PyTorch ConvTranspose2d(k=3, s=2, p=1, output_padding=1) + InstanceNorm
    + ReLU via polyphase decomposition: one GEMM over 2x2 input patches,
    InstanceNorm applied on the phase-major GEMM output (lane-dense), and the
    pixel-shuffle transpose done once on normalized bf16 data.
    Bias omitted (always followed by InstanceNorm here)."""
    Cin, Cout, _, _ = p["w"].shape
    N, H, W, _ = x.shape
    xp = jnp.pad(x, ((0, 0), (0, 1), (0, 1), (0, 0)))
    t0 = xp[:, :H, :W, :]
    t1 = xp[:, :H, 1:W + 1, :]
    t2 = xp[:, 1:H + 1, :W, :]
    t3 = xp[:, 1:H + 1, 1:W + 1, :]
    # TODO(synk): gather the 4 taps inside the GEMM instead of concatenating
    #             (4x duplication of the deconv input in HBM).
    patches = jnp.concatenate([t0, t1, t2, t3], axis=-1).reshape(N * H * W, 4 * Cin)
    y = matmul_bias(patches, _deconv_poly_weight(p["w"]), None,
                    out_dtype=jnp.bfloat16)              # (N*H*W, 4*Cout)
    # InstanceNorm over the phase-major layout: column = phase*Cout + c, so the
    # lane-group machinery pools the 4 phases == the 2x2 output pixels.
    y = instance_norm(y.reshape(N, H * W, 4 * Cout), Cout,
                      p["gamma"], p["beta"], relu=relu)
    y = y.reshape(N, H, W, 2, 2, Cout)
    y = y.transpose(0, 1, 3, 2, 4, 5).reshape(N, 2 * H, 2 * W, Cout)
    return y


def transformer_network(x_nchw, params):
    x = jnp.transpose(x_nchw, (0, 2, 3, 1)).astype(jnp.bfloat16)  # NCHW -> NHWC

    # ConvBlock: (Conv 9x9 s1, ReLU), (Conv 3x3 s2, ReLU), (Conv 3x3 s2, ReLU)
    x = conv_layer(x, params["c1"], stride=1, relu=True)
    x = conv_layer(x, params["c2"], stride=2, relu=True)
    x = conv_layer(x, params["c3"], stride=2, relu=True)

    # ResidualBlock: 5 x ResidualLayer(128, 3)
    for rp in params["res"]:
        identity = x
        h = conv_layer(x, rp["a"], stride=1, relu=True)
        x = conv_layer(h, rp["b"], stride=1, relu=False, residual=identity)

    # DeconvBlock: Deconv 3x3 s2 + ReLU, Deconv 3x3 s2 + ReLU, Conv 9x9 s1 (no norm)
    x = deconv_layer(x, params["d1"], relu=True)
    x = deconv_layer(x, params["d2"], relu=True)
    x = conv_layer(x, params["c4"], stride=1, norm=False)

    return jnp.transpose(x, (0, 3, 1, 2))                         # NHWC -> NCHW


# --------------------------------------------------------------------------
# Deterministic parameter init (synthetic weights, shapes match the nn.Module)
# --------------------------------------------------------------------------
def init_params(key):
    def conv_p(k, cin, cout, ksz, norm=True):
        k1, k2, k3, k4 = jax.random.split(k, 4)
        scale = 1.0 / (ksz * ksz * cin) ** 0.5
        p = {
            "w": jax.random.normal(k1, (ksz, ksz, cin, cout), jnp.float32) * scale,
            "b": jax.random.normal(k2, (cout,), jnp.float32) * scale,
        }
        if norm:
            p["gamma"] = 1.0 + 0.1 * jax.random.normal(k3, (1, 1, cout), jnp.float32)
            p["beta"] = 0.1 * jax.random.normal(k4, (1, 1, cout), jnp.float32)
        return p

    def deconv_p(k, cin, cout, ksz):
        k1, k2, k3, k4 = jax.random.split(k, 4)
        scale = 1.0 / (ksz * ksz * cin) ** 0.5
        return {
            "w": jax.random.normal(k1, (cin, cout, ksz, ksz), jnp.float32) * scale,
            "b": jax.random.normal(k2, (cout,), jnp.float32) * scale,
            "gamma": 1.0 + 0.1 * jax.random.normal(k3, (1, 1, cout), jnp.float32),
            "beta": 0.1 * jax.random.normal(k4, (1, 1, cout), jnp.float32),
        }

    keys = jax.random.split(key, 16)
    return {
        "c1": conv_p(keys[0], 3, 32, 9),
        "c2": conv_p(keys[1], 32, 64, 3),
        "c3": conv_p(keys[2], 64, 128, 3),
        "res": [
            {"a": conv_p(keys[3 + i], 128, 128, 3),
             "b": conv_p(keys[8 + i], 128, 128, 3)}
            for i in range(5)
        ],
        "d1": deconv_p(keys[13], 128, 64, 3),
        "d2": deconv_p(keys[14], 64, 32, 3),
        "c4": conv_p(keys[15], 32, 3, 9, norm=False),
    }


if __name__ == "__main__":
    key = jax.random.PRNGKey(0)
    kx, kp = jax.random.split(key)
    # small input consistent with the module: batch=2, RGB, 16x16 spatial (NCHW)
    x = jax.random.normal(kx, (2, 3, 16, 16), jnp.float32)
    params = init_params(kp)

    fwd = jax.jit(transformer_network)
    out = fwd(x, params)
    jax.block_until_ready(out)
    assert out.shape == (2, 3, 16, 16), out.shape
    assert bool(jnp.all(jnp.isfinite(out)))
    print("KERNEL_OK")
</pallas_src>

<mosaic_0001>
module attributes {stable_mosaic.version = 11 : i64} {
  func.func @_gemm_kernel(%arg0: i32, %arg1: memref<512x256xbf16, #tpu.memory_space<vmem>>, %arg2: memref<256x32xbf16, #tpu.memory_space<vmem>>, %arg3: memref<512x32xbf16, #tpu.memory_space<vmem>>) attributes {dimension_semantics = [#tpu.dimension_semantics<parallel>], iteration_bounds = array<i64: 1>, scalar_prefetch = 0 : i64, scratch_operands = 0 : i64, tpu.core_type = #tpu.core_type<tc>, window_params = [{transform_indices = @transform_0, window_bounds = array<i64: 512, 256>}, {pipeline_mode = #tpu.pipeline_mode<synchronous>, transform_indices = @transform_1, window_bounds = array<i64: 256, 32>}, {transform_indices = @transform_2, window_bounds = array<i64: 512, 32>}]} {
    %c0 = arith.constant 0 : index
    %c0_0 = arith.constant 0 : index
    %0 = vector.load %arg1[%c0, %c0_0] : memref<512x256xbf16, #tpu.memory_space<vmem>>, vector<512x256xbf16>
    %c0_1 = arith.constant 0 : index
    %c0_2 = arith.constant 0 : index
    %1 = vector.load %arg2[%c0_1, %c0_2] : memref<256x32xbf16, #tpu.memory_space<vmem>>, vector<256x32xbf16>
    %cst = arith.constant dense<0.000000e+00> : vector<512x32xf32>
    %2 = tpu.matmul %0, %1, %cst {dimension_numbers = #tpu.dot_dimension_numbers<[1], [0], [0], [1], [0, 0, 1, 1], [], []>} : vector<512x256xbf16>, vector<256x32xbf16>, vector<512x32xf32> -> vector<512x32xf32>
    %3 = arith.truncf %2 : vector<512x32xf32> to vector<512x32xbf16>
    %c0_3 = arith.constant 0 : index
    %c0_4 = arith.constant 0 : index
    %4 = vector.load %arg3[%c0_3, %c0_4] : memref<512x32xbf16, #tpu.memory_space<vmem>>, vector<512x32xbf16>
    tpu.vector_store %arg3[%c0_3, %c0_4], %3 {strides = array<i32>} : memref<512x32xbf16, #tpu.memory_space<vmem>>, vector<512x32xbf16>,
    return
  }
  func.func @transform_0(%arg0: i32) -> (i32, i32) {
    %c0_i32 = arith.constant 0 : i32
    %c0_i32_0 = arith.constant 0 : i32
    return %arg0, %c0_i32 : i32, i32
  }
  func.func @transform_1(%arg0: i32) -> (i32, i32) {
    %c0_i32 = arith.constant 0 : i32
    %c0_i32_0 = arith.constant 0 : i32
    %c0_i32_1 = arith.constant 0 : i32
    return %c0_i32, %c0_i32_0 : i32, i32
  }
  func.func @transform_2(%arg0: i32) -> (i32, i32) {
    %c0_i32 = arith.constant 0 : i32
    %c0_i32_0 = arith.constant 0 : i32
    return %arg0, %c0_i32 : i32, i32
  }
}

module attributes {stable_mosaic.version = 11 : i64} {
  func.func @_in_stats_kernel(%arg0: i32, %arg1: i32, %arg2: memref<1x64x128xbf16, #tpu.memory_space<vmem>>, %arg3: memref<1x1x128xf32, #tpu.memory_space<vmem>>, %arg4: memref<1x1x128xf32, #tpu.memory_space<vmem>>) attributes {dimension_semantics = [#tpu.dimension_semantics<parallel>, #tpu.dimension_semantics<arbitrary>], iteration_bounds = array<i64: 2, 1>, scalar_prefetch = 0 : i64, scratch_operands = 0 : i64, tpu.core_type = #tpu.core_type<tc>, window_params = [{transform_indices = @transform_0, window_bounds = array<i64: 1, 64, 128>}, {transform_indices = @transform_1, window_bounds = array<i64: 1, 1, 128>}, {transform_indices = @transform_2, window_bounds = array<i64: 1, 1, 128>}]} {
    %c0_i32 = arith.constant 0 : i32
    %0 = arith.cmpi eq, %arg1, %c0_i32 : i32
    %1 = arith.extui %0 : i1 to i32
    %c0_i32_0 = arith.constant 0 : i32
    %2 = arith.cmpi ne, %1, %c0_i32_0 : i32
    scf.if %2 {
      %cst_16 = arith.constant 0.000000e+00 : f32
      %16 = vector.broadcast %cst_16 : f32 to vector<1x1x128xf32>
      %c0_17 = arith.constant 0 : index
      %c0_18 = arith.constant 0 : index
      %c0_19 = arith.constant 0 : index
      %17 = vector.load %arg3[%c0_17, %c0_18, %c0_19] : memref<1x1x128xf32, #tpu.memory_space<vmem>>, vector<1x1x128xf32>
      tpu.vector_store %arg3[%c0_17, %c0_18, %c0_19], %16 {strides = array<i32>} : memref<1x1x128xf32, #tpu.memory_space<vmem>>, vector<1x1x128xf32>,
      %cst_20 = arith.constant 0.000000e+00 : f32
      %18 = vector.broadcast %cst_20 : f32 to vector<1x1x128xf32>
      %c0_21 = arith.constant 0 : index
      %c0_22 = arith.constant 0 : index
      %c0_23 = arith.constant 0 : index
      %19 = vector.load %arg4[%c0_21, %c0_22, %c0_23] : memref<1x1x128xf32, #tpu.memory_space<vmem>>, vector<1x1x128xf32>
      tpu.vector_store %arg4[%c0_21, %c0_22, %c0_23], %18 {strides = array<i32>} : memref<1x1x128xf32, #tpu.memory_space<vmem>>, vector<1x1x128xf32>,
    } else {
    }
    %c0 = arith.constant 0 : index
    %c0_1 = arith.constant 0 : index
    %c0_2 = arith.constant 0 : index
    %3 = vector.load %arg2[%c0, %c0_1, %c0_2] : memref<1x64x128xbf16, #tpu.memory_space<vmem>>, vector<1x64x128xbf16>
    %4 = arith.extf %3 : vector<1x64x128xbf16> to vector<1x64x128xf32>
    %c0_3 = arith.constant 0 : index
    %c0_4 = arith.constant 0 : index
    %c0_5 = arith.constant 0 : index
    %5 = vector.load %arg3[%c0_3, %c0_4, %c0_5] : memref<1x1x128xf32, #tpu.memory_space<vmem>>, vector<1x1x128xf32>
    %cst = arith.constant dense<0.000000e+00> : vector<1x128xf32>
    %6 = vector.multi_reduction <add>, %4, %cst [1] : vector<1x64x128xf32> to vector<1x128xf32>
    %7 = vector.shape_cast %6 : vector<1x128xf32> to vector<1x1x128xf32>
    %8 = arith.addf %5, %7 : vector<1x1x128xf32>
    %c0_6 = arith.constant 0 : index
    %c0_7 = arith.constant 0 : index
    %c0_8 = arith.constant 0 : index
    %9 = vector.load %arg3[%c0_6, %c0_7, %c0_8] : memref<1x1x128xf32, #tpu.memory_space<vmem>>, vector<1x1x128xf32>
    tpu.vector_store %arg3[%c0_6, %c0_7, %c0_8], %8 {strides = array<i32>} : memref<1x1x128xf32, #tpu.memory_space<vmem>>, vector<1x1x128xf32>,
    %c0_9 = arith.constant 0 : index
    %c0_10 = arith.constant 0 : index
    %c0_11 = arith.constant 0 : index
    %10 = vector.load %arg4[%c0_9, %c0_10, %c0_11] : memref<1x1x128xf32, #tpu.memory_space<vmem>>, vector<1x1x128xf32>
    %11 = arith.mulf %4, %4 : vector<1x64x128xf32>
    %cst_12 = arith.constant dense<0.000000e+00> : vector<1x128xf32>
    %12 = vector.multi_reduction <add>, %11, %cst_12 [1] : vector<1x64x128xf32> to vector<1x128xf32>
    %13 = vector.shape_cast %12 : vector<1x128xf32> to vector<1x1x128xf32>
    %14 = arith.addf %10, %13 : vector<1x1x128xf32>
    %c0_13 = arith.constant 0 : index
    %c0_14 = arith.constant 0 : index
    %c0_15 = arith.constant 0 : index
    %15 = vector.load %arg4[%c0_13, %c0_14, %c0_15] : memref<1x1x128xf32, #tpu.memory_space<vmem>>, vector<1x1x128xf32>
    tpu.vector_store %arg4[%c0_13, %c0_14, %c0_15], %14 {strides = array<i32>} : memref<1x1x128xf32, #tpu.memory_space<vmem>>, vector<1x1x128xf32>,
    return
  }
  func.func @transform_0(%arg0: i32, %arg1: i32) -> (i32, i32, i32) {
    %c0_i32 = arith.constant 0 : i32
    %c0_i32_0 = arith.constant 0 : i32
    return %arg0, %arg1, %c0_i32 : i32, i32, i32
  }
  func.func @transform_1(%arg0: i32, %arg1: i32) -> (i32, i32, i32) {
    %c0_i32 = arith.constant 0 : i32
    %c0_i32_0 = arith.constant 0 : i32
    %c0_i32_1 = arith.constant 0 : i32
    return %arg0, %c0_i32, %c0_i32_0 : i32, i32, i32
  }
  func.func @transform_2(%arg0: i32, %arg1: i32) -> (i32, i32, i32) {
    %c0_i32 = arith.constant 0 : i32
    %c0_i32_0 = arith.constant 0 : i32
    %c0_i32_1 = arith.constant 0 : i32
    return %arg0, %c0_i32, %c0_i32_0 : i32, i32, i32
  }
}

module attributes {stable_mosaic.version = 11 : i64} {
  func.func @_in_apply_kernel(%arg0: i32, %arg1: i32, %arg2: memref<1x64x128xbf16, #tpu.memory_space<vmem>>, %arg3: memref<1x1x128xf32, #tpu.memory_space<vmem>>, %arg4: memref<1x1x128xf32, #tpu.memory_space<vmem>>, %arg5: memref<1x64x128xbf16, #tpu.memory_space<vmem>>) attributes {dimension_semantics = [#tpu.dimension_semantics<parallel>, #tpu.dimension_semantics<parallel>], iteration_bounds = array<i64: 2, 1>, scalar_prefetch = 0 : i64, scratch_operands = 0 : i64, tpu.core_type = #tpu.core_type<tc>, window_params = [{transform_indices = @transform_0, window_bounds = array<i64: 1, 64, 128>}, {transform_indices = @transform_1, window_bounds = array<i64: 1, 1, 128>}, {transform_indices = @transform_2, window_bounds = array<i64: 1, 1, 128>}, {transform_indices = @transform_3, window_bounds = array<i64: 1, 64, 128>}]} {
    %c0 = arith.constant 0 : index
    %c0_0 = arith.constant 0 : index
    %c0_1 = arith.constant 0 : index
    %0 = vector.load %arg2[%c0, %c0_0, %c0_1] : memref<1x64x128xbf16, #tpu.memory_space<vmem>>, vector<1x64x128xbf16>
    %1 = arith.extf %0 : vector<1x64x128xbf16> to vector<1x64x128xf32>
    %c0_2 = arith.constant 0 : index
    %c0_3 = arith.constant 0 : index
    %c0_4 = arith.constant 0 : index
    %2 = vector.load %arg3[%c0_2, %c0_3, %c0_4] : memref<1x1x128xf32, #tpu.memory_space<vmem>>, vector<1x1x128xf32>
    %3 = vector.broadcast %2 : vector<1x1x128xf32> to vector<1x64x128xf32>
    %4 = arith.mulf %1, %3 : vector<1x64x128xf32>
    %c0_5 = arith.constant 0 : index
    %c0_6 = arith.constant 0 : index
    %c0_7 = arith.constant 0 : index
    %5 = vector.load %arg4[%c0_5, %c0_6, %c0_7] : memref<1x1x128xf32, #tpu.memory_space<vmem>>, vector<1x1x128xf32>
    %6 = vector.broadcast %5 : vector<1x1x128xf32> to vector<1x64x128xf32>
    %7 = arith.addf %4, %6 : vector<1x64x128xf32>
    %cst = arith.constant 0.000000e+00 : f32
    %8 = vector.broadcast %cst : f32 to vector<1x64x128xf32>
    %9 = arith.maximumf %7, %8 : vector<1x64x128xf32>
    %10 = arith.truncf %9 : vector<1x64x128xf32> to vector<1x64x128xbf16>
    %c0_8 = arith.constant 0 : index
    %c0_9 = arith.constant 0 : index
    %c0_10 = arith.constant 0 : index
    %11 = vector.load %arg5[%c0_8, %c0_9, %c0_10] : memref<1x64x128xbf16, #tpu.memory_space<vmem>>, vector<1x64x128xbf16>
    tpu.vector_store %arg5[%c0_8, %c0_9, %c0_10], %10 {strides = array<i32>} : memref<1x64x128xbf16, #tpu.memory_space<vmem>>, vector<1x64x128xbf16>,
    return
  }
  func.func @transform_0(%arg0: i32, %arg1: i32) -> (i32, i32, i32) {
    %c0_i32 = arith.constant 0 : i32
    %c0_i32_0 = arith.constant 0 : i32
    return %arg0, %arg1, %c0_i32 : i32, i32, i32
  }
  func.func @transform_1(%arg0: i32, %arg1: i32) -> (i32, i32, i32) {
    %c0_i32 = arith.constant 0 : i32
    %c0_i32_0 = arith.constant 0 : i32
    %c0_i32_1 = arith.constant 0 : i32
    return %arg0, %c0_i32, %c0_i32_0 : i32, i32, i32
  }
  func.func @transform_2(%arg0: i32, %arg1: i32) -> (i32, i32, i32) {
    %c0_i32 = arith.constant 0 : i32
    %c0_i32_0 = arith.constant 0 : i32
    %c0_i32_1 = arith.constant 0 : i32
    return %arg0, %c0_i32, %c0_i32_0 : i32, i32, i32
  }
  func.func @transform_3(%arg0: i32, %arg1: i32) -> (i32, i32, i32) {
    %c0_i32 = arith.constant 0 : i32
    %c0_i32_0 = arith.constant 0 : i32
    return %arg0, %arg1, %c0_i32 : i32, i32, i32
  }
}

module attributes {stable_mosaic.version = 11 : i64} {
  func.func @_in_stats_kernel(%arg0: i32, %arg1: i32, %arg2: memref<1x32x128xbf16, #tpu.memory_space<vmem>>, %arg3: memref<1x1x128xf32, #tpu.memory_space<vmem>>, %arg4: memref<1x1x128xf32, #tpu.memory_space<vmem>>) attributes {dimension_semantics = [#tpu.dimension_semantics<parallel>, #tpu.dimension_semantics<arbitrary>], iteration_bounds = array<i64: 2, 1>, scalar_prefetch = 0 : i64, scratch_operands = 0 : i64, tpu.core_type = #tpu.core_type<tc>, window_params = [{transform_indices = @transform_0, window_bounds = array<i64: 1, 32, 128>}, {transform_indices = @transform_1, window_bounds = array<i64: 1, 1, 128>}, {transform_indices = @transform_2, window_bounds = array<i64: 1, 1, 128>}]} {
    %c0_i32 = arith.constant 0 : i32
    %0 = arith.cmpi eq, %arg1, %c0_i32 : i32
    %1 = arith.extui %0 : i1 to i32
    %c0_i32_0 = arith.constant 0 : i32
    %2 = arith.cmpi ne, %1, %c0_i32_0 : i32
    scf.if %2 {
      %cst_16 = arith.constant 0.000000e+00 : f32
      %16 = vector.broadcast %cst_16 : f32 to vector<1x1x128xf32>
      %c0_17 = arith.constant 0 : index
      %c0_18 = arith.constant 0 : index
      %c0_19 = arith.constant 0 : index
      %17 = vector.load %arg3[%c0_17, %c0_18, %c0_19] : memref<1x1x128xf32, #tpu.memory_space<vmem>>, vector<1x1x128xf32>
      tpu.vector_store %arg3[%c0_17, %c0_18, %c0_19], %16 {strides = array<i32>} : memref<1x1x128xf32, #tpu.memory_space<vmem>>, vector<1x1x128xf32>,
      %cst_20 = arith.constant 0.000000e+00 : f32
      %18 = vector.broadcast %cst_20 : f32 to vector<1x1x128xf32>
      %c0_21 = arith.constant 0 : index
      %c0_22 = arith.constant 0 : index
      %c0_23 = arith.constant 0 : index
      %19 = vector.load %arg4[%c0_21, %c0_22, %c0_23] : memref<1x1x128xf32, #tpu.memory_space<vmem>>, vector<1x1x128xf32>
      tpu.vector_store %arg4[%c0_21, %c0_22, %c0_23], %18 {strides = array<i32>} : memref<1x1x128xf32, #tpu.memory_space<vmem>>, vector<1x1x128xf32>,
    } else {
    }
    %c0 = arith.constant 0 : index
    %c0_1 = arith.constant 0 : index
    %c0_2 = arith.constant 0 : index
    %3 = vector.load %arg2[%c0, %c0_1, %c0_2] : memref<1x32x128xbf16, #tpu.memory_space<vmem>>, vector<1x32x128xbf16>
    %4 = arith.extf %3 : vector<1x32x128xbf16> to vector<1x32x128xf32>
    %c0_3 = arith.constant 0 : index
    %c0_4 = arith.constant 0 : index
    %c0_5 = arith.constant 0 : index
    %5 = vector.load %arg3[%c0_3, %c0_4, %c0_5] : memref<1x1x128xf32, #tpu.memory_space<vmem>>, vector<1x1x128xf32>
    %cst = arith.constant dense<0.000000e+00> : vector<1x128xf32>
    %6 = vector.multi_reduction <add>, %4, %cst [1] : vector<1x32x128xf32> to vector<1x128xf32>
    %7 = vector.shape_cast %6 : vector<1x128xf32> to vector<1x1x128xf32>
    %8 = arith.addf %5, %7 : vector<1x1x128xf32>
    %c0_6 = arith.constant 0 : index
    %c0_7 = arith.constant 0 : index
    %c0_8 = arith.constant 0 : index
    %9 = vector.load %arg3[%c0_6, %c0_7, %c0_8] : memref<1x1x128xf32, #tpu.memory_space<vmem>>, vector<1x1x128xf32>
    tpu.vector_store %arg3[%c0_6, %c0_7, %c0_8], %8 {strides = array<i32>} : memref<1x1x128xf32, #tpu.memory_space<vmem>>, vector<1x1x128xf32>,
    %c0_9 = arith.constant 0 : index
    %c0_10 = arith.constant 0 : index
    %c0_11 = arith.constant 0 : index
    %10 = vector.load %arg4[%c0_9, %c0_10, %c0_11] : memref<1x1x128xf32, #tpu.memory_space<vmem>>, vector<1x1x128xf32>
    %11 = arith.mulf %4, %4 : vector<1x32x128xf32>
    %cst_12 = arith.constant dense<0.000000e+00> : vector<1x128xf32>
    %12 = vector.multi_reduction <add>, %11, %cst_12 [1] : vector<1x32x128xf32> to vector<1x128xf32>
    %13 = vector.shape_cast %12 : vector<1x128xf32> to vector<1x1x128xf32>
    %14 = arith.addf %10, %13 : vector<1x1x128xf32>
    %c0_13 = arith.constant 0 : index
    %c0_14 = arith.constant 0 : index
    %c0_15 = arith.constant 0 : index
    %15 = vector.load %arg4[%c0_13, %c0_14, %c0_15] : memref<1x1x128xf32, #tpu.memory_space<vmem>>, vector<1x1x128xf32>
    tpu.vector_store %arg4[%c0_13, %c0_14, %c0_15], %14 {strides = array<i32>} : memref<1x1x128xf32, #tpu.memory_space<vmem>>, vector<1x1x128xf32>,
    return
  }
  func.func @transform_0(%arg0: i32, %arg1: i32) -> (i32, i32, i32) {
    %c0_i32 = arith.constant 0 : i32
    %c0_i32_0 = arith.constant 0 : i32
    return %arg0, %arg1, %c0_i32 : i32, i32, i32
  }
  func.func @transform_1(%arg0: i32, %arg1: i32) -> (i32, i32, i32) {
    %c0_i32 = arith.constant 0 : i32
    %c0_i32_0 = arith.constant 0 : i32
    %c0_i32_1 = arith.constant 0 : i32
    return %arg0, %c0_i32, %c0_i32_0 : i32, i32, i32
  }
  func.func @transform_2(%arg0: i32, %arg1: i32) -> (i32, i32, i32) {
    %c0_i32 = arith.constant 0 : i32
    %c0_i32_0 = arith.constant 0 : i32
    %c0_i32_1 = arith.constant 0 : i32
    return %arg0, %c0_i32, %c0_i32_0 : i32, i32, i32
  }
}

module attributes {stable_mosaic.version = 11 : i64} {
  func.func @_gemm_kernel(%arg0: i32, %arg1: memref<128x384xbf16, #tpu.memory_space<vmem>>, %arg2: memref<384x64xbf16, #tpu.memory_space<vmem>>, %arg3: memref<128x64xbf16, #tpu.memory_space<vmem>>) attributes {dimension_semantics = [#tpu.dimension_semantics<parallel>], iteration_bounds = array<i64: 1>, scalar_prefetch = 0 : i64, scratch_operands = 0 : i64, tpu.core_type = #tpu.core_type<tc>, window_params = [{transform_indices = @transform_0, window_bounds = array<i64: 128, 384>}, {pipeline_mode = #tpu.pipeline_mode<synchronous>, transform_indices = @transform_1, window_bounds = array<i64: 384, 64>}, {transform_indices = @transform_2, window_bounds = array<i64: 128, 64>}]} {
    %c0 = arith.constant 0 : index
    %c0_0 = arith.constant 0 : index
    %0 = vector.load %arg1[%c0, %c0_0] : memref<128x384xbf16, #tpu.memory_space<vmem>>, vector<128x384xbf16>
    %c0_1 = arith.constant 0 : index
    %c0_2 = arith.constant 0 : index
    %1 = vector.load %arg2[%c0_1, %c0_2] : memref<384x64xbf16, #tpu.memory_space<vmem>>, vector<384x64xbf16>
    %cst = arith.constant dense<0.000000e+00> : vector<128x64xf32>
    %2 = tpu.matmul %0, %1, %cst {dimension_numbers = #tpu.dot_dimension_numbers<[1], [0], [0], [1], [0, 0, 1, 1], [], []>} : vector<128x384xbf16>, vector<384x64xbf16>, vector<128x64xf32> -> vector<128x64xf32>
    %3 = arith.truncf %2 : vector<128x64xf32> to vector<128x64xbf16>
    %c0_3 = arith.constant 0 : index
    %c0_4 = arith.constant 0 : index
    %4 = vector.load %arg3[%c0_3, %c0_4] : memref<128x64xbf16, #tpu.memory_space<vmem>>, vector<128x64xbf16>
    tpu.vector_store %arg3[%c0_3, %c0_4], %3 {strides = array<i32>} : memref<128x64xbf16, #tpu.memory_space<vmem>>, vector<128x64xbf16>,
    return
  }
  func.func @transform_0(%arg0: i32) -> (i32, i32) {
    %c0_i32 = arith.constant 0 : i32
    %c0_i32_0 = arith.constant 0 : i32
    return %arg0, %c0_i32 : i32, i32
  }
  func.func @transform_1(%arg0: i32) -> (i32, i32) {
    %c0_i32 = arith.constant 0 : i32
    %c0_i32_0 = arith.constant 0 : i32
    %c0_i32_1 = arith.constant 0 : i32
    return %c0_i32, %c0_i32_0 : i32, i32
  }
  func.func @transform_2(%arg0: i32) -> (i32, i32) {
    %c0_i32 = arith.constant 0 : i32
    %c0_i32_0 = arith.constant 0 : i32
    return %arg0, %c0_i32 : i32, i32
  }
}

module attributes {stable_mosaic.version = 11 : i64} {
  func.func @_in_apply_kernel(%arg0: i32, %arg1: i32, %arg2: memref<1x32x128xbf16, #tpu.memory_space<vmem>>, %arg3: memref<1x1x128xf32, #tpu.memory_space<vmem>>, %arg4: memref<1x1x128xf32, #tpu.memory_space<vmem>>, %arg5: memref<1x32x128xbf16, #tpu.memory_space<vmem>>) attributes {dimension_semantics = [#tpu.dimension_semantics<parallel>, #tpu.dimension_semantics<parallel>], iteration_bounds = array<i64: 2, 1>, scalar_prefetch = 0 : i64, scratch_operands = 0 : i64, tpu.core_type = #tpu.core_type<tc>, window_params = [{transform_indices = @transform_0, window_bounds = array<i64: 1, 32, 128>}, {transform_indices = @transform_1, window_bounds = array<i64: 1, 1, 128>}, {transform_indices = @transform_2, window_bounds = array<i64: 1, 1, 128>}, {transform_indices = @transform_3, window_bounds = array<i64: 1, 32, 128>}]} {
    %c0 = arith.constant 0 : index
    %c0_0 = arith.constant 0 : index
    %c0_1 = arith.constant 0 : index
    %0 = vector.load %arg2[%c0, %c0_0, %c0_1] : memref<1x32x128xbf16, #tpu.memory_space<vmem>>, vector<1x32x128xbf16>
    %1 = arith.extf %0 : vector<1x32x128xbf16> to vector<1x32x128xf32>
    %c0_2 = arith.constant 0 : index
    %c0_3 = arith.constant 0 : index
    %c0_4 = arith.constant 0 : index
    %2 = vector.load %arg3[%c0_2, %c0_3, %c0_4] : memref<1x1x128xf32, #tpu.memory_space<vmem>>, vector<1x1x128xf32>
    %3 = vector.broadcast %2 : vector<1x1x128xf32> to vector<1x32x128xf32>
    %4 = arith.mulf %1, %3 : vector<1x32x128xf32>
    %c0_5 = arith.constant 0 : index
    %c0_6 = arith.constant 0 : index
    %c0_7 = arith.constant 0 : index
    %5 = vector.load %arg4[%c0_5, %c0_6, %c0_7] : memref<1x1x128xf32, #tpu.memory_space<vmem>>, vector<1x1x128xf32>
    %6 = vector.broadcast %5 : vector<1x1x128xf32> to vector<1x32x128xf32>
    %7 = arith.addf %4, %6 : vector<1x32x128xf32>
    %cst = arith.constant 0.000000e+00 : f32
    %8 = vector.broadcast %cst : f32 to vector<1x32x128xf32>
    %9 = arith.maximumf %7, %8 : vector<1x32x128xf32>
    %10 = arith.truncf %9 : vector<1x32x128xf32> to vector<1x32x128xbf16>
    %c0_8 = arith.constant 0 : index
    %c0_9 = arith.constant 0 : index
    %c0_10 = arith.constant 0 : index
    %11 = vector.load %arg5[%c0_8, %c0_9, %c0_10] : memref<1x32x128xbf16, #tpu.memory_space<vmem>>, vector<1x32x128xbf16>
    tpu.vector_store %arg5[%c0_8, %c0_9, %c0_10], %10 {strides = array<i32>} : memref<1x32x128xbf16, #tpu.memory_space<vmem>>, vector<1x32x128xbf16>,
    return
  }
  func.func @transform_0(%arg0: i32, %arg1: i32) -> (i32, i32, i32) {
    %c0_i32 = arith.constant 0 : i32
    %c0_i32_0 = arith.constant 0 : i32
    return %arg0, %arg1, %c0_i32 : i32, i32, i32
  }
  func.func @transform_1(%arg0: i32, %arg1: i32) -> (i32, i32, i32) {
    %c0_i32 = arith.constant 0 : i32
    %c0_i32_0 = arith.constant 0 : i32
    %c0_i32_1 = arith.constant 0 : i32
    return %arg0, %c0_i32, %c0_i32_0 : i32, i32, i32
  }
  func.func @transform_2(%arg0: i32, %arg1: i32) -> (i32, i32, i32) {
    %c0_i32 = arith.constant 0 : i32
    %c0_i32_0 = arith.constant 0 : i32
    %c0_i32_1 = arith.constant 0 : i32
    return %arg0, %c0_i32, %c0_i32_0 : i32, i32, i32
  }
  func.func @transform_3(%arg0: i32, %arg1: i32) -> (i32, i32, i32) {
    %c0_i32 = arith.constant 0 : i32
    %c0_i32_0 = arith.constant 0 : i32
    return %arg0, %arg1, %c0_i32 : i32, i32, i32
  }
}

module attributes {stable_mosaic.version = 11 : i64} {
  func.func @_gemm_kernel(%arg0: i32, %arg1: memref<32x640xbf16, #tpu.memory_space<vmem>>, %arg2: memref<640x128xbf16, #tpu.memory_space<vmem>>, %arg3: memref<32x128xbf16, #tpu.memory_space<vmem>>) attributes {dimension_semantics = [#tpu.dimension_semantics<parallel>], iteration_bounds = array<i64: 1>, scalar_prefetch = 0 : i64, scratch_operands = 0 : i64, tpu.core_type = #tpu.core_type<tc>, window_params = [{transform_indices = @transform_0, window_bounds = array<i64: 32, 640>}, {pipeline_mode = #tpu.pipeline_mode<synchronous>, transform_indices = @transform_1, window_bounds = array<i64: 640, 128>}, {transform_indices = @transform_2, window_bounds = array<i64: 32, 128>}]} {
    %c0 = arith.constant 0 : index
    %c0_0 = arith.constant 0 : index
    %0 = vector.load %arg1[%c0, %c0_0] : memref<32x640xbf16, #tpu.memory_space<vmem>>, vector<32x640xbf16>
    %c0_1 = arith.constant 0 : index
    %c0_2 = arith.constant 0 : index
    %1 = vector.load %arg2[%c0_1, %c0_2] : memref<640x128xbf16, #tpu.memory_space<vmem>>, vector<640x128xbf16>
    %cst = arith.constant dense<0.000000e+00> : vector<32x128xf32>
    %2 = tpu.matmul %0, %1, %cst {dimension_numbers = #tpu.dot_dimension_numbers<[1], [0], [0], [1], [0, 0, 1, 1], [], []>} : vector<32x640xbf16>, vector<640x128xbf16>, vector<32x128xf32> -> vector<32x128xf32>
    %3 = arith.truncf %2 : vector<32x128xf32> to vector<32x128xbf16>
    %c0_3 = arith.constant 0 : index
    %c0_4 = arith.constant 0 : index
    %4 = vector.load %arg3[%c0_3, %c0_4] : memref<32x128xbf16, #tpu.memory_space<vmem>>, vector<32x128xbf16>
    tpu.vector_store %arg3[%c0_3, %c0_4], %3 {strides = array<i32>} : memref<32x128xbf16, #tpu.memory_space<vmem>>, vector<32x128xbf16>,
    return
  }
  func.func @transform_0(%arg0: i32) -> (i32, i32) {
    %c0_i32 = arith.constant 0 : i32
    %c0_i32_0 = arith.constant 0 : i32
    return %arg0, %c0_i32 : i32, i32
  }
  func.func @transform_1(%arg0: i32) -> (i32, i32) {
    %c0_i32 = arith.constant 0 : i32
    %c0_i32_0 = arith.constant 0 : i32
    %c0_i32_1 = arith.constant 0 : i32
    return %c0_i32, %c0_i32_0 : i32, i32
  }
  func.func @transform_2(%arg0: i32) -> (i32, i32) {
    %c0_i32 = arith.constant 0 : i32
    %c0_i32_0 = arith.constant 0 : i32
    return %arg0, %c0_i32 : i32, i32
  }
}

module attributes {stable_mosaic.version = 11 : i64} {
  func.func @_in_fused_kernel(%arg0: i32, %arg1: memref<1x16x128xbf16, #tpu.memory_space<vmem>>, %arg2: memref<1x1x128xf32, #tpu.memory_space<vmem>>, %arg3: memref<1x1x128xf32, #tpu.memory_space<vmem>>, %arg4: memref<1x16x128xbf16, #tpu.memory_space<vmem>>) attributes {dimension_semantics = [#tpu.dimension_semantics<parallel>], iteration_bounds = array<i64: 2>, scalar_prefetch = 0 : i64, scratch_operands = 0 : i64, tpu.core_type = #tpu.core_type<tc>, window_params = [{transform_indices = @transform_0, window_bounds = array<i64: 1, 16, 128>}, {pipeline_mode = #tpu.pipeline_mode<synchronous>, transform_indices = @transform_1, window_bounds = array<i64: 1, 1, 128>}, {pipeline_mode = #tpu.pipeline_mode<synchronous>, transform_indices = @transform_2, window_bounds = array<i64: 1, 1, 128>}, {transform_indices = @transform_3, window_bounds = array<i64: 1, 16, 128>}]} {
    %c0 = arith.constant 0 : index
    %c0_0 = arith.constant 0 : index
    %c0_1 = arith.constant 0 : index
    %0 = vector.load %arg1[%c0, %c0_0, %c0_1] : memref<1x16x128xbf16, #tpu.memory_space<vmem>>, vector<1x16x128xbf16>
    %1 = arith.extf %0 : vector<1x16x128xbf16> to vector<1x16x128xf32>
    %cst = arith.constant dense<0.000000e+00> : vector<1x128xf32>
    %2 = vector.multi_reduction <add>, %1, %cst [1] : vector<1x16x128xf32> to vector<1x128xf32>
    %3 = vector.shape_cast %2 : vector<1x128xf32> to vector<1x1x128xf32>
    %cst_2 = arith.constant 6.250000e-02 : f32
    %4 = vector.broadcast %cst_2 : f32 to vector<1x1x128xf32>
    %5 = arith.mulf %3, %4 : vector<1x1x128xf32>
    %6 = arith.mulf %1, %1 : vector<1x16x128xf32>
    %cst_3 = arith.constant dense<0.000000e+00> : vector<1x128xf32>
    %7 = vector.multi_reduction <add>, %6, %cst_3 [1] : vector<1x16x128xf32> to vector<1x128xf32>
    %8 = vector.shape_cast %7 : vector<1x128xf32> to vector<1x1x128xf32>
    %cst_4 = arith.constant 6.250000e-02 : f32
    %9 = vector.broadcast %cst_4 : f32 to vector<1x1x128xf32>
    %10 = arith.mulf %8, %9 : vector<1x1x128xf32>
    %11 = arith.mulf %5, %5 : vector<1x1x128xf32>
    %12 = arith.subf %10, %11 : vector<1x1x128xf32>
    %cst_5 = arith.constant 0.000000e+00 : f32
    %13 = vector.broadcast %cst_5 : f32 to vector<1x1x128xf32>
    %14 = arith.maximumf %12, %13 : vector<1x1x128xf32>
    %cst_6 = arith.constant 9.99999974E-6 : f32
    %15 = vector.broadcast %cst_6 : f32 to vector<1x1x128xf32>
    %16 = arith.addf %14, %15 : vector<1x1x128xf32>
    %17 = math.rsqrt %16 : vector<1x1x128xf32>
    %c0_7 = arith.constant 0 : index
    %c0_8 = arith.constant 0 : index
    %c0_9 = arith.constant 0 : index
    %18 = vector.load %arg2[%c0_7, %c0_8, %c0_9] : memref<1x1x128xf32, #tpu.memory_space<vmem>>, vector<1x1x128xf32>
    %19 = arith.mulf %17, %18 : vector<1x1x128xf32>
    %c0_10 = arith.constant 0 : index
    %c0_11 = arith.constant 0 : index
    %c0_12 = arith.constant 0 : index
    %20 = vector.load %arg3[%c0_10, %c0_11, %c0_12] : memref<1x1x128xf32, #tpu.memory_space<vmem>>, vector<1x1x128xf32>
    %21 = arith.mulf %5, %19 : vector<1x1x128xf32>
    %22 = arith.subf %20, %21 : vector<1x1x128xf32>
    %23 = vector.broadcast %19 : vector<1x1x128xf32> to vector<1x16x128xf32>
    %24 = arith.mulf %1, %23 : vector<1x16x128xf32>
    %25 = vector.broadcast %22 : vector<1x1x128xf32> to vector<1x16x128xf32>
    %26 = arith.addf %24, %25 : vector<1x16x128xf32>
    %cst_13 = arith.constant 0.000000e+00 : f32
    %27 = vector.broadcast %cst_13 : f32 to vector<1x16x128xf32>
    %28 = arith.maximumf %26, %27 : vector<1x16x128xf32>
    %29 = arith.truncf %28 : vector<1x16x128xf32> to vector<1x16x128xbf16>
    %c0_14 = arith.constant 0 : index
    %c0_15 = arith.constant 0 : index
    %c0_16 = arith.constant 0 : index
    %30 = vector.load %arg4[%c0_14, %c0_15, %c0_16] : memref<1x16x128xbf16, #tpu.memory_space<vmem>>, vector<1x16x128xbf16>
    tpu.vector_store %arg4[%c0_14, %c0_15, %c0_16], %29 {strides = array<i32>} : memref<1x16x128xbf16, #tpu.memory_space<vmem>>, vector<1x16x128xbf16>,
    return
  }
  func.func @transform_0(%arg0: i32) -> (i32, i32, i32) {
    %c0_i32 = arith.constant 0 : i32
    %c0_i32_0 = arith.constant 0 : i32
    %c0_i32_1 = arith.constant 0 : i32
    return %arg0, %c0_i32, %c0_i32_0 : i32, i32, i32
  }
  func.func @transform_1(%arg0: i32) -> (i32, i32, i32) {
    %c0_i32 = arith.constant 0 : i32
    %c0_i32_0 = arith.constant 0 : i32
    %c0_i32_1 = arith.constant 0 : i32
    %c0_i32_2 = arith.constant 0 : i32
    return %c0_i32, %c0_i32_0, %c0_i32_1 : i32, i32, i32
  }
  func.func @transform_2(%arg0: i32) -> (i32, i32, i32) {
    %c0_i32 = arith.constant 0 : i32
    %c0_i32_0 = arith.constant 0 : i32
    %c0_i32_1 = arith.constant 0 : i32
    %c0_i32_2 = arith.constant 0 : i32
    return %c0_i32, %c0_i32_0, %c0_i32_1 : i32, i32, i32
  }
  func.func @transform_3(%arg0: i32) -> (i32, i32, i32) {
    %c0_i32 = arith.constant 0 : i32
    %c0_i32_0 = arith.constant 0 : i32
    %c0_i32_1 = arith.constant 0 : i32
    return %arg0, %c0_i32, %c0_i32_0 : i32, i32, i32
  }
}

module attributes {stable_mosaic.version = 11 : i64} {
  func.func @_gemm_kernel(%arg0: i32, %arg1: memref<32x1152xbf16, #tpu.memory_space<vmem>>, %arg2: memref<1152x128xbf16, #tpu.memory_space<vmem>>, %arg3: memref<32x128xbf16, #tpu.memory_space<vmem>>) attributes {dimension_semantics = [#tpu.dimension_semantics<parallel>], iteration_bounds = array<i64: 1>, scalar_prefetch = 0 : i64, scratch_operands = 0 : i64, tpu.core_type = #tpu.core_type<tc>, window_params = [{transform_indices = @transform_0, window_bounds = array<i64: 32, 1152>}, {pipeline_mode = #tpu.pipeline_mode<synchronous>, transform_indices = @transform_1, window_bounds = array<i64: 1152, 128>}, {transform_indices = @transform_2, window_bounds = array<i64: 32, 128>}]} {
    %c0 = arith.constant 0 : index
    %c0_0 = arith.constant 0 : index
    %0 = vector.load %arg1[%c0, %c0_0] : memref<32x1152xbf16, #tpu.memory_space<vmem>>, vector<32x1152xbf16>
    %c0_1 = arith.constant 0 : index
    %c0_2 = arith.constant 0 : index
    %1 = vector.load %arg2[%c0_1, %c0_2] : memref<1152x128xbf16, #tpu.memory_space<vmem>>, vector<1152x128xbf16>
    %cst = arith.constant dense<0.000000e+00> : vector<32x128xf32>
    %2 = tpu.matmul %0, %1, %cst {dimension_numbers = #tpu.dot_dimension_numbers<[1], [0], [0], [1], [0, 0, 1, 1], [], []>} : vector<32x1152xbf16>, vector<1152x128xbf16>, vector<32x128xf32> -> vector<32x128xf32>
    %3 = arith.truncf %2 : vector<32x128xf32> to vector<32x128xbf16>
    %c0_3 = arith.constant 0 : index
    %c0_4 = arith.constant 0 : index
    %4 = vector.load %arg3[%c0_3, %c0_4] : memref<32x128xbf16, #tpu.memory_space<vmem>>, vector<32x128xbf16>
    tpu.vector_store %arg3[%c0_3, %c0_4], %3 {strides = array<i32>} : memref<32x128xbf16, #tpu.memory_space<vmem>>, vector<32x128xbf16>,
    return
  }
  func.func @transform_0(%arg0: i32) -> (i32, i32) {
    %c0_i32 = arith.constant 0 : i32
    %c0_i32_0 = arith.constant 0 : i32
    return %arg0, %c0_i32 : i32, i32
  }
  func.func @transform_1(%arg0: i32) -> (i32, i32) {
    %c0_i32 = arith.constant 0 : i32
    %c0_i32_0 = arith.constant 0 : i32
    %c0_i32_1 = arith.constant 0 : i32
    return %c0_i32, %c0_i32_0 : i32, i32
  }
  func.func @transform_2(%arg0: i32) -> (i32, i32) {
    %c0_i32 = arith.constant 0 : i32
    %c0_i32_0 = arith.constant 0 : i32
    return %arg0, %c0_i32 : i32, i32
  }
}

module attributes {stable_mosaic.version = 11 : i64} {
  func.func @_in_fused_kernel(%arg0: i32, %arg1: memref<1x16x128xbf16, #tpu.memory_space<vmem>>, %arg2: memref<1x1x128xf32, #tpu.memory_space<vmem>>, %arg3: memref<1x1x128xf32, #tpu.memory_space<vmem>>, %arg4: memref<1x16x128xbf16, #tpu.memory_space<vmem>>, %arg5: memref<1x16x128xbf16, #tpu.memory_space<vmem>>) attributes {dimension_semantics = [#tpu.dimension_semantics<parallel>], iteration_bounds = array<i64: 2>, scalar_prefetch = 0 : i64, scratch_operands = 0 : i64, tpu.core_type = #tpu.core_type<tc>, window_params = [{transform_indices = @transform_0, window_bounds = array<i64: 1, 16, 128>}, {pipeline_mode = #tpu.pipeline_mode<synchronous>, transform_indices = @transform_1, window_bounds = array<i64: 1, 1, 128>}, {pipeline_mode = #tpu.pipeline_mode<synchronous>, transform_indices = @transform_2, window_bounds = array<i64: 1, 1, 128>}, {transform_indices = @transform_3, window_bounds = array<i64: 1, 16, 128>}, {transform_indices = @transform_4, window_bounds = array<i64: 1, 16, 128>}]} {
    %c0 = arith.constant 0 : index
    %c0_0 = arith.constant 0 : index
    %c0_1 = arith.constant 0 : index
    %0 = vector.load %arg1[%c0, %c0_0, %c0_1] : memref<1x16x128xbf16, #tpu.memory_space<vmem>>, vector<1x16x128xbf16>
    %1 = arith.extf %0 : vector<1x16x128xbf16> to vector<1x16x128xf32>
    %cst = arith.constant dense<0.000000e+00> : vector<1x128xf32>
    %2 = vector.multi_reduction <add>, %1, %cst [1] : vector<1x16x128xf32> to vector<1x128xf32>
    %3 = vector.shape_cast %2 : vector<1x128xf32> to vector<1x1x128xf32>
    %cst_2 = arith.constant 6.250000e-02 : f32
    %4 = vector.broadcast %cst_2 : f32 to vector<1x1x128xf32>
    %5 = arith.mulf %3, %4 : vector<1x1x128xf32>
    %6 = arith.mulf %1, %1 : vector<1x16x128xf32>
    %cst_3 = arith.constant dense<0.000000e+00> : vector<1x128xf32>
    %7 = vector.multi_reduction <add>, %6, %cst_3 [1] : vector<1x16x128xf32> to vector<1x128xf32>
    %8 = vector.shape_cast %7 : vector<1x128xf32> to vector<1x1x128xf32>
    %cst_4 = arith.constant 6.250000e-02 : f32
    %9 = vector.broadcast %cst_4 : f32 to vector<1x1x128xf32>
    %10 = arith.mulf %8, %9 : vector<1x1x128xf32>
    %11 = arith.mulf %5, %5 : vector<1x1x128xf32>
    %12 = arith.subf %10, %11 : vector<1x1x128xf32>
    %cst_5 = arith.constant 0.000000e+00 : f32
    %13 = vector.broadcast %cst_5 : f32 to vector<1x1x128xf32>
    %14 = arith.maximumf %12, %13 : vector<1x1x128xf32>
    %cst_6 = arith.constant 9.99999974E-6 : f32
    %15 = vector.broadcast %cst_6 : f32 to vector<1x1x128xf32>
    %16 = arith.addf %14, %15 : vector<1x1x128xf32>
    %17 = math.rsqrt %16 : vector<1x1x128xf32>
    %c0_7 = arith.constant 0 : index
    %c0_8 = arith.constant 0 : index
    %c0_9 = arith.constant 0 : index
    %18 = vector.load %arg2[%c0_7, %c0_8, %c0_9] : memref<1x1x128xf32, #tpu.memory_space<vmem>>, vector<1x1x128xf32>
    %19 = arith.mulf %17, %18 : vector<1x1x128xf32>
    %c0_10 = arith.constant 0 : index
    %c0_11 = arith.constant 0 : index
    %c0_12 = arith.constant 0 : index
    %20 = vector.load %arg3[%c0_10, %c0_11, %c0_12] : memref<1x1x128xf32, #tpu.memory_space<vmem>>, vector<1x1x128xf32>
    %21 = arith.mulf %5, %19 : vector<1x1x128xf32>
    %22 = arith.subf %20, %21 : vector<1x1x128xf32>
    %23 = vector.broadcast %19 : vector<1x1x128xf32> to vector<1x16x128xf32>
    %24 = arith.mulf %1, %23 : vector<1x16x128xf32>
    %25 = vector.broadcast %22 : vector<1x1x128xf32> to vector<1x16x128xf32>
    %26 = arith.addf %24, %25 : vector<1x16x128xf32>
    %c0_13 = arith.constant 0 : index
    %c0_14 = arith.constant 0 : index
    %c0_15 = arith.constant 0 : index
    %27 = vector.load %arg4[%c0_13, %c0_14, %c0_15] : memref<1x16x128xbf16, #tpu.memory_space<vmem>>, vector<1x16x128xbf16>
    %28 = arith.extf %27 : vector<1x16x128xbf16> to vector<1x16x128xf32>
    %29 = arith.addf %26, %28 : vector<1x16x128xf32>
    %30 = arith.truncf %29 : vector<1x16x128xf32> to vector<1x16x128xbf16>
    %c0_16 = arith.constant 0 : index
    %c0_17 = arith.constant 0 : index
    %c0_18 = arith.constant 0 : index
    %31 = vector.load %arg5[%c0_16, %c0_17, %c0_18] : memref<1x16x128xbf16, #tpu.memory_space<vmem>>, vector<1x16x128xbf16>
    tpu.vector_store %arg5[%c0_16, %c0_17, %c0_18], %30 {strides = array<i32>} : memref<1x16x128xbf16, #tpu.memory_space<vmem>>, vector<1x16x128xbf16>,
    return
  }
  func.func @transform_0(%arg0: i32) -> (i32, i32, i32) {
    %c0_i32 = arith.constant 0 : i32
    %c0_i32_0 = arith.constant 0 : i32
    %c0_i32_1 = arith.constant 0 : i32
    return %arg0, %c0_i32, %c0_i32_0 : i32, i32, i32
  }
  func.func @transform_1(%arg0: i32) -> (i32, i32, i32) {
    %c0_i32 = arith.constant 0 : i32
    %c0_i32_0 = arith.constant 0 : i32
    %c0_i32_1 = arith.constant 0 : i32
    %c0_i32_2 = arith.constant 0 : i32
    return %c0_i32, %c0_i32_0, %c0_i32_1 : i32, i32, i32
  }
  func.func @transform_2(%arg0: i32) -> (i32, i32, i32) {
    %c0_i32 = arith.constant 0 : i32
    %c0_i32_0 = arith.constant 0 : i32
    %c0_i32_1 = arith.constant 0 : i32
    %c0_i32_2 = arith.constant 0 : i32
    return %c0_i32, %c0_i32_0, %c0_i32_1 : i32, i32, i32
  }
  func.func @transform_3(%arg0: i32) -> (i32, i32, i32) {
    %c0_i32 = arith.constant 0 : i32
    %c0_i32_0 = arith.constant 0 : i32
    %c0_i32_1 = arith.constant 0 : i32
    return %arg0, %c0_i32, %c0_i32_0 : i32, i32, i32
  }
  func.func @transform_4(%arg0: i32) -> (i32, i32, i32) {
    %c0_i32 = arith.constant 0 : i32
    %c0_i32_0 = arith.constant 0 : i32
    %c0_i32_1 = arith.constant 0 : i32
    return %arg0, %c0_i32, %c0_i32_0 : i32, i32, i32
  }
}

module attributes {stable_mosaic.version = 11 : i64} {
  func.func @_gemm_kernel(%arg0: i32, %arg1: memref<32x512xbf16, #tpu.memory_space<vmem>>, %arg2: memref<512x256xbf16, #tpu.memory_space<vmem>>, %arg3: memref<32x256xbf16, #tpu.memory_space<vmem>>) attributes {dimension_semantics = [#tpu.dimension_semantics<parallel>], iteration_bounds = array<i64: 1>, scalar_prefetch = 0 : i64, scratch_operands = 0 : i64, tpu.core_type = #tpu.core_type<tc>, window_params = [{transform_indices = @transform_0, window_bounds = array<i64: 32, 512>}, {pipeline_mode = #tpu.pipeline_mode<synchronous>, transform_indices = @transform_1, window_bounds = array<i64: 512, 256>}, {transform_indices = @transform_2, window_bounds = array<i64: 32, 256>}]} {
    %c0 = arith.constant 0 : index
    %c0_0 = arith.constant 0 : index
    %0 = vector.load %arg1[%c0, %c0_0] : memref<32x512xbf16, #tpu.memory_space<vmem>>, vector<32x512xbf16>
    %c0_1 = arith.constant 0 : index
    %c0_2 = arith.constant 0 : index
    %1 = vector.load %arg2[%c0_1, %c0_2] : memref<512x256xbf16, #tpu.memory_space<vmem>>, vector<512x256xbf16>
    %cst = arith.constant dense<0.000000e+00> : vector<32x256xf32>
    %2 = tpu.matmul %0, %1, %cst {dimension_numbers = #tpu.dot_dimension_numbers<[1], [0], [0], [1], [0, 0, 1, 1], [], []>} : vector<32x512xbf16>, vector<512x256xbf16>, vector<32x256xf32> -> vector<32x256xf32>
    %3 = arith.truncf %2 : vector<32x256xf32> to vector<32x256xbf16>
    %c0_3 = arith.constant 0 : index
    %c0_4 = arith.constant 0 : index
    %4 = vector.load %arg3[%c0_3, %c0_4] : memref<32x256xbf16, #tpu.memory_space<vmem>>, vector<32x256xbf16>
    tpu.vector_store %arg3[%c0_3, %c0_4], %3 {strides = array<i32>} : memref<32x256xbf16, #tpu.memory_space<vmem>>, vector<32x256xbf16>,
    return
  }
  func.func @transform_0(%arg0: i32) -> (i32, i32) {
    %c0_i32 = arith.constant 0 : i32
    %c0_i32_0 = arith.constant 0 : i32
    return %arg0, %c0_i32 : i32, i32
  }
  func.func @transform_1(%arg0: i32) -> (i32, i32) {
    %c0_i32 = arith.constant 0 : i32
    %c0_i32_0 = arith.constant 0 : i32
    %c0_i32_1 = arith.constant 0 : i32
    return %c0_i32, %c0_i32_0 : i32, i32
  }
  func.func @transform_2(%arg0: i32) -> (i32, i32) {
    %c0_i32 = arith.constant 0 : i32
    %c0_i32_0 = arith.constant 0 : i32
    return %arg0, %c0_i32 : i32, i32
  }
}

module attributes {stable_mosaic.version = 11 : i64} {
  func.func @_in_stats_kernel(%arg0: i32, %arg1: i32, %arg2: memref<1x16x256xbf16, #tpu.memory_space<vmem>>, %arg3: memref<1x1x256xf32, #tpu.memory_space<vmem>>, %arg4: memref<1x1x256xf32, #tpu.memory_space<vmem>>) attributes {dimension_semantics = [#tpu.dimension_semantics<parallel>, #tpu.dimension_semantics<arbitrary>], iteration_bounds = array<i64: 2, 1>, scalar_prefetch = 0 : i64, scratch_operands = 0 : i64, tpu.core_type = #tpu.core_type<tc>, window_params = [{transform_indices = @transform_0, window_bounds = array<i64: 1, 16, 256>}, {transform_indices = @transform_1, window_bounds = array<i64: 1, 1, 256>}, {transform_indices = @transform_2, window_bounds = array<i64: 1, 1, 256>}]} {
    %c0_i32 = arith.constant 0 : i32
    %0 = arith.cmpi eq, %arg1, %c0_i32 : i32
    %1 = arith.extui %0 : i1 to i32
    %c0_i32_0 = arith.constant 0 : i32
    %2 = arith.cmpi ne, %1, %c0_i32_0 : i32
    scf.if %2 {
      %cst_16 = arith.constant 0.000000e+00 : f32
      %16 = vector.broadcast %cst_16 : f32 to vector<1x1x256xf32>
      %c0_17 = arith.constant 0 : index
      %c0_18 = arith.constant 0 : index
      %c0_19 = arith.constant 0 : index
      %17 = vector.load %arg3[%c0_17, %c0_18, %c0_19] : memref<1x1x256xf32, #tpu.memory_space<vmem>>, vector<1x1x256xf32>
      tpu.vector_store %arg3[%c0_17, %c0_18, %c0_19], %16 {strides = array<i32>} : memref<1x1x256xf32, #tpu.memory_space<vmem>>, vector<1x1x256xf32>,
      %cst_20 = arith.constant 0.000000e+00 : f32
      %18 = vector.broadcast %cst_20 : f32 to vector<1x1x256xf32>
      %c0_21 = arith.constant 0 : index
      %c0_22 = arith.constant 0 : index
      %c0_23 = arith.constant 0 : index
      %19 = vector.load %arg4[%c0_21, %c0_22, %c0_23] : memref<1x1x256xf32, #tpu.memory_space<vmem>>, vector<1x1x256xf32>
      tpu.vector_store %arg4[%c0_21, %c0_22, %c0_23], %18 {strides = array<i32>} : memref<1x1x256xf32, #tpu.memory_space<vmem>>, vector<1x1x256xf32>,
    } else {
    }
    %c0 = arith.constant 0 : index
    %c0_1 = arith.constant 0 : index
    %c0_2 = arith.constant 0 : index
    %3 = vector.load %arg2[%c0, %c0_1, %c0_2] : memref<1x16x256xbf16, #tpu.memory_space<vmem>>, vector<1x16x256xbf16>
    %4 = arith.extf %3 : vector<1x16x256xbf16> to vector<1x16x256xf32>
    %c0_3 = arith.constant 0 : index
    %c0_4 = arith.constant 0 : index
    %c0_5 = arith.constant 0 : index
    %5 = vector.load %arg3[%c0_3, %c0_4, %c0_5] : memref<1x1x256xf32, #tpu.memory_space<vmem>>, vector<1x1x256xf32>
    %cst = arith.constant dense<0.000000e+00> : vector<1x256xf32>
    %6 = vector.multi_reduction <add>, %4, %cst [1] : vector<1x16x256xf32> to vector<1x256xf32>
    %7 = vector.shape_cast %6 : vector<1x256xf32> to vector<1x1x256xf32>
    %8 = arith.addf %5, %7 : vector<1x1x256xf32>
    %c0_6 = arith.constant 0 : index
    %c0_7 = arith.constant 0 : index
    %c0_8 = arith.constant 0 : index
    %9 = vector.load %arg3[%c0_6, %c0_7, %c0_8] : memref<1x1x256xf32, #tpu.memory_space<vmem>>, vector<1x1x256xf32>
    tpu.vector_store %arg3[%c0_6, %c0_7, %c0_8], %8 {strides = array<i32>} : memref<1x1x256xf32, #tpu.memory_space<vmem>>, vector<1x1x256xf32>,
    %c0_9 = arith.constant 0 : index
    %c0_10 = arith.constant 0 : index
    %c0_11 = arith.constant 0 : index
    %10 = vector.load %arg4[%c0_9, %c0_10, %c0_11] : memref<1x1x256xf32, #tpu.memory_space<vmem>>, vector<1x1x256xf32>
    %11 = arith.mulf %4, %4 : vector<1x16x256xf32>
    %cst_12 = arith.constant dense<0.000000e+00> : vector<1x256xf32>
    %12 = vector.multi_reduction <add>, %11, %cst_12 [1] : vector<1x16x256xf32> to vector<1x256xf32>
    %13 = vector.shape_cast %12 : vector<1x256xf32> to vector<1x1x256xf32>
    %14 = arith.addf %10, %13 : vector<1x1x256xf32>
    %c0_13 = arith.constant 0 : index
    %c0_14 = arith.constant 0 : index
    %c0_15 = arith.constant 0 : index
    %15 = vector.load %arg4[%c0_13, %c0_14, %c0_15] : memref<1x1x256xf32, #tpu.memory_space<vmem>>, vector<1x1x256xf32>
    tpu.vector_store %arg4[%c0_13, %c0_14, %c0_15], %14 {strides = array<i32>} : memref<1x1x256xf32, #tpu.memory_space<vmem>>, vector<1x1x256xf32>,
    return
  }
  func.func @transform_0(%arg0: i32, %arg1: i32) -> (i32, i32, i32) {
    %c0_i32 = arith.constant 0 : i32
    %c0_i32_0 = arith.constant 0 : i32
    return %arg0, %arg1, %c0_i32 : i32, i32, i32
  }
  func.func @transform_1(%arg0: i32, %arg1: i32) -> (i32, i32, i32) {
    %c0_i32 = arith.constant 0 : i32
    %c0_i32_0 = arith.constant 0 : i32
    %c0_i32_1 = arith.constant 0 : i32
    return %arg0, %c0_i32, %c0_i32_0 : i32, i32, i32
  }
  func.func @transform_2(%arg0: i32, %arg1: i32) -> (i32, i32, i32) {
    %c0_i32 = arith.constant 0 : i32
    %c0_i32_0 = arith.constant 0 : i32
    %c0_i32_1 = arith.constant 0 : i32
    return %arg0, %c0_i32, %c0_i32_0 : i32, i32, i32
  }
}

module attributes {stable_mosaic.version = 11 : i64} {
  func.func @_in_apply_kernel(%arg0: i32, %arg1: i32, %arg2: memref<1x16x256xbf16, #tpu.memory_space<vmem>>, %arg3: memref<1x1x256xf32, #tpu.memory_space<vmem>>, %arg4: memref<1x1x256xf32, #tpu.memory_space<vmem>>, %arg5: memref<1x16x256xbf16, #tpu.memory_space<vmem>>) attributes {dimension_semantics = [#tpu.dimension_semantics<parallel>, #tpu.dimension_semantics<parallel>], iteration_bounds = array<i64: 2, 1>, scalar_prefetch = 0 : i64, scratch_operands = 0 : i64, tpu.core_type = #tpu.core_type<tc>, window_params = [{transform_indices = @transform_0, window_bounds = array<i64: 1, 16, 256>}, {transform_indices = @transform_1, window_bounds = array<i64: 1, 1, 256>}, {transform_indices = @transform_2, window_bounds = array<i64: 1, 1, 256>}, {transform_indices = @transform_3, window_bounds = array<i64: 1, 16, 256>}]} {
    %c0 = arith.constant 0 : index
    %c0_0 = arith.constant 0 : index
    %c0_1 = arith.constant 0 : index
    %0 = vector.load %arg2[%c0, %c0_0, %c0_1] : memref<1x16x256xbf16, #tpu.memory_space<vmem>>, vector<1x16x256xbf16>
    %1 = arith.extf %0 : vector<1x16x256xbf16> to vector<1x16x256xf32>
    %c0_2 = arith.constant 0 : index
    %c0_3 = arith.constant 0 : index
    %c0_4 = arith.constant 0 : index
    %2 = vector.load %arg3[%c0_2, %c0_3, %c0_4] : memref<1x1x256xf32, #tpu.memory_space<vmem>>, vector<1x1x256xf32>
    %3 = vector.broadcast %2 : vector<1x1x256xf32> to vector<1x16x256xf32>
    %4 = arith.mulf %1, %3 : vector<1x16x256xf32>
    %c0_5 = arith.constant 0 : index
    %c0_6 = arith.constant 0 : index
    %c0_7 = arith.constant 0 : index
    %5 = vector.load %arg4[%c0_5, %c0_6, %c0_7] : memref<1x1x256xf32, #tpu.memory_space<vmem>>, vector<1x1x256xf32>
    %6 = vector.broadcast %5 : vector<1x1x256xf32> to vector<1x16x256xf32>
    %7 = arith.addf %4, %6 : vector<1x16x256xf32>
    %cst = arith.constant 0.000000e+00 : f32
    %8 = vector.broadcast %cst : f32 to vector<1x16x256xf32>
    %9 = arith.maximumf %7, %8 : vector<1x16x256xf32>
    %10 = arith.truncf %9 : vector<1x16x256xf32> to vector<1x16x256xbf16>
    %c0_8 = arith.constant 0 : index
    %c0_9 = arith.constant 0 : index
    %c0_10 = arith.constant 0 : index
    %11 = vector.load %arg5[%c0_8, %c0_9, %c0_10] : memref<1x16x256xbf16, #tpu.memory_space<vmem>>, vector<1x16x256xbf16>
    tpu.vector_store %arg5[%c0_8, %c0_9, %c0_10], %10 {strides = array<i32>} : memref<1x16x256xbf16, #tpu.memory_space<vmem>>, vector<1x16x256xbf16>,
    return
  }
  func.func @transform_0(%arg0: i32, %arg1: i32) -> (i32, i32, i32) {
    %c0_i32 = arith.constant 0 : i32
    %c0_i32_0 = arith.constant 0 : i32
    return %arg0, %arg1, %c0_i32 : i32, i32, i32
  }
  func.func @transform_1(%arg0: i32, %arg1: i32) -> (i32, i32, i32) {
    %c0_i32 = arith.constant 0 : i32
    %c0_i32_0 = arith.constant 0 : i32
    %c0_i32_1 = arith.constant 0 : i32
    return %arg0, %c0_i32, %c0_i32_0 : i32, i32, i32
  }
  func.func @transform_2(%arg0: i32, %arg1: i32) -> (i32, i32, i32) {
    %c0_i32 = arith.constant 0 : i32
    %c0_i32_0 = arith.constant 0 : i32
    %c0_i32_1 = arith.constant 0 : i32
    return %arg0, %c0_i32, %c0_i32_0 : i32, i32, i32
  }
  func.func @transform_3(%arg0: i32, %arg1: i32) -> (i32, i32, i32) {
    %c0_i32 = arith.constant 0 : i32
    %c0_i32_0 = arith.constant 0 : i32
    return %arg0, %arg1, %c0_i32 : i32, i32, i32
  }
}

module attributes {stable_mosaic.version = 11 : i64} {
  func.func @_gemm_kernel(%arg0: i32, %arg1: memref<128x256xbf16, #tpu.memory_space<vmem>>, %arg2: memref<256x128xbf16, #tpu.memory_space<vmem>>, %arg3: memref<128x128xbf16, #tpu.memory_space<vmem>>) attributes {dimension_semantics = [#tpu.dimension_semantics<parallel>], iteration_bounds = array<i64: 1>, scalar_prefetch = 0 : i64, scratch_operands = 0 : i64, tpu.core_type = #tpu.core_type<tc>, window_params = [{transform_indices = @transform_0, window_bounds = array<i64: 128, 256>}, {pipeline_mode = #tpu.pipeline_mode<synchronous>, transform_indices = @transform_1, window_bounds = array<i64: 256, 128>}, {transform_indices = @transform_2, window_bounds = array<i64: 128, 128>}]} {
    %c0 = arith.constant 0 : index
    %c0_0 = arith.constant 0 : index
    %0 = vector.load %arg1[%c0, %c0_0] : memref<128x256xbf16, #tpu.memory_space<vmem>>, vector<128x256xbf16>
    %c0_1 = arith.constant 0 : index
    %c0_2 = arith.constant 0 : index
    %1 = vector.load %arg2[%c0_1, %c0_2] : memref<256x128xbf16, #tpu.memory_space<vmem>>, vector<256x128xbf16>
    %cst = arith.constant dense<0.000000e+00> : vector<128x128xf32>
    %2 = tpu.matmul %0, %1, %cst {dimension_numbers = #tpu.dot_dimension_numbers<[1], [0], [0], [1], [0, 0, 1, 1], [], []>} : vector<128x256xbf16>, vector<256x128xbf16>, vector<128x128xf32> -> vector<128x128xf32>
    %3 = arith.truncf %2 : vector<128x128xf32> to vector<128x128xbf16>
    %c0_3 = arith.constant 0 : index
    %c0_4 = arith.constant 0 : index
    %4 = vector.load %arg3[%c0_3, %c0_4] : memref<128x128xbf16, #tpu.memory_space<vmem>>, vector<128x128xbf16>
    tpu.vector_store %arg3[%c0_3, %c0_4], %3 {strides = array<i32>} : memref<128x128xbf16, #tpu.memory_space<vmem>>, vector<128x128xbf16>,
    return
  }
  func.func @transform_0(%arg0: i32) -> (i32, i32) {
    %c0_i32 = arith.constant 0 : i32
    %c0_i32_0 = arith.constant 0 : i32
    return %arg0, %c0_i32 : i32, i32
  }
  func.func @transform_1(%arg0: i32) -> (i32, i32) {
    %c0_i32 = arith.constant 0 : i32
    %c0_i32_0 = arith.constant 0 : i32
    %c0_i32_1 = arith.constant 0 : i32
    return %c0_i32, %c0_i32_0 : i32, i32
  }
  func.func @transform_2(%arg0: i32) -> (i32, i32) {
    %c0_i32 = arith.constant 0 : i32
    %c0_i32_0 = arith.constant 0 : i32
    return %arg0, %c0_i32 : i32, i32
  }
}

module attributes {stable_mosaic.version = 11 : i64} {
  func.func @_gemm_kernel(%arg0: i32, %arg1: memref<512x2688xbf16, #tpu.memory_space<vmem>>, %arg2: memref<2688x3xbf16, #tpu.memory_space<vmem>>, %arg3: memref<1x3xf32, #tpu.memory_space<vmem>>, %arg4: memref<512x3xf32, #tpu.memory_space<vmem>>) attributes {dimension_semantics = [#tpu.dimension_semantics<parallel>], iteration_bounds = array<i64: 1>, scalar_prefetch = 0 : i64, scratch_operands = 0 : i64, tpu.core_type = #tpu.core_type<tc>, window_params = [{transform_indices = @transform_0, window_bounds = array<i64: 512, 2688>}, {pipeline_mode = #tpu.pipeline_mode<synchronous>, transform_indices = @transform_1, window_bounds = array<i64: 2688, 3>}, {pipeline_mode = #tpu.pipeline_mode<synchronous>, transform_indices = @transform_2, window_bounds = array<i64: 1, 3>}, {transform_indices = @transform_3, window_bounds = array<i64: 512, 3>}]} {
    %c0 = arith.constant 0 : index
    %c0_0 = arith.constant 0 : index
    %0 = vector.load %arg1[%c0, %c0_0] : memref<512x2688xbf16, #tpu.memory_space<vmem>>, vector<512x2688xbf16>
    %c0_1 = arith.constant 0 : index
    %c0_2 = arith.constant 0 : index
    %1 = vector.load %arg2[%c0_1, %c0_2] : memref<2688x3xbf16, #tpu.memory_space<vmem>>, vector<2688x3xbf16>
    %cst = arith.constant dense<0.000000e+00> : vector<512x3xf32>
    %2 = tpu.matmul %0, %1, %cst {dimension_numbers = #tpu.dot_dimension_numbers<[1], [0], [0], [1], [0, 0, 1, 1], [], []>} : vector<512x2688xbf16>, vector<2688x3xbf16>, vector<512x3xf32> -> vector<512x3xf32>
    %c0_3 = arith.constant 0 : index
    %c0_4 = arith.constant 0 : index
    %3 = vector.load %arg3[%c0_3, %c0_4] : memref<1x3xf32, #tpu.memory_space<vmem>>, vector<1x3xf32>
    %4 = vector.broadcast %3 : vector<1x3xf32> to vector<512x3xf32>
    %5 = arith.addf %2, %4 : vector<512x3xf32>
    %c0_5 = arith.constant 0 : index
    %c0_6 = arith.constant 0 : index
    %6 = vector.load %arg4[%c0_5, %c0_6] : memref<512x3xf32, #tpu.memory_space<vmem>>, vector<512x3xf32>
    tpu.vector_store %arg4[%c0_5, %c0_6], %5 {strides = array<i32>} : memref<512x3xf32, #tpu.memory_space<vmem>>, vector<512x3xf32>,
    return
  }
  func.func @transform_0(%arg0: i32) -> (i32, i32) {
    %c0_i32 = arith.constant 0 : i32
    %c0_i32_0 = arith.constant 0 : i32
    return %arg0, %c0_i32 : i32, i32
  }
  func.func @transform_1(%arg0: i32) -> (i32, i32) {
    %c0_i32 = arith.constant 0 : i32
    %c0_i32_0 = arith.constant 0 : i32
    %c0_i32_1 = arith.constant 0 : i32
    return %c0_i32, %c0_i32_0 : i32, i32
  }
  func.func @transform_2(%arg0: i32) -> (i32, i32) {
    %c0_i32 = arith.constant 0 : i32
    %c0_i32_0 = arith.constant 0 : i32
    %c0_i32_1 = arith.constant 0 : i32
    return %c0_i32, %c0_i32_0 : i32, i32
  }
  func.func @transform_3(%arg0: i32) -> (i32, i32) {
    %c0_i32 = arith.constant 0 : i32
    %c0_i32_0 = arith.constant 0 : i32
    return %arg0, %c0_i32 : i32, i32
  }
}

</mosaic_0001>

<bundles_post_ra>
// kernel: transformer_network.36
= control target key start
LH: loop header
LB: loop body
LE: loop exit
PB: predicated region body
PF: predicated region fallthrough
CT: control target
= control target key end

     0   :  { %s419_s9 = smov 0   ;;  %s421_s10 = smov 0   ;;  %s465_s0 = inlined_call_operand.vmem [shape: bf16[2,64,128], index: 0, kind: input, shape index: {}]   ;;  %s466_s1 = inlined_call_operand.vmem [shape: f32[2,1,128], index: 1, kind: output, shape index: {0}]   ;;  %s467_s2 = inlined_call_operand.vmem [shape: f32[2,1,128], index: 2, kind: output, shape index: {1}]  }
   0x1   :  { %s423_s11 = smov 0  }
   0x2 LB: > { %s25_s12 = sadd.s32 1, %s397_s10  ;;  %p329_p0 = scmp.ge.s32.totalorder %s401_s11, 1  ;;  %s401_s11 = sphi %s423_s11, %s13_s11   ;;  %s397_s10 = sphi %s421_s10, %s469_s10   ;;  %s393_s9 = sphi %s419_s9, %s468_s9  }
   0x3   : > { %p27_p1 = scmp.ge.s32.totalorder %s25_s12, 2  ;;  %p134_p2 = scmp.lt.s32.totalorder %s401_s11, 3 }
   0x5   : > { %s471_s12 = smov (%p27_p1, %s25_s12), 0  ;;  %p135_p3 = pnand %p329_p0, %p134_p2 }
   0x6   : > { %p162_p4 = scmp.lt.s32.totalorder (!%p135_p3), %s393_s9, 1 }
   0x7   : > { %138 = sbr.rel (%p135_p3) target bundleno = 49 (0x31), region = 24 }
   0xc   : > { %s473_s9 = smov (!%p162_p4, %s393_s9), 1  ;;  %v403_v0 = vmov 0.0  }
   0xd   : > { %s334_s13 = sshll.u32 %s473_s9, 5  ;;  %s440_s16 = scalar_lea.vmem %s466_s1, %s473_s9 }
   0xe   : > { %s169_s19 = scalar_lea.vmem %s465_s0, %s334_s13  ;;  %181 = vst [vmem:[%s440_s16] sm:$0x1] %v403_v0  ;;  %s449_s22 = scalar_lea.vmem %s467_s2, %s473_s9 }
   0xf   : > { %v336_v1 = vld [vmem:[%s169_s19] sm:$0xff]   ;;  %v351_v2 = vld [vmem:[%s169_s19 + $0x8] sm:$0xff]   ;;  %v352_v3 = vld [vmem:[%s169_s19 + $0x10] sm:$0xff]   ;;  %182 = vst [vmem:[%s449_s22] sm:$0x1] %v403_v0 }
  0x10   : > { %v337_v4 = vunpack.c.l.bf16 %v336_v1  ;;  %v338_v5 = vunpack.c.h.bf16 %v336_v1  ;;  %v341_v6 = vunpack.c.l.bf16 %v351_v2  ;;  %v342_v7 = vunpack.c.h.bf16 %v351_v2  ;;  %v353_v13 = vld [vmem:[%s169_s19 + $0x18] sm:$0xff]  }
  0x11   : > { %v345_v8 = vunpack.c.l.bf16 %v352_v3  ;;  %v346_v14 = vunpack.c.h.bf16 %v352_v3  ;;  %v349_v18 = vunpack.c.l.bf16 %v353_v13  ;;  %v350_v25 = vunpack.c.h.bf16 %v353_v13 }
  0x12   : > { %v200_v9 = vadd.f32 %v338_v5, %v337_v4  ;;  %v216_v10 = vmul.f32 %v337_v4, %v337_v4  ;;  %v217_v11 = vmul.f32 %v338_v5, %v338_v5  ;;  %v218_v12 = vmul.f32 %v341_v6, %v341_v6 }
  0x13   : > { %v219_v16 = vmul.f32 %v342_v7, %v342_v7  ;;  %v220_v20 = vmul.f32 %v345_v8, %v345_v8  ;;  %v221_v23 = vmul.f32 %v346_v14, %v346_v14  ;;  %v222_v27 = vmul.f32 %v349_v18, %v349_v18 }
  0x14   : > { %v201_v15 = vadd.f32 %v341_v6, %v200_v9  ;;  %v224_v17 = vadd.f32 %v217_v11, %v216_v10  ;;  %v223_v30 = vmul.f32 %v350_v25, %v350_v25 }
  0x15   : > { %v199_v44 = vld [vmem:[%s440_s16] sm:$0x1] }
  0x16   : > { %v202_v19 = vadd.f32 %v342_v7, %v201_v15  ;;  %v225_v21 = vadd.f32 %v224_v17, %v218_v12  ;;  %v215_v47 = vld [vmem:[%s449_s22] sm:$0x1] }
  0x18   : > { %v203_v22 = vadd.f32 %v345_v8, %v202_v19  ;;  %v226_v24 = vadd.f32 %v225_v21, %v219_v16 }
  0x1a   : > { %v204_v26 = vadd.f32 %v346_v14, %v203_v22  ;;  %v227_v28 = vadd.f32 %v226_v24, %v220_v20 }
  0x1c   : > { %v205_v29 = vadd.f32 %v349_v18, %v204_v26  ;;  %v228_v31 = vadd.f32 %v227_v28, %v221_v23 }
  0x1e   : > { %v206_v32 = vadd.f32 %v350_v25, %v205_v29  ;;  %v229_v33 = vadd.f32 %v228_v31, %v222_v27 }
  0x20   : > { %v207_v34 = vrot.slane %v206_v32, 4  ;;  %v230_v35 = vadd.f32 %v229_v33, %v223_v30 }
  0x22   : > { %v208_v36 = vadd.f32 %v207_v34, %v206_v32  ;;  %v231_v37 = vrot.slane %v230_v35, 4 }
  0x24   : > { %v209_v38 = vrot.slane %v208_v36, 2  ;;  %v232_v39 = vadd.f32 %v231_v37, %v230_v35 }
  0x26   : > { %v210_v40 = vadd.f32 %v209_v38, %v208_v36  ;;  %v233_v41 = vrot.slane %v232_v39, 2 }
  0x28   : > { %v211_v42 = vrot.slane %v210_v40, 1  ;;  %v234_v43 = vadd.f32 %v233_v41, %v232_v39 }
  0x2a   : > { %v212_v45 = vadd.f32 %v211_v42, %v210_v40  ;;  %v235_v46 = vrot.slane %v234_v43, 1 }
  0x2c   : > { %v213_v48 = vadd.f32 %v212_v45, %v199_v44  ;;  %v236_v49 = vadd.f32 %v235_v46, %v234_v43 }
  0x2e   : > { %214 = vst [vmem:[%s440_s16] sm:$0x1] %v213_v48  ;;  %v237_v50 = vadd.f32 %v236_v49, %v215_v47 }
  0x30   : > { %238 = vst [vmem:[%s449_s22] sm:$0x1] %v237_v50 }
  0x31 PF: > { %s13_s11 = sadd.s32 1, %s401_s11   ;;  %s468_s9 = smov %s397_s10 }
  0x32   : > { %p10_p5 = scmp.ge.s32.totalorder %s13_s11, 4   ;;  %s469_s10 = smov %s471_s12 }
  0x34   :  { %12 = sbr.rel (!%p10_p5) target bundleno = 2 (0x2), region = 70 }

// kernel: transformer_network.37
= control target key start
LH: loop header
LB: loop body
LE: loop exit
PB: predicated region body
PF: predicated region fallthrough
CT: control target
= control target key end

     0   :  { %s578_s12 = smov 0   ;;  %s580_s13 = smov 0   ;;  %s626_s0 = inlined_call_operand.vmem [shape: bf16[2,64,128], index: 0, kind: input, shape index: {}]   ;;  %s627_s1 = inlined_call_operand.vmem [shape: f32[2,1,128], index: 1, kind: input, shape index: {}]   ;;  %s628_s2 = inlined_call_operand.vmem [shape: f32[2,1,128], index: 2, kind: input, shape index: {}]   ;;  %s629_s3 = inlined_call_operand.vmem [shape: bf16[2,64,128], index: 3, kind: output, shape index: {}]  }
   0x1   :  { %s582_s14 = smov 0  }
   0x2 LB: > { %s25_s15 = sadd.s32 1, %s552_s13  ;;  %p441_p0 = scmp.ge.s32.totalorder %s556_s14, 1  ;;  %s556_s14 = sphi %s582_s14, %s13_s14   ;;  %s552_s13 = sphi %s580_s13, %s631_s13   ;;  %s548_s12 = sphi %s578_s12, %s630_s12  }
   0x3   : > { %p27_p1 = scmp.ge.s32.totalorder %s25_s15, 2  ;;  %p174_p2 = scmp.lt.s32.totalorder %s556_s14, 3 }
   0x5   : > { %s633_s15 = smov (%p27_p1, %s25_s15), 0  ;;  %p175_p3 = pnand %p441_p0, %p174_p2 }
   0x6   : > { %p213_p4 = scmp.lt.s32.totalorder (!%p175_p3), %s548_s12, 1 }
   0x7   : > { %178 = sbr.rel (%p175_p3) target bundleno = 28 (0x1c), region = 32 }
   0xc   : > { %s635_s12 = smov (!%p213_p4, %s548_s12), 1 }
   0xd   : > { %s458_s16 = sshll.u32 %s635_s12, 5  ;;  %s224_s19 = scalar_lea.vmem %s627_s1, %s635_s12 }
   0xe   : > { %s220_s22 = scalar_lea.vmem %s626_s0, %s458_s16  ;;  %s227_s25 = scalar_lea.vmem %s628_s2, %s635_s12  ;;  %v446_v1 = vld [vmem:[%s224_s19] ss:$0 sm:$0xff] }
   0xf   : > { %v469_v0 = vld [vmem:[%s220_s22] sm:$0xff]   ;;  %v504_v2 = vld [vmem:[%s220_s22 + $0x8] sm:$0xff]   ;;  %v505_v7 = vld [vmem:[%s220_s22 + $0x10] sm:$0xff]   ;;  %s236_s28 = scalar_lea.vmem %s629_s3, %s458_s16 }
  0x10   : > { %v470_v3 = vunpack.c.l.bf16 %v469_v0  ;;  %v471_v4 = vunpack.c.h.bf16 %v469_v0  ;;  %v474_v5 = vunpack.c.l.bf16 %v504_v2  ;;  %v475_v6 = vunpack.c.h.bf16 %v504_v2  ;;  %v506_v8 = vld [vmem:[%s220_s22 + $0x18] sm:$0xff]   ;;  %v447_v9 = vld [vmem:[%s227_s25] ss:$0 sm:$0xff] }
  0x11   : > { %v478_v10 = vunpack.c.l.bf16 %v505_v7  ;;  %v479_v11 = vunpack.c.h.bf16 %v505_v7  ;;  %v482_v12 = vunpack.c.l.bf16 %v506_v8  ;;  %v483_v13 = vunpack.c.h.bf16 %v506_v8 }
  0x12   : > { %v261_v14 = vmul.f32 %v470_v3, %v446_v1  ;;  %v262_v15 = vmul.f32 %v471_v4, %v446_v1  ;;  %v263_v16 = vmul.f32 %v474_v5, %v446_v1  ;;  %v264_v17 = vmul.f32 %v475_v6, %v446_v1 }
  0x13   : > { %v265_v18 = vmul.f32 %v478_v10, %v446_v1  ;;  %v266_v19 = vmul.f32 %v479_v11, %v446_v1  ;;  %v267_v20 = vmul.f32 %v482_v12, %v446_v1  ;;  %v268_v21 = vmul.f32 %v483_v13, %v446_v1 }
  0x14   : > { %v276_v22 = vadd.f32 %v447_v9, %v261_v14  ;;  %v277_v23 = vadd.f32 %v447_v9, %v262_v15  ;;  %v278_v24 = vadd.f32 %v447_v9, %v263_v16  ;;  %v279_v25 = vadd.f32 %v447_v9, %v264_v17 }
  0x15   : > { %v280_v26 = vadd.f32 %v447_v9, %v265_v18  ;;  %v281_v27 = vadd.f32 %v447_v9, %v266_v19  ;;  %v282_v28 = vadd.f32 %v447_v9, %v267_v20  ;;  %v283_v29 = vadd.f32 %v447_v9, %v268_v21 }
  0x16   : > { %v284_v30 = vmax.f32 %v276_v22, 0.0  ;;  %v285_v31 = vmax.f32 %v277_v23, 0.0  ;;  %v286_v32 = vmax.f32 %v278_v24, 0.0  ;;  %v287_v33 = vmax.f32 %v279_v25, 0.0 }
  0x17   : > { %v288_v34 = vmax.f32 %v280_v26, 0.0  ;;  %v289_v35 = vmax.f32 %v281_v27, 0.0  ;;  %v290_v36 = vmax.f32 %v282_v28, 0.0  ;;  %v291_v37 = vmax.f32 %v283_v29, 0.0 }
  0x18   : > { %v487_v38 = vpack.c.bf16 %v285_v31, %v284_v30  ;;  %v492_v39 = vpack.c.bf16 %v287_v33, %v286_v32 }
  0x19   : > { %v497_v40 = vpack.c.bf16 %v289_v35, %v288_v34  ;;  %v502_v41 = vpack.c.bf16 %v291_v37, %v290_v36 }
  0x1a   : > { %488 = vst [vmem:[%s236_s28] sm:$0xff] %v487_v38   ;;  %507 = vst [vmem:[%s236_s28 + $0x8] sm:$0xff] %v492_v39  }
  0x1b   : > { %508 = vst [vmem:[%s236_s28 + $0x10] sm:$0xff] %v497_v40   ;;  %509 = vst [vmem:[%s236_s28 + $0x18] sm:$0xff] %v502_v41  }
  0x1c PF: > { %s13_s14 = sadd.s32 1, %s556_s14   ;;  %s630_s12 = smov %s552_s13 }
  0x1d   : > { %p10_p5 = scmp.ge.s32.totalorder %s13_s14, 4   ;;  %s631_s13 = smov %s633_s15 }
  0x1f   :  { %12 = sbr.rel (!%p10_p5) target bundleno = 2 (0x2), region = 68 }

// kernel: transformer_network.35
= control target key start
LH: loop header
LB: loop body
LE: loop exit
PB: predicated region body
PF: predicated region fallthrough
CT: control target
= control target key end

     0   :  { %v1491_v0 = vmov 0   ;;  %vm1069_vm0 = vcmask 257024   ;;  %s2035_s1 = inlined_call_operand.vmem [shape: bf16[256,32], index: 1, kind: input, shape index: {}]   ;;  %s2036_s0 = inlined_call_operand.vmem [shape: bf16[512,256], index: 0, kind: input, shape index: {}]   ;;  %s2037_s2 = inlined_call_operand.vmem [shape: bf16[512,32], index: 2, kind: output, shape index: {}]  }
   0x1   :  { %524 = vmatprep.subr.bf16.mxu0 %v1491_v0  ;;  %1346 = vmatprep.subr.bf16.mxu1 %v1491_v0  ;;  %v1379_v1 = vld [vmem:[%s2035_s1 + $0x38] sm:$0xff]   ;;  %v1380_v2 = vld [vmem:[%s2035_s1 + $0x30] sm:$0xff]   ;;  %v1381_v3 = vld [vmem:[%s2035_s1 + $0x28] sm:$0xff]  }
   0x2   :  { %525 = vmatpush1.bf16.msra.mxu0 %v1379_v1  ;;  %1362 = vmatpush1.bf16.msra.mxu1 %v1379_v1  ;;  %v1382_v4 = vld [vmem:[%s2035_s1 + $0x20] sm:$0xff]   ;;  %v1383_v5 = vld [vmem:[%s2035_s1 + $0x18] sm:$0xff]   ;;  %v1384_v7 = vld [vmem:[%s2035_s1 + $0x10] sm:$0xff]  }
   0x3   :  { %526 = vmatprep.subr.bf16.mxu0 %v1491_v0  ;;  %1347 = vmatprep.subr.bf16.mxu1 %v1491_v0  ;;  %v1397_v6 = vld [vmem:[%s2036_s0 + $0x4] ss:$8 sps:$4 sm:$0xff]   ;;  %v1387_v11 = vld [vmem:[%s2035_s1 + $0x78] sm:$0xff]   ;;  %v1388_v12 = vld [vmem:[%s2035_s1 + $0x70] sm:$0xff]  }
   0x4   :  { %v1400_v8 = vld [vmem:[%s2036_s0 + $0x104] ss:$8 sps:$4 sm:$0xff]   ;;  %556 = vmatprep.mubr.bf16.mxu0 %v1397_v6  ;;  %v1391_v15 = vld [vmem:[%s2035_s1 + $0x58] sm:$0xff]   ;;  %v1392_v16 = vld [vmem:[%s2035_s1 + $0x50] sm:$0xff]  }
   0x5   :  { %684 = vmatprep.mubr.bf16.mxu1 %v1400_v8  ;;  %v1385_v9 = vld [vmem:[%s2035_s1 + $0x8] sm:$0xff]   ;;  %v1386_v10 = vld [vmem:[%s2035_s1] sm:$0xff]   ;;  %v1401_v21 = vld [vmem:[%s2036_s0 + $0x14] ss:$8 sps:$4 sm:$0xff]  }
   0x6   :  { %527 = vmatpush1.bf16.msra.mxu0 %v1380_v2  ;;  %1363 = vmatpush1.bf16.msra.mxu1 %v1380_v2  ;;  %v1389_v13 = vld [vmem:[%s2035_s1 + $0x68] sm:$0xff]   ;;  %v1390_v14 = vld [vmem:[%s2035_s1 + $0x60] sm:$0xff]   ;;  %v1403_v22 = vld [vmem:[%s2036_s0 + $0x114] ss:$8 sps:$4 sm:$0xff]  }
   0x7   :  { %528 = vmatprep.subr.bf16.mxu0 %v1491_v0  ;;  %1348 = vmatprep.subr.bf16.mxu1 %v1491_v0  ;;  %v1393_v17 = vld [vmem:[%s2035_s1 + $0x48] sm:$0xff]   ;;  %v1394_v18 = vld [vmem:[%s2035_s1 + $0x40] sm:$0xff]   ;;  %v1405_v23 = vld [vmem:[%s2036_s0 + $0x10] ss:$8 sps:$4 sm:$0xff]  }
   0x8   :  { %v1395_v19 = vld [vmem:[%s2036_s0] ss:$8 sps:$4 sm:$0xff]   ;;  %v1406_v24 = vld [vmem:[%s2036_s0 + $0x110] ss:$8 sps:$4 sm:$0xff]   ;;  %v1407_v25 = vld [vmem:[%s2036_s0 + $0x24] ss:$8 sps:$4 sm:$0xff]  }
   0x9   :  { %v1398_v20 = vld [vmem:[%s2036_s0 + $0x100] ss:$8 sps:$4 sm:$0xff]   ;;  %v1409_v26 = vld [vmem:[%s2036_s0 + $0x124] ss:$8 sps:$4 sm:$0xff]   ;;  %v1413_v29 = vld [vmem:[%s2036_s0 + $0x34] ss:$8 sps:$4 sm:$0xff]  }
   0xa   :  { %529 = vmatpush1.bf16.msra.mxu0 %v1381_v3  ;;  %1364 = vmatpush1.bf16.msra.mxu1 %v1381_v3  ;;  %v1411_v27 = vld [vmem:[%s2036_s0 + $0x20] ss:$8 sps:$4 sm:$0xff]   ;;  %v1415_v30 = vld [vmem:[%s2036_s0 + $0x134] ss:$8 sps:$4 sm:$0xff]   ;;  %v1417_v31 = vld [vmem:[%s2036_s0 + $0x30] ss:$8 sps:$4 sm:$0xff]  }
   0xb   :  { %530 = vmatprep.subr.bf16.mxu0 %v1491_v0  ;;  %1349 = vmatprep.subr.bf16.mxu1 %v1491_v0  ;;  %v1412_v28 = vld [vmem:[%s2036_s0 + $0x120] ss:$8 sps:$4 sm:$0xff]   ;;  %v1418_v32 = vld [vmem:[%s2036_s0 + $0x130] ss:$8 sps:$4 sm:$0xff]   ;;  %v1419_v33 = vld [vmem:[%s2036_s0 + $0x44] ss:$8 sps:$4 sm:$0xff]  }
   0xc   :  { %v1421_v34 = vld [vmem:[%s2036_s0 + $0x144] ss:$8 sps:$4 sm:$0xff]   ;;  %v1423_v35 = vld [vmem:[%s2036_s0 + $0x40] ss:$8 sps:$4 sm:$0xff]   ;;  %v1425_v37 = vld [vmem:[%s2036_s0 + $0x54] ss:$8 sps:$4 sm:$0xff]  }
   0xd   :  { %v1424_v36 = vld [vmem:[%s2036_s0 + $0x140] ss:$8 sps:$4 sm:$0xff]   ;;  %v1427_v38 = vld [vmem:[%s2036_s0 + $0x154] ss:$8 sps:$4 sm:$0xff]   ;;  %v1429_v39 = vld [vmem:[%s2036_s0 + $0x50] ss:$8 sps:$4 sm:$0xff]  }
   0xe   :  { %531 = vmatpush1.bf16.msra.mxu0 %v1382_v4  ;;  %1365 = vmatpush1.bf16.msra.mxu1 %v1382_v4  ;;  %v1430_v40 = vld [vmem:[%s2036_s0 + $0x150] ss:$8 sps:$4 sm:$0xff]   ;;  %v1431_v41 = vld [vmem:[%s2036_s0 + $0x64] ss:$8 sps:$4 sm:$0xff]   ;;  %v1435_v43 = vld [vmem:[%s2036_s0 + $0x60] ss:$8 sps:$4 sm:$0xff]  }
   0xf   :  { %532 = vmatprep.subr.bf16.mxu0 %v1491_v0  ;;  %1350 = vmatprep.subr.bf16.mxu1 %v1491_v0  ;;  %v1433_v42 = vld [vmem:[%s2036_s0 + $0x164] ss:$8 sps:$4 sm:$0xff]   ;;  %v1436_v44 = vld [vmem:[%s2036_s0 + $0x160] ss:$8 sps:$4 sm:$0xff]   ;;  %v1437_v45 = vld [vmem:[%s2036_s0 + $0x74] ss:$8 sps:$4 sm:$0xff]  }
  0x10   :  { %v1439_v46 = vld [vmem:[%s2036_s0 + $0x174] ss:$8 sps:$4 sm:$0xff]   ;;  %v1441_v47 = vld [vmem:[%s2036_s0 + $0x70] ss:$8 sps:$4 sm:$0xff]   ;;  %v1443_v49 = vld [vmem:[%s2036_s0 + $0x84] ss:$8 sps:$4 sm:$0xff]  }
  0x11   :  { %v1442_v48 = vld [vmem:[%s2036_s0 + $0x170] ss:$8 sps:$4 sm:$0xff]   ;;  %v1445_v50 = vld [vmem:[%s2036_s0 + $0x184] ss:$8 sps:$4 sm:$0xff]   ;;  %v1447_v51 = vld [vmem:[%s2036_s0 + $0x80] ss:$8 sps:$4 sm:$0xff]  }
  0x12   :  { %533 = vmatpush1.bf16.msra.mxu0 %v1383_v5  ;;  %1366 = vmatpush1.bf16.msra.mxu1 %v1383_v5  ;;  %v1448_v52 = vld [vmem:[%s2036_s0 + $0x180] ss:$8 sps:$4 sm:$0xff]   ;;  %v1449_v53 = vld [vmem:[%s2036_s0 + $0x94] ss:$8 sps:$4 sm:$0xff]   ;;  %v1453_v55 = vld [vmem:[%s2036_s0 + $0x90] ss:$8 sps:$4 sm:$0xff]  }
  0x13   :  { %534 = vmatprep.subr.bf16.mxu0 %v1491_v0  ;;  %1351 = vmatprep.subr.bf16.mxu1 %v1491_v0  ;;  %v1451_v54 = vld [vmem:[%s2036_s0 + $0x194] ss:$8 sps:$4 sm:$0xff]   ;;  %v1454_v56 = vld [vmem:[%s2036_s0 + $0x190] ss:$8 sps:$4 sm:$0xff]   ;;  %v1455_v57 = vld [vmem:[%s2036_s0 + $0xa4] ss:$8 sps:$4 sm:$0xff]  }
  0x14   :  { %v1457_v58 = vld [vmem:[%s2036_s0 + $0x1a4] ss:$8 sps:$4 sm:$0xff]   ;;  %v1459_v59 = vld [vmem:[%s2036_s0 + $0xa0] ss:$8 sps:$4 sm:$0xff]   ;;  %v1461_v61 = vld [vmem:[%s2036_s0 + $0xb4] ss:$8 sps:$4 sm:$0xff]  }
  0x15   :  { %v1460_v60 = vld [vmem:[%s2036_s0 + $0x1a0] ss:$8 sps:$4 sm:$0xff]   ;;  %v1463_v62 = vld [vmem:[%s2036_s0 + $0x1b4] ss:$8 sps:$4 sm:$0xff]   ;;  %v1465_v63 = vld [vmem:[%s2036_s0 + $0xb0] ss:$8 sps:$4 sm:$0xff]  }
  0x16   :  { %535 = vmatpush1.bf16.msra.mxu0 %v1384_v7  ;;  %1367 = vmatpush1.bf16.msra.mxu1 %v1384_v7  ;;  %v1467_v1 = vld [vmem:[%s2036_s0 + $0xc4] ss:$8 sps:$4 sm:$0xff]   ;;  %v1471_v3 = vld [vmem:[%s2036_s0 + $0xc0] ss:$8 sps:$4 sm:$0xff]   ;;  %v1473_v5 = vld [vmem:[%s2036_s0 + $0xd4] ss:$8 sps:$4 sm:$0xff]  }
  0x17   :  { %536 = vmatprep.subr.bf16.mxu0 %v1491_v0  ;;  %1352 = vmatprep.subr.bf16.mxu1 %v1491_v0  ;;  %v1469_v2 = vld [vmem:[%s2036_s0 + $0x1c4] ss:$8 sps:$4 sm:$0xff]   ;;  %v1472_v4 = vld [vmem:[%s2036_s0 + $0x1c0] ss:$8 sps:$4 sm:$0xff]   ;;  %v1475_v6 = vld [vmem:[%s2036_s0 + $0x1d4] ss:$8 sps:$4 sm:$0xff]  }
  0x18   :  { %v1477_v7 = vld [vmem:[%s2036_s0 + $0xd0] ss:$8 sps:$4 sm:$0xff]  }
  0x19   :  { %v1478_v8 = vld [vmem:[%s2036_s0 + $0x1d0] ss:$8 sps:$4 sm:$0xff]  }
  0x1a   :  { %537 = vmatpush1.bf16.msra.mxu0 %v1385_v9  ;;  %1368 = vmatpush1.bf16.msra.mxu1 %v1385_v9  ;;  %v1479_v9 = vld [vmem:[%s2036_s0 + $0xe4] ss:$8 sps:$4 sm:$0xff]  }
  0x1b   :  { %538 = vmatprep.subr.bf16.mxu0 %v1491_v0  ;;  %1353 = vmatprep.subr.bf16.mxu1 %v1491_v0 }
  0x1e   :  { %539 = vmatpush1.bf16.msra.mxu0 %v1386_v10  ;;  %1369 = vmatpush1.bf16.msra.mxu1 %v1386_v10  ;;  %v1481_v10 = vld [vmem:[%s2036_s0 + $0x1e4] ss:$8 sps:$4 sm:$0xff]  }
  0x1f   :  { %540 = vmatprep.subr.bf16.mxu0 %v1491_v0  ;;  %1354 = vmatprep.subr.bf16.mxu1 %v1491_v0 }
  0x22   :  { %541 = vmatpush2.bf16.msra.mxu0 %v1387_v11  ;;  %1370 = vmatpush2.bf16.msra.mxu1 %v1387_v11  ;;  %v1483_v11 = vld [vmem:[%s2036_s0 + $0xe0] ss:$8 sps:$4 sm:$0xff]  }
  0x23   :  { %542 = vmatprep.subr.bf16.mxu0 %v1491_v0  ;;  %1355 = vmatprep.subr.bf16.mxu1 %v1491_v0 }
  0x26   :  { %543 = vmatpush2.bf16.msra.mxu0 %v1388_v12  ;;  %1371 = vmatpush2.bf16.msra.mxu1 %v1388_v12  ;;  %v1484_v12 = vld [vmem:[%s2036_s0 + $0x1e0] ss:$8 sps:$4 sm:$0xff]  }
  0x27   :  { %544 = vmatprep.subr.bf16.mxu0 %v1491_v0  ;;  %1356 = vmatprep.subr.bf16.mxu1 %v1491_v0 }
  0x2a   :  { %545 = vmatpush2.bf16.msra.mxu0 %v1389_v13  ;;  %1372 = vmatpush2.bf16.msra.mxu1 %v1389_v13  ;;  %v1485_v13 = vld [vmem:[%s2036_s0 + $0xf4] ss:$8 sps:$4 sm:$0xff]  }
  0x2b   :  { %546 = vmatprep.subr.bf16.mxu0 %v1491_v0  ;;  %1357 = vmatprep.subr.bf16.mxu1 %v1491_v0 }
  0x2e   :  { %547 = vmatpush2.bf16.msra.mxu0 %v1390_v14  ;;  %1373 = vmatpush2.bf16.msra.mxu1 %v1390_v14  ;;  %v1487_v14 = vld [vmem:[%s2036_s0 + $0x1f4] ss:$8 sps:$4 sm:$0xff]  }
  0x2f   :  { %548 = vmatprep.subr.bf16.mxu0 %v1491_v0  ;;  %1358 = vmatprep.subr.bf16.mxu1 %v1491_v0 }
  0x32   :  { %549 = vmatpush2.bf16.msra.mxu0 %v1391_v15  ;;  %1374 = vmatpush2.bf16.msra.mxu1 %v1391_v15  ;;  %v1489_v15 = vld [vmem:[%s2036_s0 + $0xf0] ss:$8 sps:$4 sm:$0xff]  }
  0x33   :  { %550 = vmatprep.subr.bf16.mxu0 %v1491_v0  ;;  %1359 = vmatprep.subr.bf16.mxu1 %v1491_v0 }
  0x36   :  { %551 = vmatpush2.bf16.msra.mxu0 %v1392_v16  ;;  %1375 = vmatpush2.bf16.msra.mxu1 %v1392_v16  ;;  %v1490_v16 = vld [vmem:[%s2036_s0 + $0x1f0] ss:$8 sps:$4 sm:$0xff]  }
  0x37   :  { %552 = vmatprep.subr.bf16.mxu0 %v1491_v0  ;;  %1360 = vmatprep.subr.bf16.mxu1 %v1491_v0 }
  0x3a   :  { %553 = vmatpush2.bf16.msra.mxu0 %v1393_v17  ;;  %1376 = vmatpush2.bf16.msra.mxu1 %v1393_v17 }
  0x3b   :  { %554 = vmatprep.subr.bf16.mxu0 %v1491_v0  ;;  %1361 = vmatprep.subr.bf16.mxu1 %v1491_v0  ;;  %v1466_v0 = vld [vmem:[%s2036_s0 + $0x1b0] ss:$8 sps:$4 sm:$0xff]  }
  0x3e   :  { %555 = vmatpush2.bf16.msra.mxu0 %v1394_v18  ;;  %1377 = vmatpush2.bf16.msra.mxu1 %v1394_v18 }
  0x41   :  { %557 = vmatmul.mubr.bf16.vlgmr.msra.gmra.mxu0 %v1395_v19  ;;  %685 = vmatmul.mubr.bf16.vlgmr.msra.gmra.mxu1 %v1398_v20 }
  0x42   :  { %564 = vmatprep.mubr.bf16.mxu0 %v1401_v21  ;;  %692 = vmatprep.mubr.bf16.mxu1 %v1403_v22 }
  0x49   :  { %565 = vmatmul.mubr.bf16.gmra.mxu0 %v1405_v23  ;;  %693 = vmatmul.mubr.bf16.gmra.mxu1 %v1406_v24 }
  0x4a   :  { %572 = vmatprep.mubr.bf16.mxu0 %v1407_v25  ;;  %700 = vmatprep.mubr.bf16.mxu1 %v1409_v26 }
  0x51   :  { %573 = vmatmul.mubr.bf16.gmra.mxu0 %v1411_v27  ;;  %701 = vmatmul.mubr.bf16.gmra.mxu1 %v1412_v28 }
  0x52   :  { %580 = vmatprep.mubr.bf16.mxu0 %v1413_v29  ;;  %708 = vmatprep.mubr.bf16.mxu1 %v1415_v30 }
  0x59   :  { %581 = vmatmul.mubr.bf16.gmra.mxu0 %v1417_v31  ;;  %709 = vmatmul.mubr.bf16.gmra.mxu1 %v1418_v32 }
  0x5a   :  { %588 = vmatprep.mubr.bf16.mxu0 %v1419_v33  ;;  %716 = vmatprep.mubr.bf16.mxu1 %v1421_v34 }
  0x61   :  { %589 = vmatmul.mubr.bf16.gmra.mxu0 %v1423_v35  ;;  %717 = vmatmul.mubr.bf16.gmra.mxu1 %v1424_v36 }
  0x62   :  { %596 = vmatprep.mubr.bf16.mxu0 %v1425_v37  ;;  %724 = vmatprep.mubr.bf16.mxu1 %v1427_v38 }
  0x69   :  { %597 = vmatmul.mubr.bf16.gmra.mxu0 %v1429_v39  ;;  %725 = vmatmul.mubr.bf16.gmra.mxu1 %v1430_v40 }
  0x6a   :  { %604 = vmatprep.mubr.bf16.mxu0 %v1431_v41  ;;  %732 = vmatprep.mubr.bf16.mxu1 %v1433_v42 }
  0x71   :  { %605 = vmatmul.mubr.bf16.gmra.mxu0 %v1435_v43  ;;  %733 = vmatmul.mubr.bf16.gmra.mxu1 %v1436_v44 }
  0x72   :  { %612 = vmatprep.mubr.bf16.mxu0 %v1437_v45  ;;  %740 = vmatprep.mubr.bf16.mxu1 %v1439_v46 }
  0x79   :  { %613 = vmatmul.mubr.bf16.gmra.mxu0 %v1441_v47  ;;  %741 = vmatmul.mubr.bf16.gmra.mxu1 %v1442_v48 }
  0x7a   :  { %620 = vmatprep.mubr.bf16.mxu0 %v1443_v49  ;;  %748 = vmatprep.mubr.bf16.mxu1 %v1445_v50 }
  0x81   :  { %621 = vmatmul.mubr.bf16.gmra.mxu0 %v1447_v51  ;;  %749 = vmatmul.mubr.bf16.gmra.mxu1 %v1448_v52 }
  0x82   :  { %628 = vmatprep.mubr.bf16.mxu0 %v1449_v53  ;;  %756 = vmatprep.mubr.bf16.mxu1 %v1451_v54 }
  0x89   :  { %629 = vmatmul.mubr.bf16.gmra.mxu0 %v1453_v55  ;;  %757 = vmatmul.mubr.bf16.gmra.mxu1 %v1454_v56 }
  0x8a   :  { %636 = vmatprep.mubr.bf16.mxu0 %v1455_v57  ;;  %764 = vmatprep.mubr.bf16.mxu1 %v1457_v58 }
  0x91   :  { %637 = vmatmul.mubr.bf16.gmra.mxu0 %v1459_v59  ;;  %765 = vmatmul.mubr.bf16.gmra.mxu1 %v1460_v60 }
  0x92   :  { %644 = vmatprep.mubr.bf16.mxu0 %v1461_v61  ;;  %772 = vmatprep.mubr.bf16.mxu1 %v1463_v62 }
  0x99   :  { %645 = vmatmul.mubr.bf16.gmra.mxu0 %v1465_v63  ;;  %773 = vmatmul.mubr.bf16.gmra.mxu1 %v1466_v0 }
  0x9a   :  { %652 = vmatprep.mubr.bf16.mxu0 %v1467_v1  ;;  %780 = vmatprep.mubr.bf16.mxu1 %v1469_v2 }
  0xa1   :  { %653 = vmatmul.mubr.bf16.gmra.mxu0 %v1471_v3  ;;  %781 = vmatmul.mubr.bf16.gmra.mxu1 %v1472_v4 }
  0xa2   :  { %660 = vmatprep.mubr.bf16.mxu0 %v1473_v5  ;;  %788 = vmatprep.mubr.bf16.mxu1 %v1475_v6 }
  0xa9   :  { %661 = vmatmul.mubr.bf16.gmra.mxu0 %v1477_v7  ;;  %789 = vmatmul.mubr.bf16.gmra.mxu1 %v1478_v8 }
  0xaa   :  { %668 = vmatprep.mubr.bf16.mxu0 %v1479_v9  ;;  %796 = vmatprep.mubr.bf16.mxu1 %v1481_v10 }
  0xb1   :  { %669 = vmatmul.mubr.bf16.gmra.mxu0 %v1483_v11  ;;  %797 = vmatmul.mubr.bf16.gmra.mxu1 %v1484_v12 }
  0xb2   :  { %676 = vmatprep.mubr.bf16.mxu0 %v1485_v13  ;;  %804 = vmatprep.mubr.bf16.mxu1 %v1487_v14 }
  0xb9   :  { %677 = vmatmul.mubr.bf16.gmra.mxu0 %v1489_v15  ;;  %805 = vmatmul.mubr.bf16.gmra.mxu1 %v1490_v16 }
 0x101   :  { %v558_v17 = vpop.f32.mrf.mxu0  ;;  %v686_v18 = vpop.f32.mrf.mxu1 }
 0x102   :  { %v1282_v19 = vpack.c.bf16 %v558_v17, %v558_v17  ;;  %v1314_v20 = vpack.c.bf16 %v686_v18, %v686_v18 }
 0x103   :  { %v560_v21 = vpop.f32.mrf.mxu0  ;;  %v688_v22 = vpop.f32.mrf.mxu1 }
 0x104   :  { %1070 = vst.msk [vmem:[%s2037_s2] sm:$0xf] %vm1069_vm0, %v1282_v19  ;;  %1102 = vst.msk [vmem:[%s2037_s2 + $0x80] sm:$0xf] %vm1069_vm0, %v1314_v20 }
 0x105   :  { %v561_v23 = vpop.f32.mrf.mxu0  ;;  %v689_v24 = vpop.f32.mrf.mxu1 }
 0x106   :  { %v1283_v25 = vpack.c.bf16 %v561_v23, %v561_v23  ;;  %v1315_v26 = vpack.c.bf16 %v689_v24, %v689_v24 }
 0x107   :  { %v563_v27 = vpop.f32.mrf.mxu0  ;;  %v691_v28 = vpop.f32.mrf.mxu1 }
 0x108   :  { %1071 = vst.msk [vmem:[%s2037_s2 + $0x4] sm:$0xf] %vm1069_vm0, %v1283_v25  ;;  %1103 = vst.msk [vmem:[%s2037_s2 + $0x84] sm:$0xf] %vm1069_vm0, %v1315_v26 }
 0x109   :  { %v566_v29 = vpop.f32.mrf.mxu0  ;;  %v694_v30 = vpop.f32.mrf.mxu1 }
 0x10a   :  { %v1284_v31 = vpack.c.bf16 %v566_v29, %v566_v29  ;;  %v1316_v32 = vpack.c.bf16 %v694_v30, %v694_v30 }
 0x10b   :  { %v568_v33 = vpop.f32.mrf.mxu0  ;;  %v696_v34 = vpop.f32.mrf.mxu1 }
 0x10c   :  { %1072 = vst.msk [vmem:[%s2037_s2 + $0x8] sm:$0xf] %vm1069_vm0, %v1284_v31  ;;  %1104 = vst.msk [vmem:[%s2037_s2 + $0x88] sm:$0xf] %vm1069_vm0, %v1316_v32 }
 0x10d   :  { %v569_v35 = vpop.f32.mrf.mxu0  ;;  %v697_v36 = vpop.f32.mrf.mxu1 }
 0x10e   :  { %v1285_v37 = vpack.c.bf16 %v569_v35, %v569_v35  ;;  %v1317_v38 = vpack.c.bf16 %v697_v36, %v697_v36 }
 0x10f   :  { %v571_v39 = vpop.f32.mrf.mxu0  ;;  %v699_v40 = vpop.f32.mrf.mxu1 }
 0x110   :  { %1073 = vst.msk [vmem:[%s2037_s2 + $0xc] sm:$0xf] %vm1069_vm0, %v1285_v37  ;;  %1105 = vst.msk [vmem:[%s2037_s2 + $0x8c] sm:$0xf] %vm1069_vm0, %v1317_v38 }
 0x111   :  { %v574_v41 = vpop.f32.mrf.mxu0  ;;  %v702_v42 = vpop.f32.mrf.mxu1 }
 0x112   :  { %v1286_v43 = vpack.c.bf16 %v574_v41, %v574_v41  ;;  %v1318_v44 = vpack.c.bf16 %v702_v42, %v702_v42 }
 0x113   :  { %v576_v45 = vpop.f32.mrf.mxu0  ;;  %v704_v46 = vpop.f32.mrf.mxu1 }
 0x114   :  { %1074 = vst.msk [vmem:[%s2037_s2 + $0x10] sm:$0xf] %vm1069_vm0, %v1286_v43  ;;  %1106 = vst.msk [vmem:[%s2037_s2 + $0x90] sm:$0xf] %vm1069_vm0, %v1318_v44 }
 0x115   :  { %v577_v47 = vpop.f32.mrf.mxu0  ;;  %v705_v48 = vpop.f32.mrf.mxu1 }
 0x116   :  { %v1287_v49 = vpack.c.bf16 %v577_v47, %v577_v47  ;;  %v1319_v50 = vpack.c.bf16 %v705_v48, %v705_v48 }
 0x117   :  { %v579_v51 = vpop.f32.mrf.mxu0  ;;  %v707_v52 = vpop.f32.mrf.mxu1 }
 0x118   :  { %1075 = vst.msk [vmem:[%s2037_s2 + $0x14] sm:$0xf] %vm1069_vm0, %v1287_v49  ;;  %1107 = vst.msk [vmem:[%s2037_s2 + $0x94] sm:$0xf] %vm1069_vm0, %v1319_v50 }
 0x119   :  { %v582_v53 = vpop.f32.mrf.mxu0  ;;  %v710_v54 = vpop.f32.mrf.mxu1 }
 0x11a   :  { %v1288_v55 = vpack.c.bf16 %v582_v53, %v582_v53  ;;  %v1320_v56 = vpack.c.bf16 %v710_v54, %v710_v54 }
 0x11b   :  { %v584_v57 = vpop.f32.mrf.mxu0  ;;  %v712_v58 = vpop.f32.mrf.mxu1 }
 0x11c   :  { %1076 = vst.msk [vmem:[%s2037_s2 + $0x18] sm:$0xf] %vm1069_vm0, %v1288_v55  ;;  %1108 = vst.msk [vmem:[%s2037_s2 + $0x98] sm:$0xf] %vm1069_vm0, %v1320_v56 }
 0x11d   :  { %v585_v59 = vpop.f32.mrf.mxu0  ;;  %v713_v60 = vpop.f32.mrf.mxu1 }
 0x11e   :  { %v1289_v61 = vpack.c.bf16 %v585_v59, %v585_v59  ;;  %v1321_v62 = vpack.c.bf16 %v713_v60, %v713_v60 }
 0x11f   :  { %v587_v63 = vpop.f32.mrf.mxu0  ;;  %v715_v0 = vpop.f32.mrf.mxu1 }
 0x120   :  { %1077 = vst.msk [vmem:[%s2037_s2 + $0x1c] sm:$0xf] %vm1069_vm0, %v1289_v61  ;;  %1109 = vst.msk [vmem:[%s2037_s2 + $0x9c] sm:$0xf] %vm1069_vm0, %v1321_v62 }
 0x121   :  { %v590_v1 = vpop.f32.mrf.mxu0  ;;  %v718_v2 = vpop.f32.mrf.mxu1 }
 0x122   :  { %v1290_v3 = vpack.c.bf16 %v590_v1, %v590_v1  ;;  %v1322_v4 = vpack.c.bf16 %v718_v2, %v718_v2 }
 0x123   :  { %v592_v5 = vpop.f32.mrf.mxu0  ;;  %v720_v6 = vpop.f32.mrf.mxu1 }
 0x124   :  { %1078 = vst.msk [vmem:[%s2037_s2 + $0x20] sm:$0xf] %vm1069_vm0, %v1290_v3  ;;  %1110 = vst.msk [vmem:[%s2037_s2 + $0xa0] sm:$0xf] %vm1069_vm0, %v1322_v4 }
 0x125   :  { %v593_v7 = vpop.f32.mrf.mxu0  ;;  %v721_v8 = vpop.f32.mrf.mxu1 }
 0x126   :  { %v1291_v9 = vpack.c.bf16 %v593_v7, %v593_v7  ;;  %v1323_v10 = vpack.c.bf16 %v721_v8, %v721_v8 }
 0x127   :  { %v595_v11 = vpop.f32.mrf.mxu0  ;;  %v723_v12 = vpop.f32.mrf.mxu1 }
 0x128   :  { %1079 = vst.msk [vmem:[%s2037_s2 + $0x24] sm:$0xf] %vm1069_vm0, %v1291_v9  ;;  %1111 = vst.msk [vmem:[%s2037_s2 + $0xa4] sm:$0xf] %vm1069_vm0, %v1323_v10 }
 0x129   :  { %v598_v13 = vpop.f32.mrf.mxu0  ;;  %v726_v14 = vpop.f32.mrf.mxu1 }
 0x12a   :  { %v1292_v15 = vpack.c.bf16 %v598_v13, %v598_v13  ;;  %v1324_v16 = vpack.c.bf16 %v726_v14, %v726_v14 }
 0x12b   :  { %v600_v17 = vpop.f32.mrf.mxu0  ;;  %v728_v18 = vpop.f32.mrf.mxu1 }
 0x12c   :  { %1080 = vst.msk [vmem:[%s2037_s2 + $0x28] sm:$0xf] %vm1069_vm0, %v1292_v15  ;;  %1112 = vst.msk [vmem:[%s2037_s2 + $0xa8] sm:$0xf] %vm1069_vm0, %v1324_v16 }
 0x12d   :  { %v601_v19 = vpop.f32.mrf.mxu0  ;;  %v729_v20 = vpop.f32.mrf.mxu1 }
 0x12e   :  { %v1293_v21 = vpack.c.bf16 %v601_v19, %v601_v19  ;;  %v1325_v22 = vpack.c.bf16 %v729_v20, %v729_v20 }
 0x12f   :  { %v603_v23 = vpop.f32.mrf.mxu0  ;;  %v731_v24 = vpop.f32.mrf.mxu1 }
 0x130   :  { %1081 = vst.msk [vmem:[%s2037_s2 + $0x2c] sm:$0xf] %vm1069_vm0, %v1293_v21  ;;  %1113 = vst.msk [vmem:[%s2037_s2 + $0xac] sm:$0xf] %vm1069_vm0, %v1325_v22 }
 0x131   :  { %v606_v25 = vpop.f32.mrf.mxu0  ;;  %v734_v26 = vpop.f32.mrf.mxu1 }
 0x132   :  { %v1294_v27 = vpack.c.bf16 %v606_v25, %v606_v25  ;;  %v1326_v28 = vpack.c.bf16 %v734_v26, %v734_v26 }
 0x133   :  { %v608_v29 = vpop.f32.mrf.mxu0  ;;  %v736_v30 = vpop.f32.mrf.mxu1 }
 0x134   :  { %1082 = vst.msk [vmem:[%s2037_s2 + $0x30] sm:$0xf] %vm1069_vm0, %v1294_v27  ;;  %1114 = vst.msk [vmem:[%s2037_s2 + $0xb0] sm:$0xf] %vm1069_vm0, %v1326_v28 }
 0x135   :  { %v609_v31 = vpop.f32.mrf.mxu0  ;;  %v737_v32 = vpop.f32.mrf.mxu1 }
 0x136   :  { %v1295_v33 = vpack.c.bf16 %v609_v31, %v609_v31  ;;  %v1327_v34 = vpack.c.bf16 %v737_v32, %v737_v32 }
 0x137   :  { %v611_v35 = vpop.f32.mrf.mxu0  ;;  %v739_v36 = vpop.f32.mrf.mxu1 }
 0x138   :  { %1083 = vst.msk [vmem:[%s2037_s2 + $0x34] sm:$0xf] %vm1069_vm0, %v1295_v33  ;;  %1115 = vst.msk [vmem:[%s2037_s2 + $0xb4] sm:$0xf] %vm1069_vm0, %v1327_v34 }
 0x139   :  { %v614_v37 = vpop.f32.mrf.mxu0  ;;  %v742_v38 = vpop.f32.mrf.mxu1 }
 0x13a   :  { %v1296_v39 = vpack.c.bf16 %v614_v37, %v614_v37  ;;  %v1328_v40 = vpack.c.bf16 %v742_v38, %v742_v38 }
 0x13b   :  { %v616_v41 = vpop.f32.mrf.mxu0  ;;  %v744_v42 = vpop.f32.mrf.mxu1 }
 0x13c   :  { %1084 = vst.msk [vmem:[%s2037_s2 + $0x38] sm:$0xf] %vm1069_vm0, %v1296_v39  ;;  %1116 = vst.msk [vmem:[%s2037_s2 + $0xb8] sm:$0xf] %vm1069_vm0, %v1328_v40 }
 0x13d   :  { %v617_v43 = vpop.f32.mrf.mxu0  ;;  %v745_v44 = vpop.f32.mrf.mxu1 }
 0x13e   :  { %v1297_v45 = vpack.c.bf16 %v617_v43, %v617_v43  ;;  %v1329_v46 = vpack.c.bf16 %v745_v44, %v745_v44 }
 0x13f   :  { %v619_v47 = vpop.f32.mrf.mxu0  ;;  %v747_v48 = vpop.f32.mrf.mxu1 }
 0x140   :  { %1085 = vst.msk [vmem:[%s2037_s2 + $0x3c] sm:$0xf] %vm1069_vm0, %v1297_v45  ;;  %1117 = vst.msk [vmem:[%s2037_s2 + $0xbc] sm:$0xf] %vm1069_vm0, %v1329_v46 }
 0x141   :  { %v622_v49 = vpop.f32.mrf.mxu0  ;;  %v750_v50 = vpop.f32.mrf.mxu1 }
 0x142   :  { %v1298_v51 = vpack.c.bf16 %v622_v49, %v622_v49  ;;  %v1330_v52 = vpack.c.bf16 %v750_v50, %v750_v50 }
 0x143   :  { %v624_v53 = vpop.f32.mrf.mxu0  ;;  %v752_v54 = vpop.f32.mrf.mxu1 }
 0x144   :  { %1086 = vst.msk [vmem:[%s2037_s2 + $0x40] sm:$0xf] %vm1069_vm0, %v1298_v51  ;;  %1118 = vst.msk [vmem:[%s2037_s2 + $0xc0] sm:$0xf] %vm1069_vm0, %v1330_v52 }
 0x145   :  { %v625_v55 = vpop.f32.mrf.mxu0  ;;  %v753_v56 = vpop.f32.mrf.mxu1 }
 0x146   :  { %v1299_v57 = vpack.c.bf16 %v625_v55, %v625_v55  ;;  %v1331_v58 = vpack.c.bf16 %v753_v56, %v753_v56 }
 0x147   :  { %v627_v59 = vpop.f32.mrf.mxu0  ;;  %v755_v60 = vpop.f32.mrf.mxu1 }
 0x148   :  { %1087 = vst.msk [vmem:[%s2037_s2 + $0x44] sm:$0xf] %vm1069_vm0, %v1299_v57  ;;  %1119 = vst.msk [vmem:[%s2037_s2 + $0xc4] sm:$0xf] %vm1069_vm0, %v1331_v58 }
 0x149   :  { %v630_v61 = vpop.f32.mrf.mxu0  ;;  %v758_v62 = vpop.f32.mrf.mxu1 }
 0x14a   :  { %v1300_v63 = vpack.c.bf16 %v630_v61, %v630_v61  ;;  %v1332_v0 = vpack.c.bf16 %v758_v62, %v758_v62 }
 0x14b   :  { %v632_v1 = vpop.f32.mrf.mxu0  ;;  %v760_v2 = vpop.f32.mrf.mxu1 }
 0x14c   :  { %1088 = vst.msk [vmem:[%s2037_s2 + $0x48] sm:$0xf] %vm1069_vm0, %v1300_v63  ;;  %1120 = vst.msk [vmem:[%s2037_s2 + $0xc8] sm:$0xf] %vm1069_vm0, %v1332_v0 }
 0x14d   :  { %v633_v3 = vpop.f32.mrf.mxu0  ;;  %v761_v4 = vpop.f32.mrf.mxu1 }
 0x14e   :  { %v1301_v5 = vpack.c.bf16 %v633_v3, %v633_v3  ;;  %v1333_v6 = vpack.c.bf16 %v761_v4, %v761_v4 }
 0x14f   :  { %v635_v7 = vpop.f32.mrf.mxu0  ;;  %v763_v8 = vpop.f32.mrf.mxu1 }
 0x150   :  { %1089 = vst.msk [vmem:[%s2037_s2 + $0x4c] sm:$0xf] %vm1069_vm0, %v1301_v5  ;;  %1121 = vst.msk [vmem:[%s2037_s2 + $0xcc] sm:$0xf] %vm1069_vm0, %v1333_v6 }
 0x151   :  { %v638_v9 = vpop.f32.mrf.mxu0  ;;  %v766_v10 = vpop.f32.mrf.mxu1 }
 0x152   :  { %v1302_v11 = vpack.c.bf16 %v638_v9, %v638_v9  ;;  %v1334_v12 = vpack.c.bf16 %v766_v10, %v766_v10 }
 0x153   :  { %v640_v13 = vpop.f32.mrf.mxu0  ;;  %v768_v14 = vpop.f32.mrf.mxu1 }
 0x154   :  { %1090 = vst.msk [vmem:[%s2037_s2 + $0x50] sm:$0xf] %vm1069_vm0, %v1302_v11  ;;  %1122 = vst.msk [vmem:[%s2037_s2 + $0xd0] sm:$0xf] %vm1069_vm0, %v1334_v12 }
 0x155   :  { %v641_v15 = vpop.f32.mrf.mxu0  ;;  %v769_v16 = vpop.f32.mrf.mxu1 }
 0x156   :  { %v1303_v17 = vpack.c.bf16 %v641_v15, %v641_v15  ;;  %v1335_v18 = vpack.c.bf16 %v769_v16, %v769_v16 }
 0x157   :  { %v643_v19 = vpop.f32.mrf.mxu0  ;;  %v771_v20 = vpop.f32.mrf.mxu1 }
 0x158   :  { %1091 = vst.msk [vmem:[%s2037_s2 + $0x54] sm:$0xf] %vm1069_vm0, %v1303_v17  ;;  %1123 = vst.msk [vmem:[%s2037_s2 + $0xd4] sm:$0xf] %vm1069_vm0, %v1335_v18 }
 0x159   :  { %v646_v21 = vpop.f32.mrf.mxu0  ;;  %v774_v22 = vpop.f32.mrf.mxu1 }
 0x15a   :  { %v1304_v23 = vpack.c.bf16 %v646_v21, %v646_v21  ;;  %v1336_v24 = vpack.c.bf16 %v774_v22, %v774_v22 }
 0x15b   :  { %v648_v25 = vpop.f32.mrf.mxu0  ;;  %v776_v26 = vpop.f32.mrf.mxu1 }
 0x15c   :  { %1092 = vst.msk [vmem:[%s2037_s2 + $0x58] sm:$0xf] %vm1069_vm0, %v1304_v23  ;;  %1124 = vst.msk [vmem:[%s2037_s2 + $0xd8] sm:$0xf] %vm1069_vm0, %v1336_v24 }
 0x15d   :  { %v649_v27 = vpop.f32.mrf.mxu0  ;;  %v777_v28 = vpop.f32.mrf.mxu1 }
 0x15e   :  { %v1305_v29 = vpack.c.bf16 %v649_v27, %v649_v27  ;;  %v1337_v30 = vpack.c.bf16 %v777_v28, %v777_v28 }
 0x15f   :  { %v651_v31 = vpop.f32.mrf.mxu0  ;;  %v779_v32 = vpop.f32.mrf.mxu1 }
 0x160   :  { %1093 = vst.msk [vmem:[%s2037_s2 + $0x5c] sm:$0xf] %vm1069_vm0, %v1305_v29  ;;  %1125 = vst.msk [vmem:[%s2037_s2 + $0xdc] sm:$0xf] %vm1069_vm0, %v1337_v30 }
 0x161   :  { %v654_v33 = vpop.f32.mrf.mxu0  ;;  %v782_v34 = vpop.f32.mrf.mxu1 }
 0x162   :  { %v1306_v35 = vpack.c.bf16 %v654_v33, %v654_v33  ;;  %v1338_v36 = vpack.c.bf16 %v782_v34, %v782_v34 }
 0x163   :  { %v656_v37 = vpop.f32.mrf.mxu0  ;;  %v784_v38 = vpop.f32.mrf.mxu1 }
 0x164   :  { %1094 = vst.msk [vmem:[%s2037_s2 + $0x60] sm:$0xf] %vm1069_vm0, %v1306_v35  ;;  %1126 = vst.msk [vmem:[%s2037_s2 + $0xe0] sm:$0xf] %vm1069_vm0, %v1338_v36 }
 0x165   :  { %v657_v39 = vpop.f32.mrf.mxu0  ;;  %v785_v40 = vpop.f32.mrf.mxu1 }
 0x166   :  { %v1307_v41 = vpack.c.bf16 %v657_v39, %v657_v39  ;;  %v1339_v42 = vpack.c.bf16 %v785_v40, %v785_v40 }
 0x167   :  { %v659_v43 = vpop.f32.mrf.mxu0  ;;  %v787_v44 = vpop.f32.mrf.mxu1 }
 0x168   :  { %1095 = vst.msk [vmem:[%s2037_s2 + $0x64] sm:$0xf] %vm1069_vm0, %v1307_v41  ;;  %1127 = vst.msk [vmem:[%s2037_s2 + $0xe4] sm:$0xf] %vm1069_vm0, %v1339_v42 }
 0x169   :  { %v662_v45 = vpop.f32.mrf.mxu0  ;;  %v790_v46 = vpop.f32.mrf.mxu1 }
 0x16a   :  { %v1308_v47 = vpack.c.bf16 %v662_v45, %v662_v45  ;;  %v1340_v48 = vpack.c.bf16 %v790_v46, %v790_v46 }
 0x16b   :  { %v664_v49 = vpop.f32.mrf.mxu0  ;;  %v792_v50 = vpop.f32.mrf.mxu1 }
 0x16c   :  { %1096 = vst.msk [vmem:[%s2037_s2 + $0x68] sm:$0xf] %vm1069_vm0, %v1308_v47  ;;  %1128 = vst.msk [vmem:[%s2037_s2 + $0xe8] sm:$0xf] %vm1069_vm0, %v1340_v48 }
 0x16d   :  { %v665_v51 = vpop.f32.mrf.mxu0  ;;  %v793_v52 = vpop.f32.mrf.mxu1 }
 0x16e   :  { %v1309_v53 = vpack.c.bf16 %v665_v51, %v665_v51  ;;  %v1341_v54 = vpack.c.bf16 %v793_v52, %v793_v52 }
 0x16f   :  { %v667_v55 = vpop.f32.mrf.mxu0  ;;  %v795_v56 = vpop.f32.mrf.mxu1 }
 0x170   :  { %1097 = vst.msk [vmem:[%s2037_s2 + $0x6c] sm:$0xf] %vm1069_vm0, %v1309_v53  ;;  %1129 = vst.msk [vmem:[%s2037_s2 + $0xec] sm:$0xf] %vm1069_vm0, %v1341_v54 }
 0x171   :  { %v670_v57 = vpop.f32.mrf.mxu0  ;;  %v798_v58 = vpop.f32.mrf.mxu1 }
 0x172   :  { %v1310_v59 = vpack.c.bf16 %v670_v57, %v670_v57  ;;  %v1342_v60 = vpack.c.bf16 %v798_v58, %v798_v58 }
 0x173   :  { %v672_v61 = vpop.f32.mrf.mxu0  ;;  %v800_v62 = vpop.f32.mrf.mxu1 }
 0x174   :  { %1098 = vst.msk [vmem:[%s2037_s2 + $0x70] sm:$0xf] %vm1069_vm0, %v1310_v59  ;;  %1130 = vst.msk [vmem:[%s2037_s2 + $0xf0] sm:$0xf] %vm1069_vm0, %v1342_v60 }
 0x175   :  { %v673_v63 = vpop.f32.mrf.mxu0  ;;  %v801_v0 = vpop.f32.mrf.mxu1 }
 0x176   :  { %v1311_v1 = vpack.c.bf16 %v673_v63, %v673_v63  ;;  %v1343_v2 = vpack.c.bf16 %v801_v0, %v801_v0 }
 0x177   :  { %v675_v3 = vpop.f32.mrf.mxu0  ;;  %v803_v4 = vpop.f32.mrf.mxu1 }
 0x178   :  { %1099 = vst.msk [vmem:[%s2037_s2 + $0x74] sm:$0xf] %vm1069_vm0, %v1311_v1  ;;  %1131 = vst.msk [vmem:[%s2037_s2 + $0xf4] sm:$0xf] %vm1069_vm0, %v1343_v2 }
 0x179   :  { %v678_v5 = vpop.f32.mrf.mxu0  ;;  %v806_v6 = vpop.f32.mrf.mxu1 }
 0x17a   :  { %v1312_v7 = vpack.c.bf16 %v678_v5, %v678_v5  ;;  %v1344_v8 = vpack.c.bf16 %v806_v6, %v806_v6 }
 0x17b   :  { %v680_v9 = vpop.f32.mrf.mxu0  ;;  %v808_v10 = vpop.f32.mrf.mxu1 }
 0x17c   :  { %1100 = vst.msk [vmem:[%s2037_s2 + $0x78] sm:$0xf] %vm1069_vm0, %v1312_v7  ;;  %1132 = vst.msk [vmem:[%s2037_s2 + $0xf8] sm:$0xf] %vm1069_vm0, %v1344_v8 }
 0x17d   :  { %v681_v11 = vpop.f32.mrf.mxu0  ;;  %v809_v12 = vpop.f32.mrf.mxu1 }
 0x17e   :  { %v1313_v13 = vpack.c.bf16 %v681_v11, %v681_v11  ;;  %v1345_v14 = vpack.c.bf16 %v809_v12, %v809_v12 }
 0x17f   :  { %v683_v15 = vpop.f32.mrf.mxu0  ;;  %v811_v16 = vpop.f32.mrf.mxu1 }
 0x180   :  { %1101 = vst.msk [vmem:[%s2037_s2 + $0x7c] sm:$0xf] %vm1069_vm0, %v1313_v13  ;;  %1133 = vst.msk [vmem:[%s2037_s2 + $0xfc] sm:$0xf] %vm1069_vm0, %v1345_v14 }

// kernel: transformer_network.39
= control target key start
LH: loop header
LB: loop body
LE: loop exit
PB: predicated region body
PF: predicated region fallthrough
CT: control target
= control target key end

     0   :  { %s389_s9 = smov 0   ;;  %s391_s10 = smov 0   ;;  %s435_s0 = inlined_call_operand.vmem [shape: bf16[2,32,128], index: 0, kind: input, shape index: {}]   ;;  %s436_s1 = inlined_call_operand.vmem [shape: f32[2,1,128], index: 1, kind: output, shape index: {0}]   ;;  %s437_s2 = inlined_call_operand.vmem [shape: f32[2,1,128], index: 2, kind: output, shape index: {1}]  }
   0x1   :  { %s393_s11 = smov 0  }
   0x2 LB: > { %s25_s12 = sadd.s32 1, %s367_s10  ;;  %p309_p0 = scmp.ge.s32.totalorder %s371_s11, 1  ;;  %s371_s11 = sphi %s393_s11, %s13_s11   ;;  %s367_s10 = sphi %s391_s10, %s439_s10   ;;  %s363_s9 = sphi %s389_s9, %s438_s9  }
   0x3   : > { %p27_p1 = scmp.ge.s32.totalorder %s25_s12, 2  ;;  %p134_p2 = scmp.lt.s32.totalorder %s371_s11, 3 }
   0x5   : > { %s441_s12 = smov (%p27_p1, %s25_s12), 0  ;;  %p135_p3 = pnand %p309_p0, %p134_p2 }
   0x6   : > { %p162_p4 = scmp.lt.s32.totalorder (!%p135_p3), %s363_s9, 1 }
   0x7   : > { %138 = sbr.rel (%p135_p3) target bundleno = 41 (0x29), region = 24 }
   0xc   : > { %s443_s9 = smov (!%p162_p4, %s363_s9), 1  ;;  %v373_v0 = vmov 0.0  }
   0xd   : > { %s314_s13 = sshll.u32 %s443_s9, 4  ;;  %s410_s16 = scalar_lea.vmem %s436_s1, %s443_s9 }
   0xe   : > { %s169_s19 = scalar_lea.vmem %s435_s0, %s314_s13  ;;  %181 = vst [vmem:[%s410_s16] sm:$0x1] %v373_v0  ;;  %s419_s22 = scalar_lea.vmem %s437_s2, %s443_s9 }
   0xf   : > { %v316_v1 = vld [vmem:[%s169_s19] sm:$0xff]   ;;  %v323_v2 = vld [vmem:[%s169_s19 + $0x8] sm:$0xff]   ;;  %182 = vst [vmem:[%s419_s22] sm:$0x1] %v373_v0 }
  0x10   : > { %v317_v3 = vunpack.c.l.bf16 %v316_v1  ;;  %v318_v4 = vunpack.c.h.bf16 %v316_v1  ;;  %v321_v5 = vunpack.c.l.bf16 %v323_v2  ;;  %v322_v6 = vunpack.c.h.bf16 %v323_v2 }
  0x12   : > { %v192_v7 = vadd.f32 %v318_v4, %v317_v3  ;;  %v204_v8 = vmul.f32 %v317_v3, %v317_v3  ;;  %v205_v9 = vmul.f32 %v318_v4, %v318_v4  ;;  %v206_v10 = vmul.f32 %v321_v5, %v321_v5 }
  0x13   : > { %v207_v12 = vmul.f32 %v322_v6, %v322_v6 }
  0x14   : > { %v193_v11 = vadd.f32 %v321_v5, %v192_v7  ;;  %v208_v13 = vadd.f32 %v205_v9, %v204_v8 }
  0x15   : > { %v191_v26 = vld [vmem:[%s410_s16] sm:$0x1] }
  0x16   : > { %v194_v14 = vadd.f32 %v322_v6, %v193_v11  ;;  %v209_v15 = vadd.f32 %v208_v13, %v206_v10  ;;  %v203_v29 = vld [vmem:[%s419_s22] sm:$0x1] }
  0x18   : > { %v195_v16 = vrot.slane %v194_v14, 4  ;;  %v210_v17 = vadd.f32 %v209_v15, %v207_v12 }
  0x1a   : > { %v196_v18 = vadd.f32 %v195_v16, %v194_v14  ;;  %v211_v19 = vrot.slane %v210_v17, 4 }
  0x1c   : > { %v197_v20 = vrot.slane %v196_v18, 2  ;;  %v212_v21 = vadd.f32 %v211_v19, %v210_v17 }
  0x1e   : > { %v198_v22 = vadd.f32 %v197_v20, %v196_v18  ;;  %v213_v23 = vrot.slane %v212_v21, 2 }
  0x20   : > { %v199_v24 = vrot.slane %v198_v22, 1  ;;  %v214_v25 = vadd.f32 %v213_v23, %v212_v21 }
  0x22   : > { %v200_v27 = vadd.f32 %v199_v24, %v198_v22  ;;  %v215_v28 = vrot.slane %v214_v25, 1 }
  0x24   : > { %v201_v30 = vadd.f32 %v200_v27, %v191_v26  ;;  %v216_v31 = vadd.f32 %v215_v28, %v214_v25 }
  0x26   : > { %202 = vst [vmem:[%s410_s16] sm:$0x1] %v201_v30  ;;  %v217_v32 = vadd.f32 %v216_v31, %v203_v29 }
  0x28   : > { %218 = vst [vmem:[%s419_s22] sm:$0x1] %v217_v32 }
  0x29 PF: > { %s13_s11 = sadd.s32 1, %s371_s11   ;;  %s438_s9 = smov %s367_s10 }
  0x2a   : > { %p10_p5 = scmp.ge.s32.totalorder %s13_s11, 4   ;;  %s439_s10 = smov %s441_s12 }
  0x2c   :  { %12 = sbr.rel (!%p10_p5) target bundleno = 2 (0x2), region = 70 }

// kernel: transformer_network.38
= control target key start
LH: loop header
LB: loop body
LE: loop exit
PB: predicated region body
PF: predicated region fallthrough
CT: control target
= control target key end

     0   :  { %vm622_vm0 = vcmask 519168   ;;  %s1114_s1 = inlined_call_operand.vmem [shape: bf16[384,64], index: 1, kind: input, shape index: {}]   ;;  %s1115_s0 = inlined_call_operand.vmem [shape: bf16[128,384], index: 0, kind: input, shape index: {}]   ;;  %s1116_s2 = inlined_call_operand.vmem [shape: bf16[128,64], index: 2, kind: output, shape index: {}]  }
   0x1   :  { %v835_v0 = vld [vmem:[%s1114_s1 + $0x78] sm:$0xff]   ;;  %v838_v3 = vld [vmem:[%s1114_s1 + $0x70] sm:$0xff]   ;;  %v841_v6 = vld [vmem:[%s1114_s1 + $0x68] sm:$0xff]  }
   0x2   :  { %v836_v1 = vld [vmem:[%s1114_s1 + $0x38] sm:$0xff]   ;;  %723 = vmatprep.subr.bf16.mxu0 %v835_v0  ;;  %v839_v4 = vld [vmem:[%s1114_s1 + $0x30] sm:$0xff]   ;;  %v842_v7 = vld [vmem:[%s1114_s1 + $0x28] sm:$0xff]  }
   0x3   :  { %v837_v2 = vld [vmem:[%s1114_s1 + $0xb8] sm:$0xff]   ;;  %724 = vmatpush3.bf16.msra.mxu0 %v836_v1  ;;  %v840_v5 = vld [vmem:[%s1114_s1 + $0xb0] sm:$0xff]   ;;  %v843_v8 = vld [vmem:[%s1114_s1 + $0xa8] sm:$0xff]  }
   0x4   :  { %803 = vmatprep.subr.bf16.mxu1 %v837_v2  ;;  %725 = vmatprep.subr.bf16.mxu0 %v838_v3  ;;  %v844_v9 = vld [vmem:[%s1114_s1 + $0x60] sm:$0xff]   ;;  %v847_v12 = vld [vmem:[%s1114_s1 + $0x58] sm:$0xff]   ;;  %v850_v15 = vld [vmem:[%s1114_s1 + $0x50] sm:$0xff]  }
   0x5   :  { %804 = vmatpush3.bf16.msra.mxu1 %v837_v2  ;;  %v845_v10 = vld [vmem:[%s1114_s1 + $0x20] sm:$0xff]   ;;  %v849_v13 = vld [vmem:[%s1114_s1 + $0x98] sm:$0xff]   ;;  %v852_v16 = vld [vmem:[%s1114_s1 + $0x90] sm:$0xff]  }
   0x6   :  { %805 = vmatprep.subr.bf16.mxu1 %v840_v5  ;;  %v846_v11 = vld [vmem:[%s1114_s1 + $0xa0] sm:$0xff]   ;;  %v848_v14 = vld [vmem:[%s1114_s1 + $0x18] sm:$0xff]   ;;  %v851_v17 = vld [vmem:[%s1114_s1 + $0x10] sm:$0xff]  }
   0x7   :  { %726 = vmatpush3.bf16.msra.mxu0 %v839_v4  ;;  %v853_v18 = vld [vmem:[%s1114_s1 + $0x48] sm:$0xff]   ;;  %v856_v21 = vld [vmem:[%s1114_s1 + $0x40] sm:$0xff]   ;;  %v871_v32 = vld [vmem:[%s1115_s0 + $0x50] ss:$12 sps:$4 sm:$0xff]  }
   0x8   :  { %727 = vmatprep.subr.bf16.mxu0 %v841_v6  ;;  %v854_v19 = vld [vmem:[%s1114_s1 + $0x8] sm:$0xff]   ;;  %v858_v22 = vld [vmem:[%s1114_s1 + $0x80] sm:$0xff]   ;;  %v869_v34 = vld [vmem:[%s1115_s0 + $0x30] ss:$12 sps:$4 sm:$0xff]  }
   0x9   :  { %806 = vmatpush3.bf16.msra.mxu1 %v840_v5  ;;  %v855_v20 = vld [vmem:[%s1114_s1 + $0x88] sm:$0xff]   ;;  %v861_v23 = vld [vmem:[%s1115_s0 + $0x4] ss:$12 sps:$4 sm:$0xff]   ;;  %v867_v31 = vld [vmem:[%s1115_s0 + $0x34] ss:$12 sps:$4 sm:$0xff]  }
   0xa   :  { %807 = vmatprep.subr.bf16.mxu1 %v843_v8  ;;  %v862_v24 = vld [vmem:[%s1115_s0 + $0x8] ss:$12 sps:$4 sm:$0xff]   ;;  %v857_v25 = vld [vmem:[%s1114_s1] sm:$0xff]   ;;  %396 = vmatprep.mubr.bf16.mxu0 %v861_v23  ;;  %v872_v35 = vld [vmem:[%s1115_s0 + $0x4c] ss:$12 sps:$4 sm:$0xff]  }
   0xb   :  { %728 = vmatpush3.bf16.msra.mxu0 %v842_v7  ;;  %819 = vmatprep.mubr.bf16.mxu1 %v862_v24  ;;  %v859_v26 = vld [vmem:[%s1115_s0] ss:$12 sps:$4 sm:$0xff]   ;;  %v864_v27 = vld [vmem:[%s1115_s0 + $0x1c] ss:$12 sps:$4 sm:$0xff]   ;;  %v870_v29 = vld [vmem:[%s1115_s0 + $0x38] ss:$12 sps:$4 sm:$0xff]  }
   0xc   :  { %729 = vmatprep.subr.bf16.mxu0 %v844_v9  ;;  %v863_v28 = vld [vmem:[%s1115_s0 + $0x20] ss:$12 sps:$4 sm:$0xff]   ;;  %v866_v30 = vld [vmem:[%s1115_s0 + $0x18] ss:$12 sps:$4 sm:$0xff]   ;;  %v878_v33 = vld [vmem:[%s1115_s0 + $0x68] ss:$12 sps:$4 sm:$0xff]  }
   0xd   :  { %808 = vmatpush3.bf16.msra.mxu1 %v843_v8  ;;  %v879_v36 = vld [vmem:[%s1115_s0 + $0x80] ss:$12 sps:$4 sm:$0xff]   ;;  %v886_v37 = vld [vmem:[%s1115_s0 + $0x98] ss:$12 sps:$4 sm:$0xff]   ;;  %v874_v38 = vld [vmem:[%s1115_s0 + $0x48] ss:$12 sps:$4 sm:$0xff]  }
   0xe   :  { %809 = vmatprep.subr.bf16.mxu1 %v846_v11  ;;  %v875_v39 = vld [vmem:[%s1115_s0 + $0x64] ss:$12 sps:$4 sm:$0xff]   ;;  %v877_v41 = vld [vmem:[%s1115_s0 + $0x60] ss:$12 sps:$4 sm:$0xff]   ;;  %v880_v42 = vld [vmem:[%s1115_s0 + $0x7c] ss:$12 sps:$4 sm:$0xff]  }
   0xf   :  { %730 = vmatpush3.bf16.msra.mxu0 %v845_v10  ;;  %v887_v40 = vld [vmem:[%s1115_s0 + $0xb0] ss:$12 sps:$4 sm:$0xff]   ;;  %v882_v43 = vld [vmem:[%s1115_s0 + $0x78] ss:$12 sps:$4 sm:$0xff]   ;;  %v883_v44 = vld [vmem:[%s1115_s0 + $0x94] ss:$12 sps:$4 sm:$0xff]  }
  0x10   :  { %731 = vmatprep.subr.bf16.mxu0 %v847_v12  ;;  %v885_v45 = vld [vmem:[%s1115_s0 + $0x90] ss:$12 sps:$4 sm:$0xff]   ;;  %v888_v46 = vld [vmem:[%s1115_s0 + $0xac] ss:$12 sps:$4 sm:$0xff]   ;;  %v890_v47 = vld [vmem:[%s1115_s0 + $0xa8] ss:$12 sps:$4 sm:$0xff]  }
  0x11   :  { %810 = vmatpush3.bf16.msra.mxu1 %v846_v11 }
  0x12   :  { %811 = vmatprep.subr.bf16.mxu1 %v849_v13 }
  0x13   :  { %732 = vmatpush3.bf16.msra.mxu0 %v848_v14 }
  0x14   :  { %733 = vmatprep.subr.bf16.mxu0 %v850_v15 }
  0x15   :  { %812 = vmatpush3.bf16.msra.mxu1 %v849_v13 }
  0x16   :  { %813 = vmatprep.subr.bf16.mxu1 %v852_v16 }
  0x17   :  { %734 = vmatpush3.bf16.msra.mxu0 %v851_v17 }
  0x18   :  { %735 = vmatprep.subr.bf16.mxu0 %v853_v18 }
  0x19   :  { %814 = vmatpush3.bf16.msra.mxu1 %v852_v16 }
  0x1a   :  { %815 = vmatprep.subr.bf16.mxu1 %v855_v20 }
  0x1b   :  { %736 = vmatpush3.bf16.msra.mxu0 %v854_v19 }
  0x1c   :  { %737 = vmatprep.subr.bf16.mxu0 %v856_v21 }
  0x1d   :  { %816 = vmatpush3.bf16.msra.mxu1 %v855_v20 }
  0x1e   :  { %817 = vmatprep.subr.bf16.mxu1 %v858_v22 }
  0x1f   :  { %738 = vmatpush3.bf16.msra.mxu0 %v857_v25 }
  0x21   :  { %818 = vmatpush3.bf16.msra.mxu1 %v858_v22 }
  0x22   :  { %397 = vmatmul.mubr.bf16.vlgmr.msra.gmra.mxu0 %v859_v26 }
  0x23   :  { %404 = vmatprep.mubr.bf16.mxu0 %v864_v27 }
  0x24   :  { %820 = vmatmul.mubr.bf16.vlgmr.msra.gmra.mxu1 %v863_v28 }
  0x25   :  { %823 = vmatprep.mubr.bf16.mxu1 %v870_v29 }
  0x2a   :  { %405 = vmatmul.mubr.bf16.gmra.mxu0 %v866_v30 }
  0x2b   :  { %412 = vmatprep.mubr.bf16.mxu0 %v867_v31 }
  0x2c   :  { %824 = vmatmul.mubr.bf16.gmra.mxu1 %v871_v32 }
  0x2d   :  { %827 = vmatprep.mubr.bf16.mxu1 %v878_v33 }
  0x32   :  { %413 = vmatmul.mubr.bf16.gmra.mxu0 %v869_v34 }
  0x33   :  { %420 = vmatprep.mubr.bf16.mxu0 %v872_v35 }
  0x34   :  { %828 = vmatmul.mubr.bf16.gmra.mxu1 %v879_v36 }
  0x35   :  { %831 = vmatprep.mubr.bf16.mxu1 %v886_v37 }
  0x3a   :  { %421 = vmatmul.mubr.bf16.gmra.mxu0 %v874_v38 }
  0x3b   :  { %428 = vmatprep.mubr.bf16.mxu0 %v875_v39 }
  0x3c   :  { %832 = vmatmul.mubr.bf16.gmra.mxu1 %v887_v40 }
  0x42   :  { %429 = vmatmul.mubr.bf16.gmra.mxu0 %v877_v41 }
  0x43   :  { %436 = vmatprep.mubr.bf16.mxu0 %v880_v42 }
  0x4a   :  { %437 = vmatmul.mubr.bf16.gmra.mxu0 %v882_v43 }
  0x4b   :  { %444 = vmatprep.mubr.bf16.mxu0 %v883_v44 }
  0x52   :  { %445 = vmatmul.mubr.bf16.gmra.mxu0 %v885_v45 }
  0x53   :  { %452 = vmatprep.mubr.bf16.mxu0 %v888_v46 }
  0x5a   :  { %453 = vmatmul.mubr.bf16.gmra.mxu0 %v890_v47 }
  0xe2   :  { %v739_v48 = vpop.f32.mrf.mxu0 }
  0xe4   :  { %v740_v49 = vpop.f32.mrf.mxu0  ;;  %v821_v50 = vpop.f32.mrf.mxu1 }
  0xe5   :  { %v741_v51 = vadd.f32 %v740_v49, %v739_v48 }
  0xe6   :  { %v742_v52 = vpop.f32.mrf.mxu0  ;;  %v495_v53 = vpop.f32.mrf.mxu1 }
  0xe7   :  { %v496_v54 = vadd.f32 %v741_v51, %v495_v53 }
  0xe8   :  { %v743_v55 = vpop.f32.mrf.mxu0  ;;  %v822_v56 = vpop.f32.mrf.mxu1 }
  0xe9   :  { %v707_v57 = vpack.c.bf16 %v496_v54, %v496_v54  ;;  %v744_v58 = vadd.f32 %v743_v55, %v742_v52 }
  0xea   :  { %v745_v59 = vpop.f32.mrf.mxu0  ;;  %v498_v60 = vpop.f32.mrf.mxu1 }
  0xeb   :  { %623 = vst.msk [vmem:[%s1116_s2] sm:$0xf] %vm622_vm0, %v707_v57  ;;  %v499_v61 = vadd.f32 %v744_v58, %v498_v60 }
  0xec   :  { %v746_v62 = vpop.f32.mrf.mxu0  ;;  %v825_v63 = vpop.f32.mrf.mxu1 }
  0xed   :  { %v708_v0 = vpack.c.bf16 %v499_v61, %v499_v61  ;;  %v747_v1 = vadd.f32 %v746_v62, %v745_v59 }
  0xee   :  { %v748_v2 = vpop.f32.mrf.mxu0  ;;  %v511_v5 = vpop.f32.mrf.mxu1 }
  0xef   :  { %624 = vst.msk [vmem:[%s1116_s2 + $0x4] sm:$0xf] %vm622_vm0, %v708_v0  ;;  %v504_v3 = vadd.f32 %v821_v50, %v747_v1 }
  0xf0   :  { %v749_v4 = vpop.f32.mrf.mxu0  ;;  %v826_v11 = vpop.f32.mrf.mxu1 }
  0xf1   :  { %v709_v6 = vpack.c.bf16 %v504_v3, %v504_v3  ;;  %v750_v7 = vadd.f32 %v749_v4, %v748_v2 }
  0xf2   :  { %v751_v8 = vpop.f32.mrf.mxu0  ;;  %v514_v17 = vpop.f32.mrf.mxu1 }
  0xf3   :  { %625 = vst.msk [vmem:[%s1116_s2 + $0x8] sm:$0xf] %vm622_vm0, %v709_v6  ;;  %v507_v9 = vadd.f32 %v822_v56, %v750_v7 }
  0xf4   :  { %v752_v10 = vpop.f32.mrf.mxu0  ;;  %v829_v23 = vpop.f32.mrf.mxu1 }
  0xf5   :  { %v710_v12 = vpack.c.bf16 %v507_v9, %v507_v9  ;;  %v753_v13 = vadd.f32 %v752_v10, %v751_v8 }
  0xf6   :  { %v754_v14 = vpop.f32.mrf.mxu0  ;;  %v527_v29 = vpop.f32.mrf.mxu1 }
  0xf7   :  { %626 = vst.msk [vmem:[%s1116_s2 + $0xc] sm:$0xf] %vm622_vm0, %v710_v12  ;;  %v512_v15 = vadd.f32 %v753_v13, %v511_v5 }
  0xf8   :  { %v755_v16 = vpop.f32.mrf.mxu0  ;;  %v830_v35 = vpop.f32.mrf.mxu1 }
  0xf9   :  { %v711_v18 = vpack.c.bf16 %v512_v15, %v512_v15  ;;  %v756_v19 = vadd.f32 %v755_v16, %v754_v14 }
  0xfa   :  { %v757_v20 = vpop.f32.mrf.mxu0  ;;  %v530_v41 = vpop.f32.mrf.mxu1 }
  0xfb   :  { %627 = vst.msk [vmem:[%s1116_s2 + $0x10] sm:$0xf] %vm622_vm0, %v711_v18  ;;  %v515_v21 = vadd.f32 %v756_v19, %v514_v17 }
  0xfc   :  { %v758_v22 = vpop.f32.mrf.mxu0  ;;  %v833_v47 = vpop.f32.mrf.mxu1 }
  0xfd   :  { %v712_v24 = vpack.c.bf16 %v515_v21, %v515_v21  ;;  %v759_v25 = vadd.f32 %v758_v22, %v757_v20 }
  0xfe   :  { %v760_v26 = vpop.f32.mrf.mxu0  ;;  %v543_v53 = vpop.f32.mrf.mxu1 }
  0xff   :  { %628 = vst.msk [vmem:[%s1116_s2 + $0x14] sm:$0xf] %vm622_vm0, %v712_v24  ;;  %v520_v27 = vadd.f32 %v825_v63, %v759_v25 }
 0x100   :  { %v761_v28 = vpop.f32.mrf.mxu0  ;;  %v834_v59 = vpop.f32.mrf.mxu1 }
 0x101   :  { %v713_v30 = vpack.c.bf16 %v520_v27, %v520_v27  ;;  %v762_v31 = vadd.f32 %v761_v28, %v760_v26 }
 0x102   :  { %v763_v32 = vpop.f32.mrf.mxu0  ;;  %v546_v1 = vpop.f32.mrf.mxu1 }
 0x103   :  { %629 = vst.msk [vmem:[%s1116_s2 + $0x18] sm:$0xf] %vm622_vm0, %v713_v30  ;;  %v523_v33 = vadd.f32 %v826_v11, %v762_v31 }
 0x104   :  { %v764_v34 = vpop.f32.mrf.mxu0 }
 0x105   :  { %v714_v36 = vpack.c.bf16 %v523_v33, %v523_v33  ;;  %v765_v37 = vadd.f32 %v764_v34, %v763_v32 }
 0x106   :  { %v766_v38 = vpop.f32.mrf.mxu0 }
 0x107   :  { %630 = vst.msk [vmem:[%s1116_s2 + $0x1c] sm:$0xf] %vm622_vm0, %v714_v36  ;;  %v528_v39 = vadd.f32 %v765_v37, %v527_v29 }
 0x108   :  { %v767_v40 = vpop.f32.mrf.mxu0 }
 0x109   :  { %v715_v42 = vpack.c.bf16 %v528_v39, %v528_v39  ;;  %v768_v43 = vadd.f32 %v767_v40, %v766_v38 }
 0x10a   :  { %v769_v44 = vpop.f32.mrf.mxu0 }
 0x10b   :  { %631 = vst.msk [vmem:[%s1116_s2 + $0x20] sm:$0xf] %vm622_vm0, %v715_v42  ;;  %v531_v45 = vadd.f32 %v768_v43, %v530_v41 }
 0x10c   :  { %v770_v46 = vpop.f32.mrf.mxu0 }
 0x10d   :  { %v716_v48 = vpack.c.bf16 %v531_v45, %v531_v45  ;;  %v771_v49 = vadd.f32 %v770_v46, %v769_v44 }
 0x10e   :  { %v772_v50 = vpop.f32.mrf.mxu0 }
 0x10f   :  { %632 = vst.msk [vmem:[%s1116_s2 + $0x24] sm:$0xf] %vm622_vm0, %v716_v48  ;;  %v536_v51 = vadd.f32 %v829_v23, %v771_v49 }
 0x110   :  { %v773_v52 = vpop.f32.mrf.mxu0 }
 0x111   :  { %v717_v54 = vpack.c.bf16 %v536_v51, %v536_v51  ;;  %v774_v55 = vadd.f32 %v773_v52, %v772_v50 }
 0x112   :  { %v775_v56 = vpop.f32.mrf.mxu0 }
 0x113   :  { %633 = vst.msk [vmem:[%s1116_s2 + $0x28] sm:$0xf] %vm622_vm0, %v717_v54  ;;  %v539_v57 = vadd.f32 %v830_v35, %v774_v55 }
 0x114   :  { %v776_v58 = vpop.f32.mrf.mxu0 }
 0x115   :  { %v718_v60 = vpack.c.bf16 %v539_v57, %v539_v57  ;;  %v777_v61 = vadd.f32 %v776_v58, %v775_v56 }
 0x116   :  { %v778_v62 = vpop.f32.mrf.mxu0 }
 0x117   :  { %634 = vst.msk [vmem:[%s1116_s2 + $0x2c] sm:$0xf] %vm622_vm0, %v718_v60  ;;  %v544_v63 = vadd.f32 %v777_v61, %v543_v53 }
 0x118   :  { %v779_v0 = vpop.f32.mrf.mxu0 }
 0x119   :  { %v719_v2 = vpack.c.bf16 %v544_v63, %v544_v63  ;;  %v780_v3 = vadd.f32 %v779_v0, %v778_v62 }
 0x11a   :  { %v781_v4 = vpop.f32.mrf.mxu0 }
 0x11b   :  { %635 = vst.msk [vmem:[%s1116_s2 + $0x30] sm:$0xf] %vm622_vm0, %v719_v2  ;;  %v547_v5 = vadd.f32 %v780_v3, %v546_v1 }
 0x11c   :  { %v782_v6 = vpop.f32.mrf.mxu0 }
 0x11d   :  { %v720_v7 = vpack.c.bf16 %v547_v5, %v547_v5  ;;  %v783_v8 = vadd.f32 %v782_v6, %v781_v4 }
 0x11e   :  { %v784_v9 = vpop.f32.mrf.mxu0 }
 0x11f   :  { %636 = vst.msk [vmem:[%s1116_s2 + $0x34] sm:$0xf] %vm622_vm0, %v720_v7  ;;  %v552_v10 = vadd.f32 %v833_v47, %v783_v8 }
 0x120   :  { %v785_v11 = vpop.f32.mrf.mxu0 }
 0x121   :  { %v721_v12 = vpack.c.bf16 %v552_v10, %v552_v10  ;;  %v786_v13 = vadd.f32 %v785_v11, %v784_v9 }
 0x123   :  { %637 = vst.msk [vmem:[%s1116_s2 + $0x38] sm:$0xf] %vm622_vm0, %v721_v12  ;;  %v555_v14 = vadd.f32 %v834_v59, %v786_v13 }
 0x125   :  { %v722_v15 = vpack.c.bf16 %v555_v14, %v555_v14 }
 0x127   :  { %638 = vst.msk [vmem:[%s1116_s2 + $0x3c] sm:$0xf] %vm622_vm0, %v722_v15 }

// kernel: transformer_network.40
= control target key start
LH: loop header
LB: loop body
LE: loop exit
PB: predicated region body
PF: predicated region fallthrough
CT: control target
= control target key end

     0   :  { %s508_s12 = smov 0   ;;  %s510_s13 = smov 0   ;;  %s547_s0 = inlined_call_operand.vmem [shape: bf16[2,32,128], index: 0, kind: input, shape index: {}]   ;;  %s548_s1 = inlined_call_operand.vmem [shape: f32[2,1,128], index: 1, kind: input, shape index: {}]   ;;  %s549_s2 = inlined_call_operand.vmem [shape: f32[2,1,128], index: 2, kind: input, shape index: {}]   ;;  %s550_s3 = inlined_call_operand.vmem [shape: bf16[2,32,128], index: 3, kind: output, shape index: {}]  }
   0x1   :  { %s512_s14 = smov 0  }
   0x2 LB: > { %s25_s15 = sadd.s32 1, %s482_s13  ;;  %p401_p0 = scmp.ge.s32.totalorder %s486_s14, 1  ;;  %s486_s14 = sphi %s512_s14, %s13_s14   ;;  %s482_s13 = sphi %s510_s13, %s552_s13   ;;  %s478_s12 = sphi %s508_s12, %s551_s12  }
   0x3   : > { %p27_p1 = scmp.ge.s32.totalorder %s25_s15, 2  ;;  %p174_p2 = scmp.lt.s32.totalorder %s486_s14, 3 }
   0x5   : > { %s554_s15 = smov (%p27_p1, %s25_s15), 0  ;;  %p175_p3 = pnand %p401_p0, %p174_p2 }
   0x6   : > { %p213_p4 = scmp.lt.s32.totalorder (!%p175_p3), %s478_s12, 1 }
   0x7   : > { %178 = sbr.rel (%p175_p3) target bundleno = 27 (0x1b), region = 32 }
   0xc   : > { %s556_s12 = smov (!%p213_p4, %s478_s12), 1 }
   0xd   : > { %s414_s16 = sshll.u32 %s556_s12, 4  ;;  %s224_s19 = scalar_lea.vmem %s548_s1, %s556_s12 }
   0xe   : > { %s220_s22 = scalar_lea.vmem %s547_s0, %s414_s16  ;;  %s227_s25 = scalar_lea.vmem %s549_s2, %s556_s12  ;;  %v406_v2 = vld [vmem:[%s224_s19] ss:$0 sm:$0xff] }
   0xf   : > { %v421_v0 = vld [vmem:[%s220_s22] sm:$0xff]   ;;  %v438_v1 = vld [vmem:[%s220_s22 + $0x8] sm:$0xff]   ;;  %s236_s28 = scalar_lea.vmem %s550_s3, %s414_s16 }
  0x10   : > { %v422_v3 = vunpack.c.l.bf16 %v421_v0  ;;  %v423_v4 = vunpack.c.h.bf16 %v421_v0  ;;  %v426_v5 = vunpack.c.l.bf16 %v438_v1  ;;  %v427_v6 = vunpack.c.h.bf16 %v438_v1  ;;  %v407_v7 = vld [vmem:[%s227_s25] ss:$0 sm:$0xff] }
  0x12   : > { %v253_v8 = vmul.f32 %v422_v3, %v406_v2  ;;  %v254_v9 = vmul.f32 %v423_v4, %v406_v2  ;;  %v255_v10 = vmul.f32 %v426_v5, %v406_v2  ;;  %v256_v11 = vmul.f32 %v427_v6, %v406_v2 }
  0x14   : > { %v264_v12 = vadd.f32 %v407_v7, %v253_v8  ;;  %v265_v13 = vadd.f32 %v407_v7, %v254_v9  ;;  %v266_v14 = vadd.f32 %v407_v7, %v255_v10  ;;  %v267_v15 = vadd.f32 %v407_v7, %v256_v11 }
  0x16   : > { %v268_v16 = vmax.f32 %v264_v12, 0.0  ;;  %v269_v17 = vmax.f32 %v265_v13, 0.0  ;;  %v270_v18 = vmax.f32 %v266_v14, 0.0  ;;  %v271_v19 = vmax.f32 %v267_v15, 0.0 }
  0x18   : > { %v431_v20 = vpack.c.bf16 %v269_v17, %v268_v16  ;;  %v436_v21 = vpack.c.bf16 %v271_v19, %v270_v18 }
  0x1a   : > { %432 = vst [vmem:[%s236_s28] sm:$0xff] %v431_v20   ;;  %439 = vst [vmem:[%s236_s28 + $0x8] sm:$0xff] %v436_v21  }
  0x1b PF: > { %s13_s14 = sadd.s32 1, %s486_s14   ;;  %s551_s12 = smov %s482_s13 }
  0x1c   : > { %p10_p5 = scmp.ge.s32.totalorder %s13_s14, 4   ;;  %s552_s13 = smov %s554_s15 }
  0x1e   :  { %12 = sbr.rel (!%p10_p5) target bundleno = 2 (0x2), region = 68 }

// kernel: transformer_network.42
= control target key start
LH: loop header
LB: loop body
LE: loop exit
PB: predicated region body
PF: predicated region fallthrough
CT: control target
= control target key end

     0   :  { %s348_s12 = smov 0   ;;  %s378_s0 = inlined_call_operand.vmem [shape: bf16[2,16,128], index: 0, kind: input, shape index: {}]   ;;  %s379_s1 = inlined_call_operand.vmem [shape: f32[1,1,128], index: 1, kind: input, shape index: {}]   ;;  %s380_s2 = inlined_call_operand.vmem [shape: f32[1,1,128], index: 2, kind: input, shape index: {}]   ;;  %s381_s3 = inlined_call_operand.vmem [shape: bf16[2,16,128], index: 3, kind: output, shape index: {}]  }
   0x1 LB: > { %s284_s13 = sadd.s32 4294967295, %s326_s12   ;;  %p288_p0 = scmp.ge.s32.totalorder %s326_s12, 1  ;;  %s326_s12 = sphi %s348_s12, %s13_s12  }
   0x2   : > { %p137_p1 = scmp.lt.s32.totalorder %s326_s12, 3 }
   0x4   : > { %p138_p2 = pnand %p288_p0, %p137_p1 }
   0x5   : > { %p161_p3 = scmp.lt.s32.totalorder (!%p138_p2), %s284_s13, 1 }
   0x6   : > { %141 = sbr.rel (%p138_p2) target bundleno = 70 (0x46), region = 32 }
   0xb   : > { %s383_s13 = smov (!%p161_p3, %s284_s13), 1  ;;  %v203_v25 = vlaneseq  ;;  %v198_v27 = vld [vmem:[%s379_s1] sm:$0x1] }
   0xc   : > { %s297_s14 = sshll.u32 %s383_s13, 3  ;;  %v200_v31 = vld [vmem:[%s380_s2] sm:$0x1] }
   0xd   : > { %s165_s17 = scalar_lea.vmem %s378_s0, %s297_s14  ;;  %v204_v26 = vshrl.u32 %v203_v25, 7  ;;  %s170_s24 = scalar_lea.vmem %s381_s3, %s297_s14 }
   0xe   : > { %v302_v0 = vld [vmem:[%s165_s17] sm:$0xff]  }
   0xf   : > { %v303_v1 = vunpack.c.l.bf16 %v302_v0  ;;  %v304_v2 = vunpack.c.h.bf16 %v302_v0  ;;  %v205_v28 = vsub.s32 0, %v204_v26 }
  0x11   : > { %v175_v3 = vadd.f32 %v304_v2, %v303_v1  ;;  %v183_v4 = vmul.f32 %v303_v1, %v303_v1  ;;  %v184_v5 = vmul.f32 %v304_v2, %v304_v2 }
  0x13   : > { %v176_v6 = vrot.slane %v175_v3, 4  ;;  %v185_v7 = vadd.f32 %v184_v5, %v183_v4 }
  0x15   : > { %v177_v8 = vadd.f32 %v176_v6, %v175_v3  ;;  %v186_v9 = vrot.slane %v185_v7, 4 }
  0x17   : > { %v178_v10 = vrot.slane %v177_v8, 2  ;;  %v187_v11 = vadd.f32 %v186_v9, %v185_v7 }
  0x19   : > { %v179_v12 = vadd.f32 %v178_v10, %v177_v8  ;;  %v188_v13 = vrot.slane %v187_v11, 2 }
  0x1b   : > { %v180_v14 = vrot.slane %v179_v12, 1  ;;  %v189_v15 = vadd.f32 %v188_v13, %v187_v11 }
  0x1d   : > { %v181_v16 = vadd.f32 %v180_v14, %v179_v12  ;;  %v190_v17 = vrot.slane %v189_v15, 1 }
  0x1f   : > { %v182_v18 = vmul.f32 0.0625, %v181_v16  ;;  %v191_v19 = vadd.f32 %v190_v17, %v189_v15 }
  0x21   : > { %v192_v20 = vmul.f32 0.0625, %v191_v19  ;;  %v193_v21 = vmul.f32 %v182_v18, %v182_v18 }
  0x23   : > { %v194_v22 = vsub.f32 %v192_v20, %v193_v21 }
  0x25   : > { %v195_v23 = vmax.f32 %v194_v22, 0.0 }
  0x27   : > { %v196_v24 = vadd.f32 1e-05, %v195_v23 }
  0x29   : > { %318 = vrsqrt.f32 %v196_v24 }
  0x36   : > { %v319_v29 = vpop.eup %318 }
  0x37   : > { %v199_v30 = vmul.f32 %v319_v29, %v198_v27 }
  0x39   : > { %v201_v32 = vmul.f32 %v199_v30, %v182_v18  ;;  %v206_v33 = vrot.slane %v199_v30, %v205_v28 }
  0x3b   : > { %v202_v34 = vsub.f32 %v200_v31, %v201_v32  ;;  %v207_v35 = vmul.f32 %v303_v1, %v206_v33  ;;  %v208_v36 = vmul.f32 %v304_v2, %v206_v33 }
  0x3d   : > { %v213_v37 = vrot.slane %v202_v34, %v205_v28 }
  0x3f   : > { %v215_v38 = vadd.f32 %v213_v37, %v207_v35  ;;  %v216_v39 = vadd.f32 %v213_v37, %v208_v36 }
  0x41   : > { %v217_v40 = vmax.f32 %v215_v38, 0.0  ;;  %v218_v41 = vmax.f32 %v216_v39, 0.0 }
  0x43   : > { %v308_v42 = vpack.c.bf16 %v218_v41, %v217_v40 }
  0x45   : > { %309 = vst [vmem:[%s170_s24] sm:$0xff] %v308_v42  }
  0x46 PF: > { %s13_s12 = sadd.s32 1, %s326_s12  }
  0x47   : > { %p10_p4 = scmp.ge.s32.totalorder %s13_s12, 4  }
  0x49   :  { %12 = sbr.rel (!%p10_p4) target bundleno = 1 (0x1), region = 62 }

// kernel: transformer_network.41
= control target key start
LH: loop header
LB: loop body
LE: loop exit
PB: predicated region body
PF: predicated region fallthrough
CT: control target
= control target key end

     0   :  { %s947_s1 = inlined_call_operand.vmem [shape: bf16[640,128], index: 1, kind: input, shape index: {}]   ;;  %s948_s0 = inlined_call_operand.vmem [shape: bf16[32,640], index: 0, kind: input, shape index: {}]   ;;  %s949_s2 = inlined_call_operand.vmem [shape: bf16[32,128], index: 2, kind: output, shape index: {}]  }
   0x1   :  { %v722_v0 = vld [vmem:[%s947_s1 + $0x78] sm:$0xff]   ;;  %v726_v4 = vld [vmem:[%s947_s1 + $0x70] sm:$0xff]   ;;  %v730_v8 = vld [vmem:[%s947_s1 + $0x68] sm:$0xff]  }
   0x2   :  { %v723_v1 = vld [vmem:[%s947_s1 + $0xf8] sm:$0xff]   ;;  %636 = vmatprep.subr.bf16.mxu0 %v722_v0  ;;  %v727_v5 = vld [vmem:[%s947_s1 + $0xf0] sm:$0xff]   ;;  %v731_v9 = vld [vmem:[%s947_s1 + $0xe8] sm:$0xff]  }
   0x3   :  { %v724_v2 = vld [vmem:[%s947_s1 + $0x38] sm:$0xff]   ;;  %664 = vmatprep.subr.bf16.mxu1 %v723_v1  ;;  %v728_v6 = vld [vmem:[%s947_s1 + $0x30] sm:$0xff]   ;;  %v732_v10 = vld [vmem:[%s947_s1 + $0x28] sm:$0xff]  }
   0x4   :  { %v725_v3 = vld [vmem:[%s947_s1 + $0xb8] sm:$0xff]   ;;  %637 = vmatpush3.bf16.msra.mxu0 %v724_v2  ;;  %v729_v7 = vld [vmem:[%s947_s1 + $0xb0] sm:$0xff]   ;;  %v733_v11 = vld [vmem:[%s947_s1 + $0xa8] sm:$0xff]  }
   0x5   :  { %665 = vmatpush3.bf16.msra.mxu1 %v725_v3  ;;  %638 = vmatprep.subr.bf16.mxu0 %v726_v4  ;;  %v734_v12 = vld [vmem:[%s947_s1 + $0x60] sm:$0xff]   ;;  %v738_v16 = vld [vmem:[%s947_s1 + $0x58] sm:$0xff]   ;;  %v742_v20 = vld [vmem:[%s947_s1 + $0x50] sm:$0xff]  }
   0x6   :  { %666 = vmatprep.subr.bf16.mxu1 %v727_v5  ;;  %v735_v13 = vld [vmem:[%s947_s1 + $0xe0] sm:$0xff]   ;;  %v739_v17 = vld [vmem:[%s947_s1 + $0xd8] sm:$0xff]   ;;  %v743_v21 = vld [vmem:[%s947_s1 + $0xd0] sm:$0xff]  }
   0x7   :  { %v736_v14 = vld [vmem:[%s947_s1 + $0x20] sm:$0xff]   ;;  %v740_v18 = vld [vmem:[%s947_s1 + $0x18] sm:$0xff]   ;;  %v744_v22 = vld [vmem:[%s947_s1 + $0x10] sm:$0xff]  }
   0x8   :  { %639 = vmatpush3.bf16.msra.mxu0 %v728_v6  ;;  %v737_v15 = vld [vmem:[%s947_s1 + $0xa0] sm:$0xff]   ;;  %v741_v19 = vld [vmem:[%s947_s1 + $0x98] sm:$0xff]   ;;  %v745_v23 = vld [vmem:[%s947_s1 + $0x90] sm:$0xff]  }
   0x9   :  { %667 = vmatpush3.bf16.msra.mxu1 %v729_v7  ;;  %640 = vmatprep.subr.bf16.mxu0 %v730_v8  ;;  %v746_v24 = vld [vmem:[%s947_s1 + $0x48] sm:$0xff]   ;;  %v750_v28 = vld [vmem:[%s947_s1 + $0x40] sm:$0xff]   ;;  %v760_v36 = vld [vmem:[%s947_s1 + $0x138] sm:$0xff]  }
   0xa   :  { %668 = vmatprep.subr.bf16.mxu1 %v731_v9  ;;  %v747_v25 = vld [vmem:[%s947_s1 + $0xc8] sm:$0xff]   ;;  %v751_v29 = vld [vmem:[%s947_s1 + $0xc0] sm:$0xff]   ;;  %v761_v37 = vld [vmem:[%s947_s1 + $0x130] sm:$0xff]  }
   0xb   :  { %v748_v26 = vld [vmem:[%s947_s1 + $0x8] sm:$0xff]   ;;  %v752_v30 = vld [vmem:[%s947_s1] sm:$0xff]   ;;  %v764_v45 = vld [vmem:[%s947_s1 + $0x118] sm:$0xff]  }
   0xc   :  { %641 = vmatpush3.bf16.msra.mxu0 %v732_v10  ;;  %v749_v27 = vld [vmem:[%s947_s1 + $0x88] sm:$0xff]   ;;  %v753_v31 = vld [vmem:[%s947_s1 + $0x80] sm:$0xff]   ;;  %v771_v46 = vld [vmem:[%s947_s1 + $0x110] sm:$0xff]  }
   0xd   :  { %669 = vmatpush3.bf16.msra.mxu1 %v733_v11  ;;  %642 = vmatprep.subr.bf16.mxu0 %v734_v12  ;;  %v754_v32 = vld [vmem:[%s948_s0] ss:$20 sps:$4 sm:$0xff]   ;;  %v756_v33 = vld [vmem:[%s948_s0 + $0x4] ss:$20 sps:$4 sm:$0xff]   ;;  %v757_v34 = vld [vmem:[%s948_s0 + $0x8] ss:$20 sps:$4 sm:$0xff]  }
   0xe   :  { %670 = vmatprep.subr.bf16.mxu1 %v735_v13  ;;  %v759_v35 = vld [vmem:[%s948_s0 + $0xc] ss:$20 sps:$4 sm:$0xff]   ;;  %428 = vmatprep.mubr.bf16.mxu0 %v756_v33  ;;  %v767_v40 = vld [vmem:[%s948_s0 + $0x34] ss:$20 sps:$4 sm:$0xff]   ;;  %v770_v42 = vld [vmem:[%s948_s0 + $0x30] ss:$20 sps:$4 sm:$0xff]  }
   0xf   :  { %477 = vmatprep.mubr.bf16.mxu1 %v759_v35  ;;  %v762_v38 = vld [vmem:[%s947_s1 + $0x128] sm:$0xff]   ;;  %v763_v43 = vld [vmem:[%s947_s1 + $0x120] sm:$0xff]  }
  0x10   :  { %643 = vmatpush3.bf16.msra.mxu0 %v736_v14  ;;  %v765_v39 = vld [vmem:[%s948_s0 + $0x2c] ss:$20 sps:$4 sm:$0xff]   ;;  %v769_v41 = vld [vmem:[%s948_s0 + $0x28] ss:$20 sps:$4 sm:$0xff]   ;;  %v774_v44 = vld [vmem:[%s948_s0 + $0x10] ss:$20 sps:$4 sm:$0xff]  }
  0x11   :  { %671 = vmatpush3.bf16.msra.mxu1 %v737_v15  ;;  %644 = vmatprep.subr.bf16.mxu0 %v738_v16  ;;  %v772_v47 = vld [vmem:[%s947_s1 + $0x108] sm:$0xff]   ;;  %v773_v48 = vld [vmem:[%s947_s1 + $0x100] sm:$0xff]  }
  0x12   :  { %672 = vmatprep.subr.bf16.mxu1 %v739_v17  ;;  %v775_v49 = vld [vmem:[%s948_s0 + $0x38] ss:$20 sps:$4 sm:$0xff]  }
  0x14   :  { %645 = vmatpush3.bf16.msra.mxu0 %v740_v18 }
  0x15   :  { %673 = vmatpush3.bf16.msra.mxu1 %v741_v19  ;;  %646 = vmatprep.subr.bf16.mxu0 %v742_v20 }
  0x16   :  { %674 = vmatprep.subr.bf16.mxu1 %v743_v21 }
  0x18   :  { %647 = vmatpush3.bf16.msra.mxu0 %v744_v22 }
  0x19   :  { %675 = vmatpush3.bf16.msra.mxu1 %v745_v23  ;;  %648 = vmatprep.subr.bf16.mxu0 %v746_v24 }
  0x1a   :  { %676 = vmatprep.subr.bf16.mxu1 %v747_v25 }
  0x1c   :  { %649 = vmatpush3.bf16.msra.mxu0 %v748_v26 }
  0x1d   :  { %677 = vmatpush3.bf16.msra.mxu1 %v749_v27  ;;  %650 = vmatprep.subr.bf16.mxu0 %v750_v28 }
  0x1e   :  { %678 = vmatprep.subr.bf16.mxu1 %v751_v29 }
  0x20   :  { %651 = vmatpush3.bf16.msra.mxu0 %v752_v30 }
  0x21   :  { %679 = vmatpush3.bf16.msra.mxu1 %v753_v31  ;;  %702 = vmatprep.subr.bf16.mxu0 %v760_v36 }
  0x23   :  { %429 = vmatmul.mubr.bf16.vlgmr.msra.gmra.mxu0 %v754_v32 }
  0x24   :  { %478 = vmatmul.mubr.bf16.vlgmr.msra.gmra.mxu1 %v757_v34  ;;  %703 = vmatpush3.bf16.msra.mxu0 %v760_v36 }
  0x25   :  { %704 = vmatprep.subr.bf16.mxu0 %v761_v37  ;;  %436 = vmatprep.mubr.bf16.mxu0 %v765_v39 }
  0x26   :  { %485 = vmatprep.mubr.bf16.mxu1 %v767_v40 }
  0x28   :  { %705 = vmatpush3.bf16.msra.mxu0 %v761_v37 }
  0x29   :  { %706 = vmatprep.subr.bf16.mxu0 %v762_v38 }
  0x2b   :  { %437 = vmatmul.mubr.bf16.gmra.mxu0 %v769_v41 }
  0x2c   :  { %486 = vmatmul.mubr.bf16.gmra.mxu1 %v770_v42  ;;  %707 = vmatpush3.bf16.msra.mxu0 %v762_v38 }
  0x2d   :  { %708 = vmatprep.subr.bf16.mxu0 %v763_v43  ;;  %718 = vmatprep.mubr.bf16.mxu0 %v774_v44 }
  0x30   :  { %709 = vmatpush3.bf16.msra.mxu0 %v763_v43 }
  0x31   :  { %710 = vmatprep.subr.bf16.mxu0 %v764_v45 }
  0x34   :  { %711 = vmatpush3.bf16.msra.mxu0 %v764_v45 }
  0x35   :  { %712 = vmatprep.subr.bf16.mxu0 %v771_v46 }
  0x38   :  { %713 = vmatpush3.bf16.msra.mxu0 %v771_v46 }
  0x39   :  { %714 = vmatprep.subr.bf16.mxu0 %v772_v47 }
  0x3c   :  { %715 = vmatpush3.bf16.msra.mxu0 %v772_v47 }
  0x3d   :  { %716 = vmatprep.subr.bf16.mxu0 %v773_v48 }
  0x40   :  { %717 = vmatpush3.bf16.msra.mxu0 %v773_v48 }
  0x43   :  { %719 = vmatmul.mubr.bf16.vlgmr.msra.gmra.mxu0 %v775_v49 }
  0xe3   :  { %v652_v50 = vpop.f32.mrf.mxu0 }
  0xe4   :  { %v680_v51 = vpop.f32.mrf.mxu1 }
  0xe5   :  { %v653_v52 = vpop.f32.mrf.mxu0 }
  0xe6   :  { %v681_v53 = vpop.f32.mrf.mxu1  ;;  %v654_v7 = vadd.f32 %v653_v52, %v652_v50 }
  0xe7   :  { %v655_v54 = vpop.f32.mrf.mxu0  ;;  %v682_v8 = vadd.f32 %v681_v53, %v680_v51 }
  0xe8   :  { %v683_v55 = vpop.f32.mrf.mxu1 }
  0xe9   :  { %v656_v56 = vpop.f32.mrf.mxu0  ;;  %v480_v16 = vadd.f32 %v682_v8, %v654_v7 }
  0xea   :  { %v684_v57 = vpop.f32.mrf.mxu1  ;;  %v657_v9 = vadd.f32 %v656_v56, %v655_v54 }
  0xeb   :  { %v658_v58 = vpop.f32.mrf.mxu0  ;;  %v685_v10 = vadd.f32 %v684_v57, %v683_v55 }
  0xec   :  { %v686_v59 = vpop.f32.mrf.mxu1 }
  0xed   :  { %v659_v60 = vpop.f32.mrf.mxu0  ;;  %v483_v18 = vadd.f32 %v685_v10, %v657_v9 }
  0xee   :  { %v687_v61 = vpop.f32.mrf.mxu1  ;;  %v660_v2 = vadd.f32 %v659_v60, %v658_v58 }
  0xef   :  { %v661_v62 = vpop.f32.mrf.mxu0  ;;  %v688_v3 = vadd.f32 %v687_v61, %v686_v59 }
  0xf0   :  { %v689_v63 = vpop.f32.mrf.mxu1 }
  0xf1   :  { %v662_v0 = vpop.f32.mrf.mxu0  ;;  %v488_v12 = vadd.f32 %v688_v3, %v660_v2 }
  0xf2   :  { %v690_v1 = vpop.f32.mrf.mxu1  ;;  %v663_v4 = vadd.f32 %v662_v0, %v661_v62 }
  0xf3   :  { %v691_v5 = vadd.f32 %v690_v1, %v689_v63 }
  0xf5   :  { %v491_v13 = vadd.f32 %v691_v5, %v663_v4 }
 0x103   :  { %v720_v6 = vpop.f32.mrf.mxu0 }
 0x104   :  { %v537_v15 = vadd.f32 %v720_v6, %v488_v12 }
 0x105   :  { %v528_v11 = vpop.f32.mrf.mxu0 }
 0x106   :  { %v529_v20 = vadd.f32 %v528_v11, %v480_v16 }
 0x107   :  { %v721_v14 = vpop.f32.mrf.mxu0 }
 0x108   :  { %v540_v17 = vadd.f32 %v721_v14, %v491_v13 }
 0x109   :  { %v531_v19 = vpop.f32.mrf.mxu0 }
 0x10a   :  { %v633_v21 = vpack.c.bf16 %v540_v17, %v537_v15  ;;  %v532_v22 = vadd.f32 %v531_v19, %v483_v18 }
 0x10c   :  { %635 = vst [vmem:[%s949_s2 + $0x8] sm:$0xff] %v633_v21   ;;  %v628_v23 = vpack.c.bf16 %v532_v22, %v529_v20 }
 0x10e   :  { %629 = vst [vmem:[%s949_s2] sm:$0xff] %v628_v23  }

// kernel: transformer_network.46
= control target key start
LH: loop header
LB: loop body
LE: loop exit
PB: predicated region body
PF: predicated region fallthrough
CT: control target
= control target key end

     0   :  { %s423_s15 = smov 0   ;;  %s454_s0 = inlined_call_operand.vmem [shape: bf16[2,16,128], index: 0, kind: input, shape index: {}]   ;;  %s455_s1 = inlined_call_operand.vmem [shape: f32[1,1,128], index: 1, kind: input, shape index: {}]   ;;  %s456_s2 = inlined_call_operand.vmem [shape: f32[1,1,128], index: 2, kind: input, shape index: {}]   ;;  %s457_s3 = inlined_call_operand.vmem [shape: bf16[2,16,128], index: 3, kind: input, shape index: {}]   ;;  %s458_s4 = inlined_call_operand.vmem [shape: bf16[2,16,128], index: 4, kind: output, shape index: {}]  }
   0x1 LB: > { %s347_s16 = sadd.s32 4294967295, %s396_s15   ;;  %p351_p0 = scmp.ge.s32.totalorder %s396_s15, 1  ;;  %s396_s15 = sphi %s423_s15, %s14_s15  }
   0x2   : > { %p172_p1 = scmp.lt.s32.totalorder %s396_s15, 3 }
   0x4   : > { %p173_p2 = pnand %p351_p0, %p172_p1 }
   0x5   : > { %p203_p3 = scmp.lt.s32.totalorder (!%p173_p2), %s347_s16, 1 }
   0x6   : > { %176 = sbr.rel (%p173_p2) target bundleno = 70 (0x46), region = 36 }
   0xb   : > { %s460_s16 = smov (!%p203_p3, %s347_s16), 1  ;;  %v250_v25 = vlaneseq  ;;  %v245_v27 = vld [vmem:[%s455_s1] sm:$0x1] }
   0xc   : > { %s431_s17 = sshll.u32 %s460_s16, 3  ;;  %v247_v31 = vld [vmem:[%s456_s2] sm:$0x1] }
   0xd   : > { %s207_s20 = scalar_lea.vmem %s454_s0, %s431_s17  ;;  %v251_v26 = vshrl.u32 %v250_v25, 7  ;;  %s212_s25 = scalar_lea.vmem %s457_s3, %s431_s17 }
   0xe   : > { %v368_v0 = vld [vmem:[%s207_s20] sm:$0xff]   ;;  %s217_s30 = scalar_lea.vmem %s458_s4, %s431_s17 }
   0xf   : > { %v369_v1 = vunpack.c.l.bf16 %v368_v0  ;;  %v370_v2 = vunpack.c.h.bf16 %v368_v0  ;;  %v252_v28 = vsub.s32 0, %v251_v26  ;;  %v372_v34 = vld [vmem:[%s212_s25] sm:$0xff]  }
  0x10   : > { %v373_v39 = vunpack.c.l.bf16 %v372_v34  ;;  %v374_v40 = vunpack.c.h.bf16 %v372_v34 }
  0x11   : > { %v222_v3 = vadd.f32 %v370_v2, %v369_v1  ;;  %v230_v4 = vmul.f32 %v369_v1, %v369_v1  ;;  %v231_v5 = vmul.f32 %v370_v2, %v370_v2 }
  0x13   : > { %v223_v6 = vrot.slane %v222_v3, 4  ;;  %v232_v7 = vadd.f32 %v231_v5, %v230_v4 }
  0x15   : > { %v224_v8 = vadd.f32 %v223_v6, %v222_v3  ;;  %v233_v9 = vrot.slane %v232_v7, 4 }
  0x17   : > { %v225_v10 = vrot.slane %v224_v8, 2  ;;  %v234_v11 = vadd.f32 %v233_v9, %v232_v7 }
  0x19   : > { %v226_v12 = vadd.f32 %v225_v10, %v224_v8  ;;  %v235_v13 = vrot.slane %v234_v11, 2 }
  0x1b   : > { %v227_v14 = vrot.slane %v226_v12, 1  ;;  %v236_v15 = vadd.f32 %v235_v13, %v234_v11 }
  0x1d   : > { %v228_v16 = vadd.f32 %v227_v14, %v226_v12  ;;  %v237_v17 = vrot.slane %v236_v15, 1 }
  0x1f   : > { %v229_v18 = vmul.f32 0.0625, %v228_v16  ;;  %v238_v19 = vadd.f32 %v237_v17, %v236_v15 }
  0x21   : > { %v239_v20 = vmul.f32 0.0625, %v238_v19  ;;  %v240_v21 = vmul.f32 %v229_v18, %v229_v18 }
  0x23   : > { %v241_v22 = vsub.f32 %v239_v20, %v240_v21 }
  0x25   : > { %v242_v23 = vmax.f32 %v241_v22, 0.0 }
  0x27   : > { %v243_v24 = vadd.f32 1e-05, %v242_v23 }
  0x29   : > { %388 = vrsqrt.f32 %v243_v24 }
  0x36   : > { %v389_v29 = vpop.eup %388 }
  0x37   : > { %v246_v30 = vmul.f32 %v389_v29, %v245_v27 }
  0x39   : > { %v248_v32 = vmul.f32 %v246_v30, %v229_v18  ;;  %v253_v33 = vrot.slane %v246_v30, %v252_v28 }
  0x3b   : > { %v249_v35 = vsub.f32 %v247_v31, %v248_v32  ;;  %v254_v36 = vmul.f32 %v369_v1, %v253_v33  ;;  %v255_v37 = vmul.f32 %v370_v2, %v253_v33 }
  0x3d   : > { %v260_v38 = vrot.slane %v249_v35, %v252_v28 }
  0x3f   : > { %v262_v41 = vadd.f32 %v260_v38, %v254_v36  ;;  %v263_v42 = vadd.f32 %v260_v38, %v255_v37 }
  0x41   : > { %v268_v43 = vadd.f32 %v373_v39, %v262_v41  ;;  %v269_v44 = vadd.f32 %v374_v40, %v263_v42 }
  0x43   : > { %v378_v45 = vpack.c.bf16 %v269_v44, %v268_v43 }
  0x45   : > { %379 = vst [vmem:[%s217_s30] sm:$0xff] %v378_v45  }
  0x46 PF: > { %s14_s15 = sadd.s32 1, %s396_s15  }
  0x47   : > { %p11_p4 = scmp.ge.s32.totalorder %s14_s15, 4  }
  0x49   :  { %13 = sbr.rel (!%p11_p4) target bundleno = 1 (0x1), region = 69 }

// kernel: transformer_network.43
= control target key start
LH: loop header
LB: loop body
LE: loop exit
PB: predicated region body
PF: predicated region fallthrough
CT: control target
= control target key end

     0   :  { %s1609_s1 = inlined_call_operand.vmem [shape: bf16[1152,128], index: 1, kind: input, shape index: {}]   ;;  %s1610_s0 = inlined_call_operand.vmem [shape: bf16[32,1152], index: 0, kind: input, shape index: {}]   ;;  %s1611_s2 = inlined_call_operand.vmem [shape: bf16[32,128], index: 2, kind: output, shape index: {}]  }
   0x1   :  { %v1220_v0 = vld [vmem:[%s1609_s1 + $0x78] sm:$0xff]   ;;  %v1224_v4 = vld [vmem:[%s1609_s1 + $0x70] sm:$0xff]   ;;  %v1228_v8 = vld [vmem:[%s1609_s1 + $0x68] sm:$0xff]  }
   0x2   :  { %v1221_v1 = vld [vmem:[%s1609_s1 + $0xf8] sm:$0xff]   ;;  %1078 = vmatprep.subr.bf16.mxu0 %v1220_v0  ;;  %v1225_v5 = vld [vmem:[%s1609_s1 + $0xf0] sm:$0xff]   ;;  %v1229_v9 = vld [vmem:[%s1609_s1 + $0xe8] sm:$0xff]  }
   0x3   :  { %v1222_v2 = vld [vmem:[%s1609_s1 + $0x38] sm:$0xff]   ;;  %1106 = vmatprep.subr.bf16.mxu1 %v1221_v1  ;;  %v1226_v6 = vld [vmem:[%s1609_s1 + $0x30] sm:$0xff]   ;;  %v1230_v10 = vld [vmem:[%s1609_s1 + $0x28] sm:$0xff]  }
   0x4   :  { %v1223_v3 = vld [vmem:[%s1609_s1 + $0xb8] sm:$0xff]   ;;  %1079 = vmatpush3.bf16.msra.mxu0 %v1222_v2  ;;  %v1227_v7 = vld [vmem:[%s1609_s1 + $0xb0] sm:$0xff]   ;;  %v1231_v11 = vld [vmem:[%s1609_s1 + $0xa8] sm:$0xff]  }
   0x5   :  { %1107 = vmatpush3.bf16.msra.mxu1 %v1223_v3  ;;  %1080 = vmatprep.subr.bf16.mxu0 %v1224_v4  ;;  %v1232_v12 = vld [vmem:[%s1609_s1 + $0x60] sm:$0xff]   ;;  %v1236_v16 = vld [vmem:[%s1609_s1 + $0x58] sm:$0xff]   ;;  %v1240_v20 = vld [vmem:[%s1609_s1 + $0x50] sm:$0xff]  }
   0x6   :  { %1108 = vmatprep.subr.bf16.mxu1 %v1225_v5  ;;  %v1233_v13 = vld [vmem:[%s1609_s1 + $0xe0] sm:$0xff]   ;;  %v1237_v17 = vld [vmem:[%s1609_s1 + $0xd8] sm:$0xff]   ;;  %v1241_v21 = vld [vmem:[%s1609_s1 + $0xd0] sm:$0xff]  }
   0x7   :  { %v1234_v14 = vld [vmem:[%s1609_s1 + $0x20] sm:$0xff]   ;;  %v1238_v18 = vld [vmem:[%s1609_s1 + $0x18] sm:$0xff]   ;;  %v1242_v22 = vld [vmem:[%s1609_s1 + $0x10] sm:$0xff]  }
   0x8   :  { %1081 = vmatpush3.bf16.msra.mxu0 %v1226_v6  ;;  %v1235_v15 = vld [vmem:[%s1609_s1 + $0xa0] sm:$0xff]   ;;  %v1239_v19 = vld [vmem:[%s1609_s1 + $0x98] sm:$0xff]   ;;  %v1243_v23 = vld [vmem:[%s1609_s1 + $0x90] sm:$0xff]  }
   0x9   :  { %1109 = vmatpush3.bf16.msra.mxu1 %v1227_v7  ;;  %1082 = vmatprep.subr.bf16.mxu0 %v1228_v8  ;;  %v1244_v24 = vld [vmem:[%s1609_s1 + $0x48] sm:$0xff]   ;;  %v1248_v28 = vld [vmem:[%s1609_s1 + $0x40] sm:$0xff]   ;;  %v1258_v36 = vld [vmem:[%s1609_s1 + $0x178] sm:$0xff]  }
   0xa   :  { %1110 = vmatprep.subr.bf16.mxu1 %v1229_v9  ;;  %v1245_v25 = vld [vmem:[%s1609_s1 + $0xc8] sm:$0xff]   ;;  %v1249_v29 = vld [vmem:[%s1609_s1 + $0xc0] sm:$0xff]   ;;  %v1259_v37 = vld [vmem:[%s1609_s1 + $0x138] sm:$0xff]  }
   0xb   :  { %v1246_v26 = vld [vmem:[%s1609_s1 + $0x8] sm:$0xff]   ;;  %v1250_v30 = vld [vmem:[%s1609_s1] sm:$0xff]   ;;  %v1260_v38 = vld [vmem:[%s1609_s1 + $0x1f8] sm:$0xff]  }
   0xc   :  { %1083 = vmatpush3.bf16.msra.mxu0 %v1230_v10  ;;  %v1247_v27 = vld [vmem:[%s1609_s1 + $0x88] sm:$0xff]   ;;  %v1251_v31 = vld [vmem:[%s1609_s1 + $0x80] sm:$0xff]   ;;  %v1261_v39 = vld [vmem:[%s1609_s1 + $0x1b8] sm:$0xff]  }
   0xd   :  { %1111 = vmatpush3.bf16.msra.mxu1 %v1231_v11  ;;  %1084 = vmatprep.subr.bf16.mxu0 %v1232_v12  ;;  %v1252_v32 = vld [vmem:[%s1610_s0] ss:$36 sps:$4 sm:$0xff]   ;;  %v1255_v34 = vld [vmem:[%s1610_s0 + $0x8] ss:$36 sps:$4 sm:$0xff]   ;;  %v1262_v40 = vld [vmem:[%s1609_s1 + $0x170] sm:$0xff]  }
   0xe   :  { %1112 = vmatprep.subr.bf16.mxu1 %v1233_v13  ;;  %v1254_v33 = vld [vmem:[%s1610_s0 + $0x4] ss:$36 sps:$4 sm:$0xff]   ;;  %v1257_v35 = vld [vmem:[%s1610_s0 + $0xc] ss:$36 sps:$4 sm:$0xff]   ;;  %v1274_v52 = vld [vmem:[%s1609_s1 + $0x158] sm:$0xff]  }
   0xf   :  { %732 = vmatprep.mubr.bf16.mxu0 %v1254_v33  ;;  %781 = vmatprep.mubr.bf16.mxu1 %v1257_v35  ;;  %v1263_v41 = vld [vmem:[%s1609_s1 + $0x130] sm:$0xff]   ;;  %v1266_v44 = vld [vmem:[%s1609_s1 + $0x168] sm:$0xff]   ;;  %v1270_v48 = vld [vmem:[%s1609_s1 + $0x160] sm:$0xff]  }
  0x10   :  { %1085 = vmatpush3.bf16.msra.mxu0 %v1234_v14  ;;  %v1264_v42 = vld [vmem:[%s1609_s1 + $0x1f0] sm:$0xff]   ;;  %v1267_v45 = vld [vmem:[%s1609_s1 + $0x128] sm:$0xff]   ;;  %v1271_v49 = vld [vmem:[%s1609_s1 + $0x120] sm:$0xff]  }
  0x11   :  { %1113 = vmatpush3.bf16.msra.mxu1 %v1235_v15  ;;  %1086 = vmatprep.subr.bf16.mxu0 %v1236_v16  ;;  %v1265_v43 = vld [vmem:[%s1609_s1 + $0x1b0] sm:$0xff]   ;;  %v1268_v46 = vld [vmem:[%s1609_s1 + $0x1e8] sm:$0xff]   ;;  %v1272_v50 = vld [vmem:[%s1609_s1 + $0x1e0] sm:$0xff]  }
  0x12   :  { %1114 = vmatprep.subr.bf16.mxu1 %v1237_v17  ;;  %v1269_v47 = vld [vmem:[%s1609_s1 + $0x1a8] sm:$0xff]   ;;  %v1273_v51 = vld [vmem:[%s1609_s1 + $0x1a0] sm:$0xff]   ;;  %v1275_v53 = vld [vmem:[%s1609_s1 + $0x118] sm:$0xff]  }
  0x13   :  { %v1276_v54 = vld [vmem:[%s1610_s0 + $0x4c] ss:$36 sps:$4 sm:$0xff]   ;;  %v1278_v55 = vld [vmem:[%s1610_s0 + $0x54] ss:$36 sps:$4 sm:$0xff]   ;;  %v1292_v4 = vld [vmem:[%s1609_s1 + $0x140] sm:$0xff]  }
  0x14   :  { %1087 = vmatpush3.bf16.msra.mxu0 %v1238_v18  ;;  %v1280_v56 = vld [vmem:[%s1609_s1 + $0x1d8] sm:$0xff]   ;;  %v1281_v57 = vld [vmem:[%s1610_s0 + $0x48] ss:$36 sps:$4 sm:$0xff]   ;;  %v1282_v58 = vld [vmem:[%s1610_s0 + $0x50] ss:$36 sps:$4 sm:$0xff]  }
  0x15   :  { %1115 = vmatpush3.bf16.msra.mxu1 %v1239_v19  ;;  %1088 = vmatprep.subr.bf16.mxu0 %v1240_v20  ;;  %v1283_v59 = vld [vmem:[%s1609_s1 + $0x198] sm:$0xff]   ;;  %v1284_v60 = vld [vmem:[%s1609_s1 + $0x150] sm:$0xff]   ;;  %v1288_v0 = vld [vmem:[%s1609_s1 + $0x148] sm:$0xff]  }
  0x16   :  { %1116 = vmatprep.subr.bf16.mxu1 %v1241_v21  ;;  %v1285_v61 = vld [vmem:[%s1609_s1 + $0x110] sm:$0xff]   ;;  %v1289_v1 = vld [vmem:[%s1609_s1 + $0x108] sm:$0xff]   ;;  %v1293_v5 = vld [vmem:[%s1609_s1 + $0x100] sm:$0xff]  }
  0x17   :  { %v1286_v62 = vld [vmem:[%s1609_s1 + $0x1d0] sm:$0xff]   ;;  %v1290_v2 = vld [vmem:[%s1609_s1 + $0x1c8] sm:$0xff]   ;;  %v1294_v6 = vld [vmem:[%s1609_s1 + $0x1c0] sm:$0xff]  }
  0x18   :  { %1089 = vmatpush3.bf16.msra.mxu0 %v1242_v22  ;;  %v1287_v63 = vld [vmem:[%s1609_s1 + $0x190] sm:$0xff]   ;;  %v1291_v3 = vld [vmem:[%s1609_s1 + $0x188] sm:$0xff]   ;;  %v1298_v9 = vld [vmem:[%s1609_s1 + $0x180] sm:$0xff]  }
  0x19   :  { %1117 = vmatpush3.bf16.msra.mxu1 %v1243_v23  ;;  %1090 = vmatprep.subr.bf16.mxu0 %v1244_v24  ;;  %v1295_v7 = vld [vmem:[%s1610_s0 + $0x10] ss:$36 sps:$4 sm:$0xff]   ;;  %v1299_v10 = vld [vmem:[%s1609_s1 + $0x238] sm:$0xff]   ;;  %v1307_v16 = vld [vmem:[%s1609_s1 + $0x228] sm:$0xff]  }
  0x1a   :  { %1118 = vmatprep.subr.bf16.mxu1 %v1245_v25  ;;  %v1297_v8 = vld [vmem:[%s1610_s0 + $0x14] ss:$36 sps:$4 sm:$0xff]   ;;  %v1302_v12 = vld [vmem:[%s1610_s0 + $0x1c] ss:$36 sps:$4 sm:$0xff]   ;;  %v1308_v17 = vld [vmem:[%s1610_s0 + $0x64] ss:$36 sps:$4 sm:$0xff]  }
  0x1b   :  { %v1300_v11 = vld [vmem:[%s1610_s0 + $0x18] ss:$36 sps:$4 sm:$0xff]   ;;  %v1303_v13 = vld [vmem:[%s1609_s1 + $0x230] sm:$0xff]   ;;  %v1310_v18 = vld [vmem:[%s1610_s0 + $0x60] ss:$36 sps:$4 sm:$0xff]  }
  0x1c   :  { %1091 = vmatpush3.bf16.msra.mxu0 %v1246_v26  ;;  %v1304_v14 = vld [vmem:[%s1610_s0 + $0x5c] ss:$36 sps:$4 sm:$0xff]   ;;  %v1313_v22 = vld [vmem:[%s1609_s1 + $0x210] sm:$0xff]   ;;  %v1314_v23 = vld [vmem:[%s1609_s1 + $0x208] sm:$0xff]  }
  0x1d   :  { %1119 = vmatpush3.bf16.msra.mxu1 %v1247_v27  ;;  %1092 = vmatprep.subr.bf16.mxu0 %v1248_v28  ;;  %v1306_v15 = vld [vmem:[%s1610_s0 + $0x58] ss:$36 sps:$4 sm:$0xff]   ;;  %v1311_v19 = vld [vmem:[%s1609_s1 + $0x220] sm:$0xff]   ;;  %v1317_v25 = vld [vmem:[%s1610_s0 + $0x68] ss:$36 sps:$4 sm:$0xff]  }
  0x1e   :  { %1120 = vmatprep.subr.bf16.mxu1 %v1249_v29  ;;  %v1312_v20 = vld [vmem:[%s1609_s1 + $0x218] sm:$0xff]   ;;  %v1316_v21 = vld [vmem:[%s1610_s0 + $0x20] ss:$36 sps:$4 sm:$0xff]  }
  0x1f   :  { %v1315_v24 = vld [vmem:[%s1609_s1 + $0x200] sm:$0xff]  }
  0x20   :  { %1093 = vmatpush3.bf16.msra.mxu0 %v1250_v30 }
  0x21   :  { %1121 = vmatpush3.bf16.msra.mxu1 %v1251_v31  ;;  %1134 = vmatprep.subr.bf16.mxu0 %v1258_v36 }
  0x22   :  { %1162 = vmatprep.subr.bf16.mxu1 %v1260_v38 }
  0x23   :  { %733 = vmatmul.mubr.bf16.vlgmr.msra.gmra.mxu0 %v1252_v32 }
  0x24   :  { %782 = vmatmul.mubr.bf16.vlgmr.msra.gmra.mxu1 %v1255_v34  ;;  %1135 = vmatpush3.bf16.msra.mxu0 %v1259_v37 }
  0x25   :  { %1163 = vmatpush3.bf16.msra.mxu1 %v1261_v39  ;;  %1136 = vmatprep.subr.bf16.mxu0 %v1262_v40 }
  0x26   :  { %1164 = vmatprep.subr.bf16.mxu1 %v1264_v42  ;;  %740 = vmatprep.mubr.bf16.mxu0 %v1276_v54 }
  0x27   :  { %789 = vmatprep.mubr.bf16.mxu1 %v1278_v55 }
  0x28   :  { %1137 = vmatpush3.bf16.msra.mxu0 %v1263_v41 }
  0x29   :  { %1165 = vmatpush3.bf16.msra.mxu1 %v1265_v43  ;;  %1138 = vmatprep.subr.bf16.mxu0 %v1266_v44 }
  0x2a   :  { %1166 = vmatprep.subr.bf16.mxu1 %v1268_v46 }
  0x2b   :  { %741 = vmatmul.mubr.bf16.gmra.mxu0 %v1281_v57 }
  0x2c   :  { %1139 = vmatpush3.bf16.msra.mxu0 %v1267_v45  ;;  %790 = vmatmul.mubr.bf16.gmra.mxu1 %v1282_v58 }
  0x2d   :  { %1167 = vmatpush3.bf16.msra.mxu1 %v1269_v47  ;;  %1140 = vmatprep.subr.bf16.mxu0 %v1270_v48 }
  0x2e   :  { %1168 = vmatprep.subr.bf16.mxu1 %v1272_v50  ;;  %830 = vmatprep.mubr.bf16.mxu0 %v1297_v8 }
  0x2f   :  { %879 = vmatprep.mubr.bf16.mxu1 %v1302_v12 }
  0x30   :  { %1141 = vmatpush3.bf16.msra.mxu0 %v1271_v49 }
  0x31   :  { %1169 = vmatpush3.bf16.msra.mxu1 %v1273_v51  ;;  %1142 = vmatprep.subr.bf16.mxu0 %v1274_v52 }
  0x32   :  { %1170 = vmatprep.subr.bf16.mxu1 %v1280_v56 }
  0x34   :  { %1143 = vmatpush3.bf16.msra.mxu0 %v1275_v53 }
  0x35   :  { %1171 = vmatpush3.bf16.msra.mxu1 %v1283_v59  ;;  %1144 = vmatprep.subr.bf16.mxu0 %v1284_v60 }
  0x36   :  { %1172 = vmatprep.subr.bf16.mxu1 %v1286_v62 }
  0x38   :  { %1145 = vmatpush3.bf16.msra.mxu0 %v1285_v61 }
  0x39   :  { %1173 = vmatpush3.bf16.msra.mxu1 %v1287_v63  ;;  %1146 = vmatprep.subr.bf16.mxu0 %v1288_v0 }
  0x3a   :  { %1174 = vmatprep.subr.bf16.mxu1 %v1290_v2 }
  0x3c   :  { %1147 = vmatpush3.bf16.msra.mxu0 %v1289_v1 }
  0x3d   :  { %1175 = vmatpush3.bf16.msra.mxu1 %v1291_v3  ;;  %1148 = vmatprep.subr.bf16.mxu0 %v1292_v4 }
  0x3e   :  { %1176 = vmatprep.subr.bf16.mxu1 %v1294_v6 }
  0x40   :  { %1149 = vmatpush3.bf16.msra.mxu0 %v1293_v5 }
  0x41   :  { %1177 = vmatpush3.bf16.msra.mxu1 %v1298_v9  ;;  %1200 = vmatprep.subr.bf16.mxu0 %v1299_v10 }
  0x43   :  { %831 = vmatmul.mubr.bf16.vlgmr.msra.gmra.mxu0 %v1295_v7 }
  0x44   :  { %1201 = vmatpush3.bf16.msra.mxu0 %v1299_v10  ;;  %880 = vmatmul.mubr.bf16.vlgmr.msra.gmra.mxu1 %v1300_v11 }
  0x45   :  { %1202 = vmatprep.subr.bf16.mxu0 %v1303_v13  ;;  %838 = vmatprep.mubr.bf16.mxu0 %v1304_v14 }
  0x46   :  { %887 = vmatprep.mubr.bf16.mxu1 %v1308_v17 }
  0x48   :  { %1203 = vmatpush3.bf16.msra.mxu0 %v1303_v13 }
  0x49   :  { %1204 = vmatprep.subr.bf16.mxu0 %v1307_v16 }
  0x4b   :  { %839 = vmatmul.mubr.bf16.gmra.mxu0 %v1306_v15 }
  0x4c   :  { %1205 = vmatpush3.bf16.msra.mxu0 %v1307_v16  ;;  %888 = vmatmul.mubr.bf16.gmra.mxu1 %v1310_v18 }
  0x4d   :  { %1206 = vmatprep.subr.bf16.mxu0 %v1311_v19  ;;  %1216 = vmatprep.mubr.bf16.mxu0 %v1316_v21 }
  0x50   :  { %1207 = vmatpush3.bf16.msra.mxu0 %v1311_v19 }
  0x51   :  { %1208 = vmatprep.subr.bf16.mxu0 %v1312_v20 }
  0x54   :  { %1209 = vmatpush3.bf16.msra.mxu0 %v1312_v20 }
  0x55   :  { %1210 = vmatprep.subr.bf16.mxu0 %v1313_v22 }
  0x58   :  { %1211 = vmatpush3.bf16.msra.mxu0 %v1313_v22 }
  0x59   :  { %1212 = vmatprep.subr.bf16.mxu0 %v1314_v23 }
  0x5c   :  { %1213 = vmatpush3.bf16.msra.mxu0 %v1314_v23 }
  0x5d   :  { %1214 = vmatprep.subr.bf16.mxu0 %v1315_v24 }
  0x60   :  { %1215 = vmatpush3.bf16.msra.mxu0 %v1315_v24 }
  0x63   :  { %1217 = vmatmul.mubr.bf16.vlgmr.msra.gmra.mxu0 %v1317_v25 }
  0xe3   :  { %v1094_v26 = vpop.f32.mrf.mxu0 }
  0xe4   :  { %v1122_v27 = vpop.f32.mrf.mxu1 }
  0xe5   :  { %v1095_v28 = vpop.f32.mrf.mxu0 }
  0xe6   :  { %v1123_v29 = vpop.f32.mrf.mxu1  ;;  %v1096_v61 = vadd.f32 %v1095_v28, %v1094_v26 }
  0xe7   :  { %v1097_v30 = vpop.f32.mrf.mxu0  ;;  %v1124_v62 = vadd.f32 %v1123_v29, %v1122_v27 }
  0xe8   :  { %v1125_v31 = vpop.f32.mrf.mxu1 }
  0xe9   :  { %v1098_v32 = vpop.f32.mrf.mxu0  ;;  %v784_v8 = vadd.f32 %v1124_v62, %v1096_v61 }
  0xea   :  { %v1126_v34 = vpop.f32.mrf.mxu1  ;;  %v1099_v63 = vadd.f32 %v1098_v32, %v1097_v30 }
  0xeb   :  { %v1100_v33 = vpop.f32.mrf.mxu0  ;;  %v1127_v0 = vadd.f32 %v1126_v34, %v1125_v31 }
  0xec   :  { %v1128_v35 = vpop.f32.mrf.mxu1 }
  0xed   :  { %v1101_v36 = vpop.f32.mrf.mxu0  ;;  %v787_v9 = vadd.f32 %v1127_v0, %v1099_v63 }
  0xee   :  { %v1129_v37 = vpop.f32.mrf.mxu1  ;;  %v1102_v57 = vadd.f32 %v1101_v36, %v1100_v33 }
  0xef   :  { %v1103_v38 = vpop.f32.mrf.mxu0  ;;  %v1130_v58 = vadd.f32 %v1129_v37, %v1128_v35 }
  0xf0   :  { %v1131_v39 = vpop.f32.mrf.mxu1 }
  0xf1   :  { %v1104_v40 = vpop.f32.mrf.mxu0  ;;  %v792_v4 = vadd.f32 %v1130_v58, %v1102_v57 }
  0xf2   :  { %v1132_v42 = vpop.f32.mrf.mxu1  ;;  %v1105_v59 = vadd.f32 %v1104_v40, %v1103_v38 }
  0xf3   :  { %v1133_v60 = vadd.f32 %v1132_v42, %v1131_v39 }
  0xf5   :  { %v795_v5 = vadd.f32 %v1133_v60, %v1105_v59 }
 0x103   :  { %v1150_v41 = vpop.f32.mrf.mxu0 }
 0x104   :  { %v1178_v44 = vpop.f32.mrf.mxu1 }
 0x105   :  { %v1151_v43 = vpop.f32.mrf.mxu0 }
 0x106   :  { %v1179_v46 = vpop.f32.mrf.mxu1  ;;  %v1152_v6 = vadd.f32 %v1151_v43, %v1150_v41 }
 0x107   :  { %v1153_v45 = vpop.f32.mrf.mxu0  ;;  %v1180_v16 = vadd.f32 %v1179_v46, %v1178_v44 }
 0x108   :  { %v1181_v48 = vpop.f32.mrf.mxu1  ;;  %v833_v15 = vadd.f32 %v1152_v6, %v784_v8 }
 0x109   :  { %v1154_v47 = vpop.f32.mrf.mxu0 }
 0x10a   :  { %v1182_v50 = vpop.f32.mrf.mxu1  ;;  %v1155_v7 = vadd.f32 %v1154_v47, %v1153_v45  ;;  %v882_v24 = vadd.f32 %v1180_v16, %v833_v15 }
 0x10b   :  { %v1156_v49 = vpop.f32.mrf.mxu0  ;;  %v1183_v18 = vadd.f32 %v1182_v50, %v1181_v48 }
 0x10c   :  { %v1184_v52 = vpop.f32.mrf.mxu1  ;;  %v836_v17 = vadd.f32 %v1155_v7, %v787_v9 }
 0x10d   :  { %v1157_v51 = vpop.f32.mrf.mxu0 }
 0x10e   :  { %v1185_v54 = vpop.f32.mrf.mxu1  ;;  %v1158_v1 = vadd.f32 %v1157_v51, %v1156_v49  ;;  %v885_v26 = vadd.f32 %v1183_v18, %v836_v17 }
 0x10f   :  { %v1159_v53 = vpop.f32.mrf.mxu0  ;;  %v1186_v11 = vadd.f32 %v1185_v54, %v1184_v52 }
 0x110   :  { %v1187_v56 = vpop.f32.mrf.mxu1  ;;  %v841_v10 = vadd.f32 %v1158_v1, %v792_v4 }
 0x111   :  { %v1160_v55 = vpop.f32.mrf.mxu0 }
 0x112   :  { %v1161_v2 = vadd.f32 %v1160_v55, %v1159_v53  ;;  %v1188_v3 = vpop.f32.mrf.mxu1  ;;  %v890_v20 = vadd.f32 %v1186_v11, %v841_v10 }
 0x113   :  { %v1189_v13 = vadd.f32 %v1188_v3, %v1187_v56 }
 0x114   :  { %v844_v12 = vadd.f32 %v1161_v2, %v795_v5 }
 0x116   :  { %v893_v21 = vadd.f32 %v1189_v13, %v844_v12 }
 0x123   :  { %v1218_v14 = vpop.f32.mrf.mxu0 }
 0x124   :  { %v939_v23 = vadd.f32 %v1218_v14, %v890_v20 }
 0x125   :  { %v930_v19 = vpop.f32.mrf.mxu0 }
 0x126   :  { %v931_v28 = vadd.f32 %v930_v19, %v882_v24 }
 0x127   :  { %v1219_v22 = vpop.f32.mrf.mxu0 }
 0x128   :  { %v942_v25 = vadd.f32 %v1219_v22, %v893_v21 }
 0x129   :  { %v933_v27 = vpop.f32.mrf.mxu0 }
 0x12a   :  { %v1075_v29 = vpack.c.bf16 %v942_v25, %v939_v23  ;;  %v934_v30 = vadd.f32 %v933_v27, %v885_v26 }
 0x12c   :  { %1077 = vst [vmem:[%s1611_s2 + $0x8] sm:$0xff] %v1075_v29   ;;  %v1070_v31 = vpack.c.bf16 %v934_v30, %v931_v28 }
 0x12e   :  { %1071 = vst [vmem:[%s1611_s2] sm:$0xff] %v1070_v31  }

// kernel: transformer_network.64
= control target key start
LH: loop header
LB: loop body
LE: loop exit
PB: predicated region body
PF: predicated region fallthrough
CT: control target
= control target key end

     0   :  { %s458_s9 = smov 0   ;;  %s460_s10 = smov 0   ;;  %s516_s0 = inlined_call_operand.vmem [shape: bf16[2,16,256], index: 0, kind: input, shape index: {}]   ;;  %s517_s1 = inlined_call_operand.vmem [shape: f32[2,1,256], index: 1, kind: output, shape index: {0}]   ;;  %s518_s2 = inlined_call_operand.vmem [shape: f32[2,1,256], index: 2, kind: output, shape index: {1}]  }
   0x1   :  { %s462_s11 = smov 0  }
   0x2 LB: > { %s25_s12 = sadd.s32 1, %s435_s10  ;;  %p383_p0 = scmp.ge.s32.totalorder %s439_s11, 1  ;;  %s439_s11 = sphi %s462_s11, %s13_s11   ;;  %s435_s10 = sphi %s460_s10, %s522_s10   ;;  %s431_s9 = sphi %s458_s9, %s521_s9  }
   0x3   : > { %p27_p1 = scmp.ge.s32.totalorder %s25_s12, 2  ;;  %p135_p2 = scmp.lt.s32.totalorder %s439_s11, 3 }
   0x5   : > { %s524_s12 = smov (%p27_p1, %s25_s12), 0  ;;  %p136_p3 = pnand %p383_p0, %p135_p2 }
   0x6   : > { %p166_p4 = scmp.lt.s32.totalorder (!%p136_p3), %s431_s9, 1 }
   0x7   : > { %139 = sbr.rel (%p136_p3) target bundleno = 44 (0x2c), region = 24 }
   0xc   : > { %v188_v0 = vlaneseq  ;;  %s526_s9 = smov (!%p166_p4, %s431_s9), 1  ;;  %v441_v2 = vmov 0.0   ;;  %v442_v21 = vmov 1966171168  }
   0xd   : > { %s390_s13 = sshll.u32 %s526_s9, 4  ;;  %s386_s14 = sshll.u32 %s526_s9, 1  ;;  %v219_v22 = vunpack.c.l.s4 %v442_v21 }
   0xe   : > { %vm476_vm0 = vcmp.lt.s32.totalorder %v188_v0, 256  ;;  %s174_s17 = scalar_lea.vmem %s516_s0, %s390_s13  ;;  %s486_s20 = scalar_lea.vmem %s517_s1, %s386_s14  ;;  %v222_v32 = vshrl.u32 %v188_v0, 7 }
   0xf   : > { %192 = vst.msk [vmem:[%s486_s20] sm:$0x3] %vm476_vm0, %v441_v2  ;;  %v194_v3 = vld [vmem:[%s174_s17] sm:$0xff]  ;;  %v195_v4 = vld [vmem:[%s174_s17 + $0x8] sm:$0xff]  ;;  %s494_s23 = scalar_lea.vmem %s518_s2, %s386_s14  ;;  %v220_v31 = vunpack.c.0.s8 %v219_v22 }
  0x10   : > { %v196_v5 = vunpack.c.l.bf16 %v194_v3  ;;  %v197_v6 = vunpack.c.h.bf16 %v194_v3  ;;  %v198_v7 = vunpack.c.l.bf16 %v195_v4  ;;  %v199_v8 = vunpack.c.h.bf16 %v195_v4  ;;  %193 = vst.msk [vmem:[%s494_s23] sm:$0x3] %vm476_vm0, %v441_v2 }
  0x11   : > { %v223_v41 = vsub.s32 %v220_v31, %v222_v32 }
  0x12   : > { %v201_v9 = vadd.f32 %v198_v7, %v196_v5  ;;  %v208_v10 = vadd.f32 %v199_v8, %v197_v6  ;;  %v240_v11 = vmul.f32 %v196_v5, %v196_v5  ;;  %v241_v12 = vmul.f32 %v197_v6, %v197_v6 }
  0x13   : > { %v242_v13 = vmul.f32 %v198_v7, %v198_v7  ;;  %v243_v14 = vmul.f32 %v199_v8, %v199_v8 }
  0x14   : > { %v202_v15 = vrot.slane %v201_v9, 4  ;;  %v209_v16 = vrot.slane %v208_v10, 4 }
  0x15   : > { %v244_v17 = vadd.f32 %v242_v13, %v240_v11  ;;  %v251_v18 = vadd.f32 %v243_v14, %v241_v12 }
  0x16   : > { %v203_v19 = vadd.f32 %v202_v15, %v201_v9  ;;  %v210_v20 = vadd.f32 %v209_v16, %v208_v10  ;;  %v200_v48 = vld [vmem:[%s486_s20] sm:$0x3] }
  0x17   : > { %v245_v23 = vrot.slane %v244_v17, 4  ;;  %v252_v24 = vrot.slane %v251_v18, 4  ;;  %v239_v53 = vld [vmem:[%s494_s23] sm:$0x3] }
  0x18   : > { %v204_v25 = vrot.slane %v203_v19, 2  ;;  %v211_v26 = vrot.slane %v210_v20, 2 }
  0x19   : > { %v246_v27 = vadd.f32 %v245_v23, %v244_v17  ;;  %v253_v28 = vadd.f32 %v252_v24, %v251_v18 }
  0x1a   : > { %v205_v29 = vadd.f32 %v204_v25, %v203_v19  ;;  %v212_v30 = vadd.f32 %v211_v26, %v210_v20 }
  0x1b   : > { %v247_v33 = vrot.slane %v246_v27, 2  ;;  %v254_v34 = vrot.slane %v253_v28, 2 }
  0x1c   : > { %v206_v35 = vrot.slane %v205_v29, 1  ;;  %v213_v36 = vrot.slane %v212_v30, 1 }
  0x1d   : > { %v248_v37 = vadd.f32 %v247_v33, %v246_v27  ;;  %v255_v38 = vadd.f32 %v254_v34, %v253_v28 }
  0x1e   : > { %v207_v39 = vadd.f32 %v206_v35, %v205_v29  ;;  %v214_v40 = vadd.f32 %v213_v36, %v212_v30 }
  0x1f   : > { %v249_v42 = vrot.slane %v248_v37, 1  ;;  %v256_v43 = vrot.slane %v255_v38, 1 }
  0x20   : > { %v217_v44 = vcombine.low %v207_v39, %v214_v40 }
  0x21   : > { %v250_v45 = vadd.f32 %v249_v42, %v248_v37  ;;  %v257_v46 = vadd.f32 %v256_v43, %v255_v38 }
  0x22   : > { %v224_v47 = vrot.slane %v217_v44, %v223_v41 }
  0x23   : > { %v260_v49 = vcombine.low %v250_v45, %v257_v46 }
  0x24   : > { %v231_v50 = vrot.slane %v224_v47, %v223_v41 }
  0x25   : > { %v267_v51 = vrot.slane %v260_v49, %v223_v41 }
  0x26   : > { %v233_v52 = vadd.f32 %v231_v50, %v200_v48 }
  0x27   : > { %v274_v54 = vrot.slane %v267_v51, %v223_v41 }
  0x28   : > { %238 = vst.msk [vmem:[%s486_s20] sm:$0x3] %vm476_vm0, %v233_v52 }
  0x29   : > { %v276_v55 = vadd.f32 %v274_v54, %v239_v53 }
  0x2b   : > { %277 = vst.msk [vmem:[%s494_s23] sm:$0x3] %vm476_vm0, %v276_v55 }
  0x2c PF: > { %s13_s11 = sadd.s32 1, %s439_s11   ;;  %s521_s9 = smov %s435_s10 }
  0x2d   : > { %p10_p5 = scmp.ge.s32.totalorder %s13_s11, 4   ;;  %s522_s10 = smov %s524_s12 }
  0x2f   :  { %12 = sbr.rel (!%p10_p5) target bundleno = 2 (0x2), region = 70 }

// kernel: transformer_network.63
= control target key start
LH: loop header
LB: loop body
LE: loop exit
PB: predicated region body
PF: predicated region fallthrough
CT: control target
= control target key end

     0   :  { %s1012_s1 = inlined_call_operand.vmem [shape: bf16[512,256], index: 1, kind: input, shape index: {}]   ;;  %s1013_s0 = inlined_call_operand.vmem [shape: bf16[32,512], index: 0, kind: input, shape index: {}]   ;;  %s1014_s2 = inlined_call_operand.vmem [shape: bf16[32,256], index: 2, kind: output, shape index: {}]  }
   0x1   :  { %v661_v0 = vld [vmem:[%s1012_s1 + $0x74] ss:$8 sps:$4 sm:$0xff]   ;;  %v665_v2 = vld [vmem:[%s1012_s1 + $0x70] ss:$8 sps:$4 sm:$0xff]   ;;  %v667_v4 = vld [vmem:[%s1012_s1 + $0x64] ss:$8 sps:$4 sm:$0xff]  }
   0x2   :  { %v663_v1 = vld [vmem:[%s1012_s1 + $0x174] ss:$8 sps:$4 sm:$0xff]   ;;  %443 = vmatprep.subr.bf16.mxu0 %v661_v0  ;;  %v666_v3 = vld [vmem:[%s1012_s1 + $0x170] ss:$8 sps:$4 sm:$0xff]   ;;  %v669_v5 = vld [vmem:[%s1012_s1 + $0x164] ss:$8 sps:$4 sm:$0xff]  }
   0x3   :  { %496 = vmatprep.subr.bf16.mxu1 %v663_v1  ;;  %444 = vmatpush1.bf16.msra.mxu0 %v665_v2  ;;  %v671_v6 = vld [vmem:[%s1012_s1 + $0x60] ss:$8 sps:$4 sm:$0xff]   ;;  %v673_v8 = vld [vmem:[%s1012_s1 + $0x54] ss:$8 sps:$4 sm:$0xff]   ;;  %v677_v10 = vld [vmem:[%s1012_s1 + $0x50] ss:$8 sps:$4 sm:$0xff]  }
   0x4   :  { %497 = vmatpush1.bf16.msra.mxu1 %v666_v3  ;;  %445 = vmatprep.subr.bf16.mxu0 %v667_v4  ;;  %v672_v7 = vld [vmem:[%s1012_s1 + $0x160] ss:$8 sps:$4 sm:$0xff]   ;;  %v675_v9 = vld [vmem:[%s1012_s1 + $0x154] ss:$8 sps:$4 sm:$0xff]   ;;  %v678_v11 = vld [vmem:[%s1012_s1 + $0x150] ss:$8 sps:$4 sm:$0xff]  }
   0x5   :  { %498 = vmatprep.subr.bf16.mxu1 %v669_v5  ;;  %v679_v12 = vld [vmem:[%s1012_s1 + $0x44] ss:$8 sps:$4 sm:$0xff]   ;;  %v683_v14 = vld [vmem:[%s1012_s1 + $0x40] ss:$8 sps:$4 sm:$0xff]   ;;  %v685_v16 = vld [vmem:[%s1012_s1 + $0x34] ss:$8 sps:$4 sm:$0xff]  }
   0x6   :  { %v681_v13 = vld [vmem:[%s1012_s1 + $0x144] ss:$8 sps:$4 sm:$0xff]   ;;  %v684_v15 = vld [vmem:[%s1012_s1 + $0x140] ss:$8 sps:$4 sm:$0xff]   ;;  %v687_v17 = vld [vmem:[%s1012_s1 + $0x134] ss:$8 sps:$4 sm:$0xff]  }
   0x7   :  { %446 = vmatpush1.bf16.msra.mxu0 %v671_v6  ;;  %v689_v18 = vld [vmem:[%s1012_s1 + $0x30] ss:$8 sps:$4 sm:$0xff]   ;;  %v691_v20 = vld [vmem:[%s1012_s1 + $0x24] ss:$8 sps:$4 sm:$0xff]   ;;  %v695_v22 = vld [vmem:[%s1012_s1 + $0x20] ss:$8 sps:$4 sm:$0xff]  }
   0x8   :  { %499 = vmatpush1.bf16.msra.mxu1 %v672_v7  ;;  %447 = vmatprep.subr.bf16.mxu0 %v673_v8  ;;  %v690_v19 = vld [vmem:[%s1012_s1 + $0x130] ss:$8 sps:$4 sm:$0xff]   ;;  %v693_v21 = vld [vmem:[%s1012_s1 + $0x124] ss:$8 sps:$4 sm:$0xff]   ;;  %v696_v23 = vld [vmem:[%s1012_s1 + $0x120] ss:$8 sps:$4 sm:$0xff]  }
   0x9   :  { %500 = vmatprep.subr.bf16.mxu1 %v675_v9  ;;  %v697_v24 = vld [vmem:[%s1012_s1 + $0x14] ss:$8 sps:$4 sm:$0xff]   ;;  %v701_v26 = vld [vmem:[%s1012_s1 + $0x10] ss:$8 sps:$4 sm:$0xff]   ;;  %v703_v28 = vld [vmem:[%s1012_s1 + $0x4] ss:$8 sps:$4 sm:$0xff]  }
   0xa   :  { %v699_v25 = vld [vmem:[%s1012_s1 + $0x114] ss:$8 sps:$4 sm:$0xff]   ;;  %v702_v27 = vld [vmem:[%s1012_s1 + $0x110] ss:$8 sps:$4 sm:$0xff]   ;;  %v705_v29 = vld [vmem:[%s1012_s1 + $0x104] ss:$8 sps:$4 sm:$0xff]  }
   0xb   :  { %448 = vmatpush1.bf16.msra.mxu0 %v677_v10  ;;  %v707_v30 = vld [vmem:[%s1012_s1] ss:$8 sps:$4 sm:$0xff]   ;;  %v709_v32 = vld [vmem:[%s1012_s1 + $0xf4] ss:$8 sps:$4 sm:$0xff]   ;;  %v713_v34 = vld [vmem:[%s1012_s1 + $0xf0] ss:$8 sps:$4 sm:$0xff]  }
   0xc   :  { %501 = vmatpush1.bf16.msra.mxu1 %v678_v11  ;;  %449 = vmatprep.subr.bf16.mxu0 %v679_v12  ;;  %v708_v31 = vld [vmem:[%s1012_s1 + $0x100] ss:$8 sps:$4 sm:$0xff]   ;;  %v711_v33 = vld [vmem:[%s1012_s1 + $0x1f4] ss:$8 sps:$4 sm:$0xff]   ;;  %v714_v35 = vld [vmem:[%s1012_s1 + $0x1f0] ss:$8 sps:$4 sm:$0xff]  }
   0xd   :  { %502 = vmatprep.subr.bf16.mxu1 %v681_v13  ;;  %v715_v36 = vld [vmem:[%s1012_s1 + $0xe4] ss:$8 sps:$4 sm:$0xff]   ;;  %v719_v38 = vld [vmem:[%s1012_s1 + $0xe0] ss:$8 sps:$4 sm:$0xff]   ;;  %v721_v40 = vld [vmem:[%s1012_s1 + $0xd4] ss:$8 sps:$4 sm:$0xff]  }
   0xe   :  { %v717_v37 = vld [vmem:[%s1012_s1 + $0x1e4] ss:$8 sps:$4 sm:$0xff]   ;;  %v720_v39 = vld [vmem:[%s1012_s1 + $0x1e0] ss:$8 sps:$4 sm:$0xff]   ;;  %v723_v41 = vld [vmem:[%s1012_s1 + $0x1d4] ss:$8 sps:$4 sm:$0xff]  }
   0xf   :  { %450 = vmatpush1.bf16.msra.mxu0 %v683_v14  ;;  %v725_v42 = vld [vmem:[%s1012_s1 + $0xd0] ss:$8 sps:$4 sm:$0xff]   ;;  %v727_v44 = vld [vmem:[%s1012_s1 + $0xc4] ss:$8 sps:$4 sm:$0xff]   ;;  %v731_v46 = vld [vmem:[%s1012_s1 + $0xc0] ss:$8 sps:$4 sm:$0xff]  }
  0x10   :  { %503 = vmatpush1.bf16.msra.mxu1 %v684_v15  ;;  %451 = vmatprep.subr.bf16.mxu0 %v685_v16  ;;  %v726_v43 = vld [vmem:[%s1012_s1 + $0x1d0] ss:$8 sps:$4 sm:$0xff]   ;;  %v729_v45 = vld [vmem:[%s1012_s1 + $0x1c4] ss:$8 sps:$4 sm:$0xff]   ;;  %v732_v47 = vld [vmem:[%s1012_s1 + $0x1c0] ss:$8 sps:$4 sm:$0xff]  }
  0x11   :  { %504 = vmatprep.subr.bf16.mxu1 %v687_v17  ;;  %v733_v48 = vld [vmem:[%s1012_s1 + $0xb4] ss:$8 sps:$4 sm:$0xff]   ;;  %v737_v52 = vld [vmem:[%s1012_s1 + $0xb0] ss:$8 sps:$4 sm:$0xff]   ;;  %v739_v54 = vld [vmem:[%s1012_s1 + $0xa4] ss:$8 sps:$4 sm:$0xff]  }
  0x12   :  { %v759_v49 = vld [vmem:[%s1013_s0 + $0x4] ss:$16 sps:$4 sm:$0xff]   ;;  %v762_v51 = vld [vmem:[%s1013_s0 + $0xc] ss:$16 sps:$4 sm:$0xff]   ;;  %v738_v53 = vld [vmem:[%s1012_s1 + $0x1b0] ss:$8 sps:$4 sm:$0xff]  }
  0x13   :  { %452 = vmatpush1.bf16.msra.mxu0 %v689_v18  ;;  %v735_v50 = vld [vmem:[%s1012_s1 + $0x1b4] ss:$8 sps:$4 sm:$0xff]   ;;  %475 = vmatprep.mubr.bf16.mxu0 %v759_v49  ;;  %v741_v55 = vld [vmem:[%s1012_s1 + $0x1a4] ss:$8 sps:$4 sm:$0xff]   ;;  %v743_v56 = vld [vmem:[%s1012_s1 + $0xa0] ss:$8 sps:$4 sm:$0xff]  }
  0x14   :  { %505 = vmatpush1.bf16.msra.mxu1 %v690_v19  ;;  %453 = vmatprep.subr.bf16.mxu0 %v691_v20  ;;  %v744_v57 = vld [vmem:[%s1012_s1 + $0x1a0] ss:$8 sps:$4 sm:$0xff]   ;;  %v745_v58 = vld [vmem:[%s1012_s1 + $0x94] ss:$8 sps:$4 sm:$0xff]   ;;  %v749_v60 = vld [vmem:[%s1012_s1 + $0x90] ss:$8 sps:$4 sm:$0xff]  }
  0x15   :  { %506 = vmatprep.subr.bf16.mxu1 %v693_v21  ;;  %528 = vmatprep.mubr.bf16.mxu1 %v762_v51  ;;  %v747_v59 = vld [vmem:[%s1012_s1 + $0x194] ss:$8 sps:$4 sm:$0xff]   ;;  %v750_v61 = vld [vmem:[%s1012_s1 + $0x190] ss:$8 sps:$4 sm:$0xff]   ;;  %v751_v62 = vld [vmem:[%s1012_s1 + $0x84] ss:$8 sps:$4 sm:$0xff]  }
  0x16   :  { %v753_v63 = vld [vmem:[%s1012_s1 + $0x184] ss:$8 sps:$4 sm:$0xff]   ;;  %v755_v0 = vld [vmem:[%s1012_s1 + $0x80] ss:$8 sps:$4 sm:$0xff]  }
  0x17   :  { %454 = vmatpush1.bf16.msra.mxu0 %v695_v22  ;;  %v756_v1 = vld [vmem:[%s1012_s1 + $0x180] ss:$8 sps:$4 sm:$0xff]   ;;  %v763_v4 = vld [vmem:[%s1013_s0 + $0x24] ss:$16 sps:$4 sm:$0xff]   ;;  %v765_v5 = vld [vmem:[%s1013_s0 + $0x2c] ss:$16 sps:$4 sm:$0xff]  }
  0x18   :  { %507 = vmatpush1.bf16.msra.mxu1 %v696_v23  ;;  %455 = vmatprep.subr.bf16.mxu0 %v697_v24  ;;  %v757_v2 = vld [vmem:[%s1013_s0] ss:$16 sps:$4 sm:$0xff]   ;;  %v760_v3 = vld [vmem:[%s1013_s0 + $0x8] ss:$16 sps:$4 sm:$0xff]  }
  0x19   :  { %508 = vmatprep.subr.bf16.mxu1 %v699_v25  ;;  %v767_v6 = vld [vmem:[%s1013_s0 + $0x20] ss:$16 sps:$4 sm:$0xff]   ;;  %v768_v7 = vld [vmem:[%s1013_s0 + $0x28] ss:$16 sps:$4 sm:$0xff]  }
  0x1b   :  { %456 = vmatpush1.bf16.msra.mxu0 %v701_v26 }
  0x1c   :  { %509 = vmatpush1.bf16.msra.mxu1 %v702_v27  ;;  %457 = vmatprep.subr.bf16.mxu0 %v703_v28 }
  0x1d   :  { %510 = vmatprep.subr.bf16.mxu1 %v705_v29 }
  0x1f   :  { %458 = vmatpush1.bf16.msra.mxu0 %v707_v30 }
  0x20   :  { %511 = vmatpush1.bf16.msra.mxu1 %v708_v31  ;;  %459 = vmatprep.subr.bf16.mxu0 %v709_v32 }
  0x21   :  { %512 = vmatprep.subr.bf16.mxu1 %v711_v33 }
  0x23   :  { %460 = vmatpush2.bf16.msra.mxu0 %v713_v34 }
  0x24   :  { %513 = vmatpush2.bf16.msra.mxu1 %v714_v35  ;;  %461 = vmatprep.subr.bf16.mxu0 %v715_v36 }
  0x25   :  { %514 = vmatprep.subr.bf16.mxu1 %v717_v37 }
  0x27   :  { %462 = vmatpush2.bf16.msra.mxu0 %v719_v38 }
  0x28   :  { %515 = vmatpush2.bf16.msra.mxu1 %v720_v39  ;;  %463 = vmatprep.subr.bf16.mxu0 %v721_v40 }
  0x29   :  { %516 = vmatprep.subr.bf16.mxu1 %v723_v41 }
  0x2b   :  { %464 = vmatpush2.bf16.msra.mxu0 %v725_v42 }
  0x2c   :  { %517 = vmatpush2.bf16.msra.mxu1 %v726_v43  ;;  %465 = vmatprep.subr.bf16.mxu0 %v727_v44 }
  0x2d   :  { %518 = vmatprep.subr.bf16.mxu1 %v729_v45 }
  0x2f   :  { %466 = vmatpush2.bf16.msra.mxu0 %v731_v46 }
  0x30   :  { %519 = vmatpush2.bf16.msra.mxu1 %v732_v47  ;;  %467 = vmatprep.subr.bf16.mxu0 %v733_v48 }
  0x31   :  { %520 = vmatprep.subr.bf16.mxu1 %v735_v50 }
  0x33   :  { %468 = vmatpush2.bf16.msra.mxu0 %v737_v52 }
  0x34   :  { %521 = vmatpush2.bf16.msra.mxu1 %v738_v53  ;;  %469 = vmatprep.subr.bf16.mxu0 %v739_v54 }
  0x35   :  { %522 = vmatprep.subr.bf16.mxu1 %v741_v55 }
  0x37   :  { %470 = vmatpush2.bf16.msra.mxu0 %v743_v56 }
  0x38   :  { %523 = vmatpush2.bf16.msra.mxu1 %v744_v57  ;;  %471 = vmatprep.subr.bf16.mxu0 %v745_v58 }
  0x39   :  { %524 = vmatprep.subr.bf16.mxu1 %v747_v59 }
  0x3b   :  { %472 = vmatpush2.bf16.msra.mxu0 %v749_v60 }
  0x3c   :  { %525 = vmatpush2.bf16.msra.mxu1 %v750_v61  ;;  %473 = vmatprep.subr.bf16.mxu0 %v751_v62 }
  0x3d   :  { %526 = vmatprep.subr.bf16.mxu1 %v753_v63 }
  0x3f   :  { %474 = vmatpush2.bf16.msra.mxu0 %v755_v0 }
  0x40   :  { %527 = vmatpush2.bf16.msra.mxu1 %v756_v1 }
  0x42   :  { %476 = vmatmul.mubr.bf16.vlgmr.msra.gmra.mxu0 %v757_v2 }
  0x43   :  { %529 = vmatmul.mubr.bf16.vlgmr.msra.gmra.mxu1 %v760_v3  ;;  %485 = vmatprep.mubr.bf16.mxu0 %v763_v4 }
  0x44   :  { %538 = vmatprep.mubr.bf16.mxu1 %v765_v5 }
  0x4a   :  { %486 = vmatmul.mubr.bf16.gmra.mxu0 %v767_v6 }
  0x4b   :  { %539 = vmatmul.mubr.bf16.gmra.mxu1 %v768_v7 }
 0x102   :  { %v477_v8 = vpop.f32.mrf.mxu0 }
 0x103   :  { %v530_v9 = vpop.f32.mrf.mxu1 }
 0x104   :  { %v479_v10 = vpop.f32.mrf.mxu0  ;;  %v531_v12 = vadd.f32 %v530_v9, %v477_v8 }
 0x105   :  { %v532_v11 = vpop.f32.mrf.mxu1 }
 0x106   :  { %v533_v13 = vadd.f32 %v532_v11, %v479_v10  ;;  %v481_v14 = vpop.f32.mrf.mxu0 }
 0x107   :  { %v534_v15 = vpop.f32.mrf.mxu1 }
 0x108   :  { %v657_v16 = vpack.c.bf16 %v533_v13, %v531_v12  ;;  %v483_v17 = vpop.f32.mrf.mxu0  ;;  %v535_v19 = vadd.f32 %v534_v15, %v481_v14 }
 0x109   :  { %v536_v18 = vpop.f32.mrf.mxu1 }
 0x10a   :  { %573 = vst [vmem:[%s1014_s2] sm:$0xff] %v657_v16  ;;  %v537_v20 = vadd.f32 %v536_v18, %v483_v17  ;;  %v487_v21 = vpop.f32.mrf.mxu0 }
 0x10b   :  { %v540_v22 = vpop.f32.mrf.mxu1 }
 0x10c   :  { %v658_v23 = vpack.c.bf16 %v537_v20, %v535_v19  ;;  %v489_v24 = vpop.f32.mrf.mxu0  ;;  %v541_v26 = vadd.f32 %v540_v22, %v487_v21 }
 0x10d   :  { %v542_v25 = vpop.f32.mrf.mxu1 }
 0x10e   :  { %574 = vst [vmem:[%s1014_s2 + $0x8] sm:$0xff] %v658_v23  ;;  %v543_v27 = vadd.f32 %v542_v25, %v489_v24  ;;  %v491_v28 = vpop.f32.mrf.mxu0 }
 0x10f   :  { %v544_v29 = vpop.f32.mrf.mxu1 }
 0x110   :  { %v659_v30 = vpack.c.bf16 %v543_v27, %v541_v26  ;;  %v493_v31 = vpop.f32.mrf.mxu0  ;;  %v545_v33 = vadd.f32 %v544_v29, %v491_v28 }
 0x111   :  { %v546_v32 = vpop.f32.mrf.mxu1 }
 0x112   :  { %575 = vst [vmem:[%s1014_s2 + $0x10] sm:$0xff] %v659_v30  ;;  %v547_v34 = vadd.f32 %v546_v32, %v493_v31 }
 0x114   :  { %v660_v35 = vpack.c.bf16 %v547_v34, %v545_v33 }
 0x116   :  { %576 = vst [vmem:[%s1014_s2 + $0x18] sm:$0xff] %v660_v35 }

// kernel: transformer_network.65
= control target key start
LH: loop header
LB: loop body
LE: loop exit
PB: predicated region body
PF: predicated region fallthrough
CT: control target
= control target key end

     0   :  { %s512_s12 = smov 0   ;;  %s514_s13 = smov 0   ;;  %s559_s0 = inlined_call_operand.vmem [shape: bf16[2,16,256], index: 0, kind: input, shape index: {}]   ;;  %s560_s1 = inlined_call_operand.vmem [shape: f32[2,1,256], index: 1, kind: input, shape index: {}]   ;;  %s561_s2 = inlined_call_operand.vmem [shape: f32[2,1,256], index: 2, kind: input, shape index: {}]   ;;  %s562_s3 = inlined_call_operand.vmem [shape: bf16[2,16,256], index: 3, kind: output, shape index: {}]  }
   0x1   :  { %s516_s14 = smov 0  }
   0x2 LB: > { %s25_s15 = sadd.s32 1, %s486_s13  ;;  %p429_p0 = scmp.ge.s32.totalorder %s490_s14, 1  ;;  %s490_s14 = sphi %s516_s14, %s13_s14   ;;  %s486_s13 = sphi %s514_s13, %s564_s13   ;;  %s482_s12 = sphi %s512_s12, %s563_s12  }
   0x3   : > { %p27_p1 = scmp.ge.s32.totalorder %s25_s15, 2  ;;  %p177_p2 = scmp.lt.s32.totalorder %s490_s14, 3 }
   0x5   : > { %s566_s15 = smov (%p27_p1, %s25_s15), 0  ;;  %p178_p3 = pnand %p429_p0, %p177_p2 }
   0x6   : > { %p220_p4 = scmp.lt.s32.totalorder (!%p178_p3), %s482_s12, 1 }
   0x7   : > { %181 = sbr.rel (%p178_p3) target bundleno = 29 (0x1d), region = 32 }
   0xc   : > { %v257_v0 = vlaneseq  ;;  %s568_s12 = smov (!%p220_p4, %s482_s12), 1 }
   0xd   : > { %s440_s16 = sshll.u32 %s568_s12, 4  ;;  %s432_s17 = sshll.u32 %s568_s12, 1 }
   0xe   : > { %v258_v1 = vshrl.u32 %v257_v0, 7  ;;  %s228_s20 = scalar_lea.vmem %s559_s0, %s440_s16  ;;  %s233_s23 = scalar_lea.vmem %s560_s1, %s432_s17 }
   0xf   : > { %s237_s26 = scalar_lea.vmem %s561_s2, %s432_s17  ;;  %v249_v4 = vld [vmem:[%s228_s20] sm:$0xff]  ;;  %v250_v5 = vld [vmem:[%s228_s20 + $0x8] sm:$0xff]  ;;  %s247_s29 = scalar_lea.vmem %s562_s3, %s440_s16 }
  0x10   : > { %v259_v2 = vsub.s32 0, %v258_v1  ;;  %v263_v3 = vsub.s32 1, %v258_v1  ;;  %v255_v6 = vld [vmem:[%s233_s23] sm:$0x3]  ;;  %v251_v7 = vunpack.c.l.bf16 %v249_v4  ;;  %v252_v8 = vunpack.c.h.bf16 %v249_v4 }
  0x11   : > { %v253_v9 = vunpack.c.l.bf16 %v250_v5  ;;  %v254_v10 = vunpack.c.h.bf16 %v250_v5  ;;  %v271_v11 = vld [vmem:[%s237_s26] sm:$0x3] }
  0x12   : > { %v260_v12 = vrot.slane %v255_v6, %v259_v2  ;;  %v264_v13 = vrot.slane %v255_v6, %v263_v3  ;;  %v276_v14 = vrot.slane %v271_v11, %v259_v2  ;;  %v280_v15 = vrot.slane %v271_v11, %v263_v3 }
  0x14   : > { %v267_v16 = vmul.f32 %v260_v12, %v251_v7  ;;  %v268_v17 = vmul.f32 %v264_v13, %v252_v8  ;;  %v269_v18 = vmul.f32 %v260_v12, %v253_v9  ;;  %v270_v19 = vmul.f32 %v264_v13, %v254_v10 }
  0x16   : > { %v283_v20 = vadd.f32 %v276_v14, %v267_v16  ;;  %v284_v21 = vadd.f32 %v280_v15, %v268_v17  ;;  %v285_v22 = vadd.f32 %v276_v14, %v269_v18  ;;  %v286_v23 = vadd.f32 %v280_v15, %v270_v19 }
  0x18   : > { %v287_v24 = vmax.f32 %v283_v20, 0.0  ;;  %v288_v25 = vmax.f32 %v284_v21, 0.0  ;;  %v289_v26 = vmax.f32 %v285_v22, 0.0  ;;  %v290_v27 = vmax.f32 %v286_v23, 0.0 }
  0x1a   : > { %v442_v28 = vpack.c.bf16 %v288_v25, %v287_v24  ;;  %v443_v29 = vpack.c.bf16 %v290_v27, %v289_v26 }
  0x1c   : > { %303 = vst [vmem:[%s247_s29] sm:$0xff] %v442_v28  ;;  %304 = vst [vmem:[%s247_s29 + $0x8] sm:$0xff] %v443_v29 }
  0x1d PF: > { %s13_s14 = sadd.s32 1, %s490_s14   ;;  %s563_s12 = smov %s486_s13 }
  0x1e   : > { %p10_p5 = scmp.ge.s32.totalorder %s13_s14, 4   ;;  %s564_s13 = smov %s566_s15 }
  0x20   :  { %12 = sbr.rel (!%p10_p5) target bundleno = 2 (0x2), region = 68 }

// kernel: transformer_network.66
= control target key start
LH: loop header
LB: loop body
LE: loop exit
PB: predicated region body
PF: predicated region fallthrough
CT: control target
= control target key end

     0   :  { %s783_s1 = inlined_call_operand.vmem [shape: bf16[256,128], index: 1, kind: input, shape index: {}]   ;;  %s784_s0 = inlined_call_operand.vmem [shape: bf16[128,256], index: 0, kind: input, shape index: {}]   ;;  %s785_s2 = inlined_call_operand.vmem [shape: bf16[128,128], index: 2, kind: output, shape index: {}]  }
   0x1   :  { %v608_v0 = vld [vmem:[%s783_s1 + $0x78] sm:$0xff]   ;;  %v610_v2 = vld [vmem:[%s783_s1 + $0x70] sm:$0xff]   ;;  %v612_v4 = vld [vmem:[%s783_s1 + $0x68] sm:$0xff]  }
   0x2   :  { %v609_v1 = vld [vmem:[%s783_s1 + $0x38] sm:$0xff]   ;;  %528 = vmatprep.subr.bf16.mxu0 %v608_v0  ;;  %592 = vmatprep.subr.bf16.mxu1 %v608_v0  ;;  %v611_v3 = vld [vmem:[%s783_s1 + $0x30] sm:$0xff]   ;;  %v613_v5 = vld [vmem:[%s783_s1 + $0x28] sm:$0xff]  }
   0x3   :  { %529 = vmatpush3.bf16.msra.mxu0 %v609_v1  ;;  %600 = vmatpush3.bf16.msra.mxu1 %v609_v1  ;;  %v614_v6 = vld [vmem:[%s783_s1 + $0x60] sm:$0xff]   ;;  %v616_v8 = vld [vmem:[%s783_s1 + $0x58] sm:$0xff]   ;;  %v618_v10 = vld [vmem:[%s783_s1 + $0x50] sm:$0xff]  }
   0x4   :  { %530 = vmatprep.subr.bf16.mxu0 %v610_v2  ;;  %593 = vmatprep.subr.bf16.mxu1 %v610_v2  ;;  %v615_v7 = vld [vmem:[%s783_s1 + $0x20] sm:$0xff]   ;;  %v617_v9 = vld [vmem:[%s783_s1 + $0x18] sm:$0xff]   ;;  %v619_v13 = vld [vmem:[%s783_s1 + $0x10] sm:$0xff]  }
   0x5   :  { %v626_v11 = vld [vmem:[%s784_s0 + $0x4] ss:$8 sps:$4 sm:$0xff]   ;;  %v624_v18 = vld [vmem:[%s784_s0] ss:$8 sps:$4 sm:$0xff]   ;;  %v630_v20 = vld [vmem:[%s784_s0 + $0x14] ss:$8 sps:$4 sm:$0xff]  }
   0x6   :  { %v629_v12 = vld [vmem:[%s784_s0 + $0x44] ss:$8 sps:$4 sm:$0xff]   ;;  %268 = vmatprep.mubr.bf16.mxu0 %v626_v11  ;;  %v627_v19 = vld [vmem:[%s784_s0 + $0x40] ss:$8 sps:$4 sm:$0xff]   ;;  %v632_v21 = vld [vmem:[%s784_s0 + $0x54] ss:$8 sps:$4 sm:$0xff]  }
   0x7   :  { %531 = vmatpush3.bf16.msra.mxu0 %v611_v3  ;;  %601 = vmatpush3.bf16.msra.mxu1 %v611_v3  ;;  %v620_v14 = vld [vmem:[%s783_s1 + $0x48] sm:$0xff]   ;;  %v622_v16 = vld [vmem:[%s783_s1 + $0x40] sm:$0xff]   ;;  %v634_v22 = vld [vmem:[%s784_s0 + $0x10] ss:$8 sps:$4 sm:$0xff]  }
   0x8   :  { %532 = vmatprep.subr.bf16.mxu0 %v612_v4  ;;  %594 = vmatprep.subr.bf16.mxu1 %v612_v4  ;;  %v621_v15 = vld [vmem:[%s783_s1 + $0x8] sm:$0xff]   ;;  %v623_v17 = vld [vmem:[%s783_s1] sm:$0xff]   ;;  %v635_v23 = vld [vmem:[%s784_s0 + $0x50] ss:$8 sps:$4 sm:$0xff]  }
   0x9   :  { %300 = vmatprep.mubr.bf16.mxu1 %v629_v12  ;;  %v636_v24 = vld [vmem:[%s784_s0 + $0x24] ss:$8 sps:$4 sm:$0xff]   ;;  %v640_v26 = vld [vmem:[%s784_s0 + $0x20] ss:$8 sps:$4 sm:$0xff]   ;;  %v642_v28 = vld [vmem:[%s784_s0 + $0x34] ss:$8 sps:$4 sm:$0xff]  }
   0xa   :  { %v638_v25 = vld [vmem:[%s784_s0 + $0x64] ss:$8 sps:$4 sm:$0xff]   ;;  %v641_v27 = vld [vmem:[%s784_s0 + $0x60] ss:$8 sps:$4 sm:$0xff]   ;;  %v644_v29 = vld [vmem:[%s784_s0 + $0x74] ss:$8 sps:$4 sm:$0xff]  }
   0xb   :  { %533 = vmatpush3.bf16.msra.mxu0 %v613_v5  ;;  %602 = vmatpush3.bf16.msra.mxu1 %v613_v5  ;;  %v646_v30 = vld [vmem:[%s784_s0 + $0x30] ss:$8 sps:$4 sm:$0xff]  }
   0xc   :  { %534 = vmatprep.subr.bf16.mxu0 %v614_v6  ;;  %595 = vmatprep.subr.bf16.mxu1 %v614_v6  ;;  %v647_v31 = vld [vmem:[%s784_s0 + $0x70] ss:$8 sps:$4 sm:$0xff]  }
   0xf   :  { %535 = vmatpush3.bf16.msra.mxu0 %v615_v7  ;;  %603 = vmatpush3.bf16.msra.mxu1 %v615_v7 }
  0x10   :  { %536 = vmatprep.subr.bf16.mxu0 %v616_v8  ;;  %596 = vmatprep.subr.bf16.mxu1 %v616_v8 }
  0x13   :  { %537 = vmatpush3.bf16.msra.mxu0 %v617_v9  ;;  %604 = vmatpush3.bf16.msra.mxu1 %v617_v9 }
  0x14   :  { %538 = vmatprep.subr.bf16.mxu0 %v618_v10  ;;  %597 = vmatprep.subr.bf16.mxu1 %v618_v10 }
  0x17   :  { %539 = vmatpush3.bf16.msra.mxu0 %v619_v13  ;;  %605 = vmatpush3.bf16.msra.mxu1 %v619_v13 }
  0x18   :  { %540 = vmatprep.subr.bf16.mxu0 %v620_v14  ;;  %598 = vmatprep.subr.bf16.mxu1 %v620_v14 }
  0x1b   :  { %541 = vmatpush3.bf16.msra.mxu0 %v621_v15  ;;  %606 = vmatpush3.bf16.msra.mxu1 %v621_v15 }
  0x1c   :  { %542 = vmatprep.subr.bf16.mxu0 %v622_v16  ;;  %599 = vmatprep.subr.bf16.mxu1 %v622_v16 }
  0x1f   :  { %543 = vmatpush3.bf16.msra.mxu0 %v623_v17  ;;  %607 = vmatpush3.bf16.msra.mxu1 %v623_v17 }
  0x22   :  { %269 = vmatmul.mubr.bf16.vlgmr.msra.gmra.mxu0 %v624_v18  ;;  %301 = vmatmul.mubr.bf16.vlgmr.msra.gmra.mxu1 %v627_v19 }
  0x23   :  { %276 = vmatprep.mubr.bf16.mxu0 %v630_v20  ;;  %308 = vmatprep.mubr.bf16.mxu1 %v632_v21 }
  0x2a   :  { %277 = vmatmul.mubr.bf16.gmra.mxu0 %v634_v22  ;;  %309 = vmatmul.mubr.bf16.gmra.mxu1 %v635_v23 }
  0x2b   :  { %284 = vmatprep.mubr.bf16.mxu0 %v636_v24  ;;  %316 = vmatprep.mubr.bf16.mxu1 %v638_v25 }
  0x32   :  { %285 = vmatmul.mubr.bf16.gmra.mxu0 %v640_v26  ;;  %317 = vmatmul.mubr.bf16.gmra.mxu1 %v641_v27 }
  0x33   :  { %292 = vmatprep.mubr.bf16.mxu0 %v642_v28  ;;  %324 = vmatprep.mubr.bf16.mxu1 %v644_v29 }
  0x3a   :  { %293 = vmatmul.mubr.bf16.gmra.mxu0 %v646_v30  ;;  %325 = vmatmul.mubr.bf16.gmra.mxu1 %v647_v31 }
  0xe2   :  { %v544_v32 = vpop.f32.mrf.mxu0  ;;  %v568_v33 = vpop.f32.mrf.mxu1 }
  0xe4   :  { %v545_v34 = vpop.f32.mrf.mxu0  ;;  %v569_v35 = vpop.f32.mrf.mxu1 }
  0xe5   :  { %v546_v40 = vadd.f32 %v545_v34, %v544_v32  ;;  %v570_v41 = vadd.f32 %v569_v35, %v568_v33 }
  0xe6   :  { %v547_v36 = vpop.f32.mrf.mxu0  ;;  %v571_v37 = vpop.f32.mrf.mxu1 }
  0xe8   :  { %v548_v38 = vpop.f32.mrf.mxu0  ;;  %v572_v39 = vpop.f32.mrf.mxu1 }
  0xe9   :  { %v549_v42 = vadd.f32 %v548_v38, %v547_v36  ;;  %v573_v43 = vadd.f32 %v572_v39, %v571_v37 }
  0xea   :  { %v550_v44 = vpop.f32.mrf.mxu0  ;;  %v574_v45 = vpop.f32.mrf.mxu1 }
  0xeb   :  { %v484_v46 = vpack.c.bf16 %v549_v42, %v546_v40  ;;  %v504_v47 = vpack.c.bf16 %v573_v43, %v570_v41 }
  0xec   :  { %v551_v48 = vpop.f32.mrf.mxu0  ;;  %v575_v49 = vpop.f32.mrf.mxu1 }
  0xed   :  { %485 = vst [vmem:[%s785_s2] sm:$0xff] %v484_v46   ;;  %524 = vst [vmem:[%s785_s2 + $0x20] sm:$0xff] %v504_v47   ;;  %v552_v54 = vadd.f32 %v551_v48, %v550_v44  ;;  %v576_v55 = vadd.f32 %v575_v49, %v574_v45 }
  0xee   :  { %v553_v50 = vpop.f32.mrf.mxu0  ;;  %v577_v51 = vpop.f32.mrf.mxu1 }
  0xf0   :  { %v554_v52 = vpop.f32.mrf.mxu0  ;;  %v578_v53 = vpop.f32.mrf.mxu1 }
  0xf1   :  { %v555_v56 = vadd.f32 %v554_v52, %v553_v50  ;;  %v579_v57 = vadd.f32 %v578_v53, %v577_v51 }
  0xf2   :  { %v556_v58 = vpop.f32.mrf.mxu0  ;;  %v580_v59 = vpop.f32.mrf.mxu1 }
  0xf3   :  { %v489_v60 = vpack.c.bf16 %v555_v56, %v552_v54  ;;  %v509_v61 = vpack.c.bf16 %v579_v57, %v576_v55 }
  0xf4   :  { %v557_v62 = vpop.f32.mrf.mxu0  ;;  %v581_v63 = vpop.f32.mrf.mxu1 }
  0xf5   :  { %521 = vst [vmem:[%s785_s2 + $0x8] sm:$0xff] %v489_v60   ;;  %525 = vst [vmem:[%s785_s2 + $0x28] sm:$0xff] %v509_v61   ;;  %v558_v4 = vadd.f32 %v557_v62, %v556_v58  ;;  %v582_v5 = vadd.f32 %v581_v63, %v580_v59 }
  0xf6   :  { %v559_v0 = vpop.f32.mrf.mxu0  ;;  %v583_v1 = vpop.f32.mrf.mxu1 }
  0xf8   :  { %v560_v2 = vpop.f32.mrf.mxu0  ;;  %v584_v3 = vpop.f32.mrf.mxu1 }
  0xf9   :  { %v561_v6 = vadd.f32 %v560_v2, %v559_v0  ;;  %v585_v7 = vadd.f32 %v584_v3, %v583_v1 }
  0xfa   :  { %v562_v8 = vpop.f32.mrf.mxu0  ;;  %v586_v9 = vpop.f32.mrf.mxu1 }
  0xfb   :  { %v494_v10 = vpack.c.bf16 %v561_v6, %v558_v4  ;;  %v514_v11 = vpack.c.bf16 %v585_v7, %v582_v5 }
  0xfc   :  { %v563_v12 = vpop.f32.mrf.mxu0  ;;  %v587_v13 = vpop.f32.mrf.mxu1 }
  0xfd   :  { %522 = vst [vmem:[%s785_s2 + $0x10] sm:$0xff] %v494_v10   ;;  %526 = vst [vmem:[%s785_s2 + $0x30] sm:$0xff] %v514_v11   ;;  %v564_v18 = vadd.f32 %v563_v12, %v562_v8  ;;  %v588_v19 = vadd.f32 %v587_v13, %v586_v9 }
  0xfe   :  { %v565_v14 = vpop.f32.mrf.mxu0  ;;  %v589_v15 = vpop.f32.mrf.mxu1 }
 0x100   :  { %v566_v16 = vpop.f32.mrf.mxu0  ;;  %v590_v17 = vpop.f32.mrf.mxu1 }
 0x101   :  { %v567_v20 = vadd.f32 %v566_v16, %v565_v14  ;;  %v591_v21 = vadd.f32 %v590_v17, %v589_v15 }
 0x103   :  { %v499_v22 = vpack.c.bf16 %v567_v20, %v564_v18  ;;  %v519_v23 = vpack.c.bf16 %v591_v21, %v588_v19 }
 0x105   :  { %523 = vst [vmem:[%s785_s2 + $0x18] sm:$0xff] %v499_v22   ;;  %527 = vst [vmem:[%s785_s2 + $0x38] sm:$0xff] %v519_v23  }

// kernel: transformer_network.69
= control target key start
LH: loop header
LB: loop body
LE: loop exit
PB: predicated region body
PF: predicated region fallthrough
CT: control target
= control target key end

     0   :  { %v15804_v0 = vmov 0   ;;  %vm8641_vm0 = vcmask 23552   ;;  %s15800_s1 = inlined_call_operand.vmem [shape: bf16[2688,3], index: 1, kind: input, shape index: {}]   ;;  %s15801_s0 = inlined_call_operand.vmem [shape: bf16[512,2688], index: 0, kind: input, shape index: {}]   ;;  %s15802_s2 = inlined_call_operand.vmem [shape: f32[1,3], index: 2, kind: input, shape index: {}]   ;;  %s15803_s3 = inlined_call_operand.vmem [shape: f32[512,3], index: 3, kind: output, shape index: {}]  }
   0x1   :  { %5462 = vmatprep.subr.bf16.mxu0 %v15804_v0  ;;  %9671 = vmatprep.subr.bf16.mxu1 %v15804_v0  ;;  %v9704_v1 = vld [vmem:[%s15800_s1 + $0x38] sm:$0xff]   ;;  %v9705_v2 = vld [vmem:[%s15800_s1 + $0x30] sm:$0xff]   ;;  %v9706_v3 = vld [vmem:[%s15800_s1 + $0x28] sm:$0xff]  }
   0x2   :  { %5463 = vmatpush1.bf16.msra.mxu0 %v9704_v1  ;;  %9687 = vmatpush1.bf16.msra.mxu1 %v9704_v1  ;;  %v9707_v4 = vld [vmem:[%s15800_s1 + $0x20] sm:$0xff]   ;;  %v9708_v5 = vld [vmem:[%s15800_s1 + $0x18] sm:$0xff]   ;;  %v9709_v7 = vld [vmem:[%s15800_s1 + $0x10] sm:$0xff]  }
   0x3   :  { %5464 = vmatprep.subr.bf16.mxu0 %v15804_v0  ;;  %9672 = vmatprep.subr.bf16.mxu1 %v15804_v0  ;;  %v9722_v6 = vld [vmem:[%s15801_s0 + $0x4] ss:$84 sps:$4 sm:$0xff]   ;;  %v9710_v9 = vld [vmem:[%s15800_s1 + $0x8] sm:$0xff]   ;;  %v9713_v12 = vld [vmem:[%s15800_s1 + $0x70] sm:$0xff]  }
   0x4   :  { %v9725_v8 = vld [vmem:[%s15801_s0 + $0xfc4] ss:$84 sps:$4 sm:$0xff]   ;;  %5494 = vmatprep.mubr.bf16.mxu0 %v9722_v6  ;;  %v9714_v13 = vld [vmem:[%s15800_s1 + $0x68] sm:$0xff]   ;;  %v9717_v16 = vld [vmem:[%s15800_s1 + $0x50] sm:$0xff]  }
   0x5   :  { %5686 = vmatprep.mubr.bf16.mxu1 %v9725_v8  ;;  %v9711_v10 = vld [vmem:[%s15800_s1] sm:$0xff]   ;;  %v9712_v11 = vld [vmem:[%s15800_s1 + $0x78] sm:$0xff]   ;;  %v9718_v17 = vld [vmem:[%s15800_s1 + $0x48] sm:$0xff]  }
   0x6   :  { %5465 = vmatpush1.bf16.msra.mxu0 %v9705_v2  ;;  %9688 = vmatpush1.bf16.msra.mxu1 %v9705_v2  ;;  %v9715_v14 = vld [vmem:[%s15800_s1 + $0x60] sm:$0xff]   ;;  %v9716_v15 = vld [vmem:[%s15800_s1 + $0x58] sm:$0xff]   ;;  %v9728_v25 = vld [vmem:[%s15800_s1 + $0xb0] sm:$0xff]  }
   0x7   :  { %5466 = vmatprep.subr.bf16.mxu0 %v15804_v0  ;;  %9673 = vmatprep.subr.bf16.mxu1 %v15804_v0  ;;  %v9719_v18 = vld [vmem:[%s15800_s1 + $0x40] sm:$0xff]   ;;  %v9726_v21 = vld [vmem:[%s15800_s1 + $0xb8] sm:$0xff]   ;;  %v9737_v26 = vld [vmem:[%s15800_s1 + $0x130] sm:$0xff]  }
   0x8   :  { %v9720_v19 = vld [vmem:[%s15801_s0] ss:$84 sps:$4 sm:$0xff]   ;;  %v9727_v22 = vld [vmem:[%s15800_s1 + $0x138] sm:$0xff]   ;;  %v9735_v29 = vld [vmem:[%s15800_s1 + $0xa8] sm:$0xff]  }
   0x9   :  { %v9723_v20 = vld [vmem:[%s15801_s0 + $0xfc0] ss:$84 sps:$4 sm:$0xff]   ;;  %v9733_v27 = vld [vmem:[%s15801_s0 + $0xa8] ss:$84 sps:$4 sm:$0xff]   ;;  %v9742_v34 = vld [vmem:[%s15801_s0 + $0x150] ss:$84 sps:$4 sm:$0xff]  }
   0xa   :  { %5467 = vmatpush1.bf16.msra.mxu0 %v9706_v3  ;;  %9689 = vmatpush1.bf16.msra.mxu1 %v9706_v3  ;;  %v9729_v23 = vld [vmem:[%s15801_s0 + $0xac] ss:$84 sps:$4 sm:$0xff]   ;;  %v9734_v28 = vld [vmem:[%s15801_s0 + $0x1068] ss:$84 sps:$4 sm:$0xff]   ;;  %v9743_v35 = vld [vmem:[%s15801_s0 + $0x1110] ss:$84 sps:$4 sm:$0xff]  }
   0xb   :  { %5468 = vmatprep.subr.bf16.mxu0 %v15804_v0  ;;  %9674 = vmatprep.subr.bf16.mxu1 %v15804_v0  ;;  %v9731_v24 = vld [vmem:[%s15801_s0 + $0x106c] ss:$84 sps:$4 sm:$0xff]   ;;  %v9738_v30 = vld [vmem:[%s15801_s0 + $0x154] ss:$84 sps:$4 sm:$0xff]   ;;  %v9744_v37 = vld [vmem:[%s15800_s1 + $0x98] sm:$0xff]  }
   0xc   :  { %v9740_v31 = vld [vmem:[%s15801_s0 + $0x1114] ss:$84 sps:$4 sm:$0xff]   ;;  %v9736_v33 = vld [vmem:[%s15800_s1 + $0xa0] sm:$0xff]   ;;  %v9746_v38 = vld [vmem:[%s15801_s0 + $0x1fc] ss:$84 sps:$4 sm:$0xff]  }
   0xd   :  { %v9753_v32 = vld [vmem:[%s15800_s1 + $0x128] sm:$0xff]   ;;  %v9763_v36 = vld [vmem:[%s15800_s1 + $0x120] sm:$0xff]   ;;  %v9748_v39 = vld [vmem:[%s15801_s0 + $0x11bc] ss:$84 sps:$4 sm:$0xff]  }
   0xe   :  { %5469 = vmatpush1.bf16.msra.mxu0 %v9707_v4  ;;  %9690 = vmatpush1.bf16.msra.mxu1 %v9707_v4  ;;  %v9779_v40 = vld [vmem:[%s15800_s1 + $0x118] sm:$0xff]   ;;  %v9745_v41 = vld [vmem:[%s15800_s1 + $0x90] sm:$0xff]   ;;  %v9752_v44 = vld [vmem:[%s15800_s1 + $0x88] sm:$0xff]  }
   0xf   :  { %5470 = vmatprep.subr.bf16.mxu0 %v15804_v0  ;;  %9675 = vmatprep.subr.bf16.mxu1 %v15804_v0  ;;  %v9750_v42 = vld [vmem:[%s15801_s0 + $0x1f8] ss:$84 sps:$4 sm:$0xff]   ;;  %v9789_v47 = vld [vmem:[%s15800_s1 + $0x110] sm:$0xff]   ;;  %v9754_v48 = vld [vmem:[%s15800_s1 + $0x80] sm:$0xff]  }
  0x10   :  { %v9751_v43 = vld [vmem:[%s15801_s0 + $0x11b8] ss:$84 sps:$4 sm:$0xff]   ;;  %v9759_v49 = vld [vmem:[%s15801_s0 + $0x2a0] ss:$84 sps:$4 sm:$0xff]   ;;  %v9768_v57 = vld [vmem:[%s15801_s0 + $0x348] ss:$84 sps:$4 sm:$0xff]  }
  0x11   :  { %v9755_v45 = vld [vmem:[%s15801_s0 + $0x2a4] ss:$84 sps:$4 sm:$0xff]   ;;  %v9760_v50 = vld [vmem:[%s15801_s0 + $0x1260] ss:$84 sps:$4 sm:$0xff]   ;;  %v9803_v51 = vld [vmem:[%s15800_s1 + $0x108] sm:$0xff]  }
  0x12   :  { %5471 = vmatpush1.bf16.msra.mxu0 %v9708_v5  ;;  %9691 = vmatpush1.bf16.msra.mxu1 %v9708_v5  ;;  %v9757_v46 = vld [vmem:[%s15801_s0 + $0x1264] ss:$84 sps:$4 sm:$0xff]   ;;  %v9764_v53 = vld [vmem:[%s15801_s0 + $0x34c] ss:$84 sps:$4 sm:$0xff]   ;;  %v9762_v56 = vld [vmem:[%s15800_s1 + $0xf0] sm:$0xff]  }
  0x13   :  { %5472 = vmatprep.subr.bf16.mxu0 %v15804_v0  ;;  %9676 = vmatprep.subr.bf16.mxu1 %v15804_v0  ;;  %v9761_v52 = vld [vmem:[%s15800_s1 + $0xf8] sm:$0xff]   ;;  %v9766_v54 = vld [vmem:[%s15801_s0 + $0x130c] ss:$84 sps:$4 sm:$0xff]   ;;  %v9772_v60 = vld [vmem:[%s15801_s0 + $0x3f4] ss:$84 sps:$4 sm:$0xff]  }
  0x14   :  { %v9811_v55 = vld [vmem:[%s15800_s1 + $0x100] sm:$0xff]   ;;  %v9769_v58 = vld [vmem:[%s15801_s0 + $0x1308] ss:$84 sps:$4 sm:$0xff]   ;;  %v9832_v3 = vld [vmem:[%s15800_s1 + $0x170] sm:$0xff]  }
  0x15   :  { %v9770_v59 = vld [vmem:[%s15800_s1 + $0xe8] sm:$0xff]   ;;  %v9824_v62 = vld [vmem:[%s15800_s1 + $0x178] sm:$0xff]   ;;  %v9771_v63 = vld [vmem:[%s15800_s1 + $0xe0] sm:$0xff]  }
  0x16   :  { %5473 = vmatpush1.bf16.msra.mxu0 %v9709_v7  ;;  %9692 = vmatpush1.bf16.msra.mxu1 %v9709_v7  ;;  %v9774_v61 = vld [vmem:[%s15801_s0 + $0x13b4] ss:$84 sps:$4 sm:$0xff]   ;;  %v9776_v1 = vld [vmem:[%s15801_s0 + $0x3f0] ss:$84 sps:$4 sm:$0xff]   ;;  %v9778_v4 = vld [vmem:[%s15800_s1 + $0xd8] sm:$0xff]  }
  0x17   :  { %5474 = vmatprep.subr.bf16.mxu0 %v15804_v0  ;;  %9677 = vmatprep.subr.bf16.mxu1 %v15804_v0  ;;  %v9777_v2 = vld [vmem:[%s15801_s0 + $0x13b0] ss:$84 sps:$4 sm:$0xff]   ;;  %v9846_v7 = vld [vmem:[%s15800_s1 + $0x168] sm:$0xff]  }
  0x18   :  { %v9781_v5 = vld [vmem:[%s15801_s0 + $0x49c] ss:$84 sps:$4 sm:$0xff]  }
  0x19   :  { %v9783_v6 = vld [vmem:[%s15801_s0 + $0x145c] ss:$84 sps:$4 sm:$0xff]  }
  0x1a   :  { %5475 = vmatpush1.bf16.msra.mxu0 %v9710_v9  ;;  %9693 = vmatpush1.bf16.msra.mxu1 %v9710_v9  ;;  %v9780_v8 = vld [vmem:[%s15800_s1 + $0xd0] sm:$0xff]   ;;  %v9785_v9 = vld [vmem:[%s15801_s0 + $0x498] ss:$84 sps:$4 sm:$0xff]  }
  0x1b   :  { %5476 = vmatprep.subr.bf16.mxu0 %v15804_v0  ;;  %9678 = vmatprep.subr.bf16.mxu1 %v15804_v0 }
  0x1e   :  { %5477 = vmatpush1.bf16.msra.mxu0 %v9711_v10  ;;  %9694 = vmatpush1.bf16.msra.mxu1 %v9711_v10  ;;  %v9786_v10 = vld [vmem:[%s15801_s0 + $0x1458] ss:$84 sps:$4 sm:$0xff]  }
  0x1f   :  { %5478 = vmatprep.subr.bf16.mxu0 %v15804_v0  ;;  %9679 = vmatprep.subr.bf16.mxu1 %v15804_v0 }
  0x22   :  { %5479 = vmatpush2.bf16.msra.mxu0 %v9712_v11  ;;  %9695 = vmatpush2.bf16.msra.mxu1 %v9712_v11  ;;  %v9787_v11 = vld [vmem:[%s15800_s1 + $0xc8] sm:$0xff]  }
  0x23   :  { %5480 = vmatprep.subr.bf16.mxu0 %v15804_v0  ;;  %9680 = vmatprep.subr.bf16.mxu1 %v15804_v0 }
  0x26   :  { %5481 = vmatpush2.bf16.msra.mxu0 %v9713_v12  ;;  %9696 = vmatpush2.bf16.msra.mxu1 %v9713_v12  ;;  %v9790_v12 = vld [vmem:[%s15801_s0 + $0x544] ss:$84 sps:$4 sm:$0xff]  }
  0x27   :  { %5482 = vmatprep.subr.bf16.mxu0 %v15804_v0  ;;  %9681 = vmatprep.subr.bf16.mxu1 %v15804_v0 }
  0x2a   :  { %5483 = vmatpush2.bf16.msra.mxu0 %v9714_v13  ;;  %9697 = vmatpush2.bf16.msra.mxu1 %v9714_v13  ;;  %v9794_v13 = vld [vmem:[%s15801_s0 + $0xc] ss:$84 sps:$4 sm:$0xff]  }
  0x2b   :  { %5484 = vmatprep.subr.bf16.mxu0 %v15804_v0  ;;  %9682 = vmatprep.subr.bf16.mxu1 %v15804_v0 }
  0x2e   :  { %5485 = vmatpush2.bf16.msra.mxu0 %v9715_v14  ;;  %9698 = vmatpush2.bf16.msra.mxu1 %v9715_v14  ;;  %v9854_v14 = vld [vmem:[%s15800_s1 + $0x160] sm:$0xff]  }
  0x2f   :  { %5486 = vmatprep.subr.bf16.mxu0 %v15804_v0  ;;  %9683 = vmatprep.subr.bf16.mxu1 %v15804_v0 }
  0x32   :  { %5487 = vmatpush2.bf16.msra.mxu0 %v9716_v15  ;;  %9699 = vmatpush2.bf16.msra.mxu1 %v9716_v15  ;;  %v9788_v15 = vld [vmem:[%s15800_s1 + $0xc0] sm:$0xff]  }
  0x33   :  { %5488 = vmatprep.subr.bf16.mxu0 %v15804_v0  ;;  %9684 = vmatprep.subr.bf16.mxu1 %v15804_v0 }
  0x36   :  { %5489 = vmatpush2.bf16.msra.mxu0 %v9717_v16  ;;  %9700 = vmatpush2.bf16.msra.mxu1 %v9717_v16  ;;  %v9792_v16 = vld [vmem:[%s15801_s0 + $0x8] ss:$84 sps:$4 sm:$0xff]  }
  0x37   :  { %5490 = vmatprep.subr.bf16.mxu0 %v15804_v0  ;;  %9685 = vmatprep.subr.bf16.mxu1 %v15804_v0 }
  0x3a   :  { %5491 = vmatpush2.bf16.msra.mxu0 %v9718_v17  ;;  %9701 = vmatpush2.bf16.msra.mxu1 %v9718_v17  ;;  %v9795_v17 = vld [vmem:[%s15801_s0 + $0x540] ss:$84 sps:$4 sm:$0xff]  }
  0x3b   :  { %5492 = vmatprep.subr.bf16.mxu0 %v15804_v0  ;;  %9686 = vmatprep.subr.bf16.mxu1 %v15804_v0 }
  0x3e   :  { %5493 = vmatpush2.bf16.msra.mxu0 %v9719_v18  ;;  %9702 = vmatpush2.bf16.msra.mxu1 %v9719_v18  ;;  %v9867_v18 = vld [vmem:[%s15800_s1 + $0x158] sm:$0xff]  }
  0x3f   :  { %5751 = vmatprep.subr.bf16.mxu1 %v15804_v0  ;;  %6040 = vmatprep.subr.bf16.mxu0 %v15804_v0 }
  0x41   :  { %5495 = vmatmul.mubr.bf16.vlgmr.msra.gmra.mxu0 %v9720_v19  ;;  %5687 = vmatmul.mubr.bf16.vlgmr.msra.gmra.mxu1 %v9723_v20  ;;  %v9796_v19 = vld [vmem:[%s15800_s1 + $0x1b8] sm:$0xff]   ;;  %v9797_v20 = vld [vmem:[%s15801_s0 + $0x5ec] ss:$84 sps:$4 sm:$0xff]  }
  0x42   :  { %5752 = vmatpush1.bf16.msra.mxu1 %v9726_v21  ;;  %6041 = vmatpush1.bf16.msra.mxu0 %v9727_v22  ;;  %v9799_v21 = vld [vmem:[%s15801_s0 + $0xb4] ss:$84 sps:$4 sm:$0xff]  }
  0x43   :  { %5753 = vmatprep.subr.bf16.mxu1 %v15804_v0  ;;  %5502 = vmatprep.mubr.bf16.mxu0 %v9729_v23  ;;  %v9875_v22 = vld [vmem:[%s15800_s1 + $0x150] sm:$0xff]  }
  0x44   :  { %5694 = vmatprep.mubr.bf16.mxu1 %v9731_v24  ;;  %6042 = vmatprep.subr.bf16.mxu0 %v15804_v0  ;;  %v9810_v23 = vld [vmem:[%s15800_s1 + $0x1b0] sm:$0xff]   ;;  %v9801_v24 = vld [vmem:[%s15801_s0 + $0x5e8] ss:$84 sps:$4 sm:$0xff]  }
  0x46   :  { %5754 = vmatpush1.bf16.msra.mxu1 %v9728_v25  ;;  %6043 = vmatpush1.bf16.msra.mxu0 %v9737_v26  ;;  %v9802_v25 = vld [vmem:[%s15801_s0 + $0xb0] ss:$84 sps:$4 sm:$0xff]   ;;  %v9804_v26 = vld [vmem:[%s15801_s0 + $0x694] ss:$84 sps:$4 sm:$0xff]  }
  0x47   :  { %5755 = vmatprep.subr.bf16.mxu1 %v15804_v0  ;;  %6044 = vmatprep.subr.bf16.mxu0 %v15804_v0 }
  0x49   :  { %5503 = vmatmul.mubr.bf16.gmra.mxu0 %v9733_v27  ;;  %5695 = vmatmul.mubr.bf16.gmra.mxu1 %v9734_v28  ;;  %v9806_v27 = vld [vmem:[%s15801_s0 + $0x15c] ss:$84 sps:$4 sm:$0xff]   ;;  %v9825_v28 = vld [vmem:[%s15800_s1 + $0x1a8] sm:$0xff]  }
  0x4a   :  { %5756 = vmatpush1.bf16.msra.mxu1 %v9735_v29  ;;  %5510 = vmatprep.mubr.bf16.mxu0 %v9738_v30  ;;  %v9889_v29 = vld [vmem:[%s15800_s1 + $0x148] sm:$0xff]   ;;  %v9839_v30 = vld [vmem:[%s15800_s1 + $0x1a0] sm:$0xff]  }
  0x4b   :  { %5757 = vmatprep.subr.bf16.mxu1 %v15804_v0  ;;  %5702 = vmatprep.mubr.bf16.mxu1 %v9740_v31  ;;  %v9897_v31 = vld [vmem:[%s15800_s1 + $0x140] sm:$0xff]  }
  0x4c   :  { %6045 = vmatpush1.bf16.msra.mxu0 %v9753_v32  ;;  %v9808_v32 = vld [vmem:[%s15801_s0 + $0x690] ss:$84 sps:$4 sm:$0xff]  }
  0x4d   :  { %6046 = vmatprep.subr.bf16.mxu0 %v15804_v0 }
  0x4e   :  { %5758 = vmatpush1.bf16.msra.mxu1 %v9736_v33  ;;  %v9809_v33 = vld [vmem:[%s15801_s0 + $0x158] ss:$84 sps:$4 sm:$0xff]  }
  0x4f   :  { %5759 = vmatprep.subr.bf16.mxu1 %v15804_v0 }
  0x50   :  { %6047 = vmatpush1.bf16.msra.mxu0 %v9763_v36  ;;  %v9853_v36 = vld [vmem:[%s15800_s1 + $0x198] sm:$0xff]  }
  0x51   :  { %5511 = vmatmul.mubr.bf16.gmra.mxu0 %v9742_v34  ;;  %5703 = vmatmul.mubr.bf16.gmra.mxu1 %v9743_v35  ;;  %v9812_v34 = vld [vmem:[%s15801_s0 + $0x73c] ss:$84 sps:$4 sm:$0xff]   ;;  %v9814_v35 = vld [vmem:[%s15801_s0 + $0x204] ss:$84 sps:$4 sm:$0xff]  }
  0x52   :  { %5760 = vmatpush1.bf16.msra.mxu1 %v9744_v37  ;;  %5518 = vmatprep.mubr.bf16.mxu0 %v9746_v38  ;;  %v9868_v37 = vld [vmem:[%s15800_s1 + $0x190] sm:$0xff]   ;;  %v9816_v38 = vld [vmem:[%s15801_s0 + $0x738] ss:$84 sps:$4 sm:$0xff]  }
  0x53   :  { %5761 = vmatprep.subr.bf16.mxu1 %v15804_v0  ;;  %5710 = vmatprep.mubr.bf16.mxu1 %v9748_v39  ;;  %v9817_v39 = vld [vmem:[%s15801_s0 + $0x200] ss:$84 sps:$4 sm:$0xff]  }
  0x54   :  { %6048 = vmatprep.subr.bf16.mxu0 %v15804_v0 }
  0x55   :  { %6049 = vmatpush1.bf16.msra.mxu0 %v9779_v40  ;;  %v9818_v40 = vld [vmem:[%s15801_s0 + $0x7e4] ss:$84 sps:$4 sm:$0xff]  }
  0x56   :  { %5762 = vmatpush1.bf16.msra.mxu1 %v9745_v41  ;;  %6050 = vmatprep.subr.bf16.mxu0 %v15804_v0  ;;  %v9820_v41 = vld [vmem:[%s15801_s0 + $0x2ac] ss:$84 sps:$4 sm:$0xff]  }
  0x57   :  { %5763 = vmatprep.subr.bf16.mxu1 %v15804_v0 }
  0x59   :  { %5519 = vmatmul.mubr.bf16.gmra.mxu0 %v9750_v42  ;;  %5711 = vmatmul.mubr.bf16.gmra.mxu1 %v9751_v43  ;;  %v9882_v42 = vld [vmem:[%s15800_s1 + $0x188] sm:$0xff]   ;;  %v9896_v43 = vld [vmem:[%s15800_s1 + $0x180] sm:$0xff]  }
  0x5a   :  { %5764 = vmatpush1.bf16.msra.mxu1 %v9752_v44  ;;  %5526 = vmatprep.mubr.bf16.mxu0 %v9755_v45  ;;  %v9822_v44 = vld [vmem:[%s15801_s0 + $0x7e0] ss:$84 sps:$4 sm:$0xff]   ;;  %v9823_v45 = vld [vmem:[%s15801_s0 + $0x2a8] ss:$84 sps:$4 sm:$0xff]  }
  0x5b   :  { %5765 = vmatprep.subr.bf16.mxu1 %v15804_v0  ;;  %5718 = vmatprep.mubr.bf16.mxu1 %v9757_v46  ;;  %v9826_v46 = vld [vmem:[%s15801_s0 + $0x88c] ss:$84 sps:$4 sm:$0xff]  }
  0x5c   :  { %6051 = vmatpush1.bf16.msra.mxu0 %v9789_v47  ;;  %v9828_v47 = vld [vmem:[%s15801_s0 + $0x354] ss:$84 sps:$4 sm:$0xff]  }
  0x5d   :  { %6052 = vmatprep.subr.bf16.mxu0 %v15804_v0 }
  0x5e   :  { %5766 = vmatpush1.bf16.msra.mxu1 %v9754_v48  ;;  %v9910_v48 = vld [vmem:[%s15800_s1 + $0x1f8] sm:$0xff]  }
  0x5f   :  { %5767 = vmatprep.subr.bf16.mxu1 %v15804_v0 }
  0x60   :  { %6053 = vmatpush1.bf16.msra.mxu0 %v9803_v51  ;;  %v9831_v51 = vld [vmem:[%s15801_s0 + $0x350] ss:$84 sps:$4 sm:$0xff]  }
  0x61   :  { %5527 = vmatmul.mubr.bf16.gmra.mxu0 %v9759_v49  ;;  %5719 = vmatmul.mubr.bf16.gmra.mxu1 %v9760_v50  ;;  %v9924_v49 = vld [vmem:[%s15800_s1 + $0x1f0] sm:$0xff]   ;;  %v9830_v50 = vld [vmem:[%s15801_s0 + $0x888] ss:$84 sps:$4 sm:$0xff]  }
  0x62   :  { %5768 = vmatpush2.bf16.msra.mxu1 %v9761_v52  ;;  %5534 = vmatprep.mubr.bf16.mxu0 %v9764_v53  ;;  %v9833_v52 = vld [vmem:[%s15801_s0 + $0x934] ss:$84 sps:$4 sm:$0xff]   ;;  %v9835_v53 = vld [vmem:[%s15801_s0 + $0x3fc] ss:$84 sps:$4 sm:$0xff]  }
  0x63   :  { %5769 = vmatprep.subr.bf16.mxu1 %v15804_v0  ;;  %5726 = vmatprep.mubr.bf16.mxu1 %v9766_v54  ;;  %v9938_v54 = vld [vmem:[%s15800_s1 + $0x1e8] sm:$0xff]  }
  0x64   :  { %6054 = vmatprep.subr.bf16.mxu0 %v15804_v0 }
  0x65   :  { %6055 = vmatpush1.bf16.msra.mxu0 %v9811_v55  ;;  %v9837_v55 = vld [vmem:[%s15801_s0 + $0x930] ss:$84 sps:$4 sm:$0xff]  }
  0x66   :  { %5770 = vmatpush2.bf16.msra.mxu1 %v9762_v56  ;;  %6056 = vmatprep.subr.bf16.mxu0 %v15804_v0  ;;  %v9838_v56 = vld [vmem:[%s15801_s0 + $0x3f8] ss:$84 sps:$4 sm:$0xff]  }
  0x67   :  { %5771 = vmatprep.subr.bf16.mxu1 %v15804_v0 }
  0x69   :  { %5535 = vmatmul.mubr.bf16.gmra.mxu0 %v9768_v57  ;;  %5727 = vmatmul.mubr.bf16.gmra.mxu1 %v9769_v58  ;;  %v9840_v57 = vld [vmem:[%s15801_s0 + $0x9dc] ss:$84 sps:$4 sm:$0xff]   ;;  %v9842_v58 = vld [vmem:[%s15801_s0 + $0x4a4] ss:$84 sps:$4 sm:$0xff]  }
  0x6a   :  { %5772 = vmatpush2.bf16.msra.mxu1 %v9770_v59  ;;  %5542 = vmatprep.mubr.bf16.mxu0 %v9772_v60  ;;  %v9952_v59 = vld [vmem:[%s15800_s1 + $0x1e0] sm:$0xff]   ;;  %v9844_v60 = vld [vmem:[%s15801_s0 + $0x9d8] ss:$84 sps:$4 sm:$0xff]  }
  0x6b   :  { %5773 = vmatprep.subr.bf16.mxu1 %v15804_v0  ;;  %5734 = vmatprep.mubr.bf16.mxu1 %v9774_v61  ;;  %v9845_v61 = vld [vmem:[%s15801_s0 + $0x4a0] ss:$84 sps:$4 sm:$0xff]  }
  0x6c   :  { %6057 = vmatpush2.bf16.msra.mxu0 %v9824_v62  ;;  %v9847_v62 = vld [vmem:[%s15801_s0 + $0xa84] ss:$84 sps:$4 sm:$0xff]  }
  0x6d   :  { %6058 = vmatprep.subr.bf16.mxu0 %v15804_v0 }
  0x6e   :  { %5774 = vmatpush2.bf16.msra.mxu1 %v9771_v63  ;;  %v9849_v63 = vld [vmem:[%s15801_s0 + $0x54c] ss:$84 sps:$4 sm:$0xff]  }
  0x6f   :  { %5775 = vmatprep.subr.bf16.mxu1 %v15804_v0 }
  0x70   :  { %6059 = vmatpush2.bf16.msra.mxu0 %v9832_v3  ;;  %v9855_v3 = vld [vmem:[%s15801_s0 + $0xb2c] ss:$84 sps:$4 sm:$0xff]  }
  0x71   :  { %5543 = vmatmul.mubr.bf16.gmra.mxu0 %v9776_v1  ;;  %5735 = vmatmul.mubr.bf16.gmra.mxu1 %v9777_v2  ;;  %v9851_v1 = vld [vmem:[%s15801_s0 + $0xa80] ss:$84 sps:$4 sm:$0xff]   ;;  %v9852_v2 = vld [vmem:[%s15801_s0 + $0x548] ss:$84 sps:$4 sm:$0xff]  }
  0x72   :  { %5776 = vmatpush2.bf16.msra.mxu1 %v9778_v4  ;;  %5550 = vmatprep.mubr.bf16.mxu0 %v9781_v5  ;;  %v9857_v4 = vld [vmem:[%s15801_s0 + $0x5f4] ss:$84 sps:$4 sm:$0xff]   ;;  %v9966_v5 = vld [vmem:[%s15800_s1 + $0x1d8] sm:$0xff]  }
  0x73   :  { %5777 = vmatprep.subr.bf16.mxu1 %v15804_v0  ;;  %5742 = vmatprep.mubr.bf16.mxu1 %v9783_v6  ;;  %v9859_v6 = vld [vmem:[%s15801_s0 + $0xb28] ss:$84 sps:$4 sm:$0xff]  }
  0x74   :  { %6060 = vmatprep.subr.bf16.mxu0 %v15804_v0 }
  0x75   :  { %6061 = vmatpush2.bf16.msra.mxu0 %v9846_v7  ;;  %v9860_v7 = vld [vmem:[%s15801_s0 + $0x5f0] ss:$84 sps:$4 sm:$0xff]  }
  0x76   :  { %5778 = vmatpush2.bf16.msra.mxu1 %v9780_v8  ;;  %6062 = vmatprep.subr.bf16.mxu0 %v15804_v0  ;;  %v9861_v8 = vld [vmem:[%s15801_s0 + $0xbd4] ss:$84 sps:$4 sm:$0xff]  }
  0x77   :  { %5779 = vmatprep.subr.bf16.mxu1 %v15804_v0 }
  0x79   :  { %5551 = vmatmul.mubr.bf16.gmra.mxu0 %v9785_v9  ;;  %5743 = vmatmul.mubr.bf16.gmra.mxu1 %v9786_v10  ;;  %v9863_v9 = vld [vmem:[%s15801_s0 + $0x69c] ss:$84 sps:$4 sm:$0xff]  }
  0x7a   :  { %5780 = vmatpush2.bf16.msra.mxu1 %v9787_v11  ;;  %5558 = vmatprep.mubr.bf16.mxu0 %v9790_v12  ;;  %v9865_v10 = vld [vmem:[%s15801_s0 + $0xbd0] ss:$84 sps:$4 sm:$0xff]   ;;  %v9866_v11 = vld [vmem:[%s15801_s0 + $0x698] ss:$84 sps:$4 sm:$0xff]  }
  0x7b   :  { %5781 = vmatprep.subr.bf16.mxu1 %v15804_v0  ;;  %5783 = vmatprep.mubr.bf16.mxu1 %v9794_v13  ;;  %v9869_v12 = vld [vmem:[%s15801_s0 + $0xc7c] ss:$84 sps:$4 sm:$0xff]   ;;  %v9871_v13 = vld [vmem:[%s15801_s0 + $0x744] ss:$84 sps:$4 sm:$0xff]  }
  0x7c   :  { %6063 = vmatpush2.bf16.msra.mxu0 %v9854_v14  ;;  %v9980_v14 = vld [vmem:[%s15800_s1 + $0x1d0] sm:$0xff]  }
  0x7d   :  { %6064 = vmatprep.subr.bf16.mxu0 %v15804_v0 }
  0x7e   :  { %5782 = vmatpush2.bf16.msra.mxu1 %v9788_v15  ;;  %v9873_v15 = vld [vmem:[%s15801_s0 + $0xc78] ss:$84 sps:$4 sm:$0xff]  }
  0x7f   :  { %6329 = vmatprep.subr.bf16.mxu1 %v15804_v0 }
  0x80   :  { %6065 = vmatpush2.bf16.msra.mxu0 %v9867_v18  ;;  %v9878_v18 = vld [vmem:[%s15801_s0 + $0x7ec] ss:$84 sps:$4 sm:$0xff]  }
  0x81   :  { %5559 = vmatmul.mubr.bf16.gmra.mxu0 %v9795_v17  ;;  %5784 = vmatmul.mubr.bf16.vlgmr.msra.gmra.mxu1 %v9792_v16  ;;  %v9874_v16 = vld [vmem:[%s15801_s0 + $0x740] ss:$84 sps:$4 sm:$0xff]   ;;  %v9876_v17 = vld [vmem:[%s15801_s0 + $0xd24] ss:$84 sps:$4 sm:$0xff]  }
  0x82   :  { %6330 = vmatpush1.bf16.msra.mxu1 %v9796_v19  ;;  %5566 = vmatprep.mubr.bf16.mxu0 %v9797_v20  ;;  %v9880_v19 = vld [vmem:[%s15801_s0 + $0xd20] ss:$84 sps:$4 sm:$0xff]   ;;  %v9881_v20 = vld [vmem:[%s15801_s0 + $0x7e8] ss:$84 sps:$4 sm:$0xff]  }
  0x83   :  { %5791 = vmatprep.mubr.bf16.mxu1 %v9799_v21  ;;  %6331 = vmatprep.subr.bf16.mxu1 %v15804_v0  ;;  %v9883_v21 = vld [vmem:[%s15801_s0 + $0xdcc] ss:$84 sps:$4 sm:$0xff]  }
  0x84   :  { %6066 = vmatprep.subr.bf16.mxu0 %v15804_v0 }
  0x85   :  { %6067 = vmatpush2.bf16.msra.mxu0 %v9875_v22  ;;  %v9885_v22 = vld [vmem:[%s15801_s0 + $0x894] ss:$84 sps:$4 sm:$0xff]  }
  0x86   :  { %6332 = vmatpush1.bf16.msra.mxu1 %v9810_v23  ;;  %6068 = vmatprep.subr.bf16.mxu0 %v15804_v0  ;;  %v9994_v23 = vld [vmem:[%s15800_s1 + $0x1c8] sm:$0xff]  }
  0x87   :  { %6333 = vmatprep.subr.bf16.mxu1 %v15804_v0 }
  0x89   :  { %5567 = vmatmul.mubr.bf16.gmra.mxu0 %v9801_v24  ;;  %5792 = vmatmul.mubr.bf16.gmra.mxu1 %v9802_v25  ;;  %v9887_v24 = vld [vmem:[%s15801_s0 + $0xdc8] ss:$84 sps:$4 sm:$0xff]   ;;  %v9888_v25 = vld [vmem:[%s15801_s0 + $0x890] ss:$84 sps:$4 sm:$0xff]  }
  0x8a   :  { %5574 = vmatprep.mubr.bf16.mxu0 %v9804_v26  ;;  %5799 = vmatprep.mubr.bf16.mxu1 %v9806_v27  ;;  %v9890_v26 = vld [vmem:[%s15801_s0 + $0xe74] ss:$84 sps:$4 sm:$0xff]   ;;  %v9892_v27 = vld [vmem:[%s15801_s0 + $0x93c] ss:$84 sps:$4 sm:$0xff]  }
  0x8b   :  { %6334 = vmatpush1.bf16.msra.mxu1 %v9825_v28  ;;  %6069 = vmatpush2.bf16.msra.mxu0 %v9889_v29  ;;  %v9894_v28 = vld [vmem:[%s15801_s0 + $0xe70] ss:$84 sps:$4 sm:$0xff]   ;;  %v9895_v29 = vld [vmem:[%s15801_s0 + $0x938] ss:$84 sps:$4 sm:$0xff]  }
  0x8c   :  { %6335 = vmatprep.subr.bf16.mxu1 %v15804_v0  ;;  %6070 = vmatprep.subr.bf16.mxu0 %v15804_v0 }
  0x8f   :  { %6336 = vmatpush1.bf16.msra.mxu1 %v9839_v30  ;;  %6071 = vmatpush2.bf16.msra.mxu0 %v9897_v31  ;;  %v9898_v30 = vld [vmem:[%s15801_s0 + $0xf1c] ss:$84 sps:$4 sm:$0xff]   ;;  %v9900_v31 = vld [vmem:[%s15801_s0 + $0x9e4] ss:$84 sps:$4 sm:$0xff]  }
  0x90   :  { %6337 = vmatprep.subr.bf16.mxu1 %v15804_v0  ;;  %6618 = vmatprep.subr.bf16.mxu0 %v15804_v0 }
  0x91   :  { %5575 = vmatmul.mubr.bf16.gmra.mxu0 %v9808_v32  ;;  %5800 = vmatmul.mubr.bf16.gmra.mxu1 %v9809_v33  ;;  %v10008_v32 = vld [vmem:[%s15800_s1 + $0x1c0] sm:$0xff]   ;;  %v9902_v33 = vld [vmem:[%s15801_s0 + $0xf18] ss:$84 sps:$4 sm:$0xff]  }
  0x92   :  { %5582 = vmatprep.mubr.bf16.mxu0 %v9812_v34  ;;  %5807 = vmatprep.mubr.bf16.mxu1 %v9814_v35  ;;  %v9903_v34 = vld [vmem:[%s15801_s0 + $0x9e0] ss:$84 sps:$4 sm:$0xff]  }
  0x93   :  { %6338 = vmatpush1.bf16.msra.mxu1 %v9853_v36  ;;  %v9904_v35 = vld [vmem:[%s15801_s0 + $0xa8c] ss:$84 sps:$4 sm:$0xff]   ;;  %v9908_v36 = vld [vmem:[%s15801_s0 + $0x14] ss:$84 sps:$4 sm:$0xff]  }
  0x94   :  { %6339 = vmatprep.subr.bf16.mxu1 %v15804_v0 }
  0x97   :  { %6340 = vmatpush1.bf16.msra.mxu1 %v9868_v37  ;;  %v9906_v37 = vld [vmem:[%s15801_s0 + $0x10] ss:$84 sps:$4 sm:$0xff]  }
  0x98   :  { %6341 = vmatprep.subr.bf16.mxu1 %v15804_v0 }
  0x99   :  { %5583 = vmatmul.mubr.bf16.gmra.mxu0 %v9816_v38  ;;  %5808 = vmatmul.mubr.bf16.gmra.mxu1 %v9817_v39  ;;  %v9909_v38 = vld [vmem:[%s15801_s0 + $0xa88] ss:$84 sps:$4 sm:$0xff]  }
  0x9a   :  { %5590 = vmatprep.mubr.bf16.mxu0 %v9818_v40  ;;  %5815 = vmatprep.mubr.bf16.mxu1 %v9820_v41  ;;  %v9911_v39 = vld [vmem:[%s15800_s1 + $0x238] sm:$0xff]   ;;  %v9912_v40 = vld [vmem:[%s15801_s0 + $0xb34] ss:$84 sps:$4 sm:$0xff]  }
  0x9b   :  { %6342 = vmatpush1.bf16.msra.mxu1 %v9882_v42  ;;  %v9914_v41 = vld [vmem:[%s15801_s0 + $0xbc] ss:$84 sps:$4 sm:$0xff]  }
  0x9c   :  { %6343 = vmatprep.subr.bf16.mxu1 %v15804_v0 }
  0x9f   :  { %6344 = vmatpush1.bf16.msra.mxu1 %v9896_v43 }
  0xa0   :  { %6345 = vmatprep.subr.bf16.mxu1 %v15804_v0 }
  0xa1   :  { %5591 = vmatmul.mubr.bf16.gmra.mxu0 %v9822_v44  ;;  %5816 = vmatmul.mubr.bf16.gmra.mxu1 %v9823_v45  ;;  %v9925_v44 = vld [vmem:[%s15800_s1 + $0x230] sm:$0xff]  }
  0xa2   :  { %5598 = vmatprep.mubr.bf16.mxu0 %v9826_v46  ;;  %5823 = vmatprep.mubr.bf16.mxu1 %v9828_v47  ;;  %v9916_v47 = vld [vmem:[%s15801_s0 + $0xb30] ss:$84 sps:$4 sm:$0xff]  }
  0xa3   :  { %6346 = vmatpush2.bf16.msra.mxu1 %v9910_v48  ;;  %v9917_v48 = vld [vmem:[%s15801_s0 + $0xb8] ss:$84 sps:$4 sm:$0xff]  }
  0xa4   :  { %6347 = vmatprep.subr.bf16.mxu1 %v15804_v0 }
  0xa7   :  { %6348 = vmatpush2.bf16.msra.mxu1 %v9924_v49 }
  0xa8   :  { %6349 = vmatprep.subr.bf16.mxu1 %v15804_v0 }
  0xa9   :  { %5599 = vmatmul.mubr.bf16.gmra.mxu0 %v9830_v50  ;;  %5824 = vmatmul.mubr.bf16.gmra.mxu1 %v9831_v51  ;;  %v9918_v51 = vld [vmem:[%s15801_s0 + $0xbdc] ss:$84 sps:$4 sm:$0xff]  }
  0xaa   :  { %5606 = vmatprep.mubr.bf16.mxu0 %v9833_v52  ;;  %5831 = vmatprep.mubr.bf16.mxu1 %v9835_v53  ;;  %v9920_v52 = vld [vmem:[%s15801_s0 + $0x164] ss:$84 sps:$4 sm:$0xff]  }
  0xab   :  { %6350 = vmatpush2.bf16.msra.mxu1 %v9938_v54 }
  0xac   :  { %6351 = vmatprep.subr.bf16.mxu1 %v15804_v0 }
  0xaf   :  { %6352 = vmatpush2.bf16.msra.mxu1 %v9952_v59 }
  0xb0   :  { %6353 = vmatprep.subr.bf16.mxu1 %v15804_v0 }
  0xb1   :  { %5607 = vmatmul.mubr.bf16.gmra.mxu0 %v9837_v55  ;;  %5832 = vmatmul.mubr.bf16.gmra.mxu1 %v9838_v56  ;;  %v9939_v55 = vld [vmem:[%s15800_s1 + $0x228] sm:$0xff]  }
  0xb2   :  { %5614 = vmatprep.mubr.bf16.mxu0 %v9840_v57  ;;  %5839 = vmatprep.mubr.bf16.mxu1 %v9842_v58  ;;  %v9953_v58 = vld [vmem:[%s15800_s1 + $0x220] sm:$0xff]  }
  0xb3   :  { %6354 = vmatpush2.bf16.msra.mxu1 %v9966_v5 }
  0xb4   :  { %6355 = vmatprep.subr.bf16.mxu1 %v15804_v0 }
  0xb7   :  { %6356 = vmatpush2.bf16.msra.mxu1 %v9980_v14 }
  0xb8   :  { %6357 = vmatprep.subr.bf16.mxu1 %v15804_v0 }
  0xb9   :  { %5615 = vmatmul.mubr.bf16.gmra.mxu0 %v9844_v60  ;;  %5840 = vmatmul.mubr.bf16.gmra.mxu1 %v9845_v61  ;;  %v9922_v61 = vld [vmem:[%s15801_s0 + $0xbd8] ss:$84 sps:$4 sm:$0xff]  }
  0xba   :  { %5622 = vmatprep.mubr.bf16.mxu0 %v9847_v62  ;;  %5847 = vmatprep.mubr.bf16.mxu1 %v9849_v63  ;;  %v9923_v62 = vld [vmem:[%s15801_s0 + $0x160] ss:$84 sps:$4 sm:$0xff]  }
  0xbb   :  { %6358 = vmatpush2.bf16.msra.mxu1 %v9994_v23  ;;  %v10009_v23 = vld [vmem:[%s15800_s1 + $0x200] sm:$0xff]  }
  0xbc   :  { %6359 = vmatprep.subr.bf16.mxu1 %v15804_v0 }
  0xbf   :  { %6360 = vmatpush2.bf16.msra.mxu1 %v10008_v32 }
  0xc0   :  { %6907 = vmatprep.subr.bf16.mxu1 %v15804_v0 }
  0xc1   :  { %5623 = vmatmul.mubr.bf16.gmra.mxu0 %v9851_v1  ;;  %5848 = vmatmul.mubr.bf16.gmra.mxu1 %v9852_v2  ;;  %v9926_v2 = vld [vmem:[%s15801_s0 + $0xc84] ss:$84 sps:$4 sm:$0xff]  }
  0xc2   :  { %5630 = vmatprep.mubr.bf16.mxu0 %v9855_v3  ;;  %5855 = vmatprep.mubr.bf16.mxu1 %v9857_v4  ;;  %v9928_v3 = vld [vmem:[%s15801_s0 + $0x20c] ss:$84 sps:$4 sm:$0xff]  }
  0xc9   :  { %5631 = vmatmul.mubr.bf16.gmra.mxu0 %v9859_v6  ;;  %5856 = vmatmul.mubr.bf16.gmra.mxu1 %v9860_v7  ;;  %v9967_v6 = vld [vmem:[%s15800_s1 + $0x218] sm:$0xff]  }
  0xca   :  { %5638 = vmatprep.mubr.bf16.mxu0 %v9861_v8  ;;  %5863 = vmatprep.mubr.bf16.mxu1 %v9863_v9  ;;  %v9981_v9 = vld [vmem:[%s15800_s1 + $0x210] sm:$0xff]  }
  0xd1   :  { %5639 = vmatmul.mubr.bf16.gmra.mxu0 %v9865_v10  ;;  %5864 = vmatmul.mubr.bf16.gmra.mxu1 %v9866_v11 }
  0xd2   :  { %5646 = vmatprep.mubr.bf16.mxu0 %v9869_v12  ;;  %5871 = vmatprep.mubr.bf16.mxu1 %v9871_v13  ;;  %v9930_v12 = vld [vmem:[%s15801_s0 + $0xc80] ss:$84 sps:$4 sm:$0xff]   ;;  %v9931_v13 = vld [vmem:[%s15801_s0 + $0x208] ss:$84 sps:$4 sm:$0xff]  }
  0xd9   :  { %5647 = vmatmul.mubr.bf16.gmra.mxu0 %v9873_v15  ;;  %5872 = vmatmul.mubr.bf16.gmra.mxu1 %v9874_v16  ;;  %v9934_v16 = vld [vmem:[%s15801_s0 + $0xd2c] ss:$84 sps:$4 sm:$0xff]  }
  0xda   :  { %5654 = vmatprep.mubr.bf16.mxu0 %v9876_v17  ;;  %5879 = vmatprep.mubr.bf16.mxu1 %v9878_v18  ;;  %v9937_v17 = vld [vmem:[%s15801_s0 + $0x2b4] ss:$84 sps:$4 sm:$0xff]  }
  0xe1   :  { %5655 = vmatmul.mubr.bf16.gmra.mxu0 %v9880_v19  ;;  %5880 = vmatmul.mubr.bf16.gmra.mxu1 %v9881_v20  ;;  %v9995_v20 = vld [vmem:[%s15800_s1 + $0x208] sm:$0xff]  }
  0xe2   :  { %5662 = vmatprep.mubr.bf16.mxu0 %v9883_v21  ;;  %5887 = vmatprep.mubr.bf16.mxu1 %v9885_v22 }
  0xe9   :  { %5663 = vmatmul.mubr.bf16.gmra.mxu0 %v9887_v24  ;;  %5888 = vmatmul.mubr.bf16.gmra.mxu1 %v9888_v25 }
  0xea   :  { %5670 = vmatprep.mubr.bf16.mxu0 %v9890_v26  ;;  %5895 = vmatprep.mubr.bf16.mxu1 %v9892_v27  ;;  %v9932_v26 = vld [vmem:[%s15801_s0 + $0xd28] ss:$84 sps:$4 sm:$0xff]   ;;  %v9935_v27 = vld [vmem:[%s15801_s0 + $0x2b0] ss:$84 sps:$4 sm:$0xff]  }
  0xf1   :  { %5671 = vmatmul.mubr.bf16.gmra.mxu0 %v9894_v28  ;;  %5896 = vmatmul.mubr.bf16.gmra.mxu1 %v9895_v29 }
  0xf2   :  { %5678 = vmatprep.mubr.bf16.mxu0 %v9898_v30  ;;  %5903 = vmatprep.mubr.bf16.mxu1 %v9900_v31  ;;  %v9942_v30 = vld [vmem:[%s15801_s0 + $0xdd4] ss:$84 sps:$4 sm:$0xff]   ;;  %v9945_v31 = vld [vmem:[%s15801_s0 + $0x35c] ss:$84 sps:$4 sm:$0xff]  }
  0xf9   :  { %5679 = vmatmul.mubr.bf16.gmra.mxu0 %v9902_v33  ;;  %5904 = vmatmul.mubr.bf16.gmra.mxu1 %v9903_v34  ;;  %v10022_v34 = vld [vmem:[%s15800_s1 + $0x278] sm:$0xff]  }
  0xfa   :  { %5911 = vmatprep.mubr.bf16.mxu1 %v9904_v35  ;;  %6072 = vmatprep.mubr.bf16.mxu0 %v9908_v36 }
 0x101   :  { %v11470_v42 = vpop.f32.mrf.mxu0  ;;  %v11472_v43 = vpop.f32.mrf.mxu1  ;;  %5912 = vmatmul.mubr.bf16.gmra.mxu1 %v9909_v38  ;;  %6073 = vmatmul.mubr.bf16.vlgmr.msra.gmra.mxu0 %v9906_v37  ;;  %v10036_v37 = vld [vmem:[%s15800_s1 + $0x270] sm:$0xff]  }
 0x102   :  { %6619 = vmatpush1.bf16.msra.mxu0 %v9911_v39  ;;  %5919 = vmatprep.mubr.bf16.mxu1 %v9912_v40  ;;  %v9940_v40 = vld [vmem:[%s15801_s0 + $0xdd0] ss:$84 sps:$4 sm:$0xff]  }
 0x103   :  { %v5498_v45 = vpop.f32.mrf.mxu0  ;;  %v5690_v46 = vpop.f32.mrf.mxu1  ;;  %6080 = vmatprep.mubr.bf16.mxu0 %v9914_v41  ;;  %6620 = vmatprep.subr.bf16.mxu0 %v15804_v0  ;;  %v9943_v41 = vld [vmem:[%s15801_s0 + $0x358] ss:$84 sps:$4 sm:$0xff]  }
 0x104   :  { %v9948_v46 = vld [vmem:[%s15801_s0 + $0xe7c] ss:$84 sps:$4 sm:$0xff]  }
 0x105   :  { %v11484_v49 = vpop.f32.mrf.mxu0  ;;  %v11486_v50 = vpop.f32.mrf.mxu1 }
 0x106   :  { %6621 = vmatpush1.bf16.msra.mxu0 %v9925_v44 }
 0x107   :  { %v5501_v53 = vpop.f32.mrf.mxu0  ;;  %v5693_v54 = vpop.f32.mrf.mxu1  ;;  %6622 = vmatprep.subr.bf16.mxu0 %v15804_v0 }
 0x109   :  { %v11498_v56 = vpop.f32.mrf.mxu0  ;;  %v11500_v57 = vpop.f32.mrf.mxu1  ;;  %5920 = vmatmul.mubr.bf16.gmra.mxu1 %v9916_v47  ;;  %6081 = vmatmul.mubr.bf16.gmra.mxu0 %v9917_v48  ;;  %v9951_v47 = vld [vmem:[%s15801_s0 + $0x404] ss:$84 sps:$4 sm:$0xff]  }
 0x10a   :  { %5927 = vmatprep.mubr.bf16.mxu1 %v9918_v51  ;;  %6088 = vmatprep.mubr.bf16.mxu0 %v9920_v52  ;;  %v10050_v52 = vld [vmem:[%s15800_s1 + $0x268] sm:$0xff]  }
 0x10b   :  { %v5506_v59 = vpop.f32.mrf.mxu0  ;;  %v5698_v60 = vpop.f32.mrf.mxu1  ;;  %6623 = vmatpush1.bf16.msra.mxu0 %v9939_v55 }
 0x10c   :  { %6624 = vmatprep.subr.bf16.mxu0 %v15804_v0  ;;  %v9946_v59 = vld [vmem:[%s15801_s0 + $0xe78] ss:$84 sps:$4 sm:$0xff]   ;;  %v9949_v60 = vld [vmem:[%s15801_s0 + $0x400] ss:$84 sps:$4 sm:$0xff]  }
 0x10d   :  { %v11512_v63 = vpop.f32.mrf.mxu0  ;;  %v11514_v1 = vpop.f32.mrf.mxu1 }
 0x10f   :  { %v5509_v4 = vpop.f32.mrf.mxu0  ;;  %v5701_v5 = vpop.f32.mrf.mxu1  ;;  %6625 = vmatpush1.bf16.msra.mxu0 %v9953_v58 }
 0x110   :  { %6626 = vmatprep.subr.bf16.mxu0 %v15804_v0 }
 0x111   :  { %v11526_v7 = vpop.f32.mrf.mxu0  ;;  %v11528_v8 = vpop.f32.mrf.mxu1  ;;  %5928 = vmatmul.mubr.bf16.gmra.mxu1 %v9922_v61  ;;  %6089 = vmatmul.mubr.bf16.gmra.mxu0 %v9923_v62 }
 0x112   :  { %5935 = vmatprep.mubr.bf16.mxu1 %v9926_v2  ;;  %6096 = vmatprep.mubr.bf16.mxu0 %v9928_v3  ;;  %v9956_v2 = vld [vmem:[%s15801_s0 + $0xf24] ss:$84 sps:$4 sm:$0xff]   ;;  %v9959_v3 = vld [vmem:[%s15801_s0 + $0x4ac] ss:$84 sps:$4 sm:$0xff]  }
 0x113   :  { %v5514_v10 = vpop.f32.mrf.mxu0  ;;  %v5706_v11 = vpop.f32.mrf.mxu1  ;;  %6627 = vmatpush1.bf16.msra.mxu0 %v9967_v6 }
 0x114   :  { %6628 = vmatprep.subr.bf16.mxu0 %v15804_v0  ;;  %v10064_v10 = vld [vmem:[%s15800_s1 + $0x260] sm:$0xff]  }
 0x115   :  { %v11540_v14 = vpop.f32.mrf.mxu0  ;;  %v11542_v15 = vpop.f32.mrf.mxu1 }
 0x117   :  { %v5517_v18 = vpop.f32.mrf.mxu0  ;;  %v5709_v19 = vpop.f32.mrf.mxu1  ;;  %6629 = vmatpush1.bf16.msra.mxu0 %v9981_v9 }
 0x118   :  { %6630 = vmatprep.subr.bf16.mxu0 %v15804_v0  ;;  %v9962_v19 = vld [vmem:[%s15801_s0 + $0xfcc] ss:$84 sps:$4 sm:$0xff]  }
 0x119   :  { %v11554_v21 = vpop.f32.mrf.mxu0  ;;  %v11556_v22 = vpop.f32.mrf.mxu1  ;;  %5936 = vmatmul.mubr.bf16.gmra.mxu1 %v9930_v12  ;;  %6097 = vmatmul.mubr.bf16.gmra.mxu0 %v9931_v13  ;;  %v9954_v13 = vld [vmem:[%s15801_s0 + $0xf20] ss:$84 sps:$4 sm:$0xff]  }
 0x11a   :  { %5943 = vmatprep.mubr.bf16.mxu1 %v9934_v16  ;;  %6104 = vmatprep.mubr.bf16.mxu0 %v9937_v17  ;;  %v9957_v16 = vld [vmem:[%s15801_s0 + $0x4a8] ss:$84 sps:$4 sm:$0xff]  }
 0x11b   :  { %v5522_v24 = vpop.f32.mrf.mxu0  ;;  %v5714_v25 = vpop.f32.mrf.mxu1  ;;  %6631 = vmatpush1.bf16.msra.mxu0 %v9995_v20  ;;  %v9965_v20 = vld [vmem:[%s15801_s0 + $0x554] ss:$84 sps:$4 sm:$0xff]  }
 0x11c   :  { %6632 = vmatprep.subr.bf16.mxu0 %v15804_v0 }
 0x11d   :  { %v11568_v28 = vpop.f32.mrf.mxu0  ;;  %v11570_v29 = vpop.f32.mrf.mxu1 }
 0x11f   :  { %v5525_v32 = vpop.f32.mrf.mxu0  ;;  %v5717_v33 = vpop.f32.mrf.mxu1  ;;  %6633 = vmatpush1.bf16.msra.mxu0 %v10009_v23 }
 0x120   :  { %6634 = vmatprep.subr.bf16.mxu0 %v15804_v0  ;;  %v9960_v32 = vld [vmem:[%s15801_s0 + $0xfc8] ss:$84 sps:$4 sm:$0xff]   ;;  %v9963_v33 = vld [vmem:[%s15801_s0 + $0x550] ss:$84 sps:$4 sm:$0xff]  }
 0x121   :  { %v11582_v35 = vpop.f32.mrf.mxu0  ;;  %v11584_v36 = vpop.f32.mrf.mxu1  ;;  %5944 = vmatmul.mubr.bf16.gmra.mxu1 %v9932_v26  ;;  %6105 = vmatmul.mubr.bf16.gmra.mxu0 %v9935_v27  ;;  %v11662_v27 = vld [vmem:[%s15802_s2] ss:$0 sm:$0xff] }
 0x122   :  { %5951 = vmatprep.mubr.bf16.mxu1 %v9942_v30  ;;  %6112 = vmatprep.mubr.bf16.mxu0 %v9945_v31 }
 0x123   :  { %v5530_v38 = vpop.f32.mrf.mxu0  ;;  %v5722_v39 = vpop.f32.mrf.mxu1  ;;  %6635 = vmatpush2.bf16.msra.mxu0 %v10022_v34 }
 0x124   :  { %6636 = vmatprep.subr.bf16.mxu0 %v15804_v0  ;;  %v9970_v38 = vld [vmem:[%s15801_s0 + $0x1074] ss:$84 sps:$4 sm:$0xff]   ;;  %v9973_v39 = vld [vmem:[%s15801_s0 + $0x5fc] ss:$84 sps:$4 sm:$0xff]  }
 0x125   :  { %v11596_v44 = vpop.f32.mrf.mxu0  ;;  %v11598_v45 = vpop.f32.mrf.mxu1 }
 0x126   :  { %15806 = vst [vmem:[#allocation2_spill] sm:$0xff] %v11598_v45  ;;  %v10055_v45 = vld [vmem:[%s15801_s0 + $0x360] ss:$84 sps:$4 sm:$0xff]  }
 0x127   :  { %v5533_v48 = vpop.f32.mrf.mxu0  ;;  %v5725_v51 = vpop.f32.mrf.mxu1  ;;  %6637 = vmatpush2.bf16.msra.mxu0 %v10036_v37 }
 0x128   :  { %6638 = vmatprep.subr.bf16.mxu0 %v15804_v0 }
 0x129   :  { %v11610_v53 = vpop.f32.mrf.mxu0  ;;  %v11612_v54 = vpop.f32.mrf.mxu1  ;;  %5952 = vmatmul.mubr.bf16.gmra.mxu1 %v9940_v40  ;;  %6113 = vmatmul.mubr.bf16.gmra.mxu0 %v9943_v41 }
 0x12a   :  { %15807 = vst [vmem:[#allocation3_spill] sm:$0xff] %v11612_v54  ;;  %5959 = vmatprep.mubr.bf16.mxu1 %v9948_v46  ;;  %6120 = vmatprep.mubr.bf16.mxu0 %v9951_v47  ;;  %v5497_v46 = vadd.f32 %v11662_v27, %v11470_v42  ;;  %v9971_v42 = vld [vmem:[%s15801_s0 + $0x5f8] ss:$84 sps:$4 sm:$0xff]  }
 0x12b   :  { %v5538_v55 = vpop.f32.mrf.mxu0  ;;  %v5730_v58 = vpop.f32.mrf.mxu1  ;;  %6639 = vmatpush2.bf16.msra.mxu0 %v10050_v52  ;;  %v10078_v52 = vld [vmem:[%s15800_s1 + $0x258] sm:$0xff]  }
 0x12c   :  { %6640 = vmatprep.subr.bf16.mxu0 %v15804_v0 }
 0x12d   :  { %v11621_v61 = vpop.f32.mrf.mxu0  ;;  %v11623_v62 = vpop.f32.mrf.mxu1 }
 0x12e   :  { %15808 = vst [vmem:[#allocation4_spill] sm:$0xff] %v11623_v62  ;;  %v10047_v62 = vld [vmem:[%s15801_s0 + $0x2b8] ss:$84 sps:$4 sm:$0xff]  }
 0x12f   :  { %v5541_v4 = vpop.f32.mrf.mxu0  ;;  %v5733_v5 = vpop.f32.mrf.mxu1  ;;  %6641 = vmatpush2.bf16.msra.mxu0 %v10064_v10  ;;  %v9979_v10 = vld [vmem:[%s15801_s0 + $0x6a4] ss:$84 sps:$4 sm:$0xff]  }
 0x130   :  { %6642 = vmatprep.subr.bf16.mxu0 %v15804_v0  ;;  %v9976_v5 = vld [vmem:[%s15801_s0 + $0x111c] ss:$84 sps:$4 sm:$0xff]  }
 0x131   :  { %v11631_v6 = vpop.f32.mrf.mxu0  ;;  %v11633_v9 = vpop.f32.mrf.mxu1  ;;  %5960 = vmatmul.mubr.bf16.gmra.mxu1 %v9946_v59  ;;  %6121 = vmatmul.mubr.bf16.gmra.mxu0 %v9949_v60  ;;  %v9968_v59 = vld [vmem:[%s15801_s0 + $0x1070] ss:$84 sps:$4 sm:$0xff]   ;;  %v5500_v60 = vadd.f32 %v11662_v27, %v11484_v49  ;;  %v5505_v49 = vadd.f32 %v11662_v27, %v11498_v56  ;;  %v5508_v56 = vadd.f32 %v11662_v27, %v11512_v63 }
 0x132   :  { %15809 = vst [vmem:[#allocation5_spill] sm:$0xff] %v11633_v9  ;;  %5967 = vmatprep.mubr.bf16.mxu1 %v9956_v2  ;;  %6128 = vmatprep.mubr.bf16.mxu0 %v9959_v3 }
 0x133   :  { %v5546_v11 = vpop.f32.mrf.mxu0  ;;  %v5738_v12 = vpop.f32.mrf.mxu1  ;;  %6643 = vmatpush2.bf16.msra.mxu0 %v10078_v52 }
 0x134   :  { %6644 = vmatprep.subr.bf16.mxu0 %v15804_v0 }
 0x135   :  { %v11644_v17 = vpop.f32.mrf.mxu0  ;;  %v11646_v18 = vpop.f32.mrf.mxu1 }
 0x136   :  { %15810 = vst [vmem:[#allocation6_spill] sm:$0xff] %v11646_v18  ;;  %v10041_v18 = vld [vmem:[%s15801_s0 + $0x210] ss:$84 sps:$4 sm:$0xff]  }
 0x137   :  { %v5549_v23 = vpop.f32.mrf.mxu0  ;;  %v5741_v24 = vpop.f32.mrf.mxu1 }
 0x138   :  { %v9974_v24 = vld [vmem:[%s15801_s0 + $0x1118] ss:$84 sps:$4 sm:$0xff]  }
 0x139   :  { %v11655_v25 = vpop.f32.mrf.mxu0  ;;  %v11657_v26 = vpop.f32.mrf.mxu1  ;;  %5968 = vmatmul.mubr.bf16.gmra.mxu1 %v9954_v13  ;;  %6129 = vmatmul.mubr.bf16.gmra.mxu0 %v9957_v16 }
 0x13a   :  { %15811 = vst [vmem:[#allocation7_spill] sm:$0xff] %v11657_v26  ;;  %5975 = vmatprep.mubr.bf16.mxu1 %v9962_v19  ;;  %6136 = vmatprep.mubr.bf16.mxu0 %v9965_v20 }
 0x13b   :  { %v5554_v30 = vpop.f32.mrf.mxu0  ;;  %v5746_v31 = vpop.f32.mrf.mxu1 }
 0x13c   :  { %v9977_v30 = vld [vmem:[%s15801_s0 + $0x6a0] ss:$84 sps:$4 sm:$0xff]  }
 0x13d   :  { %v11670_v34 = vpop.f32.mrf.mxu0  ;;  %v11672_v37 = vpop.f32.mrf.mxu1 }
 0x13e   :  { %15812 = vst [vmem:[#allocation8_spill] sm:$0xff] %v11672_v37 }
 0x13f   :  { %v5557_v40 = vpop.f32.mrf.mxu0  ;;  %v5749_v41 = vpop.f32.mrf.mxu1 }
 0x141   :  { %v11682_v47 = vpop.f32.mrf.mxu0  ;;  %v5785_v48 = vpop.f32.mrf.mxu1  ;;  %5976 = vmatmul.mubr.bf16.gmra.mxu1 %v9960_v32  ;;  %6137 = vmatmul.mubr.bf16.gmra.mxu0 %v9963_v33 }
 0x142   :  { %v11684_v51 = vadd.f32 %v5785_v48, %v5497_v46  ;;  %5983 = vmatprep.mubr.bf16.mxu1 %v9970_v38  ;;  %6144 = vmatprep.mubr.bf16.mxu0 %v9973_v39  ;;  %v9984_v38 = vld [vmem:[%s15801_s0 + $0x11c4] ss:$84 sps:$4 sm:$0xff]   ;;  %v9987_v39 = vld [vmem:[%s15801_s0 + $0x74c] ss:$84 sps:$4 sm:$0xff]   ;;  %v5513_v46 = vadd.f32 %v11662_v27, %v11526_v7  ;;  %v9985_v7 = vld [vmem:[%s15801_s0 + $0x748] ss:$84 sps:$4 sm:$0xff]  }
 0x143   :  { %v5562_v55 = vpop.f32.mrf.mxu0  ;;  %v5787_v58 = vpop.f32.mrf.mxu1 }
 0x144   :  { %v10092_v55 = vld [vmem:[%s15800_s1 + $0x250] sm:$0xff]  }
 0x145   :  { %v11697_v2 = vpop.f32.mrf.mxu0  ;;  %v5788_v3 = vpop.f32.mrf.mxu1  ;;  %6645 = vmatpush2.bf16.msra.mxu0 %v10092_v55 }
 0x146   :  { %v11700_v4 = vadd.f32 %v5788_v3, %v5500_v60  ;;  %v5516_v60 = vadd.f32 %v11662_v27, %v11540_v14  ;;  %6646 = vmatprep.subr.bf16.mxu0 %v15804_v0  ;;  %v5521_v14 = vadd.f32 %v11662_v27, %v11554_v21  ;;  %v5524_v21 = vadd.f32 %v11662_v27, %v11568_v28 }
 0x147   :  { %v5565_v11 = vpop.f32.mrf.mxu0  ;;  %v5790_v12 = vpop.f32.mrf.mxu1 }
 0x148   :  { %v9990_v11 = vld [vmem:[%s15801_s0 + $0x126c] ss:$84 sps:$4 sm:$0xff]   ;;  %v9993_v12 = vld [vmem:[%s15801_s0 + $0x7f4] ss:$84 sps:$4 sm:$0xff]  }
 0x149   :  { %v11710_v13 = vpop.f32.mrf.mxu0  ;;  %v5793_v16 = vpop.f32.mrf.mxu1  ;;  %5984 = vmatmul.mubr.bf16.gmra.mxu1 %v9968_v59  ;;  %6145 = vmatmul.mubr.bf16.gmra.mxu0 %v9971_v42  ;;  %v9982_v42 = vld [vmem:[%s15801_s0 + $0x11c0] ss:$84 sps:$4 sm:$0xff]  }
 0x14a   :  { %v11712_v19 = vadd.f32 %v5793_v16, %v5505_v49  ;;  %5991 = vmatprep.mubr.bf16.mxu1 %v9976_v5  ;;  %6152 = vmatprep.mubr.bf16.mxu0 %v9979_v10 }
 0x14b   :  { %v5570_v20 = vpop.f32.mrf.mxu0  ;;  %v5795_v23 = vpop.f32.mrf.mxu1 }
 0x14d   :  { %v11722_v31 = vpop.f32.mrf.mxu0  ;;  %v5796_v32 = vpop.f32.mrf.mxu1 }
 0x14e   :  { %v11724_v33 = vadd.f32 %v5796_v32, %v5508_v56  ;;  %v9988_v32 = vld [vmem:[%s15801_s0 + $0x1268] ss:$84 sps:$4 sm:$0xff]  }
 0x14f   :  { %v5573_v40 = vpop.f32.mrf.mxu0  ;;  %v5798_v41 = vpop.f32.mrf.mxu1 }
 0x151   :  { %v11734_v48 = vpop.f32.mrf.mxu0  ;;  %v5801_v63 = vpop.f32.mrf.mxu1  ;;  %5992 = vmatmul.mubr.bf16.gmra.mxu1 %v9974_v24  ;;  %6153 = vmatmul.mubr.bf16.gmra.mxu0 %v9977_v30 }
 0x152   :  { %v11736_v52 = vadd.f32 %v5801_v63, %v5513_v46  ;;  %5999 = vmatprep.mubr.bf16.mxu1 %v9984_v38  ;;  %6160 = vmatprep.mubr.bf16.mxu0 %v9987_v39  ;;  %v9991_v38 = vld [vmem:[%s15801_s0 + $0x7f0] ss:$84 sps:$4 sm:$0xff]   ;;  %v9998_v46 = vld [vmem:[%s15801_s0 + $0x1314] ss:$84 sps:$4 sm:$0xff]   ;;  %v5577_v37 = vadd.f32 %v11662_v27, %v11734_v48 }
 0x153   :  { %v5578_v58 = vpop.f32.mrf.mxu0  ;;  %v5803_v59 = vpop.f32.mrf.mxu1  ;;  %v10001_v63 = vld [vmem:[%s15801_s0 + $0x89c] ss:$84 sps:$4 sm:$0xff]  }
 0x154   :  { %v5529_v59 = vadd.f32 %v11662_v27, %v11582_v35  ;;  %v9999_v35 = vld [vmem:[%s15801_s0 + $0x898] ss:$84 sps:$4 sm:$0xff]   ;;  %v10038_v48 = vld [vmem:[%s15801_s0 + $0xc88] ss:$84 sps:$4 sm:$0xff]  }
 0x155   :  { %v11749_v3 = vpop.f32.mrf.mxu0  ;;  %v5804_v5 = vpop.f32.mrf.mxu1 }
 0x156   :  { %v11752_v10 = vadd.f32 %v5804_v5, %v5516_v60  ;;  %v10106_v60 = vld [vmem:[%s15800_s1 + $0x248] sm:$0xff]  }
 0x157   :  { %v5581_v49 = vpop.f32.mrf.mxu0  ;;  %v5806_v16 = vpop.f32.mrf.mxu1  ;;  %6647 = vmatpush2.bf16.msra.mxu0 %v10106_v60 }
 0x158   :  { %v5532_v49 = vadd.f32 %v11662_v27, %v11596_v44  ;;  %6648 = vmatprep.subr.bf16.mxu0 %v15804_v0  ;;  %v5537_v44 = vadd.f32 %v11662_v27, %v11610_v53  ;;  %v5540_v53 = vadd.f32 %v11662_v27, %v11621_v61 }
 0x159   :  { %v11762_v20 = vpop.f32.mrf.mxu0  ;;  %v5809_v23 = vpop.f32.mrf.mxu1  ;;  %6000 = vmatmul.mubr.bf16.gmra.mxu1 %v9982_v42  ;;  %6161 = vmatmul.mubr.bf16.gmra.mxu0 %v9985_v7 }
 0x15a   :  { %v11764_v24 = vadd.f32 %v5809_v23, %v5521_v14  ;;  %6007 = vmatprep.mubr.bf16.mxu1 %v9990_v11  ;;  %6168 = vmatprep.mubr.bf16.mxu0 %v9993_v12  ;;  %v9996_v12 = vld [vmem:[%s15801_s0 + $0x1310] ss:$84 sps:$4 sm:$0xff]  }
 0x15b   :  { %v5586_v30 = vpop.f32.mrf.mxu0  ;;  %v5811_v56 = vpop.f32.mrf.mxu1 }
 0x15c   :  { %v10004_v30 = vld [vmem:[%s15801_s0 + $0x13bc] ss:$84 sps:$4 sm:$0xff]   ;;  %v10007_v56 = vld [vmem:[%s15801_s0 + $0x944] ss:$84 sps:$4 sm:$0xff]  }
 0x15d   :  { %v11774_v39 = vpop.f32.mrf.mxu0  ;;  %v5812_v40 = vpop.f32.mrf.mxu1 }
 0x15e   :  { %v11776_v41 = vadd.f32 %v5812_v40, %v5524_v21 }
 0x15f   :  { %v5589_v55 = vpop.f32.mrf.mxu0  ;;  %v5814_v58 = vpop.f32.mrf.mxu1 }
 0x160   :  { %v10002_v58 = vld [vmem:[%s15801_s0 + $0x13b8] ss:$84 sps:$4 sm:$0xff]  }
 0x161   :  { %v11786_v42 = vpop.f32.mrf.mxu0  ;;  %v5817_v28 = vpop.f32.mrf.mxu1  ;;  %6008 = vmatmul.mubr.bf16.gmra.mxu1 %v9988_v32  ;;  %6169 = vmatmul.mubr.bf16.gmra.mxu0 %v9991_v38 }
 0x162   :  { %v11788_v7 = vadd.f32 %v5817_v28, %v5529_v59  ;;  %6015 = vmatprep.mubr.bf16.mxu1 %v9998_v46  ;;  %6176 = vmatprep.mubr.bf16.mxu0 %v10001_v63  ;;  %v10005_v59 = vld [vmem:[%s15801_s0 + $0x940] ss:$84 sps:$4 sm:$0xff]  }
 0x163   :  { %v5594_v5 = vpop.f32.mrf.mxu0  ;;  %v5819_v11 = vpop.f32.mrf.mxu1 }
 0x164   :  { %v10012_v11 = vld [vmem:[%s15801_s0 + $0x1464] ss:$84 sps:$4 sm:$0xff]  }
 0x165   :  { %v11801_v16 = vpop.f32.mrf.mxu0  ;;  %v5820_v14 = vpop.f32.mrf.mxu1 }
 0x166   :  { %v11804_v23 = vadd.f32 %v5820_v14, %v5532_v49  ;;  %v5545_v14 = vadd.f32 %v11662_v27, %v11631_v6  ;;  %v10013_v6 = vld [vmem:[%s15801_s0 + $0x9e8] ss:$84 sps:$4 sm:$0xff]  }
 0x167   :  { %v5597_v32 = vpop.f32.mrf.mxu0  ;;  %v5822_v38 = vpop.f32.mrf.mxu1 }
 0x168   :  { %v10120_v32 = vld [vmem:[%s15800_s1 + $0x240] sm:$0xff]  }
 0x169   :  { %v11814_v21 = vpop.f32.mrf.mxu0  ;;  %v5825_v40 = vpop.f32.mrf.mxu1  ;;  %6016 = vmatmul.mubr.bf16.gmra.mxu1 %v9996_v12  ;;  %6177 = vmatmul.mubr.bf16.gmra.mxu0 %v9999_v35  ;;  %v10015_v12 = vld [vmem:[%s15801_s0 + $0x9ec] ss:$84 sps:$4 sm:$0xff]  }
 0x16a   :  { %v11816_v46 = vadd.f32 %v5825_v40, %v5537_v44  ;;  %6023 = vmatprep.mubr.bf16.mxu1 %v10004_v30  ;;  %6184 = vmatprep.mubr.bf16.mxu0 %v10007_v56  ;;  %v10010_v40 = vld [vmem:[%s15801_s0 + $0x1460] ss:$84 sps:$4 sm:$0xff]  }
 0x16b   :  { %v5602_v63 = vpop.f32.mrf.mxu0  ;;  %v5827_v55 = vpop.f32.mrf.mxu1  ;;  %6649 = vmatpush2.bf16.msra.mxu0 %v10120_v32 }
 0x16c   :  { %v5548_v63 = vadd.f32 %v11662_v27, %v11644_v17  ;;  %7196 = vmatprep.subr.bf16.mxu0 %v15804_v0  ;;  %v5553_v17 = vadd.f32 %v11662_v27, %v11655_v25  ;;  %v5556_v25 = vadd.f32 %v11662_v27, %v11670_v34  ;;  %v5561_v34 = vadd.f32 %v11662_v27, %v11682_v47  ;;  %v10027_v47 = vld [vmem:[%s15801_s0 + $0xc0] ss:$84 sps:$4 sm:$0xff]  }
 0x16d   :  { %v11826_v28 = vpop.f32.mrf.mxu0  ;;  %v5828_v60 = vpop.f32.mrf.mxu1 }
 0x16e   :  { %v11828_v5 = vadd.f32 %v5828_v60, %v5540_v53  ;;  %v10018_v53 = vld [vmem:[%s15801_s0 + $0xa94] ss:$84 sps:$4 sm:$0xff]   ;;  %v10021_v60 = vld [vmem:[%s15801_s0 + $0x1c] ss:$84 sps:$4 sm:$0xff]  }
 0x16f   :  { %v5605_v35 = vpop.f32.mrf.mxu0  ;;  %v5830_v49 = vpop.f32.mrf.mxu1 }
 0x171   :  { %v11838_v30 = vpop.f32.mrf.mxu0  ;;  %v5833_v61 = vpop.f32.mrf.mxu1  ;;  %6024 = vmatmul.mubr.bf16.gmra.mxu1 %v10002_v58  ;;  %6185 = vmatmul.mubr.bf16.gmra.mxu0 %v10005_v59 }
 0x172   :  { %v11840_v56 = vadd.f32 %v5833_v61, %v5545_v14  ;;  %6031 = vmatprep.mubr.bf16.mxu1 %v10012_v11  ;;  %6192 = vmatprep.mubr.bf16.mxu0 %v10015_v12 }
 0x173   :  { %v5610_v38 = vpop.f32.mrf.mxu0  ;;  %v5835_v44 = vpop.f32.mrf.mxu1 }
 0x174   :  { %v10016_v38 = vld [vmem:[%s15801_s0 + $0xa90] ss:$84 sps:$4 sm:$0xff]   ;;  %v10019_v44 = vld [vmem:[%s15801_s0 + $0x18] ss:$84 sps:$4 sm:$0xff]  }
 0x175   :  { %v11853_v55 = vpop.f32.mrf.mxu0  ;;  %v5836_v58 = vpop.f32.mrf.mxu1 }
 0x176   :  { %v11856_v59 = vadd.f32 %v5836_v58, %v5548_v63  ;;  %v10023_v58 = vld [vmem:[%s15800_s1 + $0x2b8] sm:$0xff]  }
 0x177   :  { %v5613_v11 = vpop.f32.mrf.mxu0  ;;  %v5838_v12 = vpop.f32.mrf.mxu1 }
 0x178   :  { %v10029_v12 = vld [vmem:[%s15801_s0 + $0xc4] ss:$84 sps:$4 sm:$0xff]  }
 0x179   :  { %v11866_v35 = vpop.f32.mrf.mxu0  ;;  %v5841_v49 = vpop.f32.mrf.mxu1  ;;  %6032 = vmatmul.mubr.bf16.gmra.mxu1 %v10010_v40  ;;  %6193 = vmatmul.mubr.bf16.gmra.mxu0 %v10013_v6 }
 0x17a   :  { %v11868_v14 = vadd.f32 %v5841_v49, %v5553_v17  ;;  %6200 = vmatprep.mubr.bf16.mxu0 %v10018_v53  ;;  %6361 = vmatprep.mubr.bf16.mxu1 %v10021_v60  ;;  %v10026_v53 = vld [vmem:[%s15801_s0 + $0xb3c] ss:$84 sps:$4 sm:$0xff]  }
 0x17b   :  { %v5618_v61 = vpop.f32.mrf.mxu0  ;;  %v5843_v32 = vpop.f32.mrf.mxu1 }
 0x17c   :  { %v10037_v32 = vld [vmem:[%s15800_s1 + $0x2b0] sm:$0xff]  }
 0x17d   :  { %v11878_v63 = vpop.f32.mrf.mxu0  ;;  %v5844_v40 = vpop.f32.mrf.mxu1 }
 0x17e   :  { %v11880_v6 = vadd.f32 %v5844_v40, %v5556_v25 }
 0x17f   :  { %v5621_v60 = vpop.f32.mrf.mxu0  ;;  %v5846_v11 = vpop.f32.mrf.mxu1 }
 0x180   :  { %v10024_v60 = vld [vmem:[%s15801_s0 + $0xb38] ss:$84 sps:$4 sm:$0xff]  }
 0x181   :  { %v11893_v17 = vpop.f32.mrf.mxu0  ;;  %v5849_v49 = vpop.f32.mrf.mxu1  ;;  %6201 = vmatmul.mubr.bf16.gmra.mxu0 %v10016_v38  ;;  %6362 = vmatmul.mubr.bf16.vlgmr.msra.gmra.mxu1 %v10019_v44  ;;  %v5564_v38 = vadd.f32 %v11662_v27, %v11697_v2  ;;  %v10032_v11 = vld [vmem:[%s15801_s0 + $0xbe4] ss:$84 sps:$4 sm:$0xff]   ;;  %v10051_v2 = vld [vmem:[%s15800_s1 + $0x2a8] sm:$0xff]  }
 0x182   :  { %v11895_v61 = vadd.f32 %v5849_v49, %v5561_v34  ;;  %6908 = vmatpush1.bf16.msra.mxu1 %v10023_v58  ;;  %6208 = vmatprep.mubr.bf16.mxu0 %v10026_v53  ;;  %v10035_v34 = vld [vmem:[%s15801_s0 + $0x16c] ss:$84 sps:$4 sm:$0xff]  }
 0x183   :  { %v5626_v25 = vpop.f32.mrf.mxu0  ;;  %v5851_v40 = vpop.f32.mrf.mxu1  ;;  %6369 = vmatprep.mubr.bf16.mxu1 %v10029_v12  ;;  %6909 = vmatprep.subr.bf16.mxu1 %v15804_v0 }
 0x184   :  { %v5569_v25 = vadd.f32 %v11662_v27, %v11710_v13  ;;  %v10033_v13 = vld [vmem:[%s15801_s0 + $0x168] ss:$84 sps:$4 sm:$0xff]  }
 0x185   :  { %v11909_v44 = vpop.f32.mrf.mxu0  ;;  %v5852_v58 = vpop.f32.mrf.mxu1 }
 0x186   :  { %v11911_v53 = vadd.f32 %v5852_v58, %v5564_v38  ;;  %6910 = vmatpush1.bf16.msra.mxu1 %v10037_v32  ;;  %v10065_v32 = vld [vmem:[%s15800_s1 + $0x2a0] sm:$0xff]  }
 0x187   :  { %v5629_v12 = vpop.f32.mrf.mxu0  ;;  %v5854_v49 = vpop.f32.mrf.mxu1  ;;  %6911 = vmatprep.subr.bf16.mxu1 %v15804_v0  ;;  %v10030_v0 = vld [vmem:[%s15801_s0 + $0xbe0] ss:$84 sps:$4 sm:$0xff]  }
 0x189   :  { %v11925_v40 = vpop.f32.mrf.mxu0  ;;  %v5857_v38 = vpop.f32.mrf.mxu1  ;;  %6209 = vmatmul.mubr.bf16.gmra.mxu0 %v10024_v60  ;;  %6370 = vmatmul.mubr.bf16.gmra.mxu1 %v10027_v47  ;;  %v5572_v60 = vadd.f32 %v11662_v27, %v11722_v31  ;;  %v15813_v47 = vmov 0   ;;  %v10079_v31 = vld [vmem:[%s15800_s1 + $0x298] sm:$0xff]  }
 0x18a   :  { %v11930_v58 = vadd.f32 %v5857_v38, %v5569_v25  ;;  %6216 = vmatprep.mubr.bf16.mxu0 %v10032_v11  ;;  %6377 = vmatprep.mubr.bf16.mxu1 %v10035_v34  ;;  %v10040_v38 = vld [vmem:[%s15801_s0 + $0xc8c] ss:$84 sps:$4 sm:$0xff]  }
 0x18b   :  { %v5634_v12 = vpop.f32.mrf.mxu0  ;;  %v5859_v49 = vpop.f32.mrf.mxu1  ;;  %6912 = vmatpush1.bf16.msra.mxu1 %v10051_v2 }
 0x18c   :  { %6913 = vmatprep.subr.bf16.mxu1 %v15813_v47  ;;  %v10043_v12 = vld [vmem:[%s15801_s0 + $0x214] ss:$84 sps:$4 sm:$0xff]  }
 0x18d   :  { %v11941_v25 = vpop.f32.mrf.mxu0  ;;  %v5860_v11 = vpop.f32.mrf.mxu1 }
 0x18e   :  { %v11943_v34 = vadd.f32 %v5860_v11, %v5572_v60 }
 0x18f   :  { %v5637_v49 = vpop.f32.mrf.mxu0  ;;  %v5862_v2 = vpop.f32.mrf.mxu1  ;;  %6914 = vmatpush1.bf16.msra.mxu1 %v10065_v32  ;;  %v10093_v32 = vld [vmem:[%s15800_s1 + $0x290] sm:$0xff]  }
 0x190   :  { %6915 = vmatprep.subr.bf16.mxu1 %v15813_v47 }
 0x191   :  { %v11957_v60 = vpop.f32.mrf.mxu0  ;;  %v5865_v11 = vpop.f32.mrf.mxu1  ;;  %6217 = vmatmul.mubr.bf16.gmra.mxu0 %v10030_v0  ;;  %6378 = vmatmul.mubr.bf16.gmra.mxu1 %v10033_v13  ;;  %v5580_v0 = vadd.f32 %v11662_v27, %v11749_v3  ;;  %v10107_v3 = vld [vmem:[%s15800_s1 + $0x288] sm:$0xff]  }
 0x192   :  { %v11959_v26 = vadd.f32 %v5865_v11, %v5577_v37  ;;  %6224 = vmatprep.mubr.bf16.mxu0 %v10040_v38  ;;  %6385 = vmatprep.mubr.bf16.mxu1 %v10043_v12  ;;  %v10046_v12 = vld [vmem:[%s15801_s0 + $0xd34] ss:$84 sps:$4 sm:$0xff]   ;;  %v10049_v11 = vld [vmem:[%s15801_s0 + $0x2bc] ss:$84 sps:$4 sm:$0xff]  }
 0x193   :  { %v5642_v49 = vpop.f32.mrf.mxu0  ;;  %v5867_v2 = vpop.f32.mrf.mxu1  ;;  %6916 = vmatpush1.bf16.msra.mxu1 %v10079_v31 }
 0x194   :  { %6917 = vmatprep.subr.bf16.mxu1 %v15813_v47  ;;  %v5585_v2 = vadd.f32 %v11662_v27, %v11762_v20  ;;  %v10044_v20 = vld [vmem:[%s15801_s0 + $0xd30] ss:$84 sps:$4 sm:$0xff]  }
 0x195   :  { %v11973_v37 = vpop.f32.mrf.mxu0  ;;  %v5868_v13 = vpop.f32.mrf.mxu1 }
 0x196   :  { %v11975_v38 = vadd.f32 %v5868_v13, %v5580_v0 }
 0x197   :  { %v5645_v49 = vpop.f32.mrf.mxu0  ;;  %v5870_v31 = vpop.f32.mrf.mxu1  ;;  %6918 = vmatpush1.bf16.msra.mxu1 %v10093_v32 }
 0x198   :  { %6919 = vmatprep.subr.bf16.mxu1 %v15813_v47  ;;  %v10121_v49 = vld [vmem:[%s15800_s1 + $0x280] sm:$0xff]  }
 0x199   :  { %v11989_v0 = vpop.f32.mrf.mxu0  ;;  %v5873_v13 = vpop.f32.mrf.mxu1  ;;  %6225 = vmatmul.mubr.bf16.gmra.mxu0 %v10038_v48  ;;  %6386 = vmatmul.mubr.bf16.gmra.mxu1 %v10041_v18  ;;  %v5588_v18 = vadd.f32 %v11662_v27, %v11774_v39  ;;  %v10134_v27 = vld [vmem:[%s15800_s1 + $0x2f8] sm:$0xff]   ;;  %v12021_v39 = vld [vmem:[%s15802_s2] ss:$0 sm:$0xff] }
 0x19a   :  { %v11994_v31 = vadd.f32 %v5873_v13, %v5585_v2  ;;  %6232 = vmatprep.mubr.bf16.mxu0 %v10046_v12  ;;  %6393 = vmatprep.mubr.bf16.mxu1 %v10049_v11  ;;  %v10057_v2 = vld [vmem:[%s15801_s0 + $0x364] ss:$84 sps:$4 sm:$0xff]  }
 0x19b   :  { %v5650_v32 = vpop.f32.mrf.mxu0  ;;  %v5875_v9 = vpop.f32.mrf.mxu1  ;;  %6920 = vmatpush1.bf16.msra.mxu1 %v10107_v3 }
 0x19c   :  { %6921 = vmatprep.subr.bf16.mxu1 %v15813_v47  ;;  %v10054_v9 = vld [vmem:[%s15801_s0 + $0xddc] ss:$84 sps:$4 sm:$0xff]   ;;  %v5593_v32 = vadd.f32 %v12021_v39, %v11786_v42  ;;  %v10052_v42 = vld [vmem:[%s15801_s0 + $0xdd8] ss:$84 sps:$4 sm:$0xff]  }
 0x19d   :  { %v12005_v48 = vpop.f32.mrf.mxu0  ;;  %v5876_v12 = vpop.f32.mrf.mxu1 }
 0x19e   :  { %v12007_v11 = vadd.f32 %v5876_v12, %v5588_v18 }
 0x19f   :  { %v5653_v13 = vpop.f32.mrf.mxu0  ;;  %v5878_v3 = vpop.f32.mrf.mxu1  ;;  %6922 = vmatpush1.bf16.msra.mxu1 %v10121_v49 }
 0x1a0   :  { %6923 = vmatprep.subr.bf16.mxu1 %v15813_v47  ;;  %v10148_v13 = vld [vmem:[%s15800_s1 + $0x2f0] sm:$0xff]  }
 0x1a1   :  { %v12026_v18 = vpop.f32.mrf.mxu0  ;;  %v5881_v12 = vpop.f32.mrf.mxu1  ;;  %6233 = vmatmul.mubr.bf16.gmra.mxu0 %v10044_v20  ;;  %6394 = vmatmul.mubr.bf16.gmra.mxu1 %v10047_v62  ;;  %v5596_v62 = vadd.f32 %v12021_v39, %v11801_v16  ;;  %v10162_v16 = vld [vmem:[%s15800_s1 + $0x2e8] sm:$0xff]  }
 0x1a2   :  { %v12028_v49 = vadd.f32 %v5881_v12, %v5593_v32  ;;  %6240 = vmatprep.mubr.bf16.mxu0 %v10054_v9  ;;  %6401 = vmatprep.mubr.bf16.mxu1 %v10057_v2  ;;  %v10063_v32 = vld [vmem:[%s15801_s0 + $0x40c] ss:$84 sps:$4 sm:$0xff]  }
 0x1a3   :  { %v5658_v3 = vpop.f32.mrf.mxu0  ;;  %v5883_v54 = vpop.f32.mrf.mxu1  ;;  %6924 = vmatpush2.bf16.msra.mxu1 %v10134_v27 }
 0x1a4   :  { %15814 = vst [vmem:[#allocation9_spill] sm:$0xff] %v12028_v49  ;;  %6925 = vmatprep.subr.bf16.mxu1 %v15813_v47  ;;  %v10060_v54 = vld [vmem:[%s15801_s0 + $0xe84] ss:$84 sps:$4 sm:$0xff]   ;;  %v5601_v3 = vadd.f32 %v12021_v39, %v11814_v21  ;;  %v10061_v21 = vld [vmem:[%s15801_s0 + $0x408] ss:$84 sps:$4 sm:$0xff]   ;;  %v5604_v49 = vadd.f32 %v12021_v39, %v11826_v28  ;;  %v5609_v28 = vadd.f32 %v12021_v39, %v11838_v30 }
 0x1a5   :  { %v12042_v20 = vpop.f32.mrf.mxu0  ;;  %v5884_v9 = vpop.f32.mrf.mxu1  ;;  %v10069_v30 = vld [vmem:[%s15801_s0 + $0x4b0] ss:$84 sps:$4 sm:$0xff]  }
 0x1a6   :  { %v12044_v2 = vadd.f32 %v5884_v9, %v5596_v62 }
 0x1a7   :  { %v5661_v12 = vpop.f32.mrf.mxu0  ;;  %v5886_v27 = vpop.f32.mrf.mxu1  ;;  %6926 = vmatpush2.bf16.msra.mxu1 %v10148_v13 }
 0x1a8   :  { %15815 = vst [vmem:[#allocation10_spill] sm:$0xff] %v12044_v2  ;;  %6927 = vmatprep.subr.bf16.mxu1 %v15813_v47  ;;  %v10058_v27 = vld [vmem:[%s15801_s0 + $0xe80] ss:$84 sps:$4 sm:$0xff]  }
 0x1a9   :  { %v12058_v62 = vpop.f32.mrf.mxu0  ;;  %v5889_v9 = vpop.f32.mrf.mxu1  ;;  %6241 = vmatmul.mubr.bf16.gmra.mxu0 %v10052_v42  ;;  %6402 = vmatmul.mubr.bf16.gmra.mxu1 %v10055_v45 }
 0x1aa   :  { %v12060_v2 = vadd.f32 %v5889_v9, %v5601_v3  ;;  %6248 = vmatprep.mubr.bf16.mxu0 %v10060_v54  ;;  %6409 = vmatprep.mubr.bf16.mxu1 %v10063_v32  ;;  %v10068_v32 = vld [vmem:[%s15801_s0 + $0xf2c] ss:$84 sps:$4 sm:$0xff]   ;;  %v10071_v3 = vld [vmem:[%s15801_s0 + $0x4b4] ss:$84 sps:$4 sm:$0xff]  }
 0x1ab   :  { %v5666_v12 = vpop.f32.mrf.mxu0  ;;  %v5891_v13 = vpop.f32.mrf.mxu1  ;;  %6928 = vmatpush2.bf16.msra.mxu1 %v10162_v16 }
 0x1ac   :  { %15816 = vst [vmem:[#allocation11_spill] sm:$0xff] %v12060_v2  ;;  %6929 = vmatprep.subr.bf16.mxu1 %v15813_v47 }
 0x1ad   :  { %v12071_v45 = vpop.f32.mrf.mxu0  ;;  %v5892_v42 = vpop.f32.mrf.mxu1 }
 0x1ae   :  { %v12073_v54 = vadd.f32 %v5892_v42, %v5604_v49  ;;  %v10176_v42 = vld [vmem:[%s15800_s1 + $0x2e0] sm:$0xff]  }
 0x1af   :  { %v5669_v9 = vpop.f32.mrf.mxu0  ;;  %v5894_v16 = vpop.f32.mrf.mxu1  ;;  %6930 = vmatpush2.bf16.msra.mxu1 %v10176_v42 }
 0x1b0   :  { %15817 = vst [vmem:[#allocation12_spill] sm:$0xff] %v12073_v54  ;;  %v10066_v9 = vld [vmem:[%s15801_s0 + $0xf28] ss:$84 sps:$4 sm:$0xff]   ;;  %6931 = vmatprep.subr.bf16.mxu1 %v15813_v47 }
 0x1b1   :  { %v12083_v12 = vpop.f32.mrf.mxu0  ;;  %v5897_v13 = vpop.f32.mrf.mxu1  ;;  %6249 = vmatmul.mubr.bf16.gmra.mxu0 %v10058_v27  ;;  %6410 = vmatmul.mubr.bf16.gmra.mxu1 %v10061_v21  ;;  %v5612_v27 = vadd.f32 %v12021_v39, %v11853_v55  ;;  %v5617_v55 = vadd.f32 %v12021_v39, %v11866_v35  ;;  %v5620_v35 = vadd.f32 %v12021_v39, %v11878_v63 }
 0x1b2   :  { %v12085_v49 = vadd.f32 %v5897_v13, %v5609_v28  ;;  %6256 = vmatprep.mubr.bf16.mxu0 %v10068_v32  ;;  %6417 = vmatprep.mubr.bf16.mxu1 %v10071_v3 }
 0x1b3   :  { %v5674_v54 = vpop.f32.mrf.mxu0  ;;  %v5899_v2 = vpop.f32.mrf.mxu1 }
 0x1b4   :  { %15818 = vst [vmem:[#allocation13_spill] sm:$0xff] %v12085_v49  ;;  %v10074_v2 = vld [vmem:[%s15801_s0 + $0xfd4] ss:$84 sps:$4 sm:$0xff]   ;;  %v10077_v54 = vld [vmem:[%s15801_s0 + $0x55c] ss:$84 sps:$4 sm:$0xff]  }
 0x1b5   :  { %v12098_v21 = vpop.f32.mrf.mxu0  ;;  %v5900_v32 = vpop.f32.mrf.mxu1  ;;  %v10072_v49 = vld [vmem:[%s15801_s0 + $0xfd0] ss:$84 sps:$4 sm:$0xff]  }
 0x1b6   :  { %v12101_v3 = vadd.f32 %v5900_v32, %v5612_v27 }
 0x1b7   :  { %v5677_v16 = vpop.f32.mrf.mxu0  ;;  %v5902_v28 = vpop.f32.mrf.mxu1 }
 0x1b8   :  { %15819 = vst [vmem:[#allocation14_spill] sm:$0xff] %v12101_v3  ;;  %v10075_v16 = vld [vmem:[%s15801_s0 + $0x558] ss:$84 sps:$4 sm:$0xff]  }
 0x1b9   :  { %v12111_v13 = vpop.f32.mrf.mxu0  ;;  %v5905_v42 = vpop.f32.mrf.mxu1  ;;  %6257 = vmatmul.mubr.bf16.gmra.mxu0 %v10066_v9  ;;  %6418 = vmatmul.mubr.bf16.gmra.mxu1 %v10069_v30 }
 0x1ba   :  { %v12113_v27 = vadd.f32 %v5905_v42, %v5617_v55  ;;  %6264 = vmatprep.mubr.bf16.mxu0 %v10074_v2  ;;  %6425 = vmatprep.mubr.bf16.mxu1 %v10077_v54  ;;  %v10085_v2 = vld [vmem:[%s15801_s0 + $0x604] ss:$84 sps:$4 sm:$0xff]   ;;  %v5625_v42 = vadd.f32 %v12021_v39, %v11893_v17 }
 0x1bb   :  { %v5682_v32 = vpop.f32.mrf.mxu0  ;;  %v5907_v3 = vpop.f32.mrf.mxu1  ;;  %v10080_v17 = vld [vmem:[%s15801_s0 + $0x1078] ss:$84 sps:$4 sm:$0xff]  }
 0x1bc   :  { %15820 = vst [vmem:[#allocation15_spill] sm:$0xff] %v12113_v27  ;;  %v10082_v3 = vld [vmem:[%s15801_s0 + $0x107c] ss:$84 sps:$4 sm:$0xff]  }
 0x1bd   :  { %v12123_v28 = vpop.f32.mrf.mxu0  ;;  %v5908_v9 = vpop.f32.mrf.mxu1 }
 0x1be   :  { %v12125_v30 = vadd.f32 %v5908_v9, %v5620_v35  ;;  %v10190_v9 = vld [vmem:[%s15800_s1 + $0x2d8] sm:$0xff]  }
 0x1bf   :  { %v5685_v54 = vpop.f32.mrf.mxu0  ;;  %v5910_v55 = vpop.f32.mrf.mxu1  ;;  %6932 = vmatpush2.bf16.msra.mxu1 %v10190_v9  ;;  %v5633_v9 = vadd.f32 %v12021_v39, %v11925_v40  ;;  %v10089_v40 = vld [vmem:[%s15801_s0 + $0x6a8] ss:$84 sps:$4 sm:$0xff]  }
 0x1c0   :  { %6933 = vmatprep.subr.bf16.mxu1 %v15813_v47 }
 0x1c1   :  { %v5913_v32 = vpop.f32.mrf.mxu1  ;;  %v6074_v63 = vpop.f32.mrf.mxu0  ;;  %6265 = vmatmul.mubr.bf16.gmra.mxu0 %v10072_v49  ;;  %6426 = vmatmul.mubr.bf16.gmra.mxu1 %v10075_v16  ;;  %v10083_v49 = vld [vmem:[%s15801_s0 + $0x600] ss:$84 sps:$4 sm:$0xff]  }
 0x1c2   :  { %v12135_v27 = vadd.f32 %v5913_v32, %v5625_v42  ;;  %v12138_v35 = vadd.f32 %v6074_v63, %v11684_v51  ;;  %6272 = vmatprep.mubr.bf16.mxu0 %v10082_v3  ;;  %6433 = vmatprep.mubr.bf16.mxu1 %v10085_v2  ;;  %v5628_v51 = vadd.f32 %v12021_v39, %v11909_v44  ;;  %v10088_v32 = vld [vmem:[%s15801_s0 + $0x1124] ss:$84 sps:$4 sm:$0xff]   ;;  %v10091_v63 = vld [vmem:[%s15801_s0 + $0x6ac] ss:$84 sps:$4 sm:$0xff]  }
 0x1c3   :  { %v5915_v54 = vpop.f32.mrf.mxu1  ;;  %v6076_v55 = vpop.f32.mrf.mxu0 }
 0x1c4   :  { %15821 = vst [vmem:[#allocation16_spill] sm:$0xff] %v12138_v35 }
 0x1c5   :  { %v5916_v16 = vpop.f32.mrf.mxu1  ;;  %v6077_v3 = vpop.f32.mrf.mxu0 }
 0x1c6   :  { %v12152_v2 = vadd.f32 %v5916_v16, %v5628_v51  ;;  %v12155_v42 = vadd.f32 %v6077_v3, %v11700_v4 }
 0x1c7   :  { %v5918_v54 = vpop.f32.mrf.mxu1  ;;  %v6079_v44 = vpop.f32.mrf.mxu0 }
 0x1c8   :  { %v10086_v54 = vld [vmem:[%s15801_s0 + $0x1120] ss:$84 sps:$4 sm:$0xff]  }
 0x1c9   :  { %v5921_v55 = vpop.f32.mrf.mxu1  ;;  %v6082_v35 = vpop.f32.mrf.mxu0  ;;  %6273 = vmatmul.mubr.bf16.gmra.mxu0 %v10080_v17  ;;  %6434 = vmatmul.mubr.bf16.gmra.mxu1 %v10083_v49  ;;  %v5636_v17 = vadd.f32 %v12021_v39, %v11941_v25  ;;  %v5641_v25 = vadd.f32 %v12021_v39, %v11957_v60  ;;  %v10094_v60 = vld [vmem:[%s15801_s0 + $0x11c8] ss:$84 sps:$4 sm:$0xff]  }
 0x1ca   :  { %v12165_v51 = vadd.f32 %v5921_v55, %v5633_v9  ;;  %v12168_v4 = vadd.f32 %v6082_v35, %v11712_v19  ;;  %6280 = vmatprep.mubr.bf16.mxu0 %v10088_v32  ;;  %6441 = vmatprep.mubr.bf16.mxu1 %v10091_v63  ;;  %v10096_v35 = vld [vmem:[%s15801_s0 + $0x11cc] ss:$84 sps:$4 sm:$0xff]   ;;  %v10099_v32 = vld [vmem:[%s15801_s0 + $0x754] ss:$84 sps:$4 sm:$0xff]  }
 0x1cb   :  { %v5923_v16 = vpop.f32.mrf.mxu1  ;;  %v6084_v3 = vpop.f32.mrf.mxu0 }
 0x1cd   :  { %v5924_v49 = vpop.f32.mrf.mxu1  ;;  %v6085_v44 = vpop.f32.mrf.mxu0 }
 0x1ce   :  { %v12178_v9 = vadd.f32 %v5924_v49, %v5636_v17  ;;  %v12181_v19 = vadd.f32 %v6085_v44, %v11724_v33  ;;  %v10204_v49 = vld [vmem:[%s15800_s1 + $0x2d0] sm:$0xff]  }
 0x1cf   :  { %v5926_v63 = vpop.f32.mrf.mxu1  ;;  %v6087_v55 = vpop.f32.mrf.mxu0  ;;  %6934 = vmatpush2.bf16.msra.mxu1 %v10204_v49  ;;  %v5649_v49 = vadd.f32 %v12021_v39, %v11989_v0  ;;  %v10100_v0 = vld [vmem:[%s15801_s0 + $0x1270] ss:$84 sps:$4 sm:$0xff]  }
 0x1d0   :  { %6935 = vmatprep.subr.bf16.mxu1 %v15813_v47 }
 0x1d1   :  { %v5929_v16 = vpop.f32.mrf.mxu1  ;;  %v6090_v3 = vpop.f32.mrf.mxu0  ;;  %6281 = vmatmul.mubr.bf16.gmra.mxu0 %v10086_v54  ;;  %6442 = vmatmul.mubr.bf16.gmra.mxu1 %v10089_v40  ;;  %v5644_v54 = vadd.f32 %v12021_v39, %v11973_v37  ;;  %v10105_v37 = vld [vmem:[%s15801_s0 + $0x7fc] ss:$84 sps:$4 sm:$0xff]  }
 0x1d2   :  { %v12191_v17 = vadd.f32 %v5929_v16, %v5641_v25  ;;  %v12194_v33 = vadd.f32 %v6090_v3, %v11736_v52  ;;  %6288 = vmatprep.mubr.bf16.mxu0 %v10096_v35  ;;  %6449 = vmatprep.mubr.bf16.mxu1 %v10099_v32  ;;  %v10097_v52 = vld [vmem:[%s15801_s0 + $0x750] ss:$84 sps:$4 sm:$0xff]   ;;  %v10102_v25 = vld [vmem:[%s15801_s0 + $0x1274] ss:$84 sps:$4 sm:$0xff]  }
 0x1d3   :  { %v5931_v44 = vpop.f32.mrf.mxu1  ;;  %v6092_v63 = vpop.f32.mrf.mxu0 }
 0x1d5   :  { %v5932_v40 = vpop.f32.mrf.mxu1  ;;  %v6093_v55 = vpop.f32.mrf.mxu0 }
 0x1d6   :  { %v12208_v35 = vadd.f32 %v5932_v40, %v5644_v54  ;;  %v12211_v32 = vadd.f32 %v6093_v55, %v11752_v10 }
 0x1d7   :  { %v5934_v16 = vpop.f32.mrf.mxu1  ;;  %v6095_v3 = vpop.f32.mrf.mxu0 }
 0x1d8   :  { %15822 = vst [vmem:[#allocation17_spill] sm:$0xff] %v12211_v32  ;;  %v5652_v16 = vadd.f32 %v12021_v39, %v12005_v48  ;;  %v10113_v48 = vld [vmem:[%s15801_s0 + $0x8a4] ss:$84 sps:$4 sm:$0xff]  }
 0x1d9   :  { %v5937_v44 = vpop.f32.mrf.mxu1  ;;  %v6098_v63 = vpop.f32.mrf.mxu0  ;;  %6289 = vmatmul.mubr.bf16.gmra.mxu0 %v10094_v60  ;;  %6450 = vmatmul.mubr.bf16.gmra.mxu1 %v10097_v52  ;;  %v10103_v60 = vld [vmem:[%s15801_s0 + $0x7f8] ss:$84 sps:$4 sm:$0xff]  }
 0x1da   :  { %v12221_v54 = vadd.f32 %v5937_v44, %v5649_v49  ;;  %v12224_v10 = vadd.f32 %v6098_v63, %v11764_v24  ;;  %6296 = vmatprep.mubr.bf16.mxu0 %v10102_v25  ;;  %6457 = vmatprep.mubr.bf16.mxu1 %v10105_v37  ;;  %v10110_v25 = vld [vmem:[%s15801_s0 + $0x131c] ss:$84 sps:$4 sm:$0xff]   ;;  %v5657_v44 = vadd.f32 %v12021_v39, %v12026_v18 }
 0x1db   :  { %v5939_v40 = vpop.f32.mrf.mxu1  ;;  %v6100_v55 = vpop.f32.mrf.mxu0  ;;  %v5660_v18 = vadd.f32 %v12021_v39, %v12042_v20  ;;  %v10116_v20 = vld [vmem:[%s15801_s0 + $0x13c4] ss:$84 sps:$4 sm:$0xff]  }
 0x1dd   :  { %v5940_v3 = vpop.f32.mrf.mxu1  ;;  %v6101_v32 = vpop.f32.mrf.mxu0 }
 0x1de   :  { %v12234_v52 = vadd.f32 %v5940_v3, %v5652_v16  ;;  %v12237_v24 = vadd.f32 %v6101_v32, %v11776_v41  ;;  %v10218_v32 = vld [vmem:[%s15800_s1 + $0x2c8] sm:$0xff]  }
 0x1df   :  { %v5942_v37 = vpop.f32.mrf.mxu1  ;;  %v6103_v49 = vpop.f32.mrf.mxu0  ;;  %6936 = vmatpush2.bf16.msra.mxu1 %v10218_v32 }
 0x1e0   :  { %6937 = vmatprep.subr.bf16.mxu1 %v15813_v47  ;;  %v10119_v49 = vld [vmem:[%s15801_s0 + $0x94c] ss:$84 sps:$4 sm:$0xff]  }
 0x1e1   :  { %v5945_v63 = vpop.f32.mrf.mxu1  ;;  %v6106_v40 = vpop.f32.mrf.mxu0  ;;  %6297 = vmatmul.mubr.bf16.gmra.mxu0 %v10100_v0  ;;  %6458 = vmatmul.mubr.bf16.gmra.mxu1 %v10103_v60  ;;  %v10108_v60 = vld [vmem:[%s15801_s0 + $0x1318] ss:$84 sps:$4 sm:$0xff]  }
 0x1e2   :  { %v12247_v55 = vadd.f32 %v5945_v63, %v5657_v44  ;;  %v12250_v41 = vadd.f32 %v6106_v40, %v11788_v7  ;;  %6304 = vmatprep.mubr.bf16.mxu0 %v10110_v25  ;;  %6465 = vmatprep.mubr.bf16.mxu1 %v10113_v48  ;;  %v10111_v7 = vld [vmem:[%s15801_s0 + $0x8a0] ss:$84 sps:$4 sm:$0xff]   ;;  %v5665_v40 = vadd.f32 %v12021_v39, %v12058_v62 }
 0x1e3   :  { %v5947_v16 = vpop.f32.mrf.mxu1  ;;  %v6108_v3 = vpop.f32.mrf.mxu0  ;;  %v10114_v62 = vld [vmem:[%s15801_s0 + $0x13c0] ss:$84 sps:$4 sm:$0xff]  }
 0x1e5   :  { %v5948_v37 = vpop.f32.mrf.mxu1  ;;  %v6109_v0 = vpop.f32.mrf.mxu0 }
 0x1e6   :  { %v12264_v25 = vadd.f32 %v5948_v37, %v5660_v18  ;;  %v12267_v48 = vadd.f32 %v6109_v0, %v11804_v23  ;;  %v5668_v0 = vadd.f32 %v12021_v39, %v12071_v45  ;;  %v10127_v45 = vld [vmem:[%s15801_s0 + $0x9f4] ss:$84 sps:$4 sm:$0xff]  }
 0x1e7   :  { %v5950_v44 = vpop.f32.mrf.mxu1  ;;  %v6111_v63 = vpop.f32.mrf.mxu0 }
 0x1e9   :  { %v5953_v32 = vpop.f32.mrf.mxu1  ;;  %v6114_v16 = vpop.f32.mrf.mxu0  ;;  %6305 = vmatmul.mubr.bf16.gmra.mxu0 %v10108_v60  ;;  %6466 = vmatmul.mubr.bf16.gmra.mxu1 %v10111_v7  ;;  %v10117_v60 = vld [vmem:[%s15801_s0 + $0x948] ss:$84 sps:$4 sm:$0xff]  }
 0x1ea   :  { %v12277_v3 = vadd.f32 %v5953_v32, %v5665_v40  ;;  %v12280_v23 = vadd.f32 %v6114_v16, %v11816_v46  ;;  %6312 = vmatprep.mubr.bf16.mxu0 %v10116_v20  ;;  %6473 = vmatprep.mubr.bf16.mxu1 %v10119_v49  ;;  %v10124_v20 = vld [vmem:[%s15801_s0 + $0x146c] ss:$84 sps:$4 sm:$0xff]   ;;  %v5673_v32 = vadd.f32 %v12021_v39, %v12083_v12 }
 0x1eb   :  { %v5955_v18 = vpop.f32.mrf.mxu1  ;;  %v6116_v37 = vpop.f32.mrf.mxu0  ;;  %v5676_v12 = vadd.f32 %v12021_v39, %v12098_v21  ;;  %v10130_v21 = vld [vmem:[%s15801_s0 + $0xa9c] ss:$84 sps:$4 sm:$0xff]  }
 0x1ed   :  { %v5956_v44 = vpop.f32.mrf.mxu1  ;;  %v6117_v63 = vpop.f32.mrf.mxu0 }
 0x1ee   :  { %v12290_v7 = vadd.f32 %v5956_v44, %v5668_v0  ;;  %v12293_v46 = vadd.f32 %v6117_v63, %v11828_v5  ;;  %v10232_v0 = vld [vmem:[%s15800_s1 + $0x2c0] sm:$0xff]  }
 0x1ef   :  { %v5958_v49 = vpop.f32.mrf.mxu1  ;;  %v6119_v40 = vpop.f32.mrf.mxu0  ;;  %6938 = vmatpush2.bf16.msra.mxu1 %v10232_v0 }
 0x1f0   :  { %7485 = vmatprep.subr.bf16.mxu1 %v15813_v47  ;;  %v10133_v40 = vld [vmem:[%s15801_s0 + $0x24] ss:$84 sps:$4 sm:$0xff]  }
 0x1f1   :  { %v5961_v16 = vpop.f32.mrf.mxu1  ;;  %v6122_v18 = vpop.f32.mrf.mxu0  ;;  %6313 = vmatmul.mubr.bf16.gmra.mxu0 %v10114_v62  ;;  %6474 = vmatmul.mubr.bf16.gmra.mxu1 %v10117_v60  ;;  %v10122_v60 = vld [vmem:[%s15801_s0 + $0x1468] ss:$84 sps:$4 sm:$0xff]  }
 0x1f2   :  { %v12303_v37 = vadd.f32 %v5961_v16, %v5673_v32  ;;  %v12306_v5 = vadd.f32 %v6122_v18, %v11840_v56  ;;  %6320 = vmatprep.mubr.bf16.mxu0 %v10124_v20  ;;  %6481 = vmatprep.mubr.bf16.mxu1 %v10127_v45  ;;  %v10125_v56 = vld [vmem:[%s15801_s0 + $0x9f0] ss:$84 sps:$4 sm:$0xff]   ;;  %v5681_v18 = vadd.f32 %v12021_v39, %v12111_v13  ;;  %v10128_v13 = vld [vmem:[%s15801_s0 + $0xa98] ss:$84 sps:$4 sm:$0xff]  }
 0x1f3   :  { %v5963_v44 = vpop.f32.mrf.mxu1  ;;  %v6124_v63 = vpop.f32.mrf.mxu0 }
 0x1f5   :  { %v5964_v49 = vpop.f32.mrf.mxu1  ;;  %v6125_v62 = vpop.f32.mrf.mxu0 }
 0x1f6   :  { %v12320_v20 = vadd.f32 %v5964_v49, %v5676_v12  ;;  %v12323_v45 = vadd.f32 %v6125_v62, %v11856_v59  ;;  %v5684_v62 = vadd.f32 %v12021_v39, %v12123_v28  ;;  %v10138_v28 = vld [vmem:[%s15801_s0 + $0xb44] ss:$84 sps:$4 sm:$0xff]  }
 0x1f7   :  { %v5966_v32 = vpop.f32.mrf.mxu1  ;;  %v6127_v16 = vpop.f32.mrf.mxu0 }
 0x1f9   :  { %v5969_v0 = vpop.f32.mrf.mxu1  ;;  %v6130_v44 = vpop.f32.mrf.mxu0  ;;  %6321 = vmatmul.mubr.bf16.gmra.mxu0 %v10122_v60  ;;  %6482 = vmatmul.mubr.bf16.gmra.mxu1 %v10125_v56  ;;  %v10131_v60 = vld [vmem:[%s15801_s0 + $0x20] ss:$84 sps:$4 sm:$0xff]  }
 0x1fa   :  { %v12333_v63 = vadd.f32 %v5969_v0, %v5681_v18  ;;  %v12336_v59 = vadd.f32 %v6130_v44, %v11868_v14  ;;  %6489 = vmatprep.mubr.bf16.mxu1 %v10130_v21  ;;  %6650 = vmatprep.mubr.bf16.mxu0 %v10133_v40  ;;  %v10135_v21 = vld [vmem:[%s15800_s1 + $0x338] sm:$0xff]   ;;  %v10141_v0 = vld [vmem:[%s15801_s0 + $0xcc] ss:$84 sps:$4 sm:$0xff]   ;;  %v5689_v44 = vadd.f32 %v12021_v39, %v11472_v43 }
 0x1fb   :  { %v5971_v12 = vpop.f32.mrf.mxu1  ;;  %v6132_v49 = vpop.f32.mrf.mxu0  ;;  %v5692_v43 = vadd.f32 %v12021_v39, %v11486_v50  ;;  %v10147_v50 = vld [vmem:[%s15801_s0 + $0x174] ss:$84 sps:$4 sm:$0xff]  }
 0x1fd   :  { %v5972_v32 = vpop.f32.mrf.mxu1  ;;  %v6133_v16 = vpop.f32.mrf.mxu0 }
 0x1fe   :  { %v12346_v56 = vadd.f32 %v5972_v32, %v5684_v62  ;;  %v12349_v14 = vadd.f32 %v6133_v16, %v11880_v6  ;;  %v10149_v32 = vld [vmem:[%s15800_s1 + $0x330] sm:$0xff]  }
 0x1ff   :  { %v5974_v40 = vpop.f32.mrf.mxu1  ;;  %v6135_v18 = vpop.f32.mrf.mxu0 }
 0x201   :  { %v5977_v12 = vpop.f32.mrf.mxu1  ;;  %v6138_v6 = vpop.f32.mrf.mxu0  ;;  %6490 = vmatmul.mubr.bf16.gmra.mxu1 %v10128_v13  ;;  %6651 = vmatmul.mubr.bf16.vlgmr.msra.gmra.mxu0 %v10131_v60 }
 0x202   :  { %v12362_v49 = vadd.f32 %v5977_v12, %v5689_v44  ;;  %v12365_v62 = vadd.f32 %v6138_v6, %v11895_v61  ;;  %7197 = vmatpush1.bf16.msra.mxu0 %v10135_v21  ;;  %6497 = vmatprep.mubr.bf16.mxu1 %v10138_v28  ;;  %v10136_v61 = vld [vmem:[%s15801_s0 + $0xb40] ss:$84 sps:$4 sm:$0xff]   ;;  %v10139_v21 = vld [vmem:[%s15801_s0 + $0xc8] ss:$84 sps:$4 sm:$0xff]  }
 0x203   :  { %v5979_v16 = vpop.f32.mrf.mxu1  ;;  %v6140_v40 = vpop.f32.mrf.mxu0  ;;  %6658 = vmatprep.mubr.bf16.mxu0 %v10141_v0  ;;  %7198 = vmatprep.subr.bf16.mxu0 %v15813_v47  ;;  %v10144_v0 = vld [vmem:[%s15801_s0 + $0xbec] ss:$84 sps:$4 sm:$0xff]  }
 0x204   :  { %v10163_v6 = vld [vmem:[%s15800_s1 + $0x328] sm:$0xff]  }
 0x205   :  { %v5980_v13 = vpop.f32.mrf.mxu1  ;;  %v6141_v60 = vpop.f32.mrf.mxu0 }
 0x206   :  { %v12379_v28 = vadd.f32 %v5980_v13, %v5692_v43  ;;  %v12382_v18 = vadd.f32 %v6141_v60, %v11911_v53  ;;  %7199 = vmatpush1.bf16.msra.mxu0 %v10149_v32  ;;  %v5697_v53 = vadd.f32 %v12021_v39, %v11500_v57  ;;  %v5700_v57 = vadd.f32 %v12021_v39, %v11514_v1  ;;  %v10152_v1 = vld [vmem:[%s15801_s0 + $0xc94] ss:$84 sps:$4 sm:$0xff]  }
 0x207   :  { %v5982_v44 = vpop.f32.mrf.mxu1  ;;  %v6143_v12 = vpop.f32.mrf.mxu0  ;;  %7200 = vmatprep.subr.bf16.mxu0 %v15813_v47 }
 0x208   :  { %v10177_v44 = vld [vmem:[%s15800_s1 + $0x320] sm:$0xff]  }
 0x209   :  { %v5985_v16 = vpop.f32.mrf.mxu1  ;;  %v6146_v40 = vpop.f32.mrf.mxu0  ;;  %6498 = vmatmul.mubr.bf16.gmra.mxu1 %v10136_v61  ;;  %6659 = vmatmul.mubr.bf16.gmra.mxu0 %v10139_v21 }
 0x20a   :  { %v12396_v43 = vadd.f32 %v5985_v16, %v5697_v53  ;;  %v12399_v13 = vadd.f32 %v6146_v40, %v11930_v58  ;;  %6505 = vmatprep.mubr.bf16.mxu1 %v10144_v0  ;;  %6666 = vmatprep.mubr.bf16.mxu0 %v10147_v50  ;;  %v10142_v58 = vld [vmem:[%s15801_s0 + $0xbe8] ss:$84 sps:$4 sm:$0xff]   ;;  %v10145_v0 = vld [vmem:[%s15801_s0 + $0x170] ss:$84 sps:$4 sm:$0xff]  }
 0x20b   :  { %v5987_v32 = vpop.f32.mrf.mxu1  ;;  %v6148_v60 = vpop.f32.mrf.mxu0  ;;  %7201 = vmatpush1.bf16.msra.mxu0 %v10163_v6  ;;  %v10155_v6 = vld [vmem:[%s15801_s0 + $0x21c] ss:$84 sps:$4 sm:$0xff]  }
 0x20c   :  { %7202 = vmatprep.subr.bf16.mxu0 %v15813_v47  ;;  %v10191_v40 = vld [vmem:[%s15800_s1 + $0x318] sm:$0xff]   ;;  %v5705_v32 = vadd.f32 %v12021_v39, %v11528_v8  ;;  %v10205_v8 = vld [vmem:[%s15800_s1 + $0x310] sm:$0xff]  }
 0x20d   :  { %v5988_v61 = vpop.f32.mrf.mxu1  ;;  %v6149_v21 = vpop.f32.mrf.mxu0 }
 0x20e   :  { %v12413_v50 = vadd.f32 %v5988_v61, %v5700_v57  ;;  %v12416_v12 = vadd.f32 %v6149_v21, %v11943_v34 }
 0x20f   :  { %v5990_v53 = vpop.f32.mrf.mxu1  ;;  %v6151_v16 = vpop.f32.mrf.mxu0  ;;  %7203 = vmatpush1.bf16.msra.mxu0 %v10177_v44 }
 0x210   :  { %7204 = vmatprep.subr.bf16.mxu0 %v15813_v47  ;;  %v5708_v53 = vadd.f32 %v12021_v39, %v11542_v15  ;;  %v10158_v15 = vld [vmem:[%s15801_s0 + $0xd3c] ss:$84 sps:$4 sm:$0xff]  }
 0x211   :  { %v5993_v34 = vpop.f32.mrf.mxu1  ;;  %v6154_v60 = vpop.f32.mrf.mxu0  ;;  %6506 = vmatmul.mubr.bf16.gmra.mxu1 %v10142_v58  ;;  %6667 = vmatmul.mubr.bf16.gmra.mxu0 %v10145_v0 }
 0x212   :  { %v12430_v57 = vadd.f32 %v5993_v34, %v5705_v32  ;;  %v12433_v61 = vadd.f32 %v6154_v60, %v11959_v26  ;;  %6513 = vmatprep.mubr.bf16.mxu1 %v10152_v1  ;;  %6674 = vmatprep.mubr.bf16.mxu0 %v10155_v6  ;;  %v10150_v26 = vld [vmem:[%s15801_s0 + $0xc90] ss:$84 sps:$4 sm:$0xff]   ;;  %v10153_v1 = vld [vmem:[%s15801_s0 + $0x218] ss:$84 sps:$4 sm:$0xff]  }
 0x213   :  { %v5995_v44 = vpop.f32.mrf.mxu1  ;;  %v6156_v21 = vpop.f32.mrf.mxu0  ;;  %7205 = vmatpush1.bf16.msra.mxu0 %v10191_v40  ;;  %v10161_v40 = vld [vmem:[%s15801_s0 + $0x2c4] ss:$84 sps:$4 sm:$0xff]   ;;  %v10219_v60 = vld [vmem:[%s15800_s1 + $0x308] sm:$0xff]  }
 0x214   :  { %7206 = vmatprep.subr.bf16.mxu0 %v15813_v47  ;;  %v5713_v44 = vadd.f32 %v12021_v39, %v11556_v22  ;;  %v10233_v22 = vld [vmem:[%s15800_s1 + $0x300] sm:$0xff]  }
 0x215   :  { %v5996_v58 = vpop.f32.mrf.mxu1  ;;  %v6157_v0 = vpop.f32.mrf.mxu0 }
 0x216   :  { %v12447_v6 = vadd.f32 %v5996_v58, %v5708_v53  ;;  %v12450_v16 = vadd.f32 %v6157_v0, %v11975_v38 }
 0x217   :  { %v5998_v32 = vpop.f32.mrf.mxu1  ;;  %v6159_v34 = vpop.f32.mrf.mxu0  ;;  %7207 = vmatpush1.bf16.msra.mxu0 %v10205_v8 }
 0x218   :  { %7208 = vmatprep.subr.bf16.mxu0 %v15813_v47  ;;  %v5716_v32 = vadd.f32 %v12021_v39, %v11570_v29  ;;  %v10166_v29 = vld [vmem:[%s15801_s0 + $0xde4] ss:$84 sps:$4 sm:$0xff]   ;;  %v10169_v39 = vld [vmem:[%s15801_s0 + $0x36c] ss:$84 sps:$4 sm:$0xff]  }
 0x219   :  { %v6001_v38 = vpop.f32.mrf.mxu1  ;;  %v6162_v21 = vpop.f32.mrf.mxu0  ;;  %6514 = vmatmul.mubr.bf16.gmra.mxu1 %v10150_v26  ;;  %6675 = vmatmul.mubr.bf16.gmra.mxu0 %v10153_v1 }
 0x21a   :  { %v12464_v53 = vadd.f32 %v6001_v38, %v5713_v44  ;;  %v12467_v58 = vadd.f32 %v6162_v21, %v11994_v31  ;;  %6521 = vmatprep.mubr.bf16.mxu1 %v10158_v15  ;;  %6682 = vmatprep.mubr.bf16.mxu0 %v10161_v40  ;;  %v10156_v31 = vld [vmem:[%s15801_s0 + $0xd38] ss:$84 sps:$4 sm:$0xff]   ;;  %v10159_v15 = vld [vmem:[%s15801_s0 + $0x2c0] ss:$84 sps:$4 sm:$0xff]  }
 0x21b   :  { %v6003_v8 = vpop.f32.mrf.mxu1  ;;  %v6164_v0 = vpop.f32.mrf.mxu0  ;;  %7209 = vmatpush1.bf16.msra.mxu0 %v10219_v60  ;;  %v10246_v38 = vld [vmem:[%s15800_s1 + $0x378] sm:$0xff]  }
 0x21c   :  { %7210 = vmatprep.subr.bf16.mxu0 %v15813_v47 }
 0x21d   :  { %v6004_v26 = vpop.f32.mrf.mxu1  ;;  %v6165_v1 = vpop.f32.mrf.mxu0 }
 0x21e   :  { %v12481_v40 = vadd.f32 %v6004_v26, %v5716_v32  ;;  %v12484_v34 = vadd.f32 %v6165_v1, %v12007_v11  ;;  %v12498_v11 = vld [vmem:[%s15802_s2] ss:$0 sm:$0xff] }
 0x21f   :  { %v6006_v60 = vpop.f32.mrf.mxu1  ;;  %v6167_v44 = vpop.f32.mrf.mxu0  ;;  %7211 = vmatpush1.bf16.msra.mxu0 %v10233_v22  ;;  %v5721_v21 = vadd.f32 %v12498_v11, %v11584_v36  ;;  %v15826_v22 = vld [vmem:[#allocation9_spill] sm:$0xff]  ;;  %v10260_v36 = vld [vmem:[%s15800_s1 + $0x370] sm:$0xff]  }
 0x220   :  { %15823 = vst [vmem:[#allocation18_spill] sm:$0xff] %v12481_v40  ;;  %15824 = vst [vmem:[#allocation19_spill] sm:$0xff] %v12484_v34  ;;  %7212 = vmatprep.subr.bf16.mxu0 %v15813_v47  ;;  %v15828_v44 = vld [vmem:[#allocation2_spill] sm:$0xff] }
 0x221   :  { %v6009_v8 = vpop.f32.mrf.mxu1  ;;  %v6170_v0 = vpop.f32.mrf.mxu0  ;;  %6522 = vmatmul.mubr.bf16.gmra.mxu1 %v10156_v31  ;;  %6683 = vmatmul.mubr.bf16.gmra.mxu0 %v10159_v15  ;;  %v5724_v34 = vadd.f32 %v12498_v11, %v15828_v44  ;;  %v10274_v44 = vld [vmem:[%s15800_s1 + $0x368] sm:$0xff]  }
 0x222   :  { %v12503_v32 = vadd.f32 %v6009_v8, %v5721_v21  ;;  %v12506_v26 = vadd.f32 %v6170_v0, %v15826_v22  ;;  %6529 = vmatprep.mubr.bf16.mxu1 %v10166_v29  ;;  %6690 = vmatprep.mubr.bf16.mxu0 %v10169_v39  ;;  %v10164_v21 = vld [vmem:[%s15801_s0 + $0xde0] ss:$84 sps:$4 sm:$0xff]   ;;  %v10167_v29 = vld [vmem:[%s15801_s0 + $0x368] ss:$84 sps:$4 sm:$0xff]  }
 0x223   :  { %v6011_v1 = vpop.f32.mrf.mxu1  ;;  %v6172_v60 = vpop.f32.mrf.mxu0  ;;  %7213 = vmatpush2.bf16.msra.mxu0 %v10246_v38  ;;  %v15830_v38 = vld [vmem:[#allocation10_spill] sm:$0xff]  ;;  %v10175_v22 = vld [vmem:[%s15801_s0 + $0x414] ss:$84 sps:$4 sm:$0xff]  }
 0x224   :  { %15825 = vst [vmem:[#allocation20_spill] sm:$0xff] %v12503_v32  ;;  %15827 = vst [vmem:[#allocation9_spill] sm:$0xff] %v12506_v26  ;;  %7214 = vmatprep.subr.bf16.mxu0 %v15813_v47  ;;  %v10172_v0 = vld [vmem:[%s15801_s0 + $0xe8c] ss:$84 sps:$4 sm:$0xff]  }
 0x225   :  { %v6012_v31 = vpop.f32.mrf.mxu1  ;;  %v6173_v15 = vpop.f32.mrf.mxu0 }
 0x226   :  { %v12520_v39 = vadd.f32 %v6012_v31, %v5724_v34  ;;  %v12523_v8 = vadd.f32 %v6173_v15, %v15830_v38  ;;  %v15832_v34 = vld [vmem:[#allocation3_spill] sm:$0xff] }
 0x227   :  { %v6014_v1 = vpop.f32.mrf.mxu1  ;;  %v6175_v60 = vpop.f32.mrf.mxu0  ;;  %7215 = vmatpush2.bf16.msra.mxu0 %v10260_v36  ;;  %v5729_v31 = vadd.f32 %v12498_v11, %v15832_v34 }
 0x228   :  { %15829 = vst [vmem:[#allocation2_spill] sm:$0xff] %v12520_v39  ;;  %15831 = vst [vmem:[#allocation10_spill] sm:$0xff] %v12523_v8  ;;  %7216 = vmatprep.subr.bf16.mxu0 %v15813_v47  ;;  %v15834_v39 = vld [vmem:[#allocation11_spill] sm:$0xff]  ;;  %v15836_v60 = vld [vmem:[#allocation4_spill] sm:$0xff] }
 0x229   :  { %v6017_v15 = vpop.f32.mrf.mxu1  ;;  %v6178_v38 = vpop.f32.mrf.mxu0  ;;  %6530 = vmatmul.mubr.bf16.gmra.mxu1 %v10164_v21  ;;  %6691 = vmatmul.mubr.bf16.gmra.mxu0 %v10167_v29  ;;  %v5732_v32 = vadd.f32 %v12498_v11, %v15836_v60  ;;  %v10170_v21 = vld [vmem:[%s15801_s0 + $0xe88] ss:$84 sps:$4 sm:$0xff]   ;;  %v10173_v29 = vld [vmem:[%s15801_s0 + $0x410] ss:$84 sps:$4 sm:$0xff]  }
 0x22a   :  { %v12537_v8 = vadd.f32 %v6017_v15, %v5729_v31  ;;  %v12540_v26 = vadd.f32 %v6178_v38, %v15834_v39  ;;  %6537 = vmatprep.mubr.bf16.mxu1 %v10172_v0  ;;  %6698 = vmatprep.mubr.bf16.mxu0 %v10175_v22  ;;  %v15838_v0 = vld [vmem:[#allocation12_spill] sm:$0xff] }
 0x22b   :  { %v6019_v36 = vpop.f32.mrf.mxu1  ;;  %v6180_v1 = vpop.f32.mrf.mxu0  ;;  %7217 = vmatpush2.bf16.msra.mxu0 %v10274_v44  ;;  %v10180_v44 = vld [vmem:[%s15801_s0 + $0xf34] ss:$84 sps:$4 sm:$0xff]   ;;  %v10183_v31 = vld [vmem:[%s15801_s0 + $0x4bc] ss:$84 sps:$4 sm:$0xff]  }
 0x22c   :  { %15833 = vst [vmem:[#allocation3_spill] sm:$0xff] %v12537_v8  ;;  %15835 = vst [vmem:[#allocation11_spill] sm:$0xff] %v12540_v26  ;;  %7218 = vmatprep.subr.bf16.mxu0 %v15813_v47  ;;  %v15840_v36 = vld [vmem:[#allocation5_spill] sm:$0xff] }
 0x22d   :  { %v6020_v34 = vpop.f32.mrf.mxu1  ;;  %v6181_v40 = vpop.f32.mrf.mxu0  ;;  %v5737_v1 = vadd.f32 %v12498_v11, %v15840_v36 }
 0x22e   :  { %v12551_v39 = vadd.f32 %v6020_v34, %v5732_v32  ;;  %v12554_v22 = vadd.f32 %v6181_v40, %v15838_v0  ;;  %v15842_v40 = vld [vmem:[#allocation13_spill] sm:$0xff]  ;;  %v10288_v0 = vld [vmem:[%s15800_s1 + $0x360] sm:$0xff]  }
 0x22f   :  { %v6022_v15 = vpop.f32.mrf.mxu1  ;;  %v6183_v38 = vpop.f32.mrf.mxu0  ;;  %7219 = vmatpush2.bf16.msra.mxu0 %v10288_v0 }
 0x230   :  { %15837 = vst [vmem:[#allocation4_spill] sm:$0xff] %v12551_v39  ;;  %15839 = vst [vmem:[#allocation12_spill] sm:$0xff] %v12554_v22  ;;  %v15844_v22 = vld [vmem:[#allocation6_spill] sm:$0xff]  ;;  %7220 = vmatprep.subr.bf16.mxu0 %v15813_v47 }
 0x231   :  { %v6025_v60 = vpop.f32.mrf.mxu1  ;;  %v6186_v26 = vpop.f32.mrf.mxu0  ;;  %6538 = vmatmul.mubr.bf16.gmra.mxu1 %v10170_v21  ;;  %6699 = vmatmul.mubr.bf16.gmra.mxu0 %v10173_v29  ;;  %v5740_v36 = vadd.f32 %v12498_v11, %v15844_v22  ;;  %v10178_v29 = vld [vmem:[%s15801_s0 + $0xf30] ss:$84 sps:$4 sm:$0xff]  }
 0x232   :  { %v12564_v32 = vadd.f32 %v6025_v60, %v5737_v1  ;;  %v12567_v34 = vadd.f32 %v6186_v26, %v15842_v40  ;;  %6545 = vmatprep.mubr.bf16.mxu1 %v10180_v44  ;;  %6706 = vmatprep.mubr.bf16.mxu0 %v10183_v31  ;;  %v10181_v26 = vld [vmem:[%s15801_s0 + $0x4b8] ss:$84 sps:$4 sm:$0xff]   ;;  %v15846_v31 = vld [vmem:[#allocation14_spill] sm:$0xff]  ;;  %v10186_v22 = vld [vmem:[%s15801_s0 + $0xfdc] ss:$84 sps:$4 sm:$0xff]  }
 0x233   :  { %v6027_v15 = vpop.f32.mrf.mxu1  ;;  %v6188_v38 = vpop.f32.mrf.mxu0  ;;  %v10189_v60 = vld [vmem:[%s15801_s0 + $0x564] ss:$84 sps:$4 sm:$0xff]  }
 0x234   :  { %15841 = vst [vmem:[#allocation5_spill] sm:$0xff] %v12564_v32  ;;  %15843 = vst [vmem:[#allocation13_spill] sm:$0xff] %v12567_v34  ;;  %v15848_v15 = vld [vmem:[#allocation7_spill] sm:$0xff] }
 0x235   :  { %v6028_v39 = vpop.f32.mrf.mxu1  ;;  %v6189_v21 = vpop.f32.mrf.mxu0  ;;  %v5745_v38 = vadd.f32 %v12498_v11, %v15848_v15  ;;  %v10184_v15 = vld [vmem:[%s15801_s0 + $0xfd8] ss:$84 sps:$4 sm:$0xff]  }
 0x236   :  { %v12581_v44 = vadd.f32 %v6028_v39, %v5740_v36  ;;  %v12584_v1 = vadd.f32 %v6189_v21, %v15846_v31  ;;  %v15849_v36 = vld [vmem:[#allocation15_spill] sm:$0xff] }
 0x237   :  { %v6030_v40 = vpop.f32.mrf.mxu1  ;;  %v6191_v0 = vpop.f32.mrf.mxu0 }
 0x238   :  { %15845 = vst [vmem:[#allocation6_spill] sm:$0xff] %v12581_v44  ;;  %15847 = vst [vmem:[#allocation14_spill] sm:$0xff] %v12584_v1  ;;  %v15850_v44 = vld [vmem:[#allocation8_spill] sm:$0xff] }
 0x239   :  { %v6033_v34 = vpop.f32.mrf.mxu1  ;;  %v6194_v32 = vpop.f32.mrf.mxu0  ;;  %6546 = vmatmul.mubr.bf16.gmra.mxu1 %v10178_v29  ;;  %6707 = vmatmul.mubr.bf16.gmra.mxu0 %v10181_v26  ;;  %v5748_v40 = vadd.f32 %v12498_v11, %v15850_v44  ;;  %v10194_v26 = vld [vmem:[%s15801_s0 + $0x1084] ss:$84 sps:$4 sm:$0xff]   ;;  %v10197_v11 = vld [vmem:[%s15801_s0 + $0x60c] ss:$84 sps:$4 sm:$0xff]  }
 0x23a   :  { %v12594_v39 = vadd.f32 %v6033_v34, %v5745_v38  ;;  %v12597_v21 = vadd.f32 %v6194_v32, %v15849_v36  ;;  %6553 = vmatprep.mubr.bf16.mxu1 %v10186_v22  ;;  %6714 = vmatprep.mubr.bf16.mxu0 %v10189_v60  ;;  %v10187_v34 = vld [vmem:[%s15801_s0 + $0x560] ss:$84 sps:$4 sm:$0xff]  }
 0x23b   :  { %v6035_v31 = vpop.f32.mrf.mxu1  ;;  %v6196_v1 = vpop.f32.mrf.mxu0  ;;  %v15851_v36 = vld [vmem:[#allocation16_spill] sm:$0xff] }
 0x23d   :  { %v6036_v0 = vpop.f32.mrf.mxu1  ;;  %v6197_v8 = vpop.f32.mrf.mxu0 }
 0x23e   :  { %v12607_v29 = vadd.f32 %v6036_v0, %v5748_v40  ;;  %v12610_v32 = vadd.f32 %v6197_v8, %v12125_v30  ;;  %v10302_v8 = vld [vmem:[%s15800_s1 + $0x358] sm:$0xff]  }
 0x23f   :  { %v6038_v44 = vpop.f32.mrf.mxu1  ;;  %v6199_v1 = vpop.f32.mrf.mxu0  ;;  %7221 = vmatpush2.bf16.msra.mxu0 %v10302_v8 }
 0x240   :  { %7222 = vmatprep.subr.bf16.mxu0 %v15813_v47  ;;  %v10203_v1 = vld [vmem:[%s15801_s0 + $0x6b4] ss:$84 sps:$4 sm:$0xff]  }
 0x241   :  { %v6202_v22 = vpop.f32.mrf.mxu0  ;;  %v6363_v60 = vpop.f32.mrf.mxu1  ;;  %6554 = vmatmul.mubr.bf16.gmra.mxu1 %v10184_v15  ;;  %6715 = vmatmul.mubr.bf16.gmra.mxu0 %v10187_v34  ;;  %v10192_v15 = vld [vmem:[%s15801_s0 + $0x1080] ss:$84 sps:$4 sm:$0xff]  }
 0x242   :  { %v12619_v38 = vadd.f32 %v6202_v22, %v12135_v27  ;;  %v12622_v30 = vadd.f32 %v6363_v60, %v15851_v36  ;;  %6561 = vmatprep.mubr.bf16.mxu1 %v10194_v26  ;;  %6722 = vmatprep.mubr.bf16.mxu0 %v10197_v11  ;;  %v10195_v27 = vld [vmem:[%s15801_s0 + $0x608] ss:$84 sps:$4 sm:$0xff]   ;;  %v10200_v11 = vld [vmem:[%s15801_s0 + $0x112c] ss:$84 sps:$4 sm:$0xff]  }
 0x243   :  { %v6204_v31 = vpop.f32.mrf.mxu0  ;;  %v6365_v40 = vpop.f32.mrf.mxu1 }
 0x245   :  { %v6205_v0 = vpop.f32.mrf.mxu0  ;;  %v6366_v44 = vpop.f32.mrf.mxu1 }
 0x246   :  { %v12635_v34 = vadd.f32 %v6205_v0, %v12152_v2  ;;  %v12638_v26 = vadd.f32 %v6366_v44, %v12155_v42 }
 0x247   :  { %v6207_v22 = vpop.f32.mrf.mxu0  ;;  %v6368_v60 = vpop.f32.mrf.mxu1 }
 0x248   :  { %v10198_v22 = vld [vmem:[%s15801_s0 + $0x1128] ss:$84 sps:$4 sm:$0xff]  }
 0x249   :  { %v6210_v36 = vpop.f32.mrf.mxu0  ;;  %v6371_v8 = vpop.f32.mrf.mxu1  ;;  %6562 = vmatmul.mubr.bf16.gmra.mxu1 %v10192_v15  ;;  %6723 = vmatmul.mubr.bf16.gmra.mxu0 %v10195_v27  ;;  %v10201_v15 = vld [vmem:[%s15801_s0 + $0x6b0] ss:$84 sps:$4 sm:$0xff]   ;;  %v10208_v27 = vld [vmem:[%s15801_s0 + $0x11d4] ss:$84 sps:$4 sm:$0xff]  }
 0x24a   :  { %v12647_v2 = vadd.f32 %v6210_v36, %v12165_v51  ;;  %v12650_v42 = vadd.f32 %v6371_v8, %v12168_v4  ;;  %6569 = vmatprep.mubr.bf16.mxu1 %v10200_v11  ;;  %6730 = vmatprep.mubr.bf16.mxu0 %v10203_v1  ;;  %v10211_v11 = vld [vmem:[%s15801_s0 + $0x75c] ss:$84 sps:$4 sm:$0xff]  }
 0x24b   :  { %v6212_v31 = vpop.f32.mrf.mxu0  ;;  %v6373_v40 = vpop.f32.mrf.mxu1 }
 0x24c   :  { %v10316_v31 = vld [vmem:[%s15800_s1 + $0x350] sm:$0xff]  }
 0x24d   :  { %v6213_v0 = vpop.f32.mrf.mxu0  ;;  %v6374_v44 = vpop.f32.mrf.mxu1  ;;  %7223 = vmatpush2.bf16.msra.mxu0 %v10316_v31 }
 0x24e   :  { %v12659_v51 = vadd.f32 %v6213_v0, %v12178_v9  ;;  %v12662_v4 = vadd.f32 %v6374_v44, %v12181_v19  ;;  %7224 = vmatprep.subr.bf16.mxu0 %v15813_v47 }
 0x24f   :  { %v6215_v1 = vpop.f32.mrf.mxu0  ;;  %v6376_v60 = vpop.f32.mrf.mxu1 }
 0x250   :  { %v10217_v60 = vld [vmem:[%s15801_s0 + $0x804] ss:$84 sps:$4 sm:$0xff]  }
 0x251   :  { %v6218_v36 = vpop.f32.mrf.mxu0  ;;  %v6379_v8 = vpop.f32.mrf.mxu1  ;;  %6570 = vmatmul.mubr.bf16.gmra.mxu1 %v10198_v22  ;;  %6731 = vmatmul.mubr.bf16.gmra.mxu0 %v10201_v15  ;;  %v10206_v22 = vld [vmem:[%s15801_s0 + $0x11d0] ss:$84 sps:$4 sm:$0xff]   ;;  %v15852_v15 = vld [vmem:[#allocation17_spill] sm:$0xff] }
 0x252   :  { %v12671_v9 = vadd.f32 %v6218_v36, %v12191_v17  ;;  %v12674_v19 = vadd.f32 %v6379_v8, %v12194_v33  ;;  %6577 = vmatprep.mubr.bf16.mxu1 %v10208_v27  ;;  %6738 = vmatprep.mubr.bf16.mxu0 %v10211_v11  ;;  %v10209_v17 = vld [vmem:[%s15801_s0 + $0x758] ss:$84 sps:$4 sm:$0xff]   ;;  %v10214_v11 = vld [vmem:[%s15801_s0 + $0x127c] ss:$84 sps:$4 sm:$0xff]  }
 0x253   :  { %v6220_v40 = vpop.f32.mrf.mxu0  ;;  %v6381_v0 = vpop.f32.mrf.mxu1 }
 0x255   :  { %v6221_v44 = vpop.f32.mrf.mxu0  ;;  %v6382_v1 = vpop.f32.mrf.mxu1 }
 0x256   :  { %v12687_v33 = vadd.f32 %v6221_v44, %v12208_v35  ;;  %v12690_v27 = vadd.f32 %v6382_v1, %v15852_v15 }
 0x257   :  { %v6223_v36 = vpop.f32.mrf.mxu0  ;;  %v6384_v8 = vpop.f32.mrf.mxu1 }
 0x258   :  { %15853 = vst [vmem:[#allocation7_spill] sm:$0xff] %v12690_v27  ;;  %v10212_v36 = vld [vmem:[%s15801_s0 + $0x1278] ss:$84 sps:$4 sm:$0xff]  }
 0x259   :  { %v6226_v31 = vpop.f32.mrf.mxu0  ;;  %v6387_v40 = vpop.f32.mrf.mxu1  ;;  %6578 = vmatmul.mubr.bf16.gmra.mxu1 %v10206_v22  ;;  %6739 = vmatmul.mubr.bf16.gmra.mxu0 %v10209_v17  ;;  %v10215_v22 = vld [vmem:[%s15801_s0 + $0x800] ss:$84 sps:$4 sm:$0xff]   ;;  %v10222_v17 = vld [vmem:[%s15801_s0 + $0x1324] ss:$84 sps:$4 sm:$0xff]  }
 0x25a   :  { %v12699_v35 = vadd.f32 %v6226_v31, %v12221_v54  ;;  %v12702_v0 = vadd.f32 %v6387_v40, %v12224_v10  ;;  %6585 = vmatprep.mubr.bf16.mxu1 %v10214_v11  ;;  %6746 = vmatprep.mubr.bf16.mxu0 %v10217_v60  ;;  %v10225_v11 = vld [vmem:[%s15801_s0 + $0x8ac] ss:$84 sps:$4 sm:$0xff]  }
 0x25b   :  { %v6228_v44 = vpop.f32.mrf.mxu0  ;;  %v6389_v1 = vpop.f32.mrf.mxu1 }
 0x25d   :  { %v6229_v15 = vpop.f32.mrf.mxu0  ;;  %v6390_v27 = vpop.f32.mrf.mxu1 }
 0x25e   :  { %v12711_v54 = vadd.f32 %v6229_v15, %v12234_v52  ;;  %v12714_v10 = vadd.f32 %v6390_v27, %v12237_v24  ;;  %v10330_v27 = vld [vmem:[%s15800_s1 + $0x348] sm:$0xff]  }
 0x25f   :  { %v6231_v60 = vpop.f32.mrf.mxu0  ;;  %v6392_v8 = vpop.f32.mrf.mxu1  ;;  %7225 = vmatpush2.bf16.msra.mxu0 %v10330_v27 }
 0x260   :  { %7226 = vmatprep.subr.bf16.mxu0 %v15813_v47 }
 0x261   :  { %v6234_v31 = vpop.f32.mrf.mxu0  ;;  %v6395_v40 = vpop.f32.mrf.mxu1  ;;  %6586 = vmatmul.mubr.bf16.gmra.mxu1 %v10212_v36  ;;  %6747 = vmatmul.mubr.bf16.gmra.mxu0 %v10215_v22  ;;  %v10220_v36 = vld [vmem:[%s15801_s0 + $0x1320] ss:$84 sps:$4 sm:$0xff]  }
 0x262   :  { %v12723_v52 = vadd.f32 %v6234_v31, %v12247_v55  ;;  %v12726_v24 = vadd.f32 %v6395_v40, %v12250_v41  ;;  %6593 = vmatprep.mubr.bf16.mxu1 %v10222_v17  ;;  %6754 = vmatprep.mubr.bf16.mxu0 %v10225_v11  ;;  %v10223_v55 = vld [vmem:[%s15801_s0 + $0x8a8] ss:$84 sps:$4 sm:$0xff]   ;;  %v10228_v17 = vld [vmem:[%s15801_s0 + $0x13cc] ss:$84 sps:$4 sm:$0xff]  }
 0x263   :  { %v6236_v44 = vpop.f32.mrf.mxu0  ;;  %v6397_v1 = vpop.f32.mrf.mxu1  ;;  %v10231_v11 = vld [vmem:[%s15801_s0 + $0x954] ss:$84 sps:$4 sm:$0xff]  }
 0x265   :  { %v6237_v15 = vpop.f32.mrf.mxu0  ;;  %v6398_v60 = vpop.f32.mrf.mxu1 }
 0x266   :  { %v12739_v41 = vadd.f32 %v6237_v15, %v12264_v25  ;;  %v12742_v22 = vadd.f32 %v6398_v60, %v12267_v48 }
 0x267   :  { %v6239_v8 = vpop.f32.mrf.mxu0  ;;  %v6400_v31 = vpop.f32.mrf.mxu1 }
 0x268   :  { %v10226_v8 = vld [vmem:[%s15801_s0 + $0x13c8] ss:$84 sps:$4 sm:$0xff]  }
 0x269   :  { %v6242_v40 = vpop.f32.mrf.mxu0  ;;  %v6403_v27 = vpop.f32.mrf.mxu1  ;;  %6594 = vmatmul.mubr.bf16.gmra.mxu1 %v10220_v36  ;;  %6755 = vmatmul.mubr.bf16.gmra.mxu0 %v10223_v55  ;;  %v10229_v36 = vld [vmem:[%s15801_s0 + $0x950] ss:$84 sps:$4 sm:$0xff]   ;;  %v10236_v55 = vld [vmem:[%s15801_s0 + $0x1474] ss:$84 sps:$4 sm:$0xff]  }
 0x26a   :  { %v12751_v25 = vadd.f32 %v6242_v40, %v12277_v3  ;;  %v12754_v48 = vadd.f32 %v6403_v27, %v12280_v23  ;;  %6601 = vmatprep.mubr.bf16.mxu1 %v10228_v17  ;;  %6762 = vmatprep.mubr.bf16.mxu0 %v10231_v11  ;;  %v10239_v17 = vld [vmem:[%s15801_s0 + $0x9fc] ss:$84 sps:$4 sm:$0xff]  }
 0x26b   :  { %v6244_v44 = vpop.f32.mrf.mxu0  ;;  %v6405_v1 = vpop.f32.mrf.mxu1 }
 0x26c   :  { %v10344_v44 = vld [vmem:[%s15800_s1 + $0x340] sm:$0xff]  }
 0x26d   :  { %v6245_v15 = vpop.f32.mrf.mxu0  ;;  %v6406_v60 = vpop.f32.mrf.mxu1  ;;  %7227 = vmatpush2.bf16.msra.mxu0 %v10344_v44 }
 0x26e   :  { %v12763_v3 = vadd.f32 %v6245_v15, %v12290_v7  ;;  %v12766_v23 = vadd.f32 %v6406_v60, %v12293_v46  ;;  %7774 = vmatprep.subr.bf16.mxu0 %v15813_v47 }
 0x26f   :  { %v6247_v11 = vpop.f32.mrf.mxu0  ;;  %v6408_v31 = vpop.f32.mrf.mxu1 }
 0x271   :  { %v6250_v40 = vpop.f32.mrf.mxu0  ;;  %v6411_v27 = vpop.f32.mrf.mxu1  ;;  %6602 = vmatmul.mubr.bf16.gmra.mxu1 %v10226_v8  ;;  %6763 = vmatmul.mubr.bf16.gmra.mxu0 %v10229_v36  ;;  %v10234_v8 = vld [vmem:[%s15801_s0 + $0x1470] ss:$84 sps:$4 sm:$0xff]  }
 0x272   :  { %v12775_v7 = vadd.f32 %v6250_v40, %v12303_v37  ;;  %v12778_v46 = vadd.f32 %v6411_v27, %v12306_v5  ;;  %6609 = vmatprep.mubr.bf16.mxu1 %v10236_v55  ;;  %6770 = vmatprep.mubr.bf16.mxu0 %v10239_v17  ;;  %v10237_v37 = vld [vmem:[%s15801_s0 + $0x9f8] ss:$84 sps:$4 sm:$0xff]  }
 0x273   :  { %v6252_v1 = vpop.f32.mrf.mxu0  ;;  %v6413_v15 = vpop.f32.mrf.mxu1  ;;  %v10242_v55 = vld [vmem:[%s15801_s0 + $0xaa4] ss:$84 sps:$4 sm:$0xff]   ;;  %v10245_v17 = vld [vmem:[%s15801_s0 + $0x2c] ss:$84 sps:$4 sm:$0xff]  }
 0x275   :  { %v6253_v60 = vpop.f32.mrf.mxu0  ;;  %v6414_v11 = vpop.f32.mrf.mxu1 }
 0x276   :  { %v12791_v5 = vadd.f32 %v6253_v60, %v12320_v20  ;;  %v12794_v36 = vadd.f32 %v6414_v11, %v12323_v45 }
 0x277   :  { %v6255_v31 = vpop.f32.mrf.mxu0  ;;  %v6416_v40 = vpop.f32.mrf.mxu1 }
 0x278   :  { %v10240_v31 = vld [vmem:[%s15801_s0 + $0xaa0] ss:$84 sps:$4 sm:$0xff]  }
 0x279   :  { %v6258_v27 = vpop.f32.mrf.mxu0  ;;  %v6419_v44 = vpop.f32.mrf.mxu1  ;;  %6610 = vmatmul.mubr.bf16.gmra.mxu1 %v10234_v8  ;;  %6771 = vmatmul.mubr.bf16.gmra.mxu0 %v10237_v37  ;;  %v10243_v8 = vld [vmem:[%s15801_s0 + $0x28] ss:$84 sps:$4 sm:$0xff]  }
 0x27a   :  { %v12803_v20 = vadd.f32 %v6258_v27, %v12333_v63  ;;  %v12806_v45 = vadd.f32 %v6419_v44, %v12336_v59  ;;  %6778 = vmatprep.mubr.bf16.mxu0 %v10242_v55  ;;  %6939 = vmatprep.mubr.bf16.mxu1 %v10245_v17  ;;  %v10247_v37 = vld [vmem:[%s15800_s1 + $0x3b8] sm:$0xff]   ;;  %v10250_v55 = vld [vmem:[%s15801_s0 + $0xb4c] ss:$84 sps:$4 sm:$0xff]   ;;  %v10253_v27 = vld [vmem:[%s15801_s0 + $0xd4] ss:$84 sps:$4 sm:$0xff]  }
 0x27b   :  { %v6260_v1 = vpop.f32.mrf.mxu0  ;;  %v6421_v15 = vpop.f32.mrf.mxu1 }
 0x27c   :  { %v10261_v15 = vld [vmem:[%s15800_s1 + $0x3b0] sm:$0xff]  }
 0x27d   :  { %v6261_v60 = vpop.f32.mrf.mxu0  ;;  %v6422_v11 = vpop.f32.mrf.mxu1 }
 0x27e   :  { %v12815_v63 = vadd.f32 %v6261_v60, %v12346_v56  ;;  %v12818_v59 = vadd.f32 %v6422_v11, %v12349_v14 }
 0x27f   :  { %v6263_v17 = vpop.f32.mrf.mxu0  ;;  %v6424_v40 = vpop.f32.mrf.mxu1 }
 0x280   :  { %v10259_v40 = vld [vmem:[%s15801_s0 + $0x17c] ss:$84 sps:$4 sm:$0xff]  }
 0x281   :  { %v6266_v44 = vpop.f32.mrf.mxu0  ;;  %v6427_v56 = vpop.f32.mrf.mxu1  ;;  %6779 = vmatmul.mubr.bf16.gmra.mxu0 %v10240_v31  ;;  %6940 = vmatmul.mubr.bf16.vlgmr.msra.gmra.mxu1 %v10243_v8 }
 0x282   :  { %v12830_v14 = vadd.f32 %v6266_v44, %v12362_v49  ;;  %v12833_v1 = vadd.f32 %v6427_v56, %v12365_v62  ;;  %7486 = vmatpush1.bf16.msra.mxu1 %v10247_v37  ;;  %6786 = vmatprep.mubr.bf16.mxu0 %v10250_v55  ;;  %v10248_v49 = vld [vmem:[%s15801_s0 + $0xb48] ss:$84 sps:$4 sm:$0xff]   ;;  %v10251_v62 = vld [vmem:[%s15801_s0 + $0xd0] ss:$84 sps:$4 sm:$0xff]  }
 0x283   :  { %v6268_v60 = vpop.f32.mrf.mxu0  ;;  %v6429_v11 = vpop.f32.mrf.mxu1  ;;  %6947 = vmatprep.mubr.bf16.mxu1 %v10253_v27  ;;  %7487 = vmatprep.subr.bf16.mxu1 %v15813_v47  ;;  %v10256_v55 = vld [vmem:[%s15801_s0 + $0xbf4] ss:$84 sps:$4 sm:$0xff]  }
 0x285   :  { %v6269_v17 = vpop.f32.mrf.mxu0  ;;  %v6430_v31 = vpop.f32.mrf.mxu1 }
 0x286   :  { %v12846_v8 = vadd.f32 %v6269_v17, %v12379_v28  ;;  %v12849_v37 = vadd.f32 %v6430_v31, %v12382_v18  ;;  %7488 = vmatpush1.bf16.msra.mxu1 %v10261_v15  ;;  %v10275_v28 = vld [vmem:[%s15800_s1 + $0x3a8] sm:$0xff]   ;;  %v10289_v31 = vld [vmem:[%s15800_s1 + $0x3a0] sm:$0xff]  }
 0x287   :  { %v6271_v27 = vpop.f32.mrf.mxu0  ;;  %v6432_v44 = vpop.f32.mrf.mxu1  ;;  %7489 = vmatprep.subr.bf16.mxu1 %v15813_v47 }
 0x288   :  { %v10267_v44 = vld [vmem:[%s15801_s0 + $0x224] ss:$84 sps:$4 sm:$0xff]  }
 0x289   :  { %v6274_v56 = vpop.f32.mrf.mxu0  ;;  %v6435_v18 = vpop.f32.mrf.mxu1  ;;  %6787 = vmatmul.mubr.bf16.gmra.mxu0 %v10248_v49  ;;  %6948 = vmatmul.mubr.bf16.gmra.mxu1 %v10251_v62 }
 0x28a   :  { %v12862_v60 = vadd.f32 %v6274_v56, %v12396_v43  ;;  %v12865_v11 = vadd.f32 %v6435_v18, %v12399_v13  ;;  %6794 = vmatprep.mubr.bf16.mxu0 %v10256_v55  ;;  %6955 = vmatprep.mubr.bf16.mxu1 %v10259_v40  ;;  %v10254_v43 = vld [vmem:[%s15801_s0 + $0xbf0] ss:$84 sps:$4 sm:$0xff]   ;;  %v10257_v13 = vld [vmem:[%s15801_s0 + $0x178] ss:$84 sps:$4 sm:$0xff]  }
 0x28b   :  { %v6276_v15 = vpop.f32.mrf.mxu0  ;;  %v6437_v17 = vpop.f32.mrf.mxu1  ;;  %7490 = vmatpush1.bf16.msra.mxu1 %v10275_v28  ;;  %v10264_v40 = vld [vmem:[%s15801_s0 + $0xc9c] ss:$84 sps:$4 sm:$0xff]  }
 0x28c   :  { %7491 = vmatprep.subr.bf16.mxu1 %v15813_v47  ;;  %v10303_v18 = vld [vmem:[%s15800_s1 + $0x398] sm:$0xff]  }
 0x28d   :  { %v6277_v27 = vpop.f32.mrf.mxu0  ;;  %v6438_v49 = vpop.f32.mrf.mxu1 }
 0x28e   :  { %v12878_v62 = vadd.f32 %v6277_v27, %v12413_v50  ;;  %v12881_v55 = vadd.f32 %v6438_v49, %v12416_v12  ;;  %v10317_v49 = vld [vmem:[%s15800_s1 + $0x390] sm:$0xff]  }
 0x28f   :  { %v6279_v28 = vpop.f32.mrf.mxu0  ;;  %v6440_v56 = vpop.f32.mrf.mxu1  ;;  %7492 = vmatpush1.bf16.msra.mxu1 %v10289_v31 }
 0x290   :  { %7493 = vmatprep.subr.bf16.mxu1 %v15813_v47  ;;  %v10273_v56 = vld [vmem:[%s15801_s0 + $0x2cc] ss:$84 sps:$4 sm:$0xff]  }
 0x291   :  { %v6282_v50 = vpop.f32.mrf.mxu0  ;;  %v6443_v12 = vpop.f32.mrf.mxu1  ;;  %6795 = vmatmul.mubr.bf16.gmra.mxu0 %v10254_v43  ;;  %6956 = vmatmul.mubr.bf16.gmra.mxu1 %v10257_v13 }
 0x292   :  { %v12894_v15 = vadd.f32 %v6282_v50, %v12430_v57  ;;  %v12897_v17 = vadd.f32 %v6443_v12, %v12433_v61  ;;  %6802 = vmatprep.mubr.bf16.mxu0 %v10264_v40  ;;  %6963 = vmatprep.mubr.bf16.mxu1 %v10267_v44  ;;  %v10262_v57 = vld [vmem:[%s15801_s0 + $0xc98] ss:$84 sps:$4 sm:$0xff]   ;;  %v10265_v61 = vld [vmem:[%s15801_s0 + $0x220] ss:$84 sps:$4 sm:$0xff]  }
 0x293   :  { %v6284_v27 = vpop.f32.mrf.mxu0  ;;  %v6445_v31 = vpop.f32.mrf.mxu1  ;;  %7494 = vmatpush1.bf16.msra.mxu1 %v10303_v18  ;;  %v10270_v44 = vld [vmem:[%s15801_s0 + $0xd44] ss:$84 sps:$4 sm:$0xff]   ;;  %v10331_v12 = vld [vmem:[%s15800_s1 + $0x388] sm:$0xff]  }
 0x294   :  { %7495 = vmatprep.subr.bf16.mxu1 %v15813_v47 }
 0x295   :  { %v6285_v28 = vpop.f32.mrf.mxu0  ;;  %v6446_v43 = vpop.f32.mrf.mxu1 }
 0x296   :  { %v12910_v13 = vadd.f32 %v6285_v28, %v12447_v6  ;;  %v12913_v40 = vadd.f32 %v6446_v43, %v12450_v16  ;;  %v10345_v43 = vld [vmem:[%s15800_s1 + $0x380] sm:$0xff]  }
 0x297   :  { %v6287_v18 = vpop.f32.mrf.mxu0  ;;  %v6448_v50 = vpop.f32.mrf.mxu1  ;;  %7496 = vmatpush1.bf16.msra.mxu1 %v10317_v49 }
 0x298   :  { %7497 = vmatprep.subr.bf16.mxu1 %v15813_v47 }
 0x299   :  { %v6290_v6 = vpop.f32.mrf.mxu0  ;;  %v6451_v16 = vpop.f32.mrf.mxu1  ;;  %6803 = vmatmul.mubr.bf16.gmra.mxu0 %v10262_v57  ;;  %6964 = vmatmul.mubr.bf16.gmra.mxu1 %v10265_v61  ;;  %v15855_v61 = vld [vmem:[#allocation18_spill] sm:$0xff] }
 0x29a   :  { %v12926_v27 = vadd.f32 %v6290_v6, %v12464_v53  ;;  %v12929_v31 = vadd.f32 %v6451_v16, %v12467_v58  ;;  %6810 = vmatprep.mubr.bf16.mxu0 %v10270_v44  ;;  %6971 = vmatprep.mubr.bf16.mxu1 %v10273_v56  ;;  %v10268_v53 = vld [vmem:[%s15801_s0 + $0xd40] ss:$84 sps:$4 sm:$0xff]   ;;  %v10271_v58 = vld [vmem:[%s15801_s0 + $0x2c8] ss:$84 sps:$4 sm:$0xff]  }
 0x29b   :  { %v6292_v28 = vpop.f32.mrf.mxu0  ;;  %v6453_v49 = vpop.f32.mrf.mxu1  ;;  %7498 = vmatpush1.bf16.msra.mxu1 %v10331_v12  ;;  %v15857_v56 = vld [vmem:[#allocation19_spill] sm:$0xff] }
 0x29c   :  { %15854 = vst [vmem:[#allocation15_spill] sm:$0xff] %v12929_v31  ;;  %7499 = vmatprep.subr.bf16.mxu1 %v15813_v47  ;;  %v10278_v12 = vld [vmem:[%s15801_s0 + $0xdec] ss:$84 sps:$4 sm:$0xff]   ;;  %v10281_v6 = vld [vmem:[%s15801_s0 + $0x374] ss:$84 sps:$4 sm:$0xff]   ;;  %v10358_v49 = vld [vmem:[%s15800_s1 + $0x3f8] sm:$0xff]  }
 0x29d   :  { %v6293_v18 = vpop.f32.mrf.mxu0  ;;  %v6454_v57 = vpop.f32.mrf.mxu1 }
 0x29e   :  { %v12942_v44 = vadd.f32 %v6293_v18, %v15855_v61  ;;  %v12945_v50 = vadd.f32 %v6454_v57, %v15857_v56  ;;  %v15859_v61 = vld [vmem:[#allocation20_spill] sm:$0xff] }
 0x29f   :  { %v6295_v16 = vpop.f32.mrf.mxu0  ;;  %v6456_v28 = vpop.f32.mrf.mxu1  ;;  %7500 = vmatpush1.bf16.msra.mxu1 %v10345_v43 }
 0x2a0   :  { %15856 = vst [vmem:[#allocation8_spill] sm:$0xff] %v12942_v44  ;;  %15858 = vst [vmem:[#allocation16_spill] sm:$0xff] %v12945_v50  ;;  %7501 = vmatprep.subr.bf16.mxu1 %v15813_v47  ;;  %v15861_v50 = vld [vmem:[#allocation9_spill] sm:$0xff]  ;;  %v10372_v28 = vld [vmem:[%s15800_s1 + $0x3f0] sm:$0xff]  }
 0x2a1   :  { %v6298_v18 = vpop.f32.mrf.mxu0  ;;  %v6459_v57 = vpop.f32.mrf.mxu1  ;;  %6811 = vmatmul.mubr.bf16.gmra.mxu0 %v10268_v53  ;;  %6972 = vmatmul.mubr.bf16.gmra.mxu1 %v10271_v58  ;;  %v10276_v58 = vld [vmem:[%s15801_s0 + $0xde8] ss:$84 sps:$4 sm:$0xff]  }
 0x2a2   :  { %v12958_v56 = vadd.f32 %v6298_v18, %v15859_v61  ;;  %v12961_v44 = vadd.f32 %v6459_v57, %v15861_v50  ;;  %6818 = vmatprep.mubr.bf16.mxu0 %v10278_v12  ;;  %6979 = vmatprep.mubr.bf16.mxu1 %v10281_v6  ;;  %v10279_v50 = vld [vmem:[%s15801_s0 + $0x370] ss:$84 sps:$4 sm:$0xff]   ;;  %v10284_v57 = vld [vmem:[%s15801_s0 + $0xe94] ss:$84 sps:$4 sm:$0xff]  }
 0x2a3   :  { %v6300_v16 = vpop.f32.mrf.mxu0  ;;  %v6461_v43 = vpop.f32.mrf.mxu1  ;;  %7502 = vmatpush2.bf16.msra.mxu1 %v10358_v49  ;;  %v15863_v12 = vld [vmem:[#allocation2_spill] sm:$0xff]  ;;  %v10287_v61 = vld [vmem:[%s15801_s0 + $0x41c] ss:$84 sps:$4 sm:$0xff]  }
 0x2a4   :  { %15860 = vst [vmem:[#allocation17_spill] sm:$0xff] %v12958_v56  ;;  %15862 = vst [vmem:[#allocation18_spill] sm:$0xff] %v12961_v44  ;;  %7503 = vmatprep.subr.bf16.mxu1 %v15813_v47  ;;  %v15865_v49 = vld [vmem:[#allocation10_spill] sm:$0xff]  ;;  %v10386_v44 = vld [vmem:[%s15800_s1 + $0x3e8] sm:$0xff]  }
 0x2a5   :  { %v6301_v31 = vpop.f32.mrf.mxu0  ;;  %v6462_v53 = vpop.f32.mrf.mxu1 }
 0x2a6   :  { %v12974_v6 = vadd.f32 %v6301_v31, %v15863_v12  ;;  %v12977_v18 = vadd.f32 %v6462_v53, %v15865_v49  ;;  %v15867_v12 = vld [vmem:[#allocation3_spill] sm:$0xff] }
 0x2a7   :  { %v6303_v16 = vpop.f32.mrf.mxu0  ;;  %v6464_v43 = vpop.f32.mrf.mxu1  ;;  %7504 = vmatpush2.bf16.msra.mxu1 %v10372_v28 }
 0x2a8   :  { %15864 = vst [vmem:[#allocation19_spill] sm:$0xff] %v12974_v6  ;;  %15866 = vst [vmem:[#allocation20_spill] sm:$0xff] %v12977_v18  ;;  %7505 = vmatprep.subr.bf16.mxu1 %v15813_v47  ;;  %v15869_v18 = vld [vmem:[#allocation11_spill] sm:$0xff] }
 0x2a9   :  { %v6306_v31 = vpop.f32.mrf.mxu0  ;;  %v6467_v53 = vpop.f32.mrf.mxu1  ;;  %6819 = vmatmul.mubr.bf16.gmra.mxu0 %v10276_v58  ;;  %6980 = vmatmul.mubr.bf16.gmra.mxu1 %v10279_v50  ;;  %v10282_v58 = vld [vmem:[%s15801_s0 + $0xe90] ss:$84 sps:$4 sm:$0xff]   ;;  %v10285_v50 = vld [vmem:[%s15801_s0 + $0x418] ss:$84 sps:$4 sm:$0xff]  }
 0x2aa   :  { %v12990_v49 = vadd.f32 %v6306_v31, %v15867_v12  ;;  %v12993_v6 = vadd.f32 %v6467_v53, %v15869_v18  ;;  %6826 = vmatprep.mubr.bf16.mxu0 %v10284_v57  ;;  %6987 = vmatprep.mubr.bf16.mxu1 %v10287_v61  ;;  %v15871_v31 = vld [vmem:[#allocation4_spill] sm:$0xff]  ;;  %v10295_v53 = vld [vmem:[%s15801_s0 + $0x4c4] ss:$84 sps:$4 sm:$0xff]  }
 0x2ab   :  { %v6308_v16 = vpop.f32.mrf.mxu0  ;;  %v6469_v28 = vpop.f32.mrf.mxu1  ;;  %7506 = vmatpush2.bf16.msra.mxu1 %v10386_v44  ;;  %v15873_v57 = vld [vmem:[#allocation12_spill] sm:$0xff] }
 0x2ac   :  { %15868 = vst [vmem:[#allocation9_spill] sm:$0xff] %v12990_v49  ;;  %15870 = vst [vmem:[#allocation2_spill] sm:$0xff] %v12993_v6  ;;  %7507 = vmatprep.subr.bf16.mxu1 %v15813_v47  ;;  %v10292_v44 = vld [vmem:[%s15801_s0 + $0xf3c] ss:$84 sps:$4 sm:$0xff]  }
 0x2ad   :  { %v6309_v43 = vpop.f32.mrf.mxu0  ;;  %v6470_v56 = vpop.f32.mrf.mxu1  ;;  %v15875_v49 = vld [vmem:[#allocation5_spill] sm:$0xff] }
 0x2ae   :  { %v13003_v18 = vadd.f32 %v6309_v43, %v15871_v31  ;;  %v13006_v61 = vadd.f32 %v6470_v56, %v15873_v57  ;;  %v15876_v31 = vld [vmem:[#allocation13_spill] sm:$0xff]  ;;  %v10400_v57 = vld [vmem:[%s15800_s1 + $0x3e0] sm:$0xff]  }
 0x2af   :  { %v6311_v12 = vpop.f32.mrf.mxu0  ;;  %v6472_v16 = vpop.f32.mrf.mxu1  ;;  %7508 = vmatpush2.bf16.msra.mxu1 %v10400_v57 }
 0x2b0   :  { %15872 = vst [vmem:[#allocation10_spill] sm:$0xff] %v13003_v18  ;;  %15874 = vst [vmem:[#allocation3_spill] sm:$0xff] %v13006_v61  ;;  %7509 = vmatprep.subr.bf16.mxu1 %v15813_v47 }
 0x2b1   :  { %v6314_v28 = vpop.f32.mrf.mxu0  ;;  %v6475_v6 = vpop.f32.mrf.mxu1  ;;  %6827 = vmatmul.mubr.bf16.gmra.mxu0 %v10282_v58  ;;  %6988 = vmatmul.mubr.bf16.gmra.mxu1 %v10285_v50  ;;  %v10290_v58 = vld [vmem:[%s15801_s0 + $0xf38] ss:$84 sps:$4 sm:$0xff]  }
 0x2b2   :  { %v13015_v43 = vadd.f32 %v6314_v28, %v15875_v49  ;;  %v13018_v56 = vadd.f32 %v6475_v6, %v15876_v31  ;;  %6834 = vmatprep.mubr.bf16.mxu0 %v10292_v44  ;;  %6995 = vmatprep.mubr.bf16.mxu1 %v10295_v53  ;;  %v10293_v6 = vld [vmem:[%s15801_s0 + $0x4c0] ss:$84 sps:$4 sm:$0xff]  }
 0x2b3   :  { %v6316_v61 = vpop.f32.mrf.mxu0  ;;  %v6477_v18 = vpop.f32.mrf.mxu1  ;;  %v15878_v49 = vld [vmem:[#allocation6_spill] sm:$0xff] }
 0x2b4   :  { %15877 = vst [vmem:[#allocation11_spill] sm:$0xff] %v13018_v56  ;;  %v15880_v44 = vld [vmem:[#allocation14_spill] sm:$0xff] }
 0x2b5   :  { %v6317_v12 = vpop.f32.mrf.mxu0  ;;  %v6478_v16 = vpop.f32.mrf.mxu1  ;;  %v10298_v18 = vld [vmem:[%s15801_s0 + $0xfe4] ss:$84 sps:$4 sm:$0xff]   ;;  %v10301_v61 = vld [vmem:[%s15801_s0 + $0x56c] ss:$84 sps:$4 sm:$0xff]  }
 0x2b6   :  { %v13031_v50 = vadd.f32 %v6317_v12, %v15878_v49  ;;  %v13034_v53 = vadd.f32 %v6478_v16, %v15880_v44 }
 0x2b7   :  { %v6319_v28 = vpop.f32.mrf.mxu0  ;;  %v6480_v31 = vpop.f32.mrf.mxu1 }
 0x2b8   :  { %15879 = vst [vmem:[#allocation4_spill] sm:$0xff] %v13031_v50  ;;  %15881 = vst [vmem:[#allocation12_spill] sm:$0xff] %v13034_v53  ;;  %v10296_v28 = vld [vmem:[%s15801_s0 + $0xfe0] ss:$84 sps:$4 sm:$0xff]  }
 0x2b9   :  { %v6322_v57 = vpop.f32.mrf.mxu0  ;;  %v6483_v56 = vpop.f32.mrf.mxu1  ;;  %6835 = vmatmul.mubr.bf16.gmra.mxu0 %v10290_v58  ;;  %6996 = vmatmul.mubr.bf16.gmra.mxu1 %v10293_v6  ;;  %v10299_v58 = vld [vmem:[%s15801_s0 + $0x568] ss:$84 sps:$4 sm:$0xff]  }
 0x2ba   :  { %v13043_v12 = vadd.f32 %v6322_v57, %v12594_v39  ;;  %v13046_v16 = vadd.f32 %v6483_v56, %v12597_v21  ;;  %6842 = vmatprep.mubr.bf16.mxu0 %v10298_v18  ;;  %7003 = vmatprep.mubr.bf16.mxu1 %v10301_v61  ;;  %v10306_v56 = vld [vmem:[%s15801_s0 + $0x108c] ss:$84 sps:$4 sm:$0xff]   ;;  %v10309_v6 = vld [vmem:[%s15801_s0 + $0x614] ss:$84 sps:$4 sm:$0xff]  }
 0x2bb   :  { %v6324_v49 = vpop.f32.mrf.mxu0  ;;  %v6485_v44 = vpop.f32.mrf.mxu1 }
 0x2bd   :  { %v6325_v53 = vpop.f32.mrf.mxu0  ;;  %v6486_v50 = vpop.f32.mrf.mxu1 }
 0x2be   :  { %v13055_v39 = vadd.f32 %v6325_v53, %v12607_v29  ;;  %v13058_v21 = vadd.f32 %v6486_v50, %v12610_v32  ;;  %v10414_v50 = vld [vmem:[%s15800_s1 + $0x3d8] sm:$0xff]  }
 0x2bf   :  { %v6327_v18 = vpop.f32.mrf.mxu0  ;;  %v6488_v61 = vpop.f32.mrf.mxu1  ;;  %7510 = vmatpush2.bf16.msra.mxu1 %v10414_v50 }
 0x2c0   :  { %7511 = vmatprep.subr.bf16.mxu1 %v15813_v47 }
 0x2c1   :  { %v6491_v31 = vpop.f32.mrf.mxu1  ;;  %v6652_v57 = vpop.f32.mrf.mxu0  ;;  %6843 = vmatmul.mubr.bf16.gmra.mxu0 %v10296_v28  ;;  %7004 = vmatmul.mubr.bf16.gmra.mxu1 %v10299_v58  ;;  %v10304_v28 = vld [vmem:[%s15801_s0 + $0x1088] ss:$84 sps:$4 sm:$0xff]  }
 0x2c2   :  { %v13067_v29 = vadd.f32 %v6491_v31, %v12619_v38  ;;  %v13070_v32 = vadd.f32 %v6652_v57, %v12622_v30  ;;  %6850 = vmatprep.mubr.bf16.mxu0 %v10306_v56  ;;  %7011 = vmatprep.mubr.bf16.mxu1 %v10309_v6  ;;  %v10307_v38 = vld [vmem:[%s15801_s0 + $0x610] ss:$84 sps:$4 sm:$0xff]   ;;  %v10312_v56 = vld [vmem:[%s15801_s0 + $0x1134] ss:$84 sps:$4 sm:$0xff]  }
 0x2c3   :  { %v6493_v53 = vpop.f32.mrf.mxu1  ;;  %v6654_v49 = vpop.f32.mrf.mxu0  ;;  %v10315_v6 = vld [vmem:[%s15801_s0 + $0x6bc] ss:$84 sps:$4 sm:$0xff]  }
 0x2c5   :  { %v6494_v44 = vpop.f32.mrf.mxu1  ;;  %v6655_v18 = vpop.f32.mrf.mxu0 }
 0x2c6   :  { %v13083_v30 = vadd.f32 %v6494_v44, %v12635_v34  ;;  %v13086_v58 = vadd.f32 %v6655_v18, %v12638_v26 }
 0x2c7   :  { %v6496_v61 = vpop.f32.mrf.mxu1  ;;  %v6657_v31 = vpop.f32.mrf.mxu0 }
 0x2c8   :  { %v10310_v61 = vld [vmem:[%s15801_s0 + $0x1130] ss:$84 sps:$4 sm:$0xff]  }
 0x2c9   :  { %v6499_v57 = vpop.f32.mrf.mxu1  ;;  %v6660_v50 = vpop.f32.mrf.mxu0  ;;  %6851 = vmatmul.mubr.bf16.gmra.mxu0 %v10304_v28  ;;  %7012 = vmatmul.mubr.bf16.gmra.mxu1 %v10307_v38  ;;  %v10313_v28 = vld [vmem:[%s15801_s0 + $0x6b8] ss:$84 sps:$4 sm:$0xff]   ;;  %v10320_v38 = vld [vmem:[%s15801_s0 + $0x11dc] ss:$84 sps:$4 sm:$0xff]  }
 0x2ca   :  { %v13095_v34 = vadd.f32 %v6499_v57, %v12647_v2  ;;  %v13098_v26 = vadd.f32 %v6660_v50, %v12650_v42  ;;  %6858 = vmatprep.mubr.bf16.mxu0 %v10312_v56  ;;  %7019 = vmatprep.mubr.bf16.mxu1 %v10315_v6  ;;  %v10323_v56 = vld [vmem:[%s15801_s0 + $0x764] ss:$84 sps:$4 sm:$0xff]  }
 0x2cb   :  { %v6501_v53 = vpop.f32.mrf.mxu1  ;;  %v6662_v49 = vpop.f32.mrf.mxu0 }
 0x2cc   :  { %v10428_v53 = vld [vmem:[%s15800_s1 + $0x3d0] sm:$0xff]  }
 0x2cd   :  { %v6502_v44 = vpop.f32.mrf.mxu1  ;;  %v6663_v18 = vpop.f32.mrf.mxu0  ;;  %7512 = vmatpush2.bf16.msra.mxu1 %v10428_v53 }
 0x2ce   :  { %v13107_v2 = vadd.f32 %v6502_v44, %v12659_v51  ;;  %v13110_v42 = vadd.f32 %v6663_v18, %v12662_v4  ;;  %7513 = vmatprep.subr.bf16.mxu1 %v15813_v47 }
 0x2cf   :  { %v6504_v6 = vpop.f32.mrf.mxu1  ;;  %v6665_v31 = vpop.f32.mrf.mxu0 }
 0x2d0   :  { %v10329_v31 = vld [vmem:[%s15801_s0 + $0x80c] ss:$84 sps:$4 sm:$0xff]  }
 0x2d1   :  { %v6507_v57 = vpop.f32.mrf.mxu1  ;;  %v6668_v50 = vpop.f32.mrf.mxu0  ;;  %6859 = vmatmul.mubr.bf16.gmra.mxu0 %v10310_v61  ;;  %7020 = vmatmul.mubr.bf16.gmra.mxu1 %v10313_v28  ;;  %v10318_v61 = vld [vmem:[%s15801_s0 + $0x11d8] ss:$84 sps:$4 sm:$0xff]  }
 0x2d2   :  { %v13119_v51 = vadd.f32 %v6507_v57, %v12671_v9  ;;  %v13122_v4 = vadd.f32 %v6668_v50, %v12674_v19  ;;  %6866 = vmatprep.mubr.bf16.mxu0 %v10320_v38  ;;  %7027 = vmatprep.mubr.bf16.mxu1 %v10323_v56  ;;  %v10321_v9 = vld [vmem:[%s15801_s0 + $0x760] ss:$84 sps:$4 sm:$0xff]   ;;  %v15882_v28 = vld [vmem:[#allocation7_spill] sm:$0xff]  ;;  %v10326_v56 = vld [vmem:[%s15801_s0 + $0x1284] ss:$84 sps:$4 sm:$0xff]  }
 0x2d3   :  { %v6509_v49 = vpop.f32.mrf.mxu1  ;;  %v6670_v44 = vpop.f32.mrf.mxu0 }
 0x2d5   :  { %v6510_v18 = vpop.f32.mrf.mxu1  ;;  %v6671_v6 = vpop.f32.mrf.mxu0 }
 0x2d6   :  { %v13135_v19 = vadd.f32 %v6510_v18, %v12687_v33  ;;  %v13138_v38 = vadd.f32 %v6671_v6, %v15882_v28 }
 0x2d7   :  { %v6512_v57 = vpop.f32.mrf.mxu1  ;;  %v6673_v50 = vpop.f32.mrf.mxu0 }
 0x2d8   :  { %15883 = vst [vmem:[#allocation5_spill] sm:$0xff] %v13138_v38  ;;  %v10324_v57 = vld [vmem:[%s15801_s0 + $0x1280] ss:$84 sps:$4 sm:$0xff]  }
 0x2d9   :  { %v6515_v53 = vpop.f32.mrf.mxu1  ;;  %v6676_v49 = vpop.f32.mrf.mxu0  ;;  %6867 = vmatmul.mubr.bf16.gmra.mxu0 %v10318_v61  ;;  %7028 = vmatmul.mubr.bf16.gmra.mxu1 %v10321_v9  ;;  %v10327_v61 = vld [vmem:[%s15801_s0 + $0x808] ss:$84 sps:$4 sm:$0xff]   ;;  %v10334_v9 = vld [vmem:[%s15801_s0 + $0x132c] ss:$84 sps:$4 sm:$0xff]  }
 0x2da   :  { %v13147_v33 = vadd.f32 %v6515_v53, %v12699_v35  ;;  %v13150_v44 = vadd.f32 %v6676_v49, %v12702_v0  ;;  %6874 = vmatprep.mubr.bf16.mxu0 %v10326_v56  ;;  %7035 = vmatprep.mubr.bf16.mxu1 %v10329_v31  ;;  %v10337_v56 = vld [vmem:[%s15801_s0 + $0x8b4] ss:$84 sps:$4 sm:$0xff]  }
 0x2db   :  { %v6517_v18 = vpop.f32.mrf.mxu1  ;;  %v6678_v6 = vpop.f32.mrf.mxu0 }
 0x2dd   :  { %v6518_v28 = vpop.f32.mrf.mxu1  ;;  %v6679_v38 = vpop.f32.mrf.mxu0 }
 0x2de   :  { %v13159_v35 = vadd.f32 %v6518_v28, %v12711_v54  ;;  %v13162_v0 = vadd.f32 %v6679_v38, %v12714_v10  ;;  %v10442_v38 = vld [vmem:[%s15800_s1 + $0x3c8] sm:$0xff]  }
 0x2df   :  { %v6520_v31 = vpop.f32.mrf.mxu1  ;;  %v6681_v50 = vpop.f32.mrf.mxu0  ;;  %7514 = vmatpush2.bf16.msra.mxu1 %v10442_v38 }
 0x2e0   :  { %7515 = vmatprep.subr.bf16.mxu1 %v15813_v47 }
 0x2e1   :  { %v6523_v53 = vpop.f32.mrf.mxu1  ;;  %v6684_v49 = vpop.f32.mrf.mxu0  ;;  %6875 = vmatmul.mubr.bf16.gmra.mxu0 %v10324_v57  ;;  %7036 = vmatmul.mubr.bf16.gmra.mxu1 %v10327_v61  ;;  %v10332_v57 = vld [vmem:[%s15801_s0 + $0x1328] ss:$84 sps:$4 sm:$0xff]  }
 0x2e2   :  { %v13171_v54 = vadd.f32 %v6523_v53, %v12723_v52  ;;  %v13174_v10 = vadd.f32 %v6684_v49, %v12726_v24  ;;  %6882 = vmatprep.mubr.bf16.mxu0 %v10334_v9  ;;  %7043 = vmatprep.mubr.bf16.mxu1 %v10337_v56  ;;  %v10335_v52 = vld [vmem:[%s15801_s0 + $0x8b0] ss:$84 sps:$4 sm:$0xff]   ;;  %v10340_v9 = vld [vmem:[%s15801_s0 + $0x13d4] ss:$84 sps:$4 sm:$0xff]  }
 0x2e3   :  { %v6525_v18 = vpop.f32.mrf.mxu1  ;;  %v6686_v6 = vpop.f32.mrf.mxu0  ;;  %v10343_v56 = vld [vmem:[%s15801_s0 + $0x95c] ss:$84 sps:$4 sm:$0xff]  }
 0x2e5   :  { %v6526_v28 = vpop.f32.mrf.mxu1  ;;  %v6687_v31 = vpop.f32.mrf.mxu0 }
 0x2e6   :  { %v13187_v24 = vadd.f32 %v6526_v28, %v12739_v41  ;;  %v13190_v61 = vadd.f32 %v6687_v31, %v12742_v22 }
 0x2e7   :  { %v6528_v50 = vpop.f32.mrf.mxu1  ;;  %v6689_v53 = vpop.f32.mrf.mxu0 }
 0x2e8   :  { %v10338_v50 = vld [vmem:[%s15801_s0 + $0x13d0] ss:$84 sps:$4 sm:$0xff]  }
 0x2e9   :  { %v6531_v49 = vpop.f32.mrf.mxu1  ;;  %v6692_v38 = vpop.f32.mrf.mxu0  ;;  %6883 = vmatmul.mubr.bf16.gmra.mxu0 %v10332_v57  ;;  %7044 = vmatmul.mubr.bf16.gmra.mxu1 %v10335_v52  ;;  %v10341_v57 = vld [vmem:[%s15801_s0 + $0x958] ss:$84 sps:$4 sm:$0xff]   ;;  %v10348_v52 = vld [vmem:[%s15801_s0 + $0x147c] ss:$84 sps:$4 sm:$0xff]  }
 0x2ea   :  { %v13199_v41 = vadd.f32 %v6531_v49, %v12751_v25  ;;  %v13202_v22 = vadd.f32 %v6692_v38, %v12754_v48  ;;  %6890 = vmatprep.mubr.bf16.mxu0 %v10340_v9  ;;  %7051 = vmatprep.mubr.bf16.mxu1 %v10343_v56  ;;  %v10351_v9 = vld [vmem:[%s15801_s0 + $0xa04] ss:$84 sps:$4 sm:$0xff]  }
 0x2eb   :  { %v6533_v18 = vpop.f32.mrf.mxu1  ;;  %v6694_v6 = vpop.f32.mrf.mxu0 }
 0x2ec   :  { %v10456_v18 = vld [vmem:[%s15800_s1 + $0x3c0] sm:$0xff]  }
 0x2ed   :  { %v6534_v28 = vpop.f32.mrf.mxu1  ;;  %v6695_v31 = vpop.f32.mrf.mxu0  ;;  %7516 = vmatpush2.bf16.msra.mxu1 %v10456_v18 }
 0x2ee   :  { %v13211_v25 = vadd.f32 %v6534_v28, %v12763_v3  ;;  %v13214_v48 = vadd.f32 %v6695_v31, %v12766_v23  ;;  %8063 = vmatprep.subr.bf16.mxu1 %v15813_v47 }
 0x2ef   :  { %v6536_v56 = vpop.f32.mrf.mxu1  ;;  %v6697_v53 = vpop.f32.mrf.mxu0 }
 0x2f1   :  { %v6539_v49 = vpop.f32.mrf.mxu1  ;;  %v6700_v38 = vpop.f32.mrf.mxu0  ;;  %6891 = vmatmul.mubr.bf16.gmra.mxu0 %v10338_v50  ;;  %7052 = vmatmul.mubr.bf16.gmra.mxu1 %v10341_v57  ;;  %v10346_v50 = vld [vmem:[%s15801_s0 + $0x1478] ss:$84 sps:$4 sm:$0xff]  }
 0x2f2   :  { %v13223_v3 = vadd.f32 %v6539_v49, %v12775_v7  ;;  %v13226_v23 = vadd.f32 %v6700_v38, %v12778_v46  ;;  %6898 = vmatprep.mubr.bf16.mxu0 %v10348_v52  ;;  %7059 = vmatprep.mubr.bf16.mxu1 %v10351_v9  ;;  %v10349_v7 = vld [vmem:[%s15801_s0 + $0xa00] ss:$84 sps:$4 sm:$0xff]  }
 0x2f3   :  { %v6541_v6 = vpop.f32.mrf.mxu1  ;;  %v6702_v28 = vpop.f32.mrf.mxu0  ;;  %v10354_v52 = vld [vmem:[%s15801_s0 + $0xaac] ss:$84 sps:$4 sm:$0xff]   ;;  %v10357_v9 = vld [vmem:[%s15801_s0 + $0x34] ss:$84 sps:$4 sm:$0xff]  }
 0x2f5   :  { %v6542_v31 = vpop.f32.mrf.mxu1  ;;  %v6703_v56 = vpop.f32.mrf.mxu0 }
 0x2f6   :  { %v13239_v46 = vadd.f32 %v6542_v31, %v12791_v5  ;;  %v13242_v57 = vadd.f32 %v6703_v56, %v12794_v36 }
 0x2f7   :  { %v6544_v53 = vpop.f32.mrf.mxu1  ;;  %v6705_v49 = vpop.f32.mrf.mxu0 }
 0x2f8   :  { %v10352_v53 = vld [vmem:[%s15801_s0 + $0xaa8] ss:$84 sps:$4 sm:$0xff]  }
 0x2f9   :  { %v6547_v38 = vpop.f32.mrf.mxu1  ;;  %v6708_v18 = vpop.f32.mrf.mxu0  ;;  %6899 = vmatmul.mubr.bf16.gmra.mxu0 %v10346_v50  ;;  %7060 = vmatmul.mubr.bf16.gmra.mxu1 %v10349_v7  ;;  %v10355_v50 = vld [vmem:[%s15801_s0 + $0x30] ss:$84 sps:$4 sm:$0xff]   ;;  %v10359_v7 = vld [vmem:[%s15800_s1 + $0x438] sm:$0xff]  }
 0x2fa   :  { %v13251_v5 = vadd.f32 %v6547_v38, %v12803_v20  ;;  %v13254_v36 = vadd.f32 %v6708_v18, %v12806_v45  ;;  %7067 = vmatprep.mubr.bf16.mxu1 %v10354_v52  ;;  %7228 = vmatprep.mubr.bf16.mxu0 %v10357_v9  ;;  %v10362_v52 = vld [vmem:[%s15801_s0 + $0xb54] ss:$84 sps:$4 sm:$0xff]   ;;  %v10365_v38 = vld [vmem:[%s15801_s0 + $0xdc] ss:$84 sps:$4 sm:$0xff]  }
 0x2fb   :  { %v6549_v6 = vpop.f32.mrf.mxu1  ;;  %v6710_v28 = vpop.f32.mrf.mxu0 }
 0x2fc   :  { %v10373_v28 = vld [vmem:[%s15800_s1 + $0x430] sm:$0xff]  }
 0x2fd   :  { %v6550_v31 = vpop.f32.mrf.mxu1  ;;  %v6711_v56 = vpop.f32.mrf.mxu0 }
 0x2fe   :  { %v13263_v20 = vadd.f32 %v6550_v31, %v12815_v63  ;;  %v13266_v45 = vadd.f32 %v6711_v56, %v12818_v59 }
 0x2ff   :  { %v6552_v9 = vpop.f32.mrf.mxu1  ;;  %v6713_v49 = vpop.f32.mrf.mxu0 }
 0x300   :  { %v10371_v49 = vld [vmem:[%s15801_s0 + $0x184] ss:$84 sps:$4 sm:$0xff]  }
 0x301   :  { %v6555_v18 = vpop.f32.mrf.mxu1  ;;  %v6716_v63 = vpop.f32.mrf.mxu0  ;;  %7068 = vmatmul.mubr.bf16.gmra.mxu1 %v10352_v53  ;;  %7229 = vmatmul.mubr.bf16.vlgmr.msra.gmra.mxu0 %v10355_v50 }
 0x302   :  { %v13278_v59 = vadd.f32 %v6555_v18, %v12830_v14  ;;  %v13281_v6 = vadd.f32 %v6716_v63, %v12833_v1  ;;  %7775 = vmatpush1.bf16.msra.mxu0 %v10359_v7  ;;  %7075 = vmatprep.mubr.bf16.mxu1 %v10362_v52  ;;  %v10360_v14 = vld [vmem:[%s15801_s0 + $0xb50] ss:$84 sps:$4 sm:$0xff]   ;;  %v10363_v1 = vld [vmem:[%s15801_s0 + $0xd8] ss:$84 sps:$4 sm:$0xff]  }
 0x303   :  { %v6557_v31 = vpop.f32.mrf.mxu1  ;;  %v6718_v56 = vpop.f32.mrf.mxu0  ;;  %7236 = vmatprep.mubr.bf16.mxu0 %v10365_v38  ;;  %7776 = vmatprep.subr.bf16.mxu0 %v15813_v47  ;;  %v10368_v52 = vld [vmem:[%s15801_s0 + $0xbfc] ss:$84 sps:$4 sm:$0xff]  }
 0x305   :  { %v6558_v9 = vpop.f32.mrf.mxu1  ;;  %v6719_v53 = vpop.f32.mrf.mxu0 }
 0x306   :  { %v13294_v50 = vadd.f32 %v6558_v9, %v12846_v8  ;;  %v13297_v7 = vadd.f32 %v6719_v53, %v12849_v37  ;;  %7777 = vmatpush1.bf16.msra.mxu0 %v10373_v28  ;;  %v10387_v8 = vld [vmem:[%s15800_s1 + $0x428] sm:$0xff]   ;;  %v10401_v53 = vld [vmem:[%s15800_s1 + $0x420] sm:$0xff]  }
 0x307   :  { %v6560_v38 = vpop.f32.mrf.mxu1  ;;  %v6721_v18 = vpop.f32.mrf.mxu0  ;;  %7778 = vmatprep.subr.bf16.mxu0 %v15813_v47 }
 0x308   :  { %v10379_v18 = vld [vmem:[%s15801_s0 + $0x22c] ss:$84 sps:$4 sm:$0xff]  }
 0x309   :  { %v6563_v63 = vpop.f32.mrf.mxu1  ;;  %v6724_v37 = vpop.f32.mrf.mxu0  ;;  %7076 = vmatmul.mubr.bf16.gmra.mxu1 %v10360_v14  ;;  %7237 = vmatmul.mubr.bf16.gmra.mxu0 %v10363_v1 }
 0x30a   :  { %v13310_v31 = vadd.f32 %v6563_v63, %v12862_v60  ;;  %v13313_v56 = vadd.f32 %v6724_v37, %v12865_v11  ;;  %7083 = vmatprep.mubr.bf16.mxu1 %v10368_v52  ;;  %7244 = vmatprep.mubr.bf16.mxu0 %v10371_v49  ;;  %v10366_v60 = vld [vmem:[%s15801_s0 + $0xbf8] ss:$84 sps:$4 sm:$0xff]   ;;  %v10369_v11 = vld [vmem:[%s15801_s0 + $0x180] ss:$84 sps:$4 sm:$0xff]  }
 0x30b   :  { %v6565_v28 = vpop.f32.mrf.mxu1  ;;  %v6726_v9 = vpop.f32.mrf.mxu0  ;;  %7779 = vmatpush1.bf16.msra.mxu0 %v10387_v8  ;;  %v10376_v49 = vld [vmem:[%s15801_s0 + $0xca4] ss:$84 sps:$4 sm:$0xff]  }
 0x30c   :  { %7780 = vmatprep.subr.bf16.mxu0 %v15813_v47  ;;  %v10415_v37 = vld [vmem:[%s15800_s1 + $0x418] sm:$0xff]  }
 0x30d   :  { %v6566_v38 = vpop.f32.mrf.mxu1  ;;  %v6727_v14 = vpop.f32.mrf.mxu0 }
 0x30e   :  { %v13326_v1 = vadd.f32 %v6566_v38, %v12878_v62  ;;  %v13329_v52 = vadd.f32 %v6727_v14, %v12881_v55  ;;  %v10429_v14 = vld [vmem:[%s15800_s1 + $0x410] sm:$0xff]  }
 0x30f   :  { %v6568_v8 = vpop.f32.mrf.mxu1  ;;  %v6729_v63 = vpop.f32.mrf.mxu0  ;;  %7781 = vmatpush1.bf16.msra.mxu0 %v10401_v53 }
 0x310   :  { %7782 = vmatprep.subr.bf16.mxu0 %v15813_v47  ;;  %v10385_v63 = vld [vmem:[%s15801_s0 + $0x2d4] ss:$84 sps:$4 sm:$0xff]  }
 0x311   :  { %v6571_v62 = vpop.f32.mrf.mxu1  ;;  %v6732_v55 = vpop.f32.mrf.mxu0  ;;  %7084 = vmatmul.mubr.bf16.gmra.mxu1 %v10366_v60  ;;  %7245 = vmatmul.mubr.bf16.gmra.mxu0 %v10369_v11 }
 0x312   :  { %v13342_v28 = vadd.f32 %v6571_v62, %v12894_v15  ;;  %v13345_v9 = vadd.f32 %v6732_v55, %v12897_v17  ;;  %7091 = vmatprep.mubr.bf16.mxu1 %v10376_v49  ;;  %7252 = vmatprep.mubr.bf16.mxu0 %v10379_v18  ;;  %v10374_v15 = vld [vmem:[%s15801_s0 + $0xca0] ss:$84 sps:$4 sm:$0xff]   ;;  %v10377_v17 = vld [vmem:[%s15801_s0 + $0x228] ss:$84 sps:$4 sm:$0xff]  }
 0x313   :  { %v6573_v38 = vpop.f32.mrf.mxu1  ;;  %v6734_v53 = vpop.f32.mrf.mxu0  ;;  %7783 = vmatpush1.bf16.msra.mxu0 %v10415_v37  ;;  %v10382_v18 = vld [vmem:[%s15801_s0 + $0xd4c] ss:$84 sps:$4 sm:$0xff]  }
 0x314   :  { %7784 = vmatprep.subr.bf16.mxu0 %v15813_v47  ;;  %v10443_v55 = vld [vmem:[%s15800_s1 + $0x408] sm:$0xff]  }
 0x315   :  { %v6574_v8 = vpop.f32.mrf.mxu1  ;;  %v6735_v60 = vpop.f32.mrf.mxu0  ;;  %v15885_v53 = vld [vmem:[#allocation15_spill] sm:$0xff] }
 0x316   :  { %v13358_v11 = vadd.f32 %v6574_v8, %v12910_v13  ;;  %v13361_v49 = vadd.f32 %v6735_v60, %v12913_v40 }
 0x317   :  { %v6576_v37 = vpop.f32.mrf.mxu1  ;;  %v6737_v62 = vpop.f32.mrf.mxu0  ;;  %7785 = vmatpush1.bf16.msra.mxu0 %v10429_v14 }
 0x318   :  { %7786 = vmatprep.subr.bf16.mxu0 %v15813_v47  ;;  %v10457_v37 = vld [vmem:[%s15800_s1 + $0x400] sm:$0xff]  }
 0x319   :  { %v6579_v13 = vpop.f32.mrf.mxu1  ;;  %v6740_v40 = vpop.f32.mrf.mxu0  ;;  %7092 = vmatmul.mubr.bf16.gmra.mxu1 %v10374_v15  ;;  %7253 = vmatmul.mubr.bf16.gmra.mxu0 %v10377_v17  ;;  %v10383_v17 = vld [vmem:[%s15801_s0 + $0x2d0] ss:$84 sps:$4 sm:$0xff]  }
 0x31a   :  { %v13374_v38 = vadd.f32 %v6579_v13, %v12926_v27  ;;  %v13377_v8 = vadd.f32 %v6740_v40, %v15885_v53  ;;  %7099 = vmatprep.mubr.bf16.mxu1 %v10382_v18  ;;  %7260 = vmatprep.mubr.bf16.mxu0 %v10385_v63  ;;  %v10380_v27 = vld [vmem:[%s15801_s0 + $0xd48] ss:$84 sps:$4 sm:$0xff]   ;;  %v15887_v18 = vld [vmem:[#allocation8_spill] sm:$0xff] }
 0x31b   :  { %v6581_v60 = vpop.f32.mrf.mxu1  ;;  %v6742_v14 = vpop.f32.mrf.mxu0  ;;  %7787 = vmatpush1.bf16.msra.mxu0 %v10443_v55  ;;  %v15889_v55 = vld [vmem:[#allocation16_spill] sm:$0xff] }
 0x31c   :  { %15884 = vst [vmem:[#allocation13_spill] sm:$0xff] %v13374_v38  ;;  %15886 = vst [vmem:[#allocation6_spill] sm:$0xff] %v13377_v8  ;;  %7788 = vmatprep.subr.bf16.mxu0 %v15813_v47  ;;  %v10390_v40 = vld [vmem:[%s15801_s0 + $0xdf4] ss:$84 sps:$4 sm:$0xff]   ;;  %v10393_v53 = vld [vmem:[%s15801_s0 + $0x37c] ss:$84 sps:$4 sm:$0xff]  }
 0x31d   :  { %v6582_v62 = vpop.f32.mrf.mxu1  ;;  %v6743_v15 = vpop.f32.mrf.mxu0  ;;  %v10470_v8 = vld [vmem:[%s15800_s1 + $0x478] sm:$0xff]  }
 0x31e   :  { %v13390_v63 = vadd.f32 %v6582_v62, %v15887_v18  ;;  %v13393_v13 = vadd.f32 %v6743_v15, %v15889_v55  ;;  %v15891_v18 = vld [vmem:[#allocation17_spill] sm:$0xff] }
 0x31f   :  { %v6584_v60 = vpop.f32.mrf.mxu1  ;;  %v6745_v14 = vpop.f32.mrf.mxu0  ;;  %7789 = vmatpush1.bf16.msra.mxu0 %v10457_v37 }
 0x320   :  { %15888 = vst [vmem:[#allocation14_spill] sm:$0xff] %v13390_v63  ;;  %15890 = vst [vmem:[#allocation7_spill] sm:$0xff] %v13393_v13  ;;  %7790 = vmatprep.subr.bf16.mxu0 %v15813_v47  ;;  %v15893_v13 = vld [vmem:[#allocation18_spill] sm:$0xff]  ;;  %v10484_v14 = vld [vmem:[%s15800_s1 + $0x470] sm:$0xff]  }
 0x321   :  { %v6587_v62 = vpop.f32.mrf.mxu1  ;;  %v6748_v15 = vpop.f32.mrf.mxu0  ;;  %7100 = vmatmul.mubr.bf16.gmra.mxu1 %v10380_v27  ;;  %7261 = vmatmul.mubr.bf16.gmra.mxu0 %v10383_v17  ;;  %v10388_v17 = vld [vmem:[%s15801_s0 + $0xdf0] ss:$84 sps:$4 sm:$0xff]  }
 0x322   :  { %v13406_v55 = vadd.f32 %v6587_v62, %v15891_v18  ;;  %v13409_v63 = vadd.f32 %v6748_v15, %v15893_v13  ;;  %7107 = vmatprep.mubr.bf16.mxu1 %v10390_v40  ;;  %7268 = vmatprep.mubr.bf16.mxu0 %v10393_v53  ;;  %v10391_v13 = vld [vmem:[%s15801_s0 + $0x378] ss:$84 sps:$4 sm:$0xff]   ;;  %v10396_v15 = vld [vmem:[%s15801_s0 + $0xe9c] ss:$84 sps:$4 sm:$0xff]  }
 0x323   :  { %v6589_v60 = vpop.f32.mrf.mxu1  ;;  %v6750_v37 = vpop.f32.mrf.mxu0  ;;  %7791 = vmatpush2.bf16.msra.mxu0 %v10470_v8  ;;  %v15895_v40 = vld [vmem:[#allocation19_spill] sm:$0xff]  ;;  %v15897_v8 = vld [vmem:[#allocation20_spill] sm:$0xff]  ;;  %v10399_v18 = vld [vmem:[%s15801_s0 + $0x424] ss:$84 sps:$4 sm:$0xff]  }
 0x324   :  { %15892 = vst [vmem:[#allocation15_spill] sm:$0xff] %v13406_v55  ;;  %15894 = vst [vmem:[#allocation8_spill] sm:$0xff] %v13409_v63  ;;  %7792 = vmatprep.subr.bf16.mxu0 %v15813_v47  ;;  %v10498_v63 = vld [vmem:[%s15800_s1 + $0x468] sm:$0xff]  }
 0x325   :  { %v6590_v38 = vpop.f32.mrf.mxu1  ;;  %v6751_v27 = vpop.f32.mrf.mxu0 }
 0x326   :  { %v13422_v53 = vadd.f32 %v6590_v38, %v15895_v40  ;;  %v13425_v62 = vadd.f32 %v6751_v27, %v15897_v8  ;;  %v15899_v40 = vld [vmem:[#allocation9_spill] sm:$0xff] }
 0x327   :  { %v6592_v60 = vpop.f32.mrf.mxu1  ;;  %v6753_v37 = vpop.f32.mrf.mxu0  ;;  %7793 = vmatpush2.bf16.msra.mxu0 %v10484_v14 }
 0x328   :  { %15896 = vst [vmem:[#allocation16_spill] sm:$0xff] %v13422_v53  ;;  %15898 = vst [vmem:[#allocation17_spill] sm:$0xff] %v13425_v62  ;;  %7794 = vmatprep.subr.bf16.mxu0 %v15813_v47  ;;  %v15900_v62 = vld [vmem:[#allocation2_spill] sm:$0xff] }
 0x329   :  { %v6595_v38 = vpop.f32.mrf.mxu1  ;;  %v6756_v27 = vpop.f32.mrf.mxu0  ;;  %7108 = vmatmul.mubr.bf16.gmra.mxu1 %v10388_v17  ;;  %7269 = vmatmul.mubr.bf16.gmra.mxu0 %v10391_v13  ;;  %v10394_v17 = vld [vmem:[%s15801_s0 + $0xe98] ss:$84 sps:$4 sm:$0xff]   ;;  %v10397_v13 = vld [vmem:[%s15801_s0 + $0x420] ss:$84 sps:$4 sm:$0xff]  }
 0x32a   :  { %v13438_v8 = vadd.f32 %v6595_v38, %v15899_v40  ;;  %v13441_v53 = vadd.f32 %v6756_v27, %v15900_v62  ;;  %7115 = vmatprep.mubr.bf16.mxu1 %v10396_v15  ;;  %7276 = vmatprep.mubr.bf16.mxu0 %v10399_v18  ;;  %v15902_v38 = vld [vmem:[#allocation10_spill] sm:$0xff]  ;;  %v15904_v15 = vld [vmem:[#allocation3_spill] sm:$0xff] }
 0x32b   :  { %v6597_v60 = vpop.f32.mrf.mxu1  ;;  %v6758_v14 = vpop.f32.mrf.mxu0  ;;  %7795 = vmatpush2.bf16.msra.mxu0 %v10498_v63  ;;  %v10404_v63 = vld [vmem:[%s15801_s0 + $0xf44] ss:$84 sps:$4 sm:$0xff]   ;;  %v10407_v27 = vld [vmem:[%s15801_s0 + $0x4cc] ss:$84 sps:$4 sm:$0xff]  }
 0x32c   :  { %15901 = vst [vmem:[#allocation18_spill] sm:$0xff] %v13441_v53  ;;  %7796 = vmatprep.subr.bf16.mxu0 %v15813_v47 }
 0x32d   :  { %v6598_v37 = vpop.f32.mrf.mxu1  ;;  %v6759_v55 = vpop.f32.mrf.mxu0 }
 0x32e   :  { %v13451_v62 = vadd.f32 %v6598_v37, %v15902_v38  ;;  %v13454_v18 = vadd.f32 %v6759_v55, %v15904_v15  ;;  %v15906_v38 = vld [vmem:[#allocation11_spill] sm:$0xff]  ;;  %v10512_v15 = vld [vmem:[%s15800_s1 + $0x460] sm:$0xff]  }
 0x32f   :  { %v6600_v40 = vpop.f32.mrf.mxu1  ;;  %v6761_v60 = vpop.f32.mrf.mxu0  ;;  %7797 = vmatpush2.bf16.msra.mxu0 %v10512_v15 }
 0x330   :  { %15903 = vst [vmem:[#allocation19_spill] sm:$0xff] %v13451_v62  ;;  %15905 = vst [vmem:[#allocation20_spill] sm:$0xff] %v13454_v18  ;;  %7798 = vmatprep.subr.bf16.mxu0 %v15813_v47 }
 0x331   :  { %v6603_v14 = vpop.f32.mrf.mxu1  ;;  %v6764_v53 = vpop.f32.mrf.mxu0  ;;  %7116 = vmatmul.mubr.bf16.gmra.mxu1 %v10394_v17  ;;  %7277 = vmatmul.mubr.bf16.gmra.mxu0 %v10397_v13  ;;  %v10402_v17 = vld [vmem:[%s15801_s0 + $0xf40] ss:$84 sps:$4 sm:$0xff]  }
 0x332   :  { %v13463_v37 = vadd.f32 %v6603_v14, %v13015_v43  ;;  %v13466_v55 = vadd.f32 %v6764_v53, %v15906_v38  ;;  %7123 = vmatprep.mubr.bf16.mxu1 %v10404_v63  ;;  %7284 = vmatprep.mubr.bf16.mxu0 %v10407_v27  ;;  %v10405_v43 = vld [vmem:[%s15801_s0 + $0x4c8] ss:$84 sps:$4 sm:$0xff]   ;;  %v15908_v53 = vld [vmem:[#allocation4_spill] sm:$0xff] }
 0x333   :  { %v6605_v18 = vpop.f32.mrf.mxu1  ;;  %v6766_v62 = vpop.f32.mrf.mxu0  ;;  %v15910_v63 = vld [vmem:[#allocation12_spill] sm:$0xff] }
 0x334   :  { %15907 = vst [vmem:[#allocation9_spill] sm:$0xff] %v13466_v55  ;;  %v10410_v62 = vld [vmem:[%s15801_s0 + $0xfec] ss:$84 sps:$4 sm:$0xff]   ;;  %v10413_v18 = vld [vmem:[%s15801_s0 + $0x574] ss:$84 sps:$4 sm:$0xff]  }
 0x335   :  { %v6606_v40 = vpop.f32.mrf.mxu1  ;;  %v6767_v60 = vpop.f32.mrf.mxu0 }
 0x336   :  { %v13479_v13 = vadd.f32 %v6606_v40, %v15908_v53  ;;  %v13482_v27 = vadd.f32 %v6767_v60, %v15910_v63 }
 0x337   :  { %v6608_v14 = vpop.f32.mrf.mxu1  ;;  %v6769_v38 = vpop.f32.mrf.mxu0 }
 0x338   :  { %15909 = vst [vmem:[#allocation2_spill] sm:$0xff] %v13479_v13  ;;  %15911 = vst [vmem:[#allocation10_spill] sm:$0xff] %v13482_v27  ;;  %v10408_v14 = vld [vmem:[%s15801_s0 + $0xfe8] ss:$84 sps:$4 sm:$0xff]  }
 0x339   :  { %v6611_v15 = vpop.f32.mrf.mxu1  ;;  %v6772_v55 = vpop.f32.mrf.mxu0  ;;  %7124 = vmatmul.mubr.bf16.gmra.mxu1 %v10402_v17  ;;  %7285 = vmatmul.mubr.bf16.gmra.mxu0 %v10405_v43  ;;  %v10411_v17 = vld [vmem:[%s15801_s0 + $0x570] ss:$84 sps:$4 sm:$0xff]  }
 0x33a   :  { %v13491_v40 = vadd.f32 %v6611_v15, %v13043_v12  ;;  %v13494_v60 = vadd.f32 %v6772_v55, %v13046_v16  ;;  %7131 = vmatprep.mubr.bf16.mxu1 %v10410_v62  ;;  %7292 = vmatprep.mubr.bf16.mxu0 %v10413_v18  ;;  %v10418_v55 = vld [vmem:[%s15801_s0 + $0x1094] ss:$84 sps:$4 sm:$0xff]   ;;  %v10421_v43 = vld [vmem:[%s15801_s0 + $0x61c] ss:$84 sps:$4 sm:$0xff]  }
 0x33b   :  { %v6613_v53 = vpop.f32.mrf.mxu1  ;;  %v6774_v63 = vpop.f32.mrf.mxu0 }
 0x33d   :  { %v6614_v27 = vpop.f32.mrf.mxu1  ;;  %v6775_v13 = vpop.f32.mrf.mxu0 }
 0x33e   :  { %v13503_v12 = vadd.f32 %v6614_v27, %v13055_v39  ;;  %v13506_v16 = vadd.f32 %v6775_v13, %v13058_v21  ;;  %v10526_v13 = vld [vmem:[%s15800_s1 + $0x458] sm:$0xff]  }
 0x33f   :  { %v6616_v62 = vpop.f32.mrf.mxu1  ;;  %v6777_v18 = vpop.f32.mrf.mxu0  ;;  %7799 = vmatpush2.bf16.msra.mxu0 %v10526_v13 }
 0x340   :  { %7800 = vmatprep.subr.bf16.mxu0 %v15813_v47 }
 0x341   :  { %v6780_v38 = vpop.f32.mrf.mxu0  ;;  %v6941_v15 = vpop.f32.mrf.mxu1  ;;  %7132 = vmatmul.mubr.bf16.gmra.mxu1 %v10408_v14  ;;  %7293 = vmatmul.mubr.bf16.gmra.mxu0 %v10411_v17  ;;  %v10416_v14 = vld [vmem:[%s15801_s0 + $0x1090] ss:$84 sps:$4 sm:$0xff]  }
 0x342   :  { %v13515_v39 = vadd.f32 %v6780_v38, %v13067_v29  ;;  %v13518_v21 = vadd.f32 %v6941_v15, %v13070_v32  ;;  %7139 = vmatprep.mubr.bf16.mxu1 %v10418_v55  ;;  %7300 = vmatprep.mubr.bf16.mxu0 %v10421_v43  ;;  %v10419_v29 = vld [vmem:[%s15801_s0 + $0x618] ss:$84 sps:$4 sm:$0xff]   ;;  %v10424_v55 = vld [vmem:[%s15801_s0 + $0x113c] ss:$84 sps:$4 sm:$0xff]  }
 0x343   :  { %v6782_v27 = vpop.f32.mrf.mxu0  ;;  %v6943_v53 = vpop.f32.mrf.mxu1  ;;  %v10427_v43 = vld [vmem:[%s15801_s0 + $0x6c4] ss:$84 sps:$4 sm:$0xff]  }
 0x345   :  { %v6783_v63 = vpop.f32.mrf.mxu0  ;;  %v6944_v62 = vpop.f32.mrf.mxu1 }
 0x346   :  { %v13531_v32 = vadd.f32 %v6783_v63, %v13083_v30  ;;  %v13534_v17 = vadd.f32 %v6944_v62, %v13086_v58 }
 0x347   :  { %v6785_v18 = vpop.f32.mrf.mxu0  ;;  %v6946_v38 = vpop.f32.mrf.mxu1 }
 0x348   :  { %v10422_v18 = vld [vmem:[%s15801_s0 + $0x1138] ss:$84 sps:$4 sm:$0xff]  }
 0x349   :  { %v6788_v15 = vpop.f32.mrf.mxu0  ;;  %v6949_v13 = vpop.f32.mrf.mxu1  ;;  %7140 = vmatmul.mubr.bf16.gmra.mxu1 %v10416_v14  ;;  %7301 = vmatmul.mubr.bf16.gmra.mxu0 %v10419_v29  ;;  %v10425_v14 = vld [vmem:[%s15801_s0 + $0x6c0] ss:$84 sps:$4 sm:$0xff]   ;;  %v10432_v29 = vld [vmem:[%s15801_s0 + $0x11e4] ss:$84 sps:$4 sm:$0xff]  }
 0x34a   :  { %v13543_v30 = vadd.f32 %v6788_v15, %v13095_v34  ;;  %v13546_v58 = vadd.f32 %v6949_v13, %v13098_v26  ;;  %7147 = vmatprep.mubr.bf16.mxu1 %v10424_v55  ;;  %7308 = vmatprep.mubr.bf16.mxu0 %v10427_v43  ;;  %v10435_v55 = vld [vmem:[%s15801_s0 + $0x76c] ss:$84 sps:$4 sm:$0xff]  }
 0x34b   :  { %v6790_v27 = vpop.f32.mrf.mxu0  ;;  %v6951_v53 = vpop.f32.mrf.mxu1 }
 0x34c   :  { %v10540_v27 = vld [vmem:[%s15800_s1 + $0x450] sm:$0xff]  }
 0x34d   :  { %v6791_v63 = vpop.f32.mrf.mxu0  ;;  %v6952_v62 = vpop.f32.mrf.mxu1  ;;  %7801 = vmatpush2.bf16.msra.mxu0 %v10540_v27 }
 0x34e   :  { %v13555_v34 = vadd.f32 %v6791_v63, %v13107_v2  ;;  %v13558_v26 = vadd.f32 %v6952_v62, %v13110_v42  ;;  %7802 = vmatprep.subr.bf16.mxu0 %v15813_v47 }
 0x34f   :  { %v6793_v43 = vpop.f32.mrf.mxu0  ;;  %v6954_v38 = vpop.f32.mrf.mxu1 }
 0x350   :  { %v10441_v38 = vld [vmem:[%s15801_s0 + $0x814] ss:$84 sps:$4 sm:$0xff]  }
 0x351   :  { %v6796_v15 = vpop.f32.mrf.mxu0  ;;  %v6957_v13 = vpop.f32.mrf.mxu1  ;;  %7148 = vmatmul.mubr.bf16.gmra.mxu1 %v10422_v18  ;;  %7309 = vmatmul.mubr.bf16.gmra.mxu0 %v10425_v14  ;;  %v10430_v18 = vld [vmem:[%s15801_s0 + $0x11e0] ss:$84 sps:$4 sm:$0xff]   ;;  %v15912_v14 = vld [vmem:[#allocation5_spill] sm:$0xff] }
 0x352   :  { %v13567_v2 = vadd.f32 %v6796_v15, %v13119_v51  ;;  %v13570_v42 = vadd.f32 %v6957_v13, %v13122_v4  ;;  %7155 = vmatprep.mubr.bf16.mxu1 %v10432_v29  ;;  %7316 = vmatprep.mubr.bf16.mxu0 %v10435_v55  ;;  %v10433_v51 = vld [vmem:[%s15801_s0 + $0x768] ss:$84 sps:$4 sm:$0xff]   ;;  %v10438_v55 = vld [vmem:[%s15801_s0 + $0x128c] ss:$84 sps:$4 sm:$0xff]  }
 0x353   :  { %v6798_v53 = vpop.f32.mrf.mxu0  ;;  %v6959_v63 = vpop.f32.mrf.mxu1 }
 0x355   :  { %v6799_v62 = vpop.f32.mrf.mxu0  ;;  %v6960_v43 = vpop.f32.mrf.mxu1 }
 0x356   :  { %v13583_v4 = vadd.f32 %v6799_v62, %v13135_v19  ;;  %v13586_v29 = vadd.f32 %v6960_v43, %v15912_v14 }
 0x357   :  { %v6801_v15 = vpop.f32.mrf.mxu0  ;;  %v6962_v13 = vpop.f32.mrf.mxu1 }
 0x358   :  { %15913 = vst [vmem:[#allocation3_spill] sm:$0xff] %v13586_v29  ;;  %v10436_v15 = vld [vmem:[%s15801_s0 + $0x1288] ss:$84 sps:$4 sm:$0xff]  }
 0x359   :  { %v6804_v27 = vpop.f32.mrf.mxu0  ;;  %v6965_v53 = vpop.f32.mrf.mxu1  ;;  %7156 = vmatmul.mubr.bf16.gmra.mxu1 %v10430_v18  ;;  %7317 = vmatmul.mubr.bf16.gmra.mxu0 %v10433_v51  ;;  %v10439_v18 = vld [vmem:[%s15801_s0 + $0x810] ss:$84 sps:$4 sm:$0xff]   ;;  %v10446_v51 = vld [vmem:[%s15801_s0 + $0x1334] ss:$84 sps:$4 sm:$0xff]  }
 0x35a   :  { %v13595_v19 = vadd.f32 %v6804_v27, %v13147_v33  ;;  %v13598_v63 = vadd.f32 %v6965_v53, %v13150_v44  ;;  %7163 = vmatprep.mubr.bf16.mxu1 %v10438_v55  ;;  %7324 = vmatprep.mubr.bf16.mxu0 %v10441_v38  ;;  %v10449_v55 = vld [vmem:[%s15801_s0 + $0x8bc] ss:$84 sps:$4 sm:$0xff]  }
 0x35b   :  { %v6806_v62 = vpop.f32.mrf.mxu0  ;;  %v6967_v43 = vpop.f32.mrf.mxu1 }
 0x35d   :  { %v6807_v14 = vpop.f32.mrf.mxu0  ;;  %v6968_v29 = vpop.f32.mrf.mxu1 }
 0x35e   :  { %v13607_v33 = vadd.f32 %v6807_v14, %v13159_v35  ;;  %v13610_v44 = vadd.f32 %v6968_v29, %v13162_v0  ;;  %v10554_v29 = vld [vmem:[%s15800_s1 + $0x448] sm:$0xff]  }
 0x35f   :  { %v6809_v38 = vpop.f32.mrf.mxu0  ;;  %v6970_v13 = vpop.f32.mrf.mxu1  ;;  %7803 = vmatpush2.bf16.msra.mxu0 %v10554_v29 }
 0x360   :  { %7804 = vmatprep.subr.bf16.mxu0 %v15813_v47 }
 0x361   :  { %v6812_v27 = vpop.f32.mrf.mxu0  ;;  %v6973_v53 = vpop.f32.mrf.mxu1  ;;  %7164 = vmatmul.mubr.bf16.gmra.mxu1 %v10436_v15  ;;  %7325 = vmatmul.mubr.bf16.gmra.mxu0 %v10439_v18  ;;  %v10444_v15 = vld [vmem:[%s15801_s0 + $0x1330] ss:$84 sps:$4 sm:$0xff]  }
 0x362   :  { %v13619_v35 = vadd.f32 %v6812_v27, %v13171_v54  ;;  %v13622_v0 = vadd.f32 %v6973_v53, %v13174_v10  ;;  %7171 = vmatprep.mubr.bf16.mxu1 %v10446_v51  ;;  %7332 = vmatprep.mubr.bf16.mxu0 %v10449_v55  ;;  %v10447_v54 = vld [vmem:[%s15801_s0 + $0x8b8] ss:$84 sps:$4 sm:$0xff]   ;;  %v10452_v51 = vld [vmem:[%s15801_s0 + $0x13dc] ss:$84 sps:$4 sm:$0xff]  }
 0x363   :  { %v6814_v62 = vpop.f32.mrf.mxu0  ;;  %v6975_v43 = vpop.f32.mrf.mxu1  ;;  %v10455_v55 = vld [vmem:[%s15801_s0 + $0x964] ss:$84 sps:$4 sm:$0xff]  }
 0x365   :  { %v6815_v14 = vpop.f32.mrf.mxu0  ;;  %v6976_v38 = vpop.f32.mrf.mxu1 }
 0x366   :  { %v13635_v10 = vadd.f32 %v6815_v14, %v13187_v24  ;;  %v13638_v18 = vadd.f32 %v6976_v38, %v13190_v61 }
 0x367   :  { %v6817_v13 = vpop.f32.mrf.mxu0  ;;  %v6978_v27 = vpop.f32.mrf.mxu1 }
 0x368   :  { %v10450_v13 = vld [vmem:[%s15801_s0 + $0x13d8] ss:$84 sps:$4 sm:$0xff]  }
 0x369   :  { %v6820_v53 = vpop.f32.mrf.mxu0  ;;  %v6981_v29 = vpop.f32.mrf.mxu1  ;;  %7172 = vmatmul.mubr.bf16.gmra.mxu1 %v10444_v15  ;;  %7333 = vmatmul.mubr.bf16.gmra.mxu0 %v10447_v54  ;;  %v10453_v15 = vld [vmem:[%s15801_s0 + $0x960] ss:$84 sps:$4 sm:$0xff]   ;;  %v10460_v54 = vld [vmem:[%s15801_s0 + $0x1484] ss:$84 sps:$4 sm:$0xff]  }
 0x36a   :  { %v13647_v24 = vadd.f32 %v6820_v53, %v13199_v41  ;;  %v13650_v61 = vadd.f32 %v6981_v29, %v13202_v22  ;;  %7179 = vmatprep.mubr.bf16.mxu1 %v10452_v51  ;;  %7340 = vmatprep.mubr.bf16.mxu0 %v10455_v55  ;;  %v10463_v51 = vld [vmem:[%s15801_s0 + $0xa0c] ss:$84 sps:$4 sm:$0xff]  }
 0x36b   :  { %v6822_v62 = vpop.f32.mrf.mxu0  ;;  %v6983_v43 = vpop.f32.mrf.mxu1 }
 0x36c   :  { %v10568_v62 = vld [vmem:[%s15800_s1 + $0x440] sm:$0xff]  }
 0x36d   :  { %v6823_v14 = vpop.f32.mrf.mxu0  ;;  %v6984_v38 = vpop.f32.mrf.mxu1  ;;  %7805 = vmatpush2.bf16.msra.mxu0 %v10568_v62 }
 0x36e   :  { %v13659_v41 = vadd.f32 %v6823_v14, %v13211_v25  ;;  %v13662_v22 = vadd.f32 %v6984_v38, %v13214_v48 }
 0x36f   :  { %v6825_v55 = vpop.f32.mrf.mxu0  ;;  %v6986_v27 = vpop.f32.mrf.mxu1 }
 0x371   :  { %v6828_v53 = vpop.f32.mrf.mxu0  ;;  %v6989_v29 = vpop.f32.mrf.mxu1  ;;  %7180 = vmatmul.mubr.bf16.gmra.mxu1 %v10450_v13  ;;  %7341 = vmatmul.mubr.bf16.gmra.mxu0 %v10453_v15  ;;  %v10458_v13 = vld [vmem:[%s15801_s0 + $0x1480] ss:$84 sps:$4 sm:$0xff]  }
 0x372   :  { %v13671_v25 = vadd.f32 %v6828_v53, %v13223_v3  ;;  %v13674_v48 = vadd.f32 %v6989_v29, %v13226_v23  ;;  %7187 = vmatprep.mubr.bf16.mxu1 %v10460_v54  ;;  %7348 = vmatprep.mubr.bf16.mxu0 %v10463_v51  ;;  %v10461_v3 = vld [vmem:[%s15801_s0 + $0xa08] ss:$84 sps:$4 sm:$0xff]  }
 0x373   :  { %v6830_v43 = vpop.f32.mrf.mxu0  ;;  %v6991_v14 = vpop.f32.mrf.mxu1  ;;  %v10466_v54 = vld [vmem:[%s15801_s0 + $0xab4] ss:$84 sps:$4 sm:$0xff]   ;;  %v10469_v51 = vld [vmem:[%s15801_s0 + $0x3c] ss:$84 sps:$4 sm:$0xff]  }
 0x375   :  { %v6831_v38 = vpop.f32.mrf.mxu0  ;;  %v6992_v55 = vpop.f32.mrf.mxu1 }
 0x376   :  { %v13686_v23 = vadd.f32 %v6831_v38, %v13239_v46  ;;  %v13689_v15 = vadd.f32 %v6992_v55, %v13242_v57 }
 0x377   :  { %v6833_v27 = vpop.f32.mrf.mxu0  ;;  %v6994_v53 = vpop.f32.mrf.mxu1 }
 0x378   :  { %v10464_v27 = vld [vmem:[%s15801_s0 + $0xab0] ss:$84 sps:$4 sm:$0xff]  }
 0x379   :  { %v6836_v29 = vpop.f32.mrf.mxu0  ;;  %v6997_v62 = vpop.f32.mrf.mxu1  ;;  %7188 = vmatmul.mubr.bf16.gmra.mxu1 %v10458_v13  ;;  %7349 = vmatmul.mubr.bf16.gmra.mxu0 %v10461_v3  ;;  %v10467_v13 = vld [vmem:[%s15801_s0 + $0x38] ss:$84 sps:$4 sm:$0xff]  }
 0x37a   :  { %v13698_v46 = vadd.f32 %v6836_v29, %v13251_v5  ;;  %v13701_v57 = vadd.f32 %v6997_v62, %v13254_v36  ;;  %7356 = vmatprep.mubr.bf16.mxu0 %v10466_v54  ;;  %7517 = vmatprep.mubr.bf16.mxu1 %v10469_v51  ;;  %v10471_v3 = vld [vmem:[%s15800_s1 + $0x4b8] sm:$0xff]  }
 0x37b   :  { %v6838_v43 = vpop.f32.mrf.mxu0  ;;  %v6999_v14 = vpop.f32.mrf.mxu1  ;;  %v10474_v54 = vld [vmem:[%s15801_s0 + $0xb5c] ss:$84 sps:$4 sm:$0xff]   ;;  %v10477_v29 = vld [vmem:[%s15801_s0 + $0xe4] ss:$84 sps:$4 sm:$0xff]  }
 0x37c   :  { %v10485_v14 = vld [vmem:[%s15800_s1 + $0x4b0] sm:$0xff]  }
 0x37d   :  { %v6839_v38 = vpop.f32.mrf.mxu0  ;;  %v7000_v55 = vpop.f32.mrf.mxu1 }
 0x37e   :  { %v13710_v5 = vadd.f32 %v6839_v38, %v13263_v20  ;;  %v13713_v36 = vadd.f32 %v7000_v55, %v13266_v45  ;;  %v13736_v38 = vld [vmem:[%s15800_s1 + $0x538] sm:$0xff]  }
 0x37f   :  { %v6841_v51 = vpop.f32.mrf.mxu0  ;;  %v7002_v53 = vpop.f32.mrf.mxu1  ;;  %9591 = vmatprep.subr.bf16.mxu0 %v13736_v38 }
 0x380   :  { %v10480_v53 = vld [vmem:[%s15801_s0 + $0xc04] ss:$84 sps:$4 sm:$0xff]  }
 0x381   :  { %v6844_v62 = vpop.f32.mrf.mxu0  ;;  %v7005_v20 = vpop.f32.mrf.mxu1  ;;  %7357 = vmatmul.mubr.bf16.gmra.mxu0 %v10464_v27  ;;  %7518 = vmatmul.mubr.bf16.vlgmr.msra.gmra.mxu1 %v10467_v13  ;;  %v10472_v13 = vld [vmem:[%s15801_s0 + $0xb58] ss:$84 sps:$4 sm:$0xff]  }
 0x382   :  { %v13725_v45 = vadd.f32 %v6844_v62, %v13278_v59  ;;  %v13728_v43 = vadd.f32 %v7005_v20, %v13281_v6  ;;  %8064 = vmatpush1.bf16.msra.mxu1 %v10471_v3  ;;  %7364 = vmatprep.mubr.bf16.mxu0 %v10474_v54  ;;  %v10475_v3 = vld [vmem:[%s15801_s0 + $0xe0] ss:$84 sps:$4 sm:$0xff]  }
 0x383   :  { %v6846_v55 = vpop.f32.mrf.mxu0  ;;  %v7007_v27 = vpop.f32.mrf.mxu1  ;;  %7525 = vmatprep.mubr.bf16.mxu1 %v10477_v29  ;;  %8065 = vmatprep.subr.bf16.mxu1 %v15813_v47  ;;  %v10483_v29 = vld [vmem:[%s15801_s0 + $0x18c] ss:$84 sps:$4 sm:$0xff]  }
 0x385   :  { %v6847_v59 = vpop.f32.mrf.mxu0  ;;  %v7008_v6 = vpop.f32.mrf.mxu1 }
 0x386   :  { %v13747_v54 = vadd.f32 %v6847_v59, %v13294_v50  ;;  %v13750_v51 = vadd.f32 %v7008_v6, %v13297_v7  ;;  %8066 = vmatpush1.bf16.msra.mxu1 %v10485_v14  ;;  %v10499_v50 = vld [vmem:[%s15800_s1 + $0x4a8] sm:$0xff]  }
 0x387   :  { %v6849_v62 = vpop.f32.mrf.mxu0  ;;  %v7010_v20 = vpop.f32.mrf.mxu1  ;;  %8067 = vmatprep.subr.bf16.mxu1 %v15813_v47 }
 0x388   :  { %v10513_v62 = vld [vmem:[%s15800_s1 + $0x4a0] sm:$0xff]  }
 0x389   :  { %v6852_v55 = vpop.f32.mrf.mxu0  ;;  %v7013_v7 = vpop.f32.mrf.mxu1  ;;  %7365 = vmatmul.mubr.bf16.gmra.mxu0 %v10472_v13  ;;  %7526 = vmatmul.mubr.bf16.gmra.mxu1 %v10475_v3 }
 0x38a   :  { %v13763_v27 = vadd.f32 %v6852_v55, %v13310_v31  ;;  %v13766_v59 = vadd.f32 %v7013_v7, %v13313_v56  ;;  %7372 = vmatprep.mubr.bf16.mxu0 %v10480_v53  ;;  %7533 = vmatprep.mubr.bf16.mxu1 %v10483_v29  ;;  %v10478_v31 = vld [vmem:[%s15801_s0 + $0xc00] ss:$84 sps:$4 sm:$0xff]   ;;  %v10481_v56 = vld [vmem:[%s15801_s0 + $0x188] ss:$84 sps:$4 sm:$0xff]  }
 0x38b   :  { %v6854_v14 = vpop.f32.mrf.mxu0  ;;  %v7015_v6 = vpop.f32.mrf.mxu1  ;;  %8068 = vmatpush1.bf16.msra.mxu1 %v10499_v50  ;;  %v10488_v29 = vld [vmem:[%s15801_s0 + $0xcac] ss:$84 sps:$4 sm:$0xff]   ;;  %v10491_v50 = vld [vmem:[%s15801_s0 + $0x234] ss:$84 sps:$4 sm:$0xff]  }
 0x38c   :  { %8069 = vmatprep.subr.bf16.mxu1 %v15813_v47  ;;  %v10527_v14 = vld [vmem:[%s15800_s1 + $0x498] sm:$0xff]  }
 0x38d   :  { %v6855_v20 = vpop.f32.mrf.mxu0  ;;  %v7016_v13 = vpop.f32.mrf.mxu1 }
 0x38e   :  { %v13779_v3 = vadd.f32 %v6855_v20, %v13326_v1  ;;  %v13782_v53 = vadd.f32 %v7016_v13, %v13329_v52 }
 0x38f   :  { %v6857_v55 = vpop.f32.mrf.mxu0  ;;  %v7018_v7 = vpop.f32.mrf.mxu1  ;;  %8070 = vmatpush1.bf16.msra.mxu1 %v10513_v62 }
 0x390   :  { %8071 = vmatprep.subr.bf16.mxu1 %v15813_v47  ;;  %v10541_v55 = vld [vmem:[%s15800_s1 + $0x490] sm:$0xff]  }
 0x391   :  { %v6860_v1 = vpop.f32.mrf.mxu0  ;;  %v7021_v52 = vpop.f32.mrf.mxu1  ;;  %7373 = vmatmul.mubr.bf16.gmra.mxu0 %v10478_v31  ;;  %7534 = vmatmul.mubr.bf16.gmra.mxu1 %v10481_v56 }
 0x392   :  { %v13795_v6 = vadd.f32 %v6860_v1, %v13342_v28  ;;  %v13798_v20 = vadd.f32 %v7021_v52, %v13345_v9  ;;  %7380 = vmatprep.mubr.bf16.mxu0 %v10488_v29  ;;  %7541 = vmatprep.mubr.bf16.mxu1 %v10491_v50  ;;  %v10486_v28 = vld [vmem:[%s15801_s0 + $0xca8] ss:$84 sps:$4 sm:$0xff]   ;;  %v10489_v9 = vld [vmem:[%s15801_s0 + $0x230] ss:$84 sps:$4 sm:$0xff]  }
 0x393   :  { %v6862_v13 = vpop.f32.mrf.mxu0  ;;  %v7023_v62 = vpop.f32.mrf.mxu1  ;;  %8072 = vmatpush1.bf16.msra.mxu1 %v10527_v14  ;;  %v10494_v50 = vld [vmem:[%s15801_s0 + $0xd54] ss:$84 sps:$4 sm:$0xff]   ;;  %v10497_v14 = vld [vmem:[%s15801_s0 + $0x2dc] ss:$84 sps:$4 sm:$0xff]  }
 0x394   :  { %8073 = vmatprep.subr.bf16.mxu1 %v15813_v47  ;;  %v10555_v13 = vld [vmem:[%s15800_s1 + $0x488] sm:$0xff]   ;;  %v15916_v62 = vld [vmem:[#allocation13_spill] sm:$0xff] }
 0x395   :  { %v6863_v7 = vpop.f32.mrf.mxu0  ;;  %v7024_v31 = vpop.f32.mrf.mxu1 }
 0x396   :  { %v13811_v56 = vadd.f32 %v6863_v7, %v13358_v11  ;;  %v13814_v29 = vadd.f32 %v7024_v31, %v13361_v49  ;;  %v15918_v31 = vld [vmem:[#allocation6_spill] sm:$0xff] }
 0x397   :  { %v6865_v1 = vpop.f32.mrf.mxu0  ;;  %v7026_v52 = vpop.f32.mrf.mxu1  ;;  %8074 = vmatpush1.bf16.msra.mxu1 %v10541_v55 }
 0x398   :  { %15914 = vst [vmem:[#allocation11_spill] sm:$0xff] %v13811_v56  ;;  %15915 = vst [vmem:[#allocation4_spill] sm:$0xff] %v13814_v29  ;;  %8075 = vmatprep.subr.bf16.mxu1 %v15813_v47  ;;  %v10569_v52 = vld [vmem:[%s15800_s1 + $0x480] sm:$0xff]  }
 0x399   :  { %v6868_v11 = vpop.f32.mrf.mxu0  ;;  %v7029_v49 = vpop.f32.mrf.mxu1  ;;  %7381 = vmatmul.mubr.bf16.gmra.mxu0 %v10486_v28  ;;  %7542 = vmatmul.mubr.bf16.gmra.mxu1 %v10489_v9  ;;  %v10492_v9 = vld [vmem:[%s15801_s0 + $0xd50] ss:$84 sps:$4 sm:$0xff]  }
 0x39a   :  { %v13827_v7 = vadd.f32 %v6868_v11, %v15916_v62  ;;  %v13830_v29 = vadd.f32 %v7029_v49, %v15918_v31  ;;  %7388 = vmatprep.mubr.bf16.mxu0 %v10494_v50  ;;  %7549 = vmatprep.mubr.bf16.mxu1 %v10497_v14  ;;  %v10495_v50 = vld [vmem:[%s15801_s0 + $0x2d8] ss:$84 sps:$4 sm:$0xff]   ;;  %v15920_v14 = vld [vmem:[#allocation14_spill] sm:$0xff]  ;;  %v10502_v62 = vld [vmem:[%s15801_s0 + $0xdfc] ss:$84 sps:$4 sm:$0xff]  }
 0x39b   :  { %v6870_v1 = vpop.f32.mrf.mxu0  ;;  %v7031_v55 = vpop.f32.mrf.mxu1  ;;  %8076 = vmatpush1.bf16.msra.mxu1 %v10555_v13  ;;  %v15922_v13 = vld [vmem:[#allocation7_spill] sm:$0xff]  ;;  %v10505_v31 = vld [vmem:[%s15801_s0 + $0x384] ss:$84 sps:$4 sm:$0xff]  }
 0x39c   :  { %15917 = vst [vmem:[#allocation12_spill] sm:$0xff] %v13827_v7  ;;  %15919 = vst [vmem:[#allocation5_spill] sm:$0xff] %v13830_v29  ;;  %8077 = vmatprep.subr.bf16.mxu1 %v15813_v47  ;;  %v10583_v29 = vld [vmem:[%s15800_s1 + $0x4f8] sm:$0xff]  }
 0x39d   :  { %v6871_v56 = vpop.f32.mrf.mxu0  ;;  %v7032_v28 = vpop.f32.mrf.mxu1 }
 0x39e   :  { %v13843_v11 = vadd.f32 %v6871_v56, %v15920_v14  ;;  %v13846_v49 = vadd.f32 %v7032_v28, %v15922_v13  ;;  %v15924_v14 = vld [vmem:[#allocation15_spill] sm:$0xff] }
 0x39f   :  { %v6873_v1 = vpop.f32.mrf.mxu0  ;;  %v7034_v55 = vpop.f32.mrf.mxu1  ;;  %8078 = vmatpush1.bf16.msra.mxu1 %v10569_v52 }
 0x3a0   :  { %15921 = vst [vmem:[#allocation13_spill] sm:$0xff] %v13843_v11  ;;  %15923 = vst [vmem:[#allocation6_spill] sm:$0xff] %v13846_v49  ;;  %8079 = vmatprep.subr.bf16.mxu1 %v15813_v47  ;;  %v15925_v49 = vld [vmem:[#allocation8_spill] sm:$0xff] }
 0x3a1   :  { %v6876_v56 = vpop.f32.mrf.mxu0  ;;  %v7037_v28 = vpop.f32.mrf.mxu1  ;;  %7389 = vmatmul.mubr.bf16.gmra.mxu0 %v10492_v9  ;;  %7550 = vmatmul.mubr.bf16.gmra.mxu1 %v10495_v50  ;;  %v10596_v55 = vld [vmem:[%s15800_s1 + $0x4f0] sm:$0xff]   ;;  %v10500_v50 = vld [vmem:[%s15801_s0 + $0xdf8] ss:$84 sps:$4 sm:$0xff]  }
 0x3a2   :  { %v13859_v13 = vadd.f32 %v6876_v56, %v15924_v14  ;;  %v13862_v11 = vadd.f32 %v7037_v28, %v15925_v49  ;;  %7396 = vmatprep.mubr.bf16.mxu0 %v10502_v62  ;;  %7557 = vmatprep.mubr.bf16.mxu1 %v10505_v31  ;;  %v10503_v49 = vld [vmem:[%s15801_s0 + $0x380] ss:$84 sps:$4 sm:$0xff]   ;;  %v10508_v28 = vld [vmem:[%s15801_s0 + $0xea4] ss:$84 sps:$4 sm:$0xff]  }
 0x3a3   :  { %v6878_v1 = vpop.f32.mrf.mxu0  ;;  %v7039_v52 = vpop.f32.mrf.mxu1  ;;  %8080 = vmatpush2.bf16.msra.mxu1 %v10583_v29  ;;  %v15927_v62 = vld [vmem:[#allocation16_spill] sm:$0xff]  ;;  %v15929_v29 = vld [vmem:[#allocation17_spill] sm:$0xff]  ;;  %v10511_v14 = vld [vmem:[%s15801_s0 + $0x42c] ss:$84 sps:$4 sm:$0xff]  }
 0x3a4   :  { %15926 = vst [vmem:[#allocation14_spill] sm:$0xff] %v13862_v11  ;;  %8081 = vmatprep.subr.bf16.mxu1 %v15813_v47  ;;  %v10610_v11 = vld [vmem:[%s15800_s1 + $0x4e8] sm:$0xff]  }
 0x3a5   :  { %v6879_v7 = vpop.f32.mrf.mxu0  ;;  %v7040_v9 = vpop.f32.mrf.mxu1 }
 0x3a6   :  { %v13875_v31 = vadd.f32 %v6879_v7, %v15927_v62  ;;  %v13878_v56 = vadd.f32 %v7040_v9, %v15929_v29  ;;  %v15931_v29 = vld [vmem:[#allocation18_spill] sm:$0xff] }
 0x3a7   :  { %v6881_v1 = vpop.f32.mrf.mxu0  ;;  %v7042_v52 = vpop.f32.mrf.mxu1  ;;  %8082 = vmatpush2.bf16.msra.mxu1 %v10596_v55 }
 0x3a8   :  { %15928 = vst [vmem:[#allocation7_spill] sm:$0xff] %v13875_v31  ;;  %15930 = vst [vmem:[#allocation15_spill] sm:$0xff] %v13878_v56  ;;  %8083 = vmatprep.subr.bf16.mxu1 %v15813_v47 }
 0x3a9   :  { %v6884_v7 = vpop.f32.mrf.mxu0  ;;  %v7045_v9 = vpop.f32.mrf.mxu1  ;;  %7397 = vmatmul.mubr.bf16.gmra.mxu0 %v10500_v50  ;;  %7558 = vmatmul.mubr.bf16.gmra.mxu1 %v10503_v49  ;;  %v10506_v50 = vld [vmem:[%s15801_s0 + $0xea0] ss:$84 sps:$4 sm:$0xff]   ;;  %v15933_v49 = vld [vmem:[#allocation19_spill] sm:$0xff] }
 0x3aa   :  { %v13891_v62 = vadd.f32 %v6884_v7, %v13438_v8  ;;  %v13894_v56 = vadd.f32 %v7045_v9, %v15931_v29  ;;  %7404 = vmatprep.mubr.bf16.mxu0 %v10508_v28  ;;  %7565 = vmatprep.mubr.bf16.mxu1 %v10511_v14  ;;  %v10509_v8 = vld [vmem:[%s15801_s0 + $0x428] ss:$84 sps:$4 sm:$0xff]   ;;  %v15935_v28 = vld [vmem:[#allocation20_spill] sm:$0xff] }
 0x3ab   :  { %v6886_v1 = vpop.f32.mrf.mxu0  ;;  %v7047_v55 = vpop.f32.mrf.mxu1  ;;  %8084 = vmatpush2.bf16.msra.mxu1 %v10610_v11  ;;  %v10516_v11 = vld [vmem:[%s15801_s0 + $0xf4c] ss:$84 sps:$4 sm:$0xff]   ;;  %v10519_v9 = vld [vmem:[%s15801_s0 + $0x4d4] ss:$84 sps:$4 sm:$0xff]  }
 0x3ac   :  { %15932 = vst [vmem:[#allocation8_spill] sm:$0xff] %v13894_v56  ;;  %8085 = vmatprep.subr.bf16.mxu1 %v15813_v47 }
 0x3ad   :  { %v6887_v52 = vpop.f32.mrf.mxu0  ;;  %v7048_v31 = vpop.f32.mrf.mxu1 }
 0x3ae   :  { %v13904_v7 = vadd.f32 %v6887_v52, %v15933_v49  ;;  %v13907_v14 = vadd.f32 %v7048_v31, %v15935_v28  ;;  %v15937_v49 = vld [vmem:[#allocation9_spill] sm:$0xff]  ;;  %v10623_v28 = vld [vmem:[%s15800_s1 + $0x4e0] sm:$0xff]  }
 0x3af   :  { %v6889_v29 = vpop.f32.mrf.mxu0  ;;  %v7050_v1 = vpop.f32.mrf.mxu1  ;;  %8086 = vmatpush2.bf16.msra.mxu1 %v10623_v28 }
 0x3b0   :  { %15934 = vst [vmem:[#allocation16_spill] sm:$0xff] %v13904_v7  ;;  %15936 = vst [vmem:[#allocation17_spill] sm:$0xff] %v13907_v14  ;;  %8087 = vmatprep.subr.bf16.mxu1 %v15813_v47 }
 0x3b1   :  { %v6892_v55 = vpop.f32.mrf.mxu0  ;;  %v7053_v56 = vpop.f32.mrf.mxu1  ;;  %7405 = vmatmul.mubr.bf16.gmra.mxu0 %v10506_v50  ;;  %7566 = vmatmul.mubr.bf16.gmra.mxu1 %v10509_v8  ;;  %v10514_v50 = vld [vmem:[%s15801_s0 + $0xf48] ss:$84 sps:$4 sm:$0xff]  }
 0x3b2   :  { %v13916_v52 = vadd.f32 %v6892_v55, %v13463_v37  ;;  %v13919_v31 = vadd.f32 %v7053_v56, %v15937_v49  ;;  %7412 = vmatprep.mubr.bf16.mxu0 %v10516_v11  ;;  %7573 = vmatprep.mubr.bf16.mxu1 %v10519_v9  ;;  %v10517_v37 = vld [vmem:[%s15801_s0 + $0x4d0] ss:$84 sps:$4 sm:$0xff]  }
 0x3b3   :  { %v6894_v14 = vpop.f32.mrf.mxu0  ;;  %v7055_v7 = vpop.f32.mrf.mxu1  ;;  %v15939_v56 = vld [vmem:[#allocation2_spill] sm:$0xff] }
 0x3b4   :  { %15938 = vst [vmem:[#allocation18_spill] sm:$0xff] %v13919_v31  ;;  %v15941_v11 = vld [vmem:[#allocation10_spill] sm:$0xff]  ;;  %v10522_v7 = vld [vmem:[%s15801_s0 + $0xff4] ss:$84 sps:$4 sm:$0xff]   ;;  %v10525_v14 = vld [vmem:[%s15801_s0 + $0x57c] ss:$84 sps:$4 sm:$0xff]  }
 0x3b5   :  { %v6895_v29 = vpop.f32.mrf.mxu0  ;;  %v7056_v1 = vpop.f32.mrf.mxu1 }
 0x3b6   :  { %v13932_v8 = vadd.f32 %v6895_v29, %v15939_v56  ;;  %v13935_v9 = vadd.f32 %v7056_v1, %v15941_v11 }
 0x3b7   :  { %v6897_v55 = vpop.f32.mrf.mxu0  ;;  %v7058_v49 = vpop.f32.mrf.mxu1 }
 0x3b8   :  { %15940 = vst [vmem:[#allocation19_spill] sm:$0xff] %v13932_v8  ;;  %15942 = vst [vmem:[#allocation20_spill] sm:$0xff] %v13935_v9  ;;  %v10520_v55 = vld [vmem:[%s15801_s0 + $0xff0] ss:$84 sps:$4 sm:$0xff]  }
 0x3b9   :  { %v6900_v28 = vpop.f32.mrf.mxu0  ;;  %v7061_v31 = vpop.f32.mrf.mxu1  ;;  %7413 = vmatmul.mubr.bf16.gmra.mxu0 %v10514_v50  ;;  %7574 = vmatmul.mubr.bf16.gmra.mxu1 %v10517_v37  ;;  %v10523_v50 = vld [vmem:[%s15801_s0 + $0x578] ss:$84 sps:$4 sm:$0xff]  }
 0x3ba   :  { %v13944_v29 = vadd.f32 %v6900_v28, %v13491_v40  ;;  %v13947_v1 = vadd.f32 %v7061_v31, %v13494_v60  ;;  %7420 = vmatprep.mubr.bf16.mxu0 %v10522_v7  ;;  %7581 = vmatprep.mubr.bf16.mxu1 %v10525_v14  ;;  %v10530_v31 = vld [vmem:[%s15801_s0 + $0x109c] ss:$84 sps:$4 sm:$0xff]   ;;  %v10533_v37 = vld [vmem:[%s15801_s0 + $0x624] ss:$84 sps:$4 sm:$0xff]  }
 0x3bb   :  { %v6902_v56 = vpop.f32.mrf.mxu0  ;;  %v7063_v11 = vpop.f32.mrf.mxu1 }
 0x3bd   :  { %v6903_v9 = vpop.f32.mrf.mxu0  ;;  %v7064_v8 = vpop.f32.mrf.mxu1 }
 0x3be   :  { %v13956_v40 = vadd.f32 %v6903_v9, %v13503_v12  ;;  %v13959_v60 = vadd.f32 %v7064_v8, %v13506_v16  ;;  %v10637_v8 = vld [vmem:[%s15800_s1 + $0x4d8] sm:$0xff]  }
 0x3bf   :  { %v6905_v7 = vpop.f32.mrf.mxu0  ;;  %v7066_v14 = vpop.f32.mrf.mxu1  ;;  %8088 = vmatpush2.bf16.msra.mxu1 %v10637_v8 }
 0x3c0   :  { %8089 = vmatprep.subr.bf16.mxu1 %v15813_v47 }
 0x3c1   :  { %v7069_v49 = vpop.f32.mrf.mxu1  ;;  %v7230_v28 = vpop.f32.mrf.mxu0  ;;  %7421 = vmatmul.mubr.bf16.gmra.mxu0 %v10520_v55  ;;  %7582 = vmatmul.mubr.bf16.gmra.mxu1 %v10523_v50  ;;  %v10528_v55 = vld [vmem:[%s15801_s0 + $0x1098] ss:$84 sps:$4 sm:$0xff]  }
 0x3c2   :  { %v13968_v12 = vadd.f32 %v7069_v49, %v13515_v39  ;;  %v13971_v16 = vadd.f32 %v7230_v28, %v13518_v21  ;;  %7428 = vmatprep.mubr.bf16.mxu0 %v10530_v31  ;;  %7589 = vmatprep.mubr.bf16.mxu1 %v10533_v37  ;;  %v10531_v39 = vld [vmem:[%s15801_s0 + $0x620] ss:$84 sps:$4 sm:$0xff]   ;;  %v10536_v31 = vld [vmem:[%s15801_s0 + $0x1144] ss:$84 sps:$4 sm:$0xff]  }
 0x3c3   :  { %v7071_v9 = vpop.f32.mrf.mxu1  ;;  %v7232_v56 = vpop.f32.mrf.mxu0  ;;  %v10539_v37 = vld [vmem:[%s15801_s0 + $0x6cc] ss:$84 sps:$4 sm:$0xff]  }
 0x3c5   :  { %v7072_v11 = vpop.f32.mrf.mxu1  ;;  %v7233_v7 = vpop.f32.mrf.mxu0 }
 0x3c6   :  { %v13984_v21 = vadd.f32 %v7072_v11, %v13531_v32  ;;  %v13987_v50 = vadd.f32 %v7233_v7, %v13534_v17 }
 0x3c7   :  { %v7074_v14 = vpop.f32.mrf.mxu1  ;;  %v7235_v49 = vpop.f32.mrf.mxu0 }
 0x3c8   :  { %v10534_v14 = vld [vmem:[%s15801_s0 + $0x1140] ss:$84 sps:$4 sm:$0xff]  }
 0x3c9   :  { %v7077_v28 = vpop.f32.mrf.mxu1  ;;  %v7238_v8 = vpop.f32.mrf.mxu0  ;;  %7429 = vmatmul.mubr.bf16.gmra.mxu0 %v10528_v55  ;;  %7590 = vmatmul.mubr.bf16.gmra.mxu1 %v10531_v39  ;;  %v10537_v55 = vld [vmem:[%s15801_s0 + $0x6c8] ss:$84 sps:$4 sm:$0xff]   ;;  %v10544_v39 = vld [vmem:[%s15801_s0 + $0x11ec] ss:$84 sps:$4 sm:$0xff]  }
 0x3ca   :  { %v13996_v32 = vadd.f32 %v7077_v28, %v13543_v30  ;;  %v13999_v17 = vadd.f32 %v7238_v8, %v13546_v58  ;;  %7436 = vmatprep.mubr.bf16.mxu0 %v10536_v31  ;;  %7597 = vmatprep.mubr.bf16.mxu1 %v10539_v37  ;;  %v10547_v31 = vld [vmem:[%s15801_s0 + $0x774] ss:$84 sps:$4 sm:$0xff]  }
 0x3cb   :  { %v7079_v9 = vpop.f32.mrf.mxu1  ;;  %v7240_v56 = vpop.f32.mrf.mxu0 }
 0x3cc   :  { %v10650_v9 = vld [vmem:[%s15800_s1 + $0x4d0] sm:$0xff]  }
 0x3cd   :  { %v7080_v11 = vpop.f32.mrf.mxu1  ;;  %v7241_v7 = vpop.f32.mrf.mxu0  ;;  %8090 = vmatpush2.bf16.msra.mxu1 %v10650_v9 }
 0x3ce   :  { %v14008_v30 = vadd.f32 %v7080_v11, %v13555_v34  ;;  %v14011_v58 = vadd.f32 %v7241_v7, %v13558_v26  ;;  %8091 = vmatprep.subr.bf16.mxu1 %v15813_v47 }
 0x3cf   :  { %v7082_v37 = vpop.f32.mrf.mxu1  ;;  %v7243_v49 = vpop.f32.mrf.mxu0 }
 0x3d0   :  { %v10553_v49 = vld [vmem:[%s15801_s0 + $0x81c] ss:$84 sps:$4 sm:$0xff]  }
 0x3d1   :  { %v7085_v28 = vpop.f32.mrf.mxu1  ;;  %v7246_v8 = vpop.f32.mrf.mxu0  ;;  %7437 = vmatmul.mubr.bf16.gmra.mxu0 %v10534_v14  ;;  %7598 = vmatmul.mubr.bf16.gmra.mxu1 %v10537_v55  ;;  %v10542_v14 = vld [vmem:[%s15801_s0 + $0x11e8] ss:$84 sps:$4 sm:$0xff]  }
 0x3d2   :  { %v14020_v34 = vadd.f32 %v7085_v28, %v13567_v2  ;;  %v14023_v26 = vadd.f32 %v7246_v8, %v13570_v42  ;;  %7444 = vmatprep.mubr.bf16.mxu0 %v10544_v39  ;;  %7605 = vmatprep.mubr.bf16.mxu1 %v10547_v31  ;;  %v10545_v2 = vld [vmem:[%s15801_s0 + $0x770] ss:$84 sps:$4 sm:$0xff]   ;;  %v15943_v55 = vld [vmem:[#allocation3_spill] sm:$0xff] }
 0x3d3   :  { %v7087_v56 = vpop.f32.mrf.mxu1  ;;  %v7248_v11 = vpop.f32.mrf.mxu0  ;;  %v10550_v31 = vld [vmem:[%s15801_s0 + $0x1294] ss:$84 sps:$4 sm:$0xff]  }
 0x3d5   :  { %v7088_v7 = vpop.f32.mrf.mxu1  ;;  %v7249_v37 = vpop.f32.mrf.mxu0 }
 0x3d6   :  { %v14036_v42 = vadd.f32 %v7088_v7, %v13583_v4  ;;  %v14039_v39 = vadd.f32 %v7249_v37, %v15943_v55 }
 0x3d7   :  { %v7090_v28 = vpop.f32.mrf.mxu1  ;;  %v7251_v8 = vpop.f32.mrf.mxu0 }
 0x3d8   :  { %15944 = vst [vmem:[#allocation9_spill] sm:$0xff] %v14039_v39  ;;  %v10548_v28 = vld [vmem:[%s15801_s0 + $0x1290] ss:$84 sps:$4 sm:$0xff]  }
 0x3d9   :  { %v7093_v9 = vpop.f32.mrf.mxu1  ;;  %v7254_v56 = vpop.f32.mrf.mxu0  ;;  %7445 = vmatmul.mubr.bf16.gmra.mxu0 %v10542_v14  ;;  %7606 = vmatmul.mubr.bf16.gmra.mxu1 %v10545_v2  ;;  %v10551_v14 = vld [vmem:[%s15801_s0 + $0x818] ss:$84 sps:$4 sm:$0xff]   ;;  %v10558_v2 = vld [vmem:[%s15801_s0 + $0x133c] ss:$84 sps:$4 sm:$0xff]  }
 0x3da   :  { %v14048_v4 = vadd.f32 %v7093_v9, %v13595_v19  ;;  %v14051_v11 = vadd.f32 %v7254_v56, %v13598_v63  ;;  %7452 = vmatprep.mubr.bf16.mxu0 %v10550_v31  ;;  %7613 = vmatprep.mubr.bf16.mxu1 %v10553_v49  ;;  %v10561_v31 = vld [vmem:[%s15801_s0 + $0x8c4] ss:$84 sps:$4 sm:$0xff]  }
 0x3db   :  { %v7095_v7 = vpop.f32.mrf.mxu1  ;;  %v7256_v37 = vpop.f32.mrf.mxu0 }
 0x3dd   :  { %v7096_v55 = vpop.f32.mrf.mxu1  ;;  %v7257_v39 = vpop.f32.mrf.mxu0 }
 0x3de   :  { %v14060_v19 = vadd.f32 %v7096_v55, %v13607_v33  ;;  %v14063_v63 = vadd.f32 %v7257_v39, %v13610_v44  ;;  %v10664_v39 = vld [vmem:[%s15800_s1 + $0x4c8] sm:$0xff]  }
 0x3df   :  { %v7098_v49 = vpop.f32.mrf.mxu1  ;;  %v7259_v8 = vpop.f32.mrf.mxu0  ;;  %8092 = vmatpush2.bf16.msra.mxu1 %v10664_v39 }
 0x3e0   :  { %8093 = vmatprep.subr.bf16.mxu1 %v15813_v47 }
 0x3e1   :  { %v7101_v9 = vpop.f32.mrf.mxu1  ;;  %v7262_v56 = vpop.f32.mrf.mxu0  ;;  %7453 = vmatmul.mubr.bf16.gmra.mxu0 %v10548_v28  ;;  %7614 = vmatmul.mubr.bf16.gmra.mxu1 %v10551_v14  ;;  %v10556_v28 = vld [vmem:[%s15801_s0 + $0x1338] ss:$84 sps:$4 sm:$0xff]  }
 0x3e2   :  { %v14072_v33 = vadd.f32 %v7101_v9, %v13619_v35  ;;  %v14075_v44 = vadd.f32 %v7262_v56, %v13622_v0  ;;  %7460 = vmatprep.mubr.bf16.mxu0 %v10558_v2  ;;  %7621 = vmatprep.mubr.bf16.mxu1 %v10561_v31  ;;  %v10559_v35 = vld [vmem:[%s15801_s0 + $0x8c0] ss:$84 sps:$4 sm:$0xff]   ;;  %v10564_v2 = vld [vmem:[%s15801_s0 + $0x13e4] ss:$84 sps:$4 sm:$0xff]  }
 0x3e3   :  { %v7103_v7 = vpop.f32.mrf.mxu1  ;;  %v7264_v37 = vpop.f32.mrf.mxu0  ;;  %v10567_v31 = vld [vmem:[%s15801_s0 + $0x96c] ss:$84 sps:$4 sm:$0xff]  }
 0x3e5   :  { %v7104_v55 = vpop.f32.mrf.mxu1  ;;  %v7265_v49 = vpop.f32.mrf.mxu0 }
 0x3e6   :  { %v14088_v0 = vadd.f32 %v7104_v55, %v13635_v10  ;;  %v14091_v14 = vadd.f32 %v7265_v49, %v13638_v18  ;;  %v10562_v49 = vld [vmem:[%s15801_s0 + $0x13e0] ss:$84 sps:$4 sm:$0xff]  }
 0x3e7   :  { %v7106_v8 = vpop.f32.mrf.mxu1  ;;  %v7267_v9 = vpop.f32.mrf.mxu0 }
 0x3e9   :  { %v7109_v56 = vpop.f32.mrf.mxu1  ;;  %v7270_v39 = vpop.f32.mrf.mxu0  ;;  %7461 = vmatmul.mubr.bf16.gmra.mxu0 %v10556_v28  ;;  %7622 = vmatmul.mubr.bf16.gmra.mxu1 %v10559_v35  ;;  %v10565_v28 = vld [vmem:[%s15801_s0 + $0x968] ss:$84 sps:$4 sm:$0xff]   ;;  %v10572_v35 = vld [vmem:[%s15801_s0 + $0x148c] ss:$84 sps:$4 sm:$0xff]  }
 0x3ea   :  { %v14100_v47 = vadd.f32 %v7109_v56, %v13647_v24  ;;  %v14103_v10 = vadd.f32 %v7270_v39, %v13650_v61  ;;  %7468 = vmatprep.mubr.bf16.mxu0 %v10564_v2  ;;  %7629 = vmatprep.mubr.bf16.mxu1 %v10567_v31  ;;  %v10575_v2 = vld [vmem:[%s15801_s0 + $0xa14] ss:$84 sps:$4 sm:$0xff]   ;;  %v10677_v39 = vld [vmem:[%s15800_s1 + $0x4c0] sm:$0xff]  }
 0x3eb   :  { %v7111_v18 = vpop.f32.mrf.mxu1  ;;  %v7272_v7 = vpop.f32.mrf.mxu0  ;;  %8094 = vmatpush2.bf16.msra.mxu1 %v10677_v39 }
 0x3ed   :  { %v7112_v37 = vpop.f32.mrf.mxu1  ;;  %v7273_v55 = vpop.f32.mrf.mxu0 }
 0x3ee   :  { %v14112_v24 = vadd.f32 %v7112_v37, %v13659_v41  ;;  %v14115_v61 = vadd.f32 %v7273_v55, %v13662_v22 }
 0x3ef   :  { %v7114_v31 = vpop.f32.mrf.mxu1  ;;  %v7275_v8 = vpop.f32.mrf.mxu0 }
 0x3f1   :  { %v7117_v9 = vpop.f32.mrf.mxu1  ;;  %v7278_v56 = vpop.f32.mrf.mxu0  ;;  %7469 = vmatmul.mubr.bf16.gmra.mxu0 %v10562_v49  ;;  %7630 = vmatmul.mubr.bf16.gmra.mxu1 %v10565_v28  ;;  %v10570_v49 = vld [vmem:[%s15801_s0 + $0x1488] ss:$84 sps:$4 sm:$0xff]  }
 0x3f2   :  { %v14124_v41 = vadd.f32 %v7117_v9, %v13671_v25  ;;  %v14127_v22 = vadd.f32 %v7278_v56, %v13674_v48  ;;  %7476 = vmatprep.mubr.bf16.mxu0 %v10572_v35  ;;  %7637 = vmatprep.mubr.bf16.mxu1 %v10575_v2  ;;  %v10573_v25 = vld [vmem:[%s15801_s0 + $0xa10] ss:$84 sps:$4 sm:$0xff]  }
 0x3f3   :  { %v7119_v18 = vpop.f32.mrf.mxu1  ;;  %v7280_v7 = vpop.f32.mrf.mxu0  ;;  %v10578_v35 = vld [vmem:[%s15801_s0 + $0xabc] ss:$84 sps:$4 sm:$0xff]   ;;  %v10581_v2 = vld [vmem:[%s15801_s0 + $0x44] ss:$84 sps:$4 sm:$0xff]  }
 0x3f5   :  { %v7120_v37 = vpop.f32.mrf.mxu1  ;;  %v7281_v55 = vpop.f32.mrf.mxu0 }
 0x3f6   :  { %v14139_v48 = vadd.f32 %v7120_v37, %v13686_v23  ;;  %v14142_v28 = vadd.f32 %v7281_v55, %v13689_v15  ;;  %v10576_v55 = vld [vmem:[%s15801_s0 + $0xab8] ss:$84 sps:$4 sm:$0xff]  }
 0x3f7   :  { %v7122_v31 = vpop.f32.mrf.mxu1  ;;  %v7283_v8 = vpop.f32.mrf.mxu0 }
 0x3f8   :  { %v10589_v31 = vld [vmem:[%s15801_s0 + $0xec] ss:$84 sps:$4 sm:$0xff]   ;;  %v10609_v8 = vld [vmem:[%s15800_s1 + $0x530] sm:$0xff]  }
 0x3f9   :  { %v7125_v9 = vpop.f32.mrf.mxu1  ;;  %v7286_v56 = vpop.f32.mrf.mxu0  ;;  %7477 = vmatmul.mubr.bf16.gmra.mxu0 %v10570_v49  ;;  %7638 = vmatmul.mubr.bf16.gmra.mxu1 %v10573_v25  ;;  %v10579_v49 = vld [vmem:[%s15801_s0 + $0x40] ss:$84 sps:$4 sm:$0xff]   ;;  %v10586_v25 = vld [vmem:[%s15801_s0 + $0xb64] ss:$84 sps:$4 sm:$0xff]  }
 0x3fa   :  { %v14151_v23 = vadd.f32 %v7125_v9, %v13698_v46  ;;  %v14154_v15 = vadd.f32 %v7286_v56, %v13701_v57  ;;  %7645 = vmatprep.mubr.bf16.mxu1 %v10578_v35  ;;  %7806 = vmatprep.mubr.bf16.mxu0 %v10581_v2 }
 0x3fb   :  { %v7127_v39 = vpop.f32.mrf.mxu1  ;;  %v7288_v18 = vpop.f32.mrf.mxu0 }
 0x3fd   :  { %v7128_v7 = vpop.f32.mrf.mxu1  ;;  %v7289_v37 = vpop.f32.mrf.mxu0 }
 0x3fe   :  { %v14163_v46 = vadd.f32 %v7128_v7, %v13710_v5  ;;  %v14166_v57 = vadd.f32 %v7289_v37, %v13713_v36  ;;  %v10636_v7 = vld [vmem:[%s15800_s1 + $0x528] sm:$0xff]  }
 0x3ff   :  { %v7130_v35 = vpop.f32.mrf.mxu1  ;;  %v7291_v2 = vpop.f32.mrf.mxu0 }
 0x400   :  { %v10595_v35 = vld [vmem:[%s15801_s0 + $0x194] ss:$84 sps:$4 sm:$0xff]  }
 0x401   :  { %v7133_v9 = vpop.f32.mrf.mxu1  ;;  %v7294_v5 = vpop.f32.mrf.mxu0  ;;  %7646 = vmatmul.mubr.bf16.gmra.mxu1 %v10576_v55  ;;  %7807 = vmatmul.mubr.bf16.vlgmr.msra.gmra.mxu0 %v10579_v49 }
 0x402   :  { %v14178_v36 = vadd.f32 %v7133_v9, %v13725_v45  ;;  %v14181_v56 = vadd.f32 %v7294_v5, %v13728_v43  ;;  %9592 = vmatpush3.bf16.msra.mxu0 %v13736_v38  ;;  %7653 = vmatprep.mubr.bf16.mxu1 %v10586_v25  ;;  %v10584_v45 = vld [vmem:[%s15801_s0 + $0xb60] ss:$84 sps:$4 sm:$0xff]   ;;  %v10587_v43 = vld [vmem:[%s15801_s0 + $0xe8] ss:$84 sps:$4 sm:$0xff]  }
 0x403   :  { %v7135_v39 = vpop.f32.mrf.mxu1  ;;  %v7296_v18 = vpop.f32.mrf.mxu0  ;;  %7814 = vmatprep.mubr.bf16.mxu0 %v10589_v31  ;;  %9593 = vmatprep.subr.bf16.mxu0 %v10609_v8  ;;  %v10592_v25 = vld [vmem:[%s15801_s0 + $0xc0c] ss:$84 sps:$4 sm:$0xff]  }
 0x405   :  { %v7136_v37 = vpop.f32.mrf.mxu1  ;;  %v7297_v55 = vpop.f32.mrf.mxu0 }
 0x406   :  { %v14194_v38 = vadd.f32 %v7136_v37, %v13747_v54  ;;  %v14197_v49 = vadd.f32 %v7297_v55, %v13750_v51  ;;  %9594 = vmatpush3.bf16.msra.mxu0 %v10609_v8  ;;  %v10663_v54 = vld [vmem:[%s15800_s1 + $0x520] sm:$0xff]   ;;  %v10690_v37 = vld [vmem:[%s15800_s1 + $0x518] sm:$0xff]  }
 0x407   :  { %v7138_v2 = vpop.f32.mrf.mxu1  ;;  %v7299_v31 = vpop.f32.mrf.mxu0  ;;  %9595 = vmatprep.subr.bf16.mxu0 %v10636_v7 }
 0x409   :  { %v7141_v9 = vpop.f32.mrf.mxu1  ;;  %v7302_v5 = vpop.f32.mrf.mxu0  ;;  %7654 = vmatmul.mubr.bf16.gmra.mxu1 %v10584_v45  ;;  %7815 = vmatmul.mubr.bf16.gmra.mxu0 %v10587_v43  ;;  %v10599_v43 = vld [vmem:[%s15801_s0 + $0xcb4] ss:$84 sps:$4 sm:$0xff]  }
 0x40a   :  { %v14209_v51 = vadd.f32 %v7141_v9, %v13763_v27  ;;  %v14212_v39 = vadd.f32 %v7302_v5, %v13766_v59  ;;  %7661 = vmatprep.mubr.bf16.mxu1 %v10592_v25  ;;  %7822 = vmatprep.mubr.bf16.mxu0 %v10595_v35  ;;  %v10590_v27 = vld [vmem:[%s15801_s0 + $0xc08] ss:$84 sps:$4 sm:$0xff]   ;;  %v10593_v59 = vld [vmem:[%s15801_s0 + $0x190] ss:$84 sps:$4 sm:$0xff]  }
 0x40b   :  { %v7143_v8 = vpop.f32.mrf.mxu1  ;;  %v7304_v18 = vpop.f32.mrf.mxu0  ;;  %9596 = vmatpush3.bf16.msra.mxu0 %v10636_v7  ;;  %v10602_v25 = vld [vmem:[%s15801_s0 + $0x23c] ss:$84 sps:$4 sm:$0xff]  }
 0x40c   :  { %9597 = vmatprep.subr.bf16.mxu0 %v10663_v54 }
 0x40d   :  { %v7144_v55 = vpop.f32.mrf.mxu1  ;;  %v7305_v2 = vpop.f32.mrf.mxu0 }
 0x40e   :  { %v14224_v45 = vadd.f32 %v7144_v55, %v13779_v3  ;;  %v14227_v7 = vadd.f32 %v7305_v2, %v13782_v53 }
 0x40f   :  { %v7146_v35 = vpop.f32.mrf.mxu1  ;;  %v7307_v31 = vpop.f32.mrf.mxu0  ;;  %9598 = vmatpush3.bf16.msra.mxu0 %v10663_v54  ;;  %v10597_v54 = vld [vmem:[%s15801_s0 + $0xcb0] ss:$84 sps:$4 sm:$0xff]  }
 0x410   :  { %9599 = vmatprep.subr.bf16.mxu0 %v10690_v37 }
 0x411   :  { %v7149_v9 = vpop.f32.mrf.mxu1  ;;  %v7310_v5 = vpop.f32.mrf.mxu0  ;;  %7662 = vmatmul.mubr.bf16.gmra.mxu1 %v10590_v27  ;;  %7823 = vmatmul.mubr.bf16.gmra.mxu0 %v10593_v59  ;;  %v10600_v27 = vld [vmem:[%s15801_s0 + $0x238] ss:$84 sps:$4 sm:$0xff]  }
 0x412   :  { %v14236_v3 = vadd.f32 %v7149_v9, %v13795_v6  ;;  %v14239_v53 = vadd.f32 %v7310_v5, %v13798_v20  ;;  %7669 = vmatprep.mubr.bf16.mxu1 %v10599_v43  ;;  %7830 = vmatprep.mubr.bf16.mxu0 %v10602_v25  ;;  %v15945_v6 = vld [vmem:[#allocation11_spill] sm:$0xff]  ;;  %v15947_v20 = vld [vmem:[#allocation4_spill] sm:$0xff]  ;;  %v10608_v43 = vld [vmem:[%s15801_s0 + $0x2e4] ss:$84 sps:$4 sm:$0xff]  }
 0x413   :  { %v7151_v8 = vpop.f32.mrf.mxu1  ;;  %v7312_v18 = vpop.f32.mrf.mxu0  ;;  %9600 = vmatpush3.bf16.msra.mxu0 %v10690_v37  ;;  %v10605_v37 = vld [vmem:[%s15801_s0 + $0xd5c] ss:$84 sps:$4 sm:$0xff]  }
 0x414   :  { %v15949_v8 = vld [vmem:[#allocation12_spill] sm:$0xff] }
 0x415   :  { %v7152_v55 = vpop.f32.mrf.mxu1  ;;  %v7313_v2 = vpop.f32.mrf.mxu0 }
 0x416   :  { %v14248_v59 = vadd.f32 %v7152_v55, %v15945_v6  ;;  %v14251_v35 = vadd.f32 %v7313_v2, %v15947_v20  ;;  %v15950_v55 = vld [vmem:[#allocation5_spill] sm:$0xff] }
 0x417   :  { %v7154_v25 = vpop.f32.mrf.mxu1  ;;  %v7315_v31 = vpop.f32.mrf.mxu0 }
 0x418   :  { %15946 = vst [vmem:[#allocation2_spill] sm:$0xff] %v14248_v59  ;;  %15948 = vst [vmem:[#allocation10_spill] sm:$0xff] %v14251_v35  ;;  %v10603_v25 = vld [vmem:[%s15801_s0 + $0xd58] ss:$84 sps:$4 sm:$0xff]  }
 0x419   :  { %v7157_v9 = vpop.f32.mrf.mxu1  ;;  %v7318_v5 = vpop.f32.mrf.mxu0  ;;  %7670 = vmatmul.mubr.bf16.gmra.mxu1 %v10597_v54  ;;  %7831 = vmatmul.mubr.bf16.gmra.mxu0 %v10600_v27  ;;  %v10606_v54 = vld [vmem:[%s15801_s0 + $0x2e0] ss:$84 sps:$4 sm:$0xff]   ;;  %v15951_v27 = vld [vmem:[#allocation13_spill] sm:$0xff] }
 0x41a   :  { %v14260_v18 = vadd.f32 %v7157_v9, %v15949_v8  ;;  %v14263_v2 = vadd.f32 %v7318_v5, %v15950_v55  ;;  %7677 = vmatprep.mubr.bf16.mxu1 %v10605_v37  ;;  %7838 = vmatprep.mubr.bf16.mxu0 %v10608_v43  ;;  %v15953_v9 = vld [vmem:[#allocation6_spill] sm:$0xff] }
 0x41b   :  { %v7159_v6 = vpop.f32.mrf.mxu1  ;;  %v7320_v20 = vpop.f32.mrf.mxu0  ;;  %v10613_v37 = vld [vmem:[%s15801_s0 + $0xe04] ss:$84 sps:$4 sm:$0xff]   ;;  %v10616_v43 = vld [vmem:[%s15801_s0 + $0x38c] ss:$84 sps:$4 sm:$0xff]  }
 0x41d   :  { %v7160_v35 = vpop.f32.mrf.mxu1  ;;  %v7321_v59 = vpop.f32.mrf.mxu0 }
 0x41e   :  { %v14272_v31 = vadd.f32 %v7160_v35, %v15951_v27  ;;  %v14275_v5 = vadd.f32 %v7321_v59, %v15953_v9  ;;  %v15956_v27 = vld [vmem:[#allocation14_spill] sm:$0xff]  ;;  %v10715_v9 = vld [vmem:[%s15800_s1 + $0x510] sm:$0xff]  }
 0x41f   :  { %v7162_v8 = vpop.f32.mrf.mxu1  ;;  %v7323_v55 = vpop.f32.mrf.mxu0  ;;  %9601 = vmatprep.subr.bf16.mxu0 %v10715_v9 }
 0x420   :  { %15952 = vst [vmem:[#allocation3_spill] sm:$0xff] %v14272_v31  ;;  %15954 = vst [vmem:[#allocation11_spill] sm:$0xff] %v14275_v5  ;;  %9602 = vmatpush3.bf16.msra.mxu0 %v10715_v9 }
 0x421   :  { %v7165_v6 = vpop.f32.mrf.mxu1  ;;  %v7326_v20 = vpop.f32.mrf.mxu0  ;;  %7678 = vmatmul.mubr.bf16.gmra.mxu1 %v10603_v25  ;;  %7839 = vmatmul.mubr.bf16.gmra.mxu0 %v10606_v54  ;;  %v10611_v25 = vld [vmem:[%s15801_s0 + $0xe00] ss:$84 sps:$4 sm:$0xff]   ;;  %v15958_v54 = vld [vmem:[#allocation7_spill] sm:$0xff] }
 0x422   :  { %v14284_v35 = vadd.f32 %v7165_v6, %v13859_v13  ;;  %v14287_v59 = vadd.f32 %v7326_v20, %v15956_v27  ;;  %7685 = vmatprep.mubr.bf16.mxu1 %v10613_v37  ;;  %7846 = vmatprep.mubr.bf16.mxu0 %v10616_v43  ;;  %v10614_v13 = vld [vmem:[%s15801_s0 + $0x388] ss:$84 sps:$4 sm:$0xff]  }
 0x423   :  { %v7167_v5 = vpop.f32.mrf.mxu1  ;;  %v7328_v31 = vpop.f32.mrf.mxu0  ;;  %v15960_v43 = vld [vmem:[#allocation15_spill] sm:$0xff] }
 0x424   :  { %15955 = vst [vmem:[#allocation4_spill] sm:$0xff] %v14284_v35  ;;  %15957 = vst [vmem:[#allocation12_spill] sm:$0xff] %v14287_v59  ;;  %v10619_v31 = vld [vmem:[%s15801_s0 + $0xeac] ss:$84 sps:$4 sm:$0xff]   ;;  %v10622_v5 = vld [vmem:[%s15801_s0 + $0x434] ss:$84 sps:$4 sm:$0xff]  }
 0x425   :  { %v7168_v8 = vpop.f32.mrf.mxu1  ;;  %v7329_v55 = vpop.f32.mrf.mxu0 }
 0x426   :  { %v14299_v37 = vadd.f32 %v7168_v8, %v15958_v54  ;;  %v14302_v6 = vadd.f32 %v7329_v55, %v15960_v43  ;;  %v15962_v8 = vld [vmem:[#allocation8_spill] sm:$0xff] }
 0x427   :  { %v7170_v20 = vpop.f32.mrf.mxu1  ;;  %v7331_v27 = vpop.f32.mrf.mxu0 }
 0x428   :  { %15959 = vst [vmem:[#allocation5_spill] sm:$0xff] %v14299_v37  ;;  %15961 = vst [vmem:[#allocation13_spill] sm:$0xff] %v14302_v6  ;;  %v10617_v20 = vld [vmem:[%s15801_s0 + $0xea8] ss:$84 sps:$4 sm:$0xff]  }
 0x429   :  { %v7173_v59 = vpop.f32.mrf.mxu1  ;;  %v7334_v35 = vpop.f32.mrf.mxu0  ;;  %7686 = vmatmul.mubr.bf16.gmra.mxu1 %v10611_v25  ;;  %7847 = vmatmul.mubr.bf16.gmra.mxu0 %v10614_v13  ;;  %v10620_v25 = vld [vmem:[%s15801_s0 + $0x430] ss:$84 sps:$4 sm:$0xff]  }
 0x42a   :  { %v14311_v9 = vadd.f32 %v7173_v59, %v13891_v62  ;;  %v14314_v55 = vadd.f32 %v7334_v35, %v15962_v8  ;;  %7693 = vmatprep.mubr.bf16.mxu1 %v10619_v31  ;;  %7854 = vmatprep.mubr.bf16.mxu0 %v10622_v5  ;;  %v15964_v13 = vld [vmem:[#allocation16_spill] sm:$0xff]  ;;  %v15966_v59 = vld [vmem:[#allocation17_spill] sm:$0xff] }
 0x42b   :  { %v7175_v54 = vpop.f32.mrf.mxu1  ;;  %v7336_v43 = vpop.f32.mrf.mxu0  ;;  %v10626_v31 = vld [vmem:[%s15801_s0 + $0xf54] ss:$84 sps:$4 sm:$0xff]   ;;  %v10629_v5 = vld [vmem:[%s15801_s0 + $0x4dc] ss:$84 sps:$4 sm:$0xff]  }
 0x42c   :  { %15963 = vst [vmem:[#allocation6_spill] sm:$0xff] %v14314_v55 }
 0x42d   :  { %v7176_v6 = vpop.f32.mrf.mxu1  ;;  %v7337_v37 = vpop.f32.mrf.mxu0 }
 0x42e   :  { %v14323_v62 = vadd.f32 %v7176_v6, %v15964_v13  ;;  %v14326_v35 = vadd.f32 %v7337_v37, %v15966_v59  ;;  %v15968_v13 = vld [vmem:[#allocation18_spill] sm:$0xff] }
 0x42f   :  { %v7178_v27 = vpop.f32.mrf.mxu1  ;;  %v7339_v8 = vpop.f32.mrf.mxu0 }
 0x430   :  { %15965 = vst [vmem:[#allocation14_spill] sm:$0xff] %v14323_v62  ;;  %15967 = vst [vmem:[#allocation7_spill] sm:$0xff] %v14326_v35  ;;  %v10624_v27 = vld [vmem:[%s15801_s0 + $0xf50] ss:$84 sps:$4 sm:$0xff]  }
 0x431   :  { %v7181_v54 = vpop.f32.mrf.mxu1  ;;  %v7342_v43 = vpop.f32.mrf.mxu0  ;;  %7694 = vmatmul.mubr.bf16.gmra.mxu1 %v10617_v20  ;;  %7855 = vmatmul.mubr.bf16.gmra.mxu0 %v10620_v25  ;;  %v10627_v20 = vld [vmem:[%s15801_s0 + $0x4d8] ss:$84 sps:$4 sm:$0xff]   ;;  %v15971_v8 = vld [vmem:[#allocation20_spill] sm:$0xff] }
 0x432   :  { %v14335_v6 = vadd.f32 %v7181_v54, %v13916_v52  ;;  %v14338_v37 = vadd.f32 %v7342_v43, %v15968_v13  ;;  %7701 = vmatprep.mubr.bf16.mxu1 %v10626_v31  ;;  %7862 = vmatprep.mubr.bf16.mxu0 %v10629_v5  ;;  %v15969_v25 = vld [vmem:[#allocation19_spill] sm:$0xff]  ;;  %v10635_v31 = vld [vmem:[%s15801_s0 + $0x584] ss:$84 sps:$4 sm:$0xff]  }
 0x433   :  { %v7183_v59 = vpop.f32.mrf.mxu1  ;;  %v7344_v35 = vpop.f32.mrf.mxu0 }
 0x434   :  { %v10632_v35 = vld [vmem:[%s15801_s0 + $0xffc] ss:$84 sps:$4 sm:$0xff]  }
 0x435   :  { %v7184_v62 = vpop.f32.mrf.mxu1  ;;  %v7345_v55 = vpop.f32.mrf.mxu0 }
 0x436   :  { %v14347_v52 = vadd.f32 %v7184_v62, %v15969_v25  ;;  %v14350_v54 = vadd.f32 %v7345_v55, %v15971_v8 }
 0x437   :  { %v7186_v5 = vpop.f32.mrf.mxu1  ;;  %v7347_v43 = vpop.f32.mrf.mxu0 }
 0x438   :  { %15970 = vst [vmem:[#allocation15_spill] sm:$0xff] %v14347_v52  ;;  %15972 = vst [vmem:[#allocation8_spill] sm:$0xff] %v14350_v54  ;;  %v10630_v5 = vld [vmem:[%s15801_s0 + $0xff8] ss:$84 sps:$4 sm:$0xff]  }
 0x439   :  { %v7189_v13 = vpop.f32.mrf.mxu1  ;;  %v7350_v59 = vpop.f32.mrf.mxu0  ;;  %7702 = vmatmul.mubr.bf16.gmra.mxu1 %v10624_v27  ;;  %7863 = vmatmul.mubr.bf16.gmra.mxu0 %v10627_v20  ;;  %v10633_v27 = vld [vmem:[%s15801_s0 + $0x580] ss:$84 sps:$4 sm:$0xff]   ;;  %v10640_v20 = vld [vmem:[%s15801_s0 + $0x10a4] ss:$84 sps:$4 sm:$0xff]  }
 0x43a   :  { %v14359_v62 = vadd.f32 %v7189_v13, %v13944_v29  ;;  %v14362_v55 = vadd.f32 %v7350_v59, %v13947_v1  ;;  %7709 = vmatprep.mubr.bf16.mxu1 %v10632_v35  ;;  %7870 = vmatprep.mubr.bf16.mxu0 %v10635_v31  ;;  %v10643_v35 = vld [vmem:[%s15801_s0 + $0x62c] ss:$84 sps:$4 sm:$0xff]  }
 0x43b   :  { %v7191_v25 = vpop.f32.mrf.mxu1  ;;  %v7352_v8 = vpop.f32.mrf.mxu0 }
 0x43d   :  { %v7192_v54 = vpop.f32.mrf.mxu1  ;;  %v7353_v52 = vpop.f32.mrf.mxu0 }
 0x43e   :  { %v14371_v29 = vadd.f32 %v7192_v54, %v13956_v40  ;;  %v14374_v1 = vadd.f32 %v7353_v52, %v13959_v60  ;;  %v10740_v52 = vld [vmem:[%s15800_s1 + $0x508] sm:$0xff]  }
 0x43f   :  { %v7194_v31 = vpop.f32.mrf.mxu1  ;;  %v7355_v43 = vpop.f32.mrf.mxu0  ;;  %9603 = vmatprep.subr.bf16.mxu0 %v10740_v52 }
 0x440   :  { %9604 = vmatpush3.bf16.msra.mxu0 %v10740_v52 }
 0x441   :  { %v7358_v13 = vpop.f32.mrf.mxu0  ;;  %v7519_v59 = vpop.f32.mrf.mxu1  ;;  %7710 = vmatmul.mubr.bf16.gmra.mxu1 %v10630_v5  ;;  %7871 = vmatmul.mubr.bf16.gmra.mxu0 %v10633_v27  ;;  %v10638_v5 = vld [vmem:[%s15801_s0 + $0x10a0] ss:$84 sps:$4 sm:$0xff]  }
 0x442   :  { %v14383_v40 = vadd.f32 %v7358_v13, %v13968_v12  ;;  %v14386_v60 = vadd.f32 %v7519_v59, %v13971_v16  ;;  %7717 = vmatprep.mubr.bf16.mxu1 %v10640_v20  ;;  %7878 = vmatprep.mubr.bf16.mxu0 %v10643_v35  ;;  %v10641_v12 = vld [vmem:[%s15801_s0 + $0x628] ss:$84 sps:$4 sm:$0xff]   ;;  %v10646_v20 = vld [vmem:[%s15801_s0 + $0x114c] ss:$84 sps:$4 sm:$0xff]  }
 0x443   :  { %v7360_v54 = vpop.f32.mrf.mxu0  ;;  %v7521_v25 = vpop.f32.mrf.mxu1  ;;  %v10649_v35 = vld [vmem:[%s15801_s0 + $0x6d4] ss:$84 sps:$4 sm:$0xff]  }
 0x445   :  { %v7361_v8 = vpop.f32.mrf.mxu0  ;;  %v7522_v31 = vpop.f32.mrf.mxu1 }
 0x446   :  { %v14398_v16 = vadd.f32 %v7361_v8, %v13984_v21  ;;  %v14401_v27 = vadd.f32 %v7522_v31, %v13987_v50 }
 0x447   :  { %v7363_v43 = vpop.f32.mrf.mxu0  ;;  %v7524_v13 = vpop.f32.mrf.mxu1 }
 0x448   :  { %v10644_v43 = vld [vmem:[%s15801_s0 + $0x1148] ss:$84 sps:$4 sm:$0xff]  }
 0x449   :  { %v7366_v59 = vpop.f32.mrf.mxu0  ;;  %v7527_v54 = vpop.f32.mrf.mxu1  ;;  %7718 = vmatmul.mubr.bf16.gmra.mxu1 %v10638_v5  ;;  %7879 = vmatmul.mubr.bf16.gmra.mxu0 %v10641_v12  ;;  %v10647_v5 = vld [vmem:[%s15801_s0 + $0x6d0] ss:$84 sps:$4 sm:$0xff]   ;;  %v10653_v12 = vld [vmem:[%s15801_s0 + $0x11f4] ss:$84 sps:$4 sm:$0xff]  }
 0x44a   :  { %v14410_v21 = vadd.f32 %v7366_v59, %v13996_v32  ;;  %v14413_v50 = vadd.f32 %v7527_v54, %v13999_v17  ;;  %7725 = vmatprep.mubr.bf16.mxu1 %v10646_v20  ;;  %7886 = vmatprep.mubr.bf16.mxu0 %v10649_v35  ;;  %v10656_v20 = vld [vmem:[%s15801_s0 + $0x77c] ss:$84 sps:$4 sm:$0xff]  }
 0x44b   :  { %v7368_v52 = vpop.f32.mrf.mxu0  ;;  %v7529_v25 = vpop.f32.mrf.mxu1 }
 0x44d   :  { %v7369_v8 = vpop.f32.mrf.mxu0  ;;  %v7530_v31 = vpop.f32.mrf.mxu1 }
 0x44e   :  { %v14422_v32 = vadd.f32 %v7369_v8, %v14008_v30  ;;  %v14425_v17 = vadd.f32 %v7530_v31, %v14011_v58 }
 0x44f   :  { %v7371_v35 = vpop.f32.mrf.mxu0  ;;  %v7532_v13 = vpop.f32.mrf.mxu1 }
 0x450   :  { %v10651_v35 = vld [vmem:[%s15801_s0 + $0x11f0] ss:$84 sps:$4 sm:$0xff]  }
 0x451   :  { %v7374_v59 = vpop.f32.mrf.mxu0  ;;  %v7535_v54 = vpop.f32.mrf.mxu1  ;;  %7726 = vmatmul.mubr.bf16.gmra.mxu1 %v10644_v43  ;;  %7887 = vmatmul.mubr.bf16.gmra.mxu0 %v10647_v5  ;;  %v10654_v43 = vld [vmem:[%s15801_s0 + $0x778] ss:$84 sps:$4 sm:$0xff]  }
 0x452   :  { %v14434_v30 = vadd.f32 %v7374_v59, %v14020_v34  ;;  %v14437_v58 = vadd.f32 %v7535_v54, %v14023_v26  ;;  %7733 = vmatprep.mubr.bf16.mxu1 %v10653_v12  ;;  %7894 = vmatprep.mubr.bf16.mxu0 %v10656_v20  ;;  %v15973_v5 = vld [vmem:[#allocation9_spill] sm:$0xff] }
 0x453   :  { %v7376_v52 = vpop.f32.mrf.mxu0  ;;  %v7537_v25 = vpop.f32.mrf.mxu1  ;;  %v10659_v12 = vld [vmem:[%s15801_s0 + $0x129c] ss:$84 sps:$4 sm:$0xff]   ;;  %v10662_v20 = vld [vmem:[%s15801_s0 + $0x824] ss:$84 sps:$4 sm:$0xff]  }
 0x455   :  { %v7377_v8 = vpop.f32.mrf.mxu0  ;;  %v7538_v31 = vpop.f32.mrf.mxu1 }
 0x456   :  { %v14446_v34 = vadd.f32 %v7377_v8, %v14036_v42  ;;  %v14449_v26 = vadd.f32 %v7538_v31, %v15973_v5 }
 0x457   :  { %v7379_v13 = vpop.f32.mrf.mxu0  ;;  %v7540_v59 = vpop.f32.mrf.mxu1 }
 0x458   :  { %15974 = vst [vmem:[#allocation16_spill] sm:$0xff] %v14449_v26  ;;  %v10657_v13 = vld [vmem:[%s15801_s0 + $0x1298] ss:$84 sps:$4 sm:$0xff]  }
 0x459   :  { %v7382_v54 = vpop.f32.mrf.mxu0  ;;  %v7543_v52 = vpop.f32.mrf.mxu1  ;;  %7734 = vmatmul.mubr.bf16.gmra.mxu1 %v10651_v35  ;;  %7895 = vmatmul.mubr.bf16.gmra.mxu0 %v10654_v43  ;;  %v10660_v35 = vld [vmem:[%s15801_s0 + $0x820] ss:$84 sps:$4 sm:$0xff]   ;;  %v10667_v43 = vld [vmem:[%s15801_s0 + $0x1344] ss:$84 sps:$4 sm:$0xff]  }
 0x45a   :  { %v14458_v42 = vadd.f32 %v7382_v54, %v14048_v4  ;;  %v14461_v25 = vadd.f32 %v7543_v52, %v14051_v11  ;;  %7741 = vmatprep.mubr.bf16.mxu1 %v10659_v12  ;;  %7902 = vmatprep.mubr.bf16.mxu0 %v10662_v20  ;;  %v10670_v12 = vld [vmem:[%s15801_s0 + $0x8cc] ss:$84 sps:$4 sm:$0xff]  }
 0x45b   :  { %v7384_v8 = vpop.f32.mrf.mxu0  ;;  %v7545_v31 = vpop.f32.mrf.mxu1 }
 0x45d   :  { %v7385_v5 = vpop.f32.mrf.mxu0  ;;  %v7546_v26 = vpop.f32.mrf.mxu1 }
 0x45e   :  { %v14470_v4 = vadd.f32 %v7385_v5, %v14060_v19  ;;  %v14473_v11 = vadd.f32 %v7546_v26, %v14063_v63  ;;  %v10765_v26 = vld [vmem:[%s15800_s1 + $0x500] sm:$0xff]  }
 0x45f   :  { %v7387_v20 = vpop.f32.mrf.mxu0  ;;  %v7548_v59 = vpop.f32.mrf.mxu1  ;;  %9605 = vmatprep.subr.bf16.mxu0 %v10765_v26 }
 0x460   :  { %9606 = vmatpush3.bf16.msra.mxu0 %v10765_v26 }
 0x461   :  { %v7390_v54 = vpop.f32.mrf.mxu0  ;;  %v7551_v52 = vpop.f32.mrf.mxu1  ;;  %7742 = vmatmul.mubr.bf16.gmra.mxu1 %v10657_v13  ;;  %7903 = vmatmul.mubr.bf16.gmra.mxu0 %v10660_v35  ;;  %v10665_v13 = vld [vmem:[%s15801_s0 + $0x1340] ss:$84 sps:$4 sm:$0xff]  }
 0x462   :  { %v14482_v19 = vadd.f32 %v7390_v54, %v14072_v33  ;;  %v14485_v63 = vadd.f32 %v7551_v52, %v14075_v44  ;;  %7749 = vmatprep.mubr.bf16.mxu1 %v10667_v43  ;;  %7910 = vmatprep.mubr.bf16.mxu0 %v10670_v12  ;;  %v10668_v33 = vld [vmem:[%s15801_s0 + $0x8c8] ss:$84 sps:$4 sm:$0xff]   ;;  %v10673_v43 = vld [vmem:[%s15801_s0 + $0x13ec] ss:$84 sps:$4 sm:$0xff]  }
 0x463   :  { %v7392_v8 = vpop.f32.mrf.mxu0  ;;  %v7553_v31 = vpop.f32.mrf.mxu1  ;;  %v10676_v12 = vld [vmem:[%s15801_s0 + $0x974] ss:$84 sps:$4 sm:$0xff]  }
 0x465   :  { %v7393_v5 = vpop.f32.mrf.mxu0  ;;  %v7554_v20 = vpop.f32.mrf.mxu1 }
 0x466   :  { %v14497_v44 = vadd.f32 %v7393_v5, %v14088_v0  ;;  %v14500_v35 = vadd.f32 %v7554_v20, %v14091_v14 }
 0x467   :  { %v7395_v59 = vpop.f32.mrf.mxu0  ;;  %v7556_v54 = vpop.f32.mrf.mxu1 }
 0x468   :  { %v10671_v59 = vld [vmem:[%s15801_s0 + $0x13e8] ss:$84 sps:$4 sm:$0xff]  }
 0x469   :  { %v7398_v52 = vpop.f32.mrf.mxu0  ;;  %v7559_v8 = vpop.f32.mrf.mxu1  ;;  %7750 = vmatmul.mubr.bf16.gmra.mxu1 %v10665_v13  ;;  %7911 = vmatmul.mubr.bf16.gmra.mxu0 %v10668_v33  ;;  %v10674_v13 = vld [vmem:[%s15801_s0 + $0x970] ss:$84 sps:$4 sm:$0xff]   ;;  %v10680_v33 = vld [vmem:[%s15801_s0 + $0x1494] ss:$84 sps:$4 sm:$0xff]  }
 0x46a   :  { %v14509_v0 = vadd.f32 %v7398_v52, %v14100_v47  ;;  %v14512_v14 = vadd.f32 %v7559_v8, %v14103_v10  ;;  %7757 = vmatprep.mubr.bf16.mxu1 %v10673_v43  ;;  %7918 = vmatprep.mubr.bf16.mxu0 %v10676_v12  ;;  %v10683_v43 = vld [vmem:[%s15801_s0 + $0xa1c] ss:$84 sps:$4 sm:$0xff]  }
 0x46b   :  { %v7400_v26 = vpop.f32.mrf.mxu0  ;;  %v7561_v31 = vpop.f32.mrf.mxu1 }
 0x46d   :  { %v7401_v5 = vpop.f32.mrf.mxu0  ;;  %v7562_v20 = vpop.f32.mrf.mxu1 }
 0x46e   :  { %v14521_v47 = vadd.f32 %v7401_v5, %v14112_v24  ;;  %v14524_v10 = vadd.f32 %v7562_v20, %v14115_v61 }
 0x46f   :  { %v7403_v12 = vpop.f32.mrf.mxu0  ;;  %v7564_v54 = vpop.f32.mrf.mxu1 }
 0x470   :  { %v10678_v12 = vld [vmem:[%s15801_s0 + $0x1490] ss:$84 sps:$4 sm:$0xff]  }
 0x471   :  { %v7406_v52 = vpop.f32.mrf.mxu0  ;;  %v7567_v8 = vpop.f32.mrf.mxu1  ;;  %7758 = vmatmul.mubr.bf16.gmra.mxu1 %v10671_v59  ;;  %7919 = vmatmul.mubr.bf16.gmra.mxu0 %v10674_v13  ;;  %v10681_v59 = vld [vmem:[%s15801_s0 + $0xa18] ss:$84 sps:$4 sm:$0xff]  }
 0x472   :  { %v14533_v24 = vadd.f32 %v7406_v52, %v14124_v41  ;;  %v14536_v61 = vadd.f32 %v7567_v8, %v14127_v22  ;;  %7765 = vmatprep.mubr.bf16.mxu1 %v10680_v33  ;;  %7926 = vmatprep.mubr.bf16.mxu0 %v10683_v43  ;;  %v10686_v13 = vld [vmem:[%s15801_s0 + $0xac4] ss:$84 sps:$4 sm:$0xff]   ;;  %v10689_v33 = vld [vmem:[%s15801_s0 + $0x4c] ss:$84 sps:$4 sm:$0xff]  }
 0x473   :  { %v7408_v26 = vpop.f32.mrf.mxu0  ;;  %v7569_v31 = vpop.f32.mrf.mxu1 }
 0x475   :  { %v7409_v5 = vpop.f32.mrf.mxu0  ;;  %v7570_v20 = vpop.f32.mrf.mxu1 }
 0x476   :  { %v14545_v41 = vadd.f32 %v7409_v5, %v14139_v48  ;;  %v14548_v22 = vadd.f32 %v7570_v20, %v14142_v28 }
 0x477   :  { %v7411_v43 = vpop.f32.mrf.mxu0  ;;  %v7572_v54 = vpop.f32.mrf.mxu1 }
 0x478   :  { %v10684_v43 = vld [vmem:[%s15801_s0 + $0xac0] ss:$84 sps:$4 sm:$0xff]  }
 0x479   :  { %v7414_v52 = vpop.f32.mrf.mxu0  ;;  %v7575_v8 = vpop.f32.mrf.mxu1  ;;  %7766 = vmatmul.mubr.bf16.gmra.mxu1 %v10678_v12  ;;  %7927 = vmatmul.mubr.bf16.gmra.mxu0 %v10681_v59  ;;  %v10687_v12 = vld [vmem:[%s15801_s0 + $0x48] ss:$84 sps:$4 sm:$0xff]   ;;  %v10693_v59 = vld [vmem:[%s15801_s0 + $0xb6c] ss:$84 sps:$4 sm:$0xff]  }
 0x47a   :  { %v14557_v48 = vadd.f32 %v7414_v52, %v14151_v23  ;;  %v14560_v28 = vadd.f32 %v7575_v8, %v14154_v15  ;;  %7934 = vmatprep.mubr.bf16.mxu0 %v10686_v13  ;;  %8095 = vmatprep.mubr.bf16.mxu1 %v10689_v33  ;;  %v10696_v13 = vld [vmem:[%s15801_s0 + $0xf4] ss:$84 sps:$4 sm:$0xff]  }
 0x47b   :  { %v7416_v26 = vpop.f32.mrf.mxu0  ;;  %v7577_v31 = vpop.f32.mrf.mxu1 }
 0x47d   :  { %v7417_v5 = vpop.f32.mrf.mxu0  ;;  %v7578_v20 = vpop.f32.mrf.mxu1 }
 0x47e   :  { %v14569_v23 = vadd.f32 %v7417_v5, %v14163_v46  ;;  %v14572_v15 = vadd.f32 %v7578_v20, %v14166_v57 }
 0x47f   :  { %v7419_v33 = vpop.f32.mrf.mxu0  ;;  %v7580_v54 = vpop.f32.mrf.mxu1 }
 0x480   :  { %v10691_v33 = vld [vmem:[%s15801_s0 + $0xb68] ss:$84 sps:$4 sm:$0xff]  }
 0x481   :  { %v7422_v52 = vpop.f32.mrf.mxu0  ;;  %v7583_v8 = vpop.f32.mrf.mxu1  ;;  %7935 = vmatmul.mubr.bf16.gmra.mxu0 %v10684_v43  ;;  %8096 = vmatmul.mubr.bf16.vlgmr.msra.gmra.mxu1 %v10687_v12  ;;  %v10694_v43 = vld [vmem:[%s15801_s0 + $0xf0] ss:$84 sps:$4 sm:$0xff]   ;;  %v10699_v12 = vld [vmem:[%s15801_s0 + $0xc14] ss:$84 sps:$4 sm:$0xff]  }
 0x482   :  { %v14581_v46 = vadd.f32 %v7422_v52, %v14178_v36  ;;  %v14584_v57 = vadd.f32 %v7583_v8, %v14181_v56  ;;  %7942 = vmatprep.mubr.bf16.mxu0 %v10693_v59  ;;  %8103 = vmatprep.mubr.bf16.mxu1 %v10696_v13  ;;  %v10702_v59 = vld [vmem:[%s15801_s0 + $0x19c] ss:$84 sps:$4 sm:$0xff]  }
 0x483   :  { %v7424_v26 = vpop.f32.mrf.mxu0  ;;  %v7585_v31 = vpop.f32.mrf.mxu1 }
 0x485   :  { %v7425_v5 = vpop.f32.mrf.mxu0  ;;  %v7586_v20 = vpop.f32.mrf.mxu1 }
 0x486   :  { %v14593_v36 = vadd.f32 %v7425_v5, %v14194_v38  ;;  %v14596_v56 = vadd.f32 %v7586_v20, %v14197_v49 }
 0x487   :  { %v7427_v13 = vpop.f32.mrf.mxu0  ;;  %v7588_v54 = vpop.f32.mrf.mxu1 }
 0x488   :  { %v10697_v13 = vld [vmem:[%s15801_s0 + $0xc10] ss:$84 sps:$4 sm:$0xff]  }
 0x489   :  { %v7430_v52 = vpop.f32.mrf.mxu0  ;;  %v7591_v8 = vpop.f32.mrf.mxu1  ;;  %7943 = vmatmul.mubr.bf16.gmra.mxu0 %v10691_v33  ;;  %8104 = vmatmul.mubr.bf16.gmra.mxu1 %v10694_v43  ;;  %v10700_v33 = vld [vmem:[%s15801_s0 + $0x198] ss:$84 sps:$4 sm:$0xff]   ;;  %v10705_v43 = vld [vmem:[%s15801_s0 + $0xcbc] ss:$84 sps:$4 sm:$0xff]  }
 0x48a   :  { %v14605_v38 = vadd.f32 %v7430_v52, %v14209_v51  ;;  %v14608_v49 = vadd.f32 %v7591_v8, %v14212_v39  ;;  %7950 = vmatprep.mubr.bf16.mxu0 %v10699_v12  ;;  %8111 = vmatprep.mubr.bf16.mxu1 %v10702_v59  ;;  %v10708_v12 = vld [vmem:[%s15801_s0 + $0x244] ss:$84 sps:$4 sm:$0xff]  }
 0x48b   :  { %v7432_v26 = vpop.f32.mrf.mxu0  ;;  %v7593_v31 = vpop.f32.mrf.mxu1 }
 0x48d   :  { %v7433_v5 = vpop.f32.mrf.mxu0  ;;  %v7594_v20 = vpop.f32.mrf.mxu1 }
 0x48e   :  { %v14617_v51 = vadd.f32 %v7433_v5, %v14224_v45  ;;  %v14620_v39 = vadd.f32 %v7594_v20, %v14227_v7 }
 0x48f   :  { %v7435_v59 = vpop.f32.mrf.mxu0  ;;  %v7596_v54 = vpop.f32.mrf.mxu1 }
 0x490   :  { %v10703_v59 = vld [vmem:[%s15801_s0 + $0xcb8] ss:$84 sps:$4 sm:$0xff]   ;;  %v15977_v54 = vld [vmem:[#allocation10_spill] sm:$0xff] }
 0x491   :  { %v7438_v52 = vpop.f32.mrf.mxu0  ;;  %v7599_v8 = vpop.f32.mrf.mxu1  ;;  %7951 = vmatmul.mubr.bf16.gmra.mxu0 %v10697_v13  ;;  %8112 = vmatmul.mubr.bf16.gmra.mxu1 %v10700_v33  ;;  %v10706_v13 = vld [vmem:[%s15801_s0 + $0x240] ss:$84 sps:$4 sm:$0xff]  }
 0x492   :  { %v14629_v45 = vadd.f32 %v7438_v52, %v14236_v3  ;;  %v14632_v7 = vadd.f32 %v7599_v8, %v14239_v53  ;;  %7958 = vmatprep.mubr.bf16.mxu0 %v10705_v43  ;;  %8119 = vmatprep.mubr.bf16.mxu1 %v10708_v12  ;;  %v15975_v33 = vld [vmem:[#allocation2_spill] sm:$0xff] }
 0x493   :  { %v7440_v26 = vpop.f32.mrf.mxu0  ;;  %v7601_v31 = vpop.f32.mrf.mxu1  ;;  %v10711_v43 = vld [vmem:[%s15801_s0 + $0xd64] ss:$84 sps:$4 sm:$0xff]   ;;  %v10714_v12 = vld [vmem:[%s15801_s0 + $0x2ec] ss:$84 sps:$4 sm:$0xff]  }
 0x495   :  { %v7441_v5 = vpop.f32.mrf.mxu0  ;;  %v7602_v20 = vpop.f32.mrf.mxu1 }
 0x496   :  { %v14641_v3 = vadd.f32 %v7441_v5, %v15975_v33  ;;  %v14644_v53 = vadd.f32 %v7602_v20, %v15977_v54 }
 0x497   :  { %v7443_v52 = vpop.f32.mrf.mxu0  ;;  %v7604_v8 = vpop.f32.mrf.mxu1 }
 0x498   :  { %15976 = vst [vmem:[#allocation17_spill] sm:$0xff] %v14641_v3  ;;  %15978 = vst [vmem:[#allocation18_spill] sm:$0xff] %v14644_v53  ;;  %v10709_v52 = vld [vmem:[%s15801_s0 + $0xd60] ss:$84 sps:$4 sm:$0xff]   ;;  %v15983_v8 = vld [vmem:[#allocation11_spill] sm:$0xff] }
 0x499   :  { %v7446_v26 = vpop.f32.mrf.mxu0  ;;  %v7607_v31 = vpop.f32.mrf.mxu1  ;;  %7959 = vmatmul.mubr.bf16.gmra.mxu0 %v10703_v59  ;;  %8120 = vmatmul.mubr.bf16.gmra.mxu1 %v10706_v13  ;;  %v10712_v59 = vld [vmem:[%s15801_s0 + $0x2e8] ss:$84 sps:$4 sm:$0xff]  }
 0x49a   :  { %v14653_v5 = vadd.f32 %v7446_v26, %v14260_v18  ;;  %v14656_v20 = vadd.f32 %v7607_v31, %v14263_v2  ;;  %7966 = vmatprep.mubr.bf16.mxu0 %v10711_v43  ;;  %8127 = vmatprep.mubr.bf16.mxu1 %v10714_v12  ;;  %v15981_v13 = vld [vmem:[#allocation3_spill] sm:$0xff] }
 0x49b   :  { %v7448_v33 = vpop.f32.mrf.mxu0  ;;  %v7609_v54 = vpop.f32.mrf.mxu1  ;;  %v10718_v43 = vld [vmem:[%s15801_s0 + $0xe0c] ss:$84 sps:$4 sm:$0xff]   ;;  %v10721_v12 = vld [vmem:[%s15801_s0 + $0x394] ss:$84 sps:$4 sm:$0xff]  }
 0x49c   :  { %15979 = vst [vmem:[#allocation19_spill] sm:$0xff] %v14653_v5  ;;  %15980 = vst [vmem:[#allocation20_spill] sm:$0xff] %v14656_v20  ;;  %v15985_v20 = vld [vmem:[#allocation4_spill] sm:$0xff] }
 0x49d   :  { %v7449_v53 = vpop.f32.mrf.mxu0  ;;  %v7610_v3 = vpop.f32.mrf.mxu1 }
 0x49e   :  { %v14665_v18 = vadd.f32 %v7449_v53, %v15981_v13  ;;  %v14668_v2 = vadd.f32 %v7610_v3, %v15983_v8  ;;  %v15986_v13 = vld [vmem:[#allocation12_spill] sm:$0xff] }
 0x49f   :  { %v7451_v26 = vpop.f32.mrf.mxu0  ;;  %v7612_v31 = vpop.f32.mrf.mxu1 }
 0x4a0   :  { %15982 = vst [vmem:[#allocation9_spill] sm:$0xff] %v14665_v18  ;;  %15984 = vst [vmem:[#allocation2_spill] sm:$0xff] %v14668_v2  ;;  %v10716_v26 = vld [vmem:[%s15801_s0 + $0xe08] ss:$84 sps:$4 sm:$0xff]  }
 0x4a1   :  { %v7454_v33 = vpop.f32.mrf.mxu0  ;;  %v7615_v54 = vpop.f32.mrf.mxu1  ;;  %7967 = vmatmul.mubr.bf16.gmra.mxu0 %v10709_v52  ;;  %8128 = vmatmul.mubr.bf16.gmra.mxu1 %v10712_v59  ;;  %v10719_v52 = vld [vmem:[%s15801_s0 + $0x390] ss:$84 sps:$4 sm:$0xff]   ;;  %v15988_v59 = vld [vmem:[#allocation5_spill] sm:$0xff] }
 0x4a2   :  { %v14677_v53 = vadd.f32 %v7454_v33, %v15985_v20  ;;  %v14680_v3 = vadd.f32 %v7615_v54, %v15986_v13  ;;  %7974 = vmatprep.mubr.bf16.mxu0 %v10718_v43  ;;  %8135 = vmatprep.mubr.bf16.mxu1 %v10721_v12  ;;  %v15990_v31 = vld [vmem:[#allocation13_spill] sm:$0xff] }
 0x4a3   :  { %v7456_v8 = vpop.f32.mrf.mxu0  ;;  %v7617_v2 = vpop.f32.mrf.mxu1  ;;  %v10727_v43 = vld [vmem:[%s15801_s0 + $0x43c] ss:$84 sps:$4 sm:$0xff]  }
 0x4a4   :  { %15987 = vst [vmem:[#allocation10_spill] sm:$0xff] %v14680_v3  ;;  %v10724_v2 = vld [vmem:[%s15801_s0 + $0xeb4] ss:$84 sps:$4 sm:$0xff]  }
 0x4a5   :  { %v7457_v18 = vpop.f32.mrf.mxu0  ;;  %v7618_v5 = vpop.f32.mrf.mxu1 }
 0x4a6   :  { %v14689_v20 = vadd.f32 %v7457_v18, %v15988_v59  ;;  %v14692_v33 = vadd.f32 %v7618_v5, %v15990_v31  ;;  %v15992_v59 = vld [vmem:[#allocation6_spill] sm:$0xff] }
 0x4a7   :  { %v7459_v12 = vpop.f32.mrf.mxu0  ;;  %v7620_v54 = vpop.f32.mrf.mxu1 }
 0x4a8   :  { %15989 = vst [vmem:[#allocation3_spill] sm:$0xff] %v14689_v20  ;;  %15991 = vst [vmem:[#allocation11_spill] sm:$0xff] %v14692_v33  ;;  %v10722_v12 = vld [vmem:[%s15801_s0 + $0xeb0] ss:$84 sps:$4 sm:$0xff]   ;;  %v15995_v54 = vld [vmem:[#allocation7_spill] sm:$0xff] }
 0x4a9   :  { %v7462_v13 = vpop.f32.mrf.mxu0  ;;  %v7623_v8 = vpop.f32.mrf.mxu1  ;;  %7975 = vmatmul.mubr.bf16.gmra.mxu0 %v10716_v26  ;;  %8136 = vmatmul.mubr.bf16.gmra.mxu1 %v10719_v52  ;;  %v10725_v26 = vld [vmem:[%s15801_s0 + $0x438] ss:$84 sps:$4 sm:$0xff]   ;;  %v15993_v52 = vld [vmem:[#allocation14_spill] sm:$0xff] }
 0x4aa   :  { %v14701_v18 = vadd.f32 %v7462_v13, %v14311_v9  ;;  %v14704_v5 = vadd.f32 %v7623_v8, %v15992_v59  ;;  %7982 = vmatprep.mubr.bf16.mxu0 %v10724_v2  ;;  %8143 = vmatprep.mubr.bf16.mxu1 %v10727_v43  ;;  %v10733_v2 = vld [vmem:[%s15801_s0 + $0x4e4] ss:$84 sps:$4 sm:$0xff]  }
 0x4ab   :  { %v7464_v31 = vpop.f32.mrf.mxu0  ;;  %v7625_v33 = vpop.f32.mrf.mxu1 }
 0x4ac   :  { %v10730_v33 = vld [vmem:[%s15801_s0 + $0xf5c] ss:$84 sps:$4 sm:$0xff]  }
 0x4ad   :  { %v7465_v20 = vpop.f32.mrf.mxu0  ;;  %v7626_v3 = vpop.f32.mrf.mxu1 }
 0x4ae   :  { %v14713_v9 = vadd.f32 %v7465_v20, %v15993_v52  ;;  %v14716_v13 = vadd.f32 %v7626_v3, %v15995_v54 }
 0x4af   :  { %v7467_v43 = vpop.f32.mrf.mxu0  ;;  %v7628_v8 = vpop.f32.mrf.mxu1 }
 0x4b0   :  { %15994 = vst [vmem:[#allocation4_spill] sm:$0xff] %v14713_v9  ;;  %15996 = vst [vmem:[#allocation12_spill] sm:$0xff] %v14716_v13  ;;  %v10728_v43 = vld [vmem:[%s15801_s0 + $0xf58] ss:$84 sps:$4 sm:$0xff]   ;;  %v15999_v8 = vld [vmem:[#allocation8_spill] sm:$0xff] }
 0x4b1   :  { %v7470_v59 = vpop.f32.mrf.mxu0  ;;  %v7631_v31 = vpop.f32.mrf.mxu1  ;;  %7983 = vmatmul.mubr.bf16.gmra.mxu0 %v10722_v12  ;;  %8144 = vmatmul.mubr.bf16.gmra.mxu1 %v10725_v26  ;;  %v10731_v12 = vld [vmem:[%s15801_s0 + $0x4e0] ss:$84 sps:$4 sm:$0xff]   ;;  %v15997_v26 = vld [vmem:[#allocation15_spill] sm:$0xff] }
 0x4b2   :  { %v14725_v20 = vadd.f32 %v7470_v59, %v14335_v6  ;;  %v14728_v3 = vadd.f32 %v7631_v31, %v14338_v37  ;;  %7990 = vmatprep.mubr.bf16.mxu0 %v10730_v33  ;;  %8151 = vmatprep.mubr.bf16.mxu1 %v10733_v2  ;;  %v10736_v33 = vld [vmem:[%s15801_s0 + $0x1004] ss:$84 sps:$4 sm:$0xff]   ;;  %v10739_v2 = vld [vmem:[%s15801_s0 + $0x58c] ss:$84 sps:$4 sm:$0xff]  }
 0x4b3   :  { %v7472_v52 = vpop.f32.mrf.mxu0  ;;  %v7633_v54 = vpop.f32.mrf.mxu1 }
 0x4b5   :  { %v7473_v13 = vpop.f32.mrf.mxu0  ;;  %v7634_v9 = vpop.f32.mrf.mxu1 }
 0x4b6   :  { %v14737_v6 = vadd.f32 %v7473_v13, %v15997_v26  ;;  %v14740_v37 = vadd.f32 %v7634_v9, %v15999_v8 }
 0x4b7   :  { %v7475_v59 = vpop.f32.mrf.mxu0  ;;  %v7636_v31 = vpop.f32.mrf.mxu1 }
 0x4b8   :  { %15998 = vst [vmem:[#allocation5_spill] sm:$0xff] %v14737_v6  ;;  %16000 = vst [vmem:[#allocation13_spill] sm:$0xff] %v14740_v37  ;;  %v10734_v59 = vld [vmem:[%s15801_s0 + $0x1000] ss:$84 sps:$4 sm:$0xff]  }
 0x4b9   :  { %v7478_v52 = vpop.f32.mrf.mxu0  ;;  %v7639_v54 = vpop.f32.mrf.mxu1  ;;  %7991 = vmatmul.mubr.bf16.gmra.mxu0 %v10728_v43  ;;  %8152 = vmatmul.mubr.bf16.gmra.mxu1 %v10731_v12  ;;  %v10737_v43 = vld [vmem:[%s15801_s0 + $0x588] ss:$84 sps:$4 sm:$0xff]   ;;  %v10743_v12 = vld [vmem:[%s15801_s0 + $0x10ac] ss:$84 sps:$4 sm:$0xff]  }
 0x4ba   :  { %v14749_v13 = vadd.f32 %v7478_v52, %v14359_v62  ;;  %v14752_v9 = vadd.f32 %v7639_v54, %v14362_v55  ;;  %7998 = vmatprep.mubr.bf16.mxu0 %v10736_v33  ;;  %8159 = vmatprep.mubr.bf16.mxu1 %v10739_v2  ;;  %v10746_v33 = vld [vmem:[%s15801_s0 + $0x634] ss:$84 sps:$4 sm:$0xff]  }
 0x4bb   :  { %v7480_v26 = vpop.f32.mrf.mxu0  ;;  %v7641_v8 = vpop.f32.mrf.mxu1 }
 0x4bd   :  { %v7481_v37 = vpop.f32.mrf.mxu0  ;;  %v7642_v6 = vpop.f32.mrf.mxu1 }
 0x4be   :  { %v14761_v62 = vadd.f32 %v7481_v37, %v14371_v29  ;;  %v14764_v55 = vadd.f32 %v7642_v6, %v14374_v1 }
 0x4bf   :  { %v7483_v2 = vpop.f32.mrf.mxu0  ;;  %v7644_v31 = vpop.f32.mrf.mxu1 }
 0x4c0   :  { %v10741_v2 = vld [vmem:[%s15801_s0 + $0x10a8] ss:$84 sps:$4 sm:$0xff]  }
 0x4c1   :  { %v7647_v52 = vpop.f32.mrf.mxu1  ;;  %v7808_v54 = vpop.f32.mrf.mxu0  ;;  %7999 = vmatmul.mubr.bf16.gmra.mxu0 %v10734_v59  ;;  %8160 = vmatmul.mubr.bf16.gmra.mxu1 %v10737_v43  ;;  %v10744_v59 = vld [vmem:[%s15801_s0 + $0x630] ss:$84 sps:$4 sm:$0xff]   ;;  %v10749_v43 = vld [vmem:[%s15801_s0 + $0x1154] ss:$84 sps:$4 sm:$0xff]  }
 0x4c2   :  { %v14773_v29 = vadd.f32 %v7647_v52, %v14383_v40  ;;  %v14776_v1 = vadd.f32 %v7808_v54, %v14386_v60  ;;  %8006 = vmatprep.mubr.bf16.mxu0 %v10743_v12  ;;  %8167 = vmatprep.mubr.bf16.mxu1 %v10746_v33  ;;  %v10752_v12 = vld [vmem:[%s15801_s0 + $0x6dc] ss:$84 sps:$4 sm:$0xff]  }
 0x4c3   :  { %v7649_v6 = vpop.f32.mrf.mxu1  ;;  %v7810_v37 = vpop.f32.mrf.mxu0 }
 0x4c5   :  { %v7650_v26 = vpop.f32.mrf.mxu1  ;;  %v7811_v8 = vpop.f32.mrf.mxu0 }
 0x4c6   :  { %v14785_v40 = vadd.f32 %v7650_v26, %v14398_v16  ;;  %v14788_v60 = vadd.f32 %v7811_v8, %v14401_v27 }
 0x4c7   :  { %v7652_v33 = vpop.f32.mrf.mxu1  ;;  %v7813_v31 = vpop.f32.mrf.mxu0 }
 0x4c8   :  { %v10747_v33 = vld [vmem:[%s15801_s0 + $0x1150] ss:$84 sps:$4 sm:$0xff]  }
 0x4c9   :  { %v7655_v52 = vpop.f32.mrf.mxu1  ;;  %v7816_v54 = vpop.f32.mrf.mxu0  ;;  %8007 = vmatmul.mubr.bf16.gmra.mxu0 %v10741_v2  ;;  %8168 = vmatmul.mubr.bf16.gmra.mxu1 %v10744_v59  ;;  %v10750_v2 = vld [vmem:[%s15801_s0 + $0x6d8] ss:$84 sps:$4 sm:$0xff]   ;;  %v10755_v59 = vld [vmem:[%s15801_s0 + $0x11fc] ss:$84 sps:$4 sm:$0xff]  }
 0x4ca   :  { %v14797_v16 = vadd.f32 %v7655_v52, %v14410_v21  ;;  %v14800_v27 = vadd.f32 %v7816_v54, %v14413_v50  ;;  %8014 = vmatprep.mubr.bf16.mxu0 %v10749_v43  ;;  %8175 = vmatprep.mubr.bf16.mxu1 %v10752_v12  ;;  %v10758_v43 = vld [vmem:[%s15801_s0 + $0x784] ss:$84 sps:$4 sm:$0xff]  }
 0x4cb   :  { %v7657_v6 = vpop.f32.mrf.mxu1  ;;  %v7818_v37 = vpop.f32.mrf.mxu0 }
 0x4cd   :  { %v7658_v26 = vpop.f32.mrf.mxu1  ;;  %v7819_v8 = vpop.f32.mrf.mxu0 }
 0x4ce   :  { %v14809_v21 = vadd.f32 %v7658_v26, %v14422_v32  ;;  %v14812_v50 = vadd.f32 %v7819_v8, %v14425_v17 }
 0x4cf   :  { %v7660_v12 = vpop.f32.mrf.mxu1  ;;  %v7821_v31 = vpop.f32.mrf.mxu0 }
 0x4d0   :  { %v10753_v12 = vld [vmem:[%s15801_s0 + $0x11f8] ss:$84 sps:$4 sm:$0xff]  }
 0x4d1   :  { %v7663_v52 = vpop.f32.mrf.mxu1  ;;  %v7824_v54 = vpop.f32.mrf.mxu0  ;;  %8015 = vmatmul.mubr.bf16.gmra.mxu0 %v10747_v33  ;;  %8176 = vmatmul.mubr.bf16.gmra.mxu1 %v10750_v2  ;;  %v10756_v33 = vld [vmem:[%s15801_s0 + $0x780] ss:$84 sps:$4 sm:$0xff]  }
 0x4d2   :  { %v14821_v32 = vadd.f32 %v7663_v52, %v14434_v30  ;;  %v14824_v17 = vadd.f32 %v7824_v54, %v14437_v58  ;;  %8022 = vmatprep.mubr.bf16.mxu0 %v10755_v59  ;;  %8183 = vmatprep.mubr.bf16.mxu1 %v10758_v43  ;;  %v16001_v2 = vld [vmem:[#allocation16_spill] sm:$0xff]  ;;  %v10761_v59 = vld [vmem:[%s15801_s0 + $0x12a4] ss:$84 sps:$4 sm:$0xff]   ;;  %v10764_v43 = vld [vmem:[%s15801_s0 + $0x82c] ss:$84 sps:$4 sm:$0xff]  }
 0x4d3   :  { %v7665_v6 = vpop.f32.mrf.mxu1  ;;  %v7826_v37 = vpop.f32.mrf.mxu0 }
 0x4d5   :  { %v7666_v26 = vpop.f32.mrf.mxu1  ;;  %v7827_v8 = vpop.f32.mrf.mxu0 }
 0x4d6   :  { %v14833_v30 = vadd.f32 %v7666_v26, %v14446_v34  ;;  %v14836_v58 = vadd.f32 %v7827_v8, %v16001_v2 }
 0x4d7   :  { %v7668_v31 = vpop.f32.mrf.mxu1  ;;  %v7829_v52 = vpop.f32.mrf.mxu0 }
 0x4d8   :  { %16002 = vst [vmem:[#allocation6_spill] sm:$0xff] %v14836_v58  ;;  %v10759_v31 = vld [vmem:[%s15801_s0 + $0x12a0] ss:$84 sps:$4 sm:$0xff]  }
 0x4d9   :  { %v7671_v54 = vpop.f32.mrf.mxu1  ;;  %v7832_v6 = vpop.f32.mrf.mxu0  ;;  %8023 = vmatmul.mubr.bf16.gmra.mxu0 %v10753_v12  ;;  %8184 = vmatmul.mubr.bf16.gmra.mxu1 %v10756_v33  ;;  %v10762_v12 = vld [vmem:[%s15801_s0 + $0x828] ss:$84 sps:$4 sm:$0xff]   ;;  %v10768_v33 = vld [vmem:[%s15801_s0 + $0x134c] ss:$84 sps:$4 sm:$0xff]  }
 0x4da   :  { %v14845_v34 = vadd.f32 %v7671_v54, %v14458_v42  ;;  %v14848_v37 = vadd.f32 %v7832_v6, %v14461_v25  ;;  %8030 = vmatprep.mubr.bf16.mxu0 %v10761_v59  ;;  %8191 = vmatprep.mubr.bf16.mxu1 %v10764_v43  ;;  %v10771_v59 = vld [vmem:[%s15801_s0 + $0x8d4] ss:$84 sps:$4 sm:$0xff]  }
 0x4db   :  { %v7673_v26 = vpop.f32.mrf.mxu1  ;;  %v7834_v8 = vpop.f32.mrf.mxu0 }
 0x4dd   :  { %v7674_v2 = vpop.f32.mrf.mxu1  ;;  %v7835_v58 = vpop.f32.mrf.mxu0 }
 0x4de   :  { %v14857_v42 = vadd.f32 %v7674_v2, %v14470_v4  ;;  %v14860_v25 = vadd.f32 %v7835_v58, %v14473_v11 }
 0x4df   :  { %v7676_v43 = vpop.f32.mrf.mxu1  ;;  %v7837_v52 = vpop.f32.mrf.mxu0 }
 0x4e0   :  { %v10766_v43 = vld [vmem:[%s15801_s0 + $0x1348] ss:$84 sps:$4 sm:$0xff]  }
 0x4e1   :  { %v7679_v54 = vpop.f32.mrf.mxu1  ;;  %v7840_v6 = vpop.f32.mrf.mxu0  ;;  %8031 = vmatmul.mubr.bf16.gmra.mxu0 %v10759_v31  ;;  %8192 = vmatmul.mubr.bf16.gmra.mxu1 %v10762_v12  ;;  %v10769_v31 = vld [vmem:[%s15801_s0 + $0x8d0] ss:$84 sps:$4 sm:$0xff]   ;;  %v10774_v12 = vld [vmem:[%s15801_s0 + $0x13f4] ss:$84 sps:$4 sm:$0xff]  }
 0x4e2   :  { %v14869_v4 = vadd.f32 %v7679_v54, %v14482_v19  ;;  %v14872_v11 = vadd.f32 %v7840_v6, %v14485_v63  ;;  %8038 = vmatprep.mubr.bf16.mxu0 %v10768_v33  ;;  %8199 = vmatprep.mubr.bf16.mxu1 %v10771_v59  ;;  %v10777_v33 = vld [vmem:[%s15801_s0 + $0x97c] ss:$84 sps:$4 sm:$0xff]  }
 0x4e3   :  { %v7681_v58 = vpop.f32.mrf.mxu1  ;;  %v7842_v26 = vpop.f32.mrf.mxu0 }
 0x4e5   :  { %v7682_v8 = vpop.f32.mrf.mxu1  ;;  %v7843_v2 = vpop.f32.mrf.mxu0 }
 0x4e6   :  { %v14881_v19 = vadd.f32 %v7682_v8, %v14497_v44  ;;  %v14884_v63 = vadd.f32 %v7843_v2, %v14500_v35 }
 0x4e7   :  { %v7684_v59 = vpop.f32.mrf.mxu1  ;;  %v7845_v52 = vpop.f32.mrf.mxu0 }
 0x4e8   :  { %v10772_v59 = vld [vmem:[%s15801_s0 + $0x13f0] ss:$84 sps:$4 sm:$0xff]  }
 0x4e9   :  { %v7687_v54 = vpop.f32.mrf.mxu1  ;;  %v7848_v6 = vpop.f32.mrf.mxu0  ;;  %8039 = vmatmul.mubr.bf16.gmra.mxu0 %v10766_v43  ;;  %8200 = vmatmul.mubr.bf16.gmra.mxu1 %v10769_v31  ;;  %v10775_v43 = vld [vmem:[%s15801_s0 + $0x978] ss:$84 sps:$4 sm:$0xff]   ;;  %v10780_v31 = vld [vmem:[%s15801_s0 + $0x149c] ss:$84 sps:$4 sm:$0xff]  }
 0x4ea   :  { %v14893_v44 = vadd.f32 %v7687_v54, %v14509_v0  ;;  %v14896_v35 = vadd.f32 %v7848_v6, %v14512_v14  ;;  %8046 = vmatprep.mubr.bf16.mxu0 %v10774_v12  ;;  %8207 = vmatprep.mubr.bf16.mxu1 %v10777_v33  ;;  %v10783_v12 = vld [vmem:[%s15801_s0 + $0xa24] ss:$84 sps:$4 sm:$0xff]  }
 0x4eb   :  { %v7689_v58 = vpop.f32.mrf.mxu1  ;;  %v7850_v26 = vpop.f32.mrf.mxu0 }
 0x4ed   :  { %v7690_v8 = vpop.f32.mrf.mxu1  ;;  %v7851_v2 = vpop.f32.mrf.mxu0 }
 0x4ee   :  { %v14905_v0 = vadd.f32 %v7690_v8, %v14521_v47  ;;  %v14908_v14 = vadd.f32 %v7851_v2, %v14524_v10 }
 0x4ef   :  { %v7692_v33 = vpop.f32.mrf.mxu1  ;;  %v7853_v52 = vpop.f32.mrf.mxu0 }
 0x4f0   :  { %v10778_v33 = vld [vmem:[%s15801_s0 + $0x1498] ss:$84 sps:$4 sm:$0xff]  }
 0x4f1   :  { %v7695_v54 = vpop.f32.mrf.mxu1  ;;  %v7856_v6 = vpop.f32.mrf.mxu0  ;;  %8047 = vmatmul.mubr.bf16.gmra.mxu0 %v10772_v59  ;;  %8208 = vmatmul.mubr.bf16.gmra.mxu1 %v10775_v43  ;;  %v10781_v59 = vld [vmem:[%s15801_s0 + $0xa20] ss:$84 sps:$4 sm:$0xff]  }
 0x4f2   :  { %v14917_v47 = vadd.f32 %v7695_v54, %v14533_v24  ;;  %v14920_v10 = vadd.f32 %v7856_v6, %v14536_v61  ;;  %8054 = vmatprep.mubr.bf16.mxu0 %v10780_v31  ;;  %8215 = vmatprep.mubr.bf16.mxu1 %v10783_v12  ;;  %v10786_v43 = vld [vmem:[%s15801_s0 + $0xacc] ss:$84 sps:$4 sm:$0xff]   ;;  %v10787_v31 = vld [vmem:[%s15801_s0 + $0x50] ss:$84 sps:$4 sm:$0xff]  }
 0x4f3   :  { %v7697_v58 = vpop.f32.mrf.mxu1  ;;  %v7858_v26 = vpop.f32.mrf.mxu0 }
 0x4f5   :  { %v7698_v8 = vpop.f32.mrf.mxu1  ;;  %v7859_v2 = vpop.f32.mrf.mxu0 }
 0x4f6   :  { %v14929_v24 = vadd.f32 %v7698_v8, %v14545_v41  ;;  %v14932_v61 = vadd.f32 %v7859_v2, %v14548_v22 }
 0x4f7   :  { %v7700_v12 = vpop.f32.mrf.mxu1  ;;  %v7861_v52 = vpop.f32.mrf.mxu0 }
 0x4f8   :  { %v10784_v12 = vld [vmem:[%s15801_s0 + $0xac8] ss:$84 sps:$4 sm:$0xff]  }
 0x4f9   :  { %v7703_v54 = vpop.f32.mrf.mxu1  ;;  %v7864_v6 = vpop.f32.mrf.mxu0  ;;  %8055 = vmatmul.mubr.bf16.gmra.mxu0 %v10778_v33  ;;  %8216 = vmatmul.mubr.bf16.gmra.mxu1 %v10781_v59  ;;  %v10788_v33 = vld [vmem:[%s15801_s0 + $0xf8] ss:$84 sps:$4 sm:$0xff]   ;;  %v10791_v59 = vld [vmem:[%s15801_s0 + $0xb74] ss:$84 sps:$4 sm:$0xff]  }
 0x4fa   :  { %v14941_v41 = vadd.f32 %v7703_v54, %v14557_v48  ;;  %v14944_v22 = vadd.f32 %v7864_v6, %v14560_v28  ;;  %8223 = vmatprep.mubr.bf16.mxu1 %v10786_v43  ;;  %9607 = vmatprep.mubr.bf16.mxu0 %v10787_v31  ;;  %v10792_v43 = vld [vmem:[%s15801_s0 + $0x1a0] ss:$84 sps:$4 sm:$0xff]  }
 0x4fb   :  { %v7705_v58 = vpop.f32.mrf.mxu1  ;;  %v7866_v26 = vpop.f32.mrf.mxu0 }
 0x4fd   :  { %v7706_v8 = vpop.f32.mrf.mxu1  ;;  %v7867_v2 = vpop.f32.mrf.mxu0 }
 0x4fe   :  { %v14953_v48 = vadd.f32 %v7706_v8, %v14569_v23  ;;  %v14956_v28 = vadd.f32 %v7867_v2, %v14572_v15 }
 0x4ff   :  { %v7708_v31 = vpop.f32.mrf.mxu1  ;;  %v7869_v52 = vpop.f32.mrf.mxu0 }
 0x500   :  { %v10789_v31 = vld [vmem:[%s15801_s0 + $0xb70] ss:$84 sps:$4 sm:$0xff]  }
 0x501   :  { %v7711_v54 = vpop.f32.mrf.mxu1  ;;  %v7872_v6 = vpop.f32.mrf.mxu0  ;;  %8224 = vmatmul.mubr.bf16.gmra.mxu1 %v10784_v12  ;;  %9608 = vmatmul.mubr.bf16.vlgmr.msra.gmra.mxu0 %v10788_v33  ;;  %v10793_v12 = vld [vmem:[%s15801_s0 + $0x248] ss:$84 sps:$4 sm:$0xff]  }
 0x502   :  { %v14965_v23 = vadd.f32 %v7711_v54, %v14581_v46  ;;  %v14968_v15 = vadd.f32 %v7872_v6, %v14584_v57  ;;  %8231 = vmatprep.mubr.bf16.mxu1 %v10791_v59  ;;  %9611 = vmatprep.mubr.bf16.mxu0 %v10792_v43  ;;  %v10796_v33 = vld [vmem:[%s15801_s0 + $0xc1c] ss:$84 sps:$4 sm:$0xff]  }
 0x503   :  { %v7713_v58 = vpop.f32.mrf.mxu1  ;;  %v7874_v26 = vpop.f32.mrf.mxu0  ;;  %v10797_v59 = vld [vmem:[%s15801_s0 + $0x2f0] ss:$84 sps:$4 sm:$0xff]  }
 0x505   :  { %v7714_v8 = vpop.f32.mrf.mxu1  ;;  %v7875_v2 = vpop.f32.mrf.mxu0 }
 0x506   :  { %v14977_v46 = vadd.f32 %v7714_v8, %v14593_v36  ;;  %v14980_v57 = vadd.f32 %v7875_v2, %v14596_v56 }
 0x507   :  { %v7716_v43 = vpop.f32.mrf.mxu1  ;;  %v7877_v52 = vpop.f32.mrf.mxu0 }
 0x508   :  { %v10794_v43 = vld [vmem:[%s15801_s0 + $0xc18] ss:$84 sps:$4 sm:$0xff]  }
 0x509   :  { %v7719_v54 = vpop.f32.mrf.mxu1  ;;  %v7880_v6 = vpop.f32.mrf.mxu0  ;;  %8232 = vmatmul.mubr.bf16.gmra.mxu1 %v10789_v31  ;;  %9612 = vmatmul.mubr.bf16.gmra.mxu0 %v10793_v12  ;;  %v10798_v31 = vld [vmem:[%s15801_s0 + $0x398] ss:$84 sps:$4 sm:$0xff]  }
 0x50a   :  { %v14989_v36 = vadd.f32 %v7719_v54, %v14605_v38  ;;  %v14992_v56 = vadd.f32 %v7880_v6, %v14608_v49  ;;  %8239 = vmatprep.mubr.bf16.mxu1 %v10796_v33  ;;  %9615 = vmatprep.mubr.bf16.mxu0 %v10797_v59  ;;  %v10801_v12 = vld [vmem:[%s15801_s0 + $0xcc4] ss:$84 sps:$4 sm:$0xff]   ;;  %v10802_v33 = vld [vmem:[%s15801_s0 + $0x440] ss:$84 sps:$4 sm:$0xff]  }
 0x50b   :  { %v7721_v58 = vpop.f32.mrf.mxu1  ;;  %v7882_v26 = vpop.f32.mrf.mxu0 }
 0x50d   :  { %v7722_v8 = vpop.f32.mrf.mxu1  ;;  %v7883_v2 = vpop.f32.mrf.mxu0 }
 0x50e   :  { %v15001_v38 = vadd.f32 %v7722_v8, %v14617_v51  ;;  %v15004_v49 = vadd.f32 %v7883_v2, %v14620_v39 }
 0x50f   :  { %v7724_v59 = vpop.f32.mrf.mxu1  ;;  %v7885_v52 = vpop.f32.mrf.mxu0 }
 0x510   :  { %v10799_v59 = vld [vmem:[%s15801_s0 + $0xcc0] ss:$84 sps:$4 sm:$0xff]  }
 0x511   :  { %v7727_v54 = vpop.f32.mrf.mxu1  ;;  %v7888_v6 = vpop.f32.mrf.mxu0  ;;  %8240 = vmatmul.mubr.bf16.gmra.mxu1 %v10794_v43  ;;  %9616 = vmatmul.mubr.bf16.gmra.mxu0 %v10798_v31  ;;  %v10803_v43 = vld [vmem:[%s15801_s0 + $0x4e8] ss:$84 sps:$4 sm:$0xff]   ;;  %v16007_v52 = vld [vmem:[#allocation18_spill] sm:$0xff] }
 0x512   :  { %v15013_v51 = vadd.f32 %v7727_v54, %v14629_v45  ;;  %v15016_v39 = vadd.f32 %v7888_v6, %v14632_v7  ;;  %8247 = vmatprep.mubr.bf16.mxu1 %v10801_v12  ;;  %9619 = vmatprep.mubr.bf16.mxu0 %v10802_v33  ;;  %v16005_v31 = vld [vmem:[#allocation17_spill] sm:$0xff]  ;;  %v10806_v12 = vld [vmem:[%s15801_s0 + $0xd6c] ss:$84 sps:$4 sm:$0xff]   ;;  %v10807_v33 = vld [vmem:[%s15801_s0 + $0x590] ss:$84 sps:$4 sm:$0xff]  }
 0x513   :  { %v7729_v58 = vpop.f32.mrf.mxu1  ;;  %v7890_v26 = vpop.f32.mrf.mxu0 }
 0x514   :  { %16003 = vst [vmem:[#allocation14_spill] sm:$0xff] %v15013_v51  ;;  %16004 = vst [vmem:[#allocation7_spill] sm:$0xff] %v15016_v39  ;;  %v16009_v39 = vld [vmem:[#allocation19_spill] sm:$0xff] }
 0x515   :  { %v7730_v8 = vpop.f32.mrf.mxu1  ;;  %v7891_v2 = vpop.f32.mrf.mxu0 }
 0x516   :  { %v15025_v45 = vadd.f32 %v7730_v8, %v16005_v31  ;;  %v15028_v7 = vadd.f32 %v7891_v2, %v16007_v52  ;;  %v16010_v31 = vld [vmem:[#allocation20_spill] sm:$0xff] }
 0x517   :  { %v7732_v54 = vpop.f32.mrf.mxu1  ;;  %v7893_v6 = vpop.f32.mrf.mxu0 }
 0x518   :  { %16006 = vst [vmem:[#allocation15_spill] sm:$0xff] %v15025_v45  ;;  %16008 = vst [vmem:[#allocation8_spill] sm:$0xff] %v15028_v7  ;;  %v10804_v54 = vld [vmem:[%s15801_s0 + $0xd68] ss:$84 sps:$4 sm:$0xff]   ;;  %v16014_v6 = vld [vmem:[#allocation2_spill] sm:$0xff] }
 0x519   :  { %v7735_v58 = vpop.f32.mrf.mxu1  ;;  %v7896_v26 = vpop.f32.mrf.mxu0  ;;  %8248 = vmatmul.mubr.bf16.gmra.mxu1 %v10799_v59  ;;  %9620 = vmatmul.mubr.bf16.gmra.mxu0 %v10803_v43  ;;  %v10808_v59 = vld [vmem:[%s15801_s0 + $0x638] ss:$84 sps:$4 sm:$0xff]  }
 0x51a   :  { %v15037_v8 = vadd.f32 %v7735_v58, %v16009_v39  ;;  %v15040_v2 = vadd.f32 %v7896_v26, %v16010_v31  ;;  %8255 = vmatprep.mubr.bf16.mxu1 %v10806_v12  ;;  %9623 = vmatprep.mubr.bf16.mxu0 %v10807_v33  ;;  %v16012_v43 = vld [vmem:[#allocation9_spill] sm:$0xff]  ;;  %v10812_v12 = vld [vmem:[%s15801_s0 + $0x6e0] ss:$84 sps:$4 sm:$0xff]  }
 0x51b   :  { %v7737_v52 = vpop.f32.mrf.mxu1  ;;  %v7898_v7 = vpop.f32.mrf.mxu0 }
 0x51c   :  { %16011 = vst [vmem:[#allocation16_spill] sm:$0xff] %v15040_v2  ;;  %v10811_v7 = vld [vmem:[%s15801_s0 + $0xe14] ss:$84 sps:$4 sm:$0xff]  }
 0x51d   :  { %v7738_v45 = vpop.f32.mrf.mxu1  ;;  %v7899_v51 = vpop.f32.mrf.mxu0 }
 0x51e   :  { %v15049_v39 = vadd.f32 %v7738_v45, %v16012_v43  ;;  %v15052_v58 = vadd.f32 %v7899_v51, %v16014_v6  ;;  %v16016_v43 = vld [vmem:[#allocation10_spill] sm:$0xff] }
 0x51f   :  { %v7740_v33 = vpop.f32.mrf.mxu1  ;;  %v7901_v26 = vpop.f32.mrf.mxu0 }
 0x520   :  { %16013 = vst [vmem:[#allocation17_spill] sm:$0xff] %v15049_v39  ;;  %16015 = vst [vmem:[#allocation18_spill] sm:$0xff] %v15052_v58  ;;  %v10809_v33 = vld [vmem:[%s15801_s0 + $0xe10] ss:$84 sps:$4 sm:$0xff]   ;;  %v16019_v26 = vld [vmem:[#allocation11_spill] sm:$0xff] }
 0x521   :  { %v7743_v31 = vpop.f32.mrf.mxu1  ;;  %v7904_v52 = vpop.f32.mrf.mxu0  ;;  %8256 = vmatmul.mubr.bf16.gmra.mxu1 %v10804_v54  ;;  %9624 = vmatmul.mubr.bf16.gmra.mxu0 %v10808_v59  ;;  %v10813_v54 = vld [vmem:[%s15801_s0 + $0x788] ss:$84 sps:$4 sm:$0xff]  }
 0x522   :  { %v15061_v45 = vadd.f32 %v7743_v31, %v14677_v53  ;;  %v15064_v51 = vadd.f32 %v7904_v52, %v16016_v43  ;;  %8263 = vmatprep.mubr.bf16.mxu1 %v10811_v7  ;;  %9627 = vmatprep.mubr.bf16.mxu0 %v10812_v12  ;;  %v16017_v59 = vld [vmem:[#allocation3_spill] sm:$0xff]  ;;  %v10817_v7 = vld [vmem:[%s15801_s0 + $0x830] ss:$84 sps:$4 sm:$0xff]  }
 0x523   :  { %v7745_v6 = vpop.f32.mrf.mxu1  ;;  %v7906_v58 = vpop.f32.mrf.mxu0 }
 0x524   :  { %v10816_v58 = vld [vmem:[%s15801_s0 + $0xebc] ss:$84 sps:$4 sm:$0xff]  }
 0x525   :  { %v7746_v39 = vpop.f32.mrf.mxu1  ;;  %v7907_v2 = vpop.f32.mrf.mxu0 }
 0x526   :  { %v15073_v53 = vadd.f32 %v7746_v39, %v16017_v59  ;;  %v15076_v31 = vadd.f32 %v7907_v2, %v16019_v26 }
 0x527   :  { %v7748_v12 = vpop.f32.mrf.mxu1  ;;  %v7909_v52 = vpop.f32.mrf.mxu0 }
 0x528   :  { %16018 = vst [vmem:[#allocation19_spill] sm:$0xff] %v15073_v53  ;;  %16020 = vst [vmem:[#allocation20_spill] sm:$0xff] %v15076_v31  ;;  %v10814_v12 = vld [vmem:[%s15801_s0 + $0xeb8] ss:$84 sps:$4 sm:$0xff]   ;;  %v16023_v52 = vld [vmem:[#allocation12_spill] sm:$0xff] }
 0x529   :  { %v7751_v43 = vpop.f32.mrf.mxu1  ;;  %v7912_v6 = vpop.f32.mrf.mxu0  ;;  %8264 = vmatmul.mubr.bf16.gmra.mxu1 %v10809_v33  ;;  %9628 = vmatmul.mubr.bf16.gmra.mxu0 %v10813_v54  ;;  %v10818_v33 = vld [vmem:[%s15801_s0 + $0x8d8] ss:$84 sps:$4 sm:$0xff]   ;;  %v16021_v54 = vld [vmem:[#allocation4_spill] sm:$0xff] }
 0x52a   :  { %v15085_v39 = vadd.f32 %v7751_v43, %v14701_v18  ;;  %v15088_v2 = vadd.f32 %v7912_v6, %v14704_v5  ;;  %8271 = vmatprep.mubr.bf16.mxu1 %v10816_v58  ;;  %9631 = vmatprep.mubr.bf16.mxu0 %v10817_v7  ;;  %v10821_v58 = vld [vmem:[%s15801_s0 + $0xf64] ss:$84 sps:$4 sm:$0xff]   ;;  %v10822_v7 = vld [vmem:[%s15801_s0 + $0x980] ss:$84 sps:$4 sm:$0xff]  }
 0x52b   :  { %v7753_v59 = vpop.f32.mrf.mxu1  ;;  %v7914_v26 = vpop.f32.mrf.mxu0 }
 0x52d   :  { %v7754_v31 = vpop.f32.mrf.mxu1  ;;  %v7915_v53 = vpop.f32.mrf.mxu0 }
 0x52e   :  { %v15097_v18 = vadd.f32 %v7754_v31, %v16021_v54  ;;  %v15100_v5 = vadd.f32 %v7915_v53, %v16023_v52 }
 0x52f   :  { %v7756_v43 = vpop.f32.mrf.mxu1  ;;  %v7917_v6 = vpop.f32.mrf.mxu0 }
 0x530   :  { %16022 = vst [vmem:[#allocation9_spill] sm:$0xff] %v15097_v18  ;;  %16024 = vst [vmem:[#allocation2_spill] sm:$0xff] %v15100_v5  ;;  %v10819_v43 = vld [vmem:[%s15801_s0 + $0xf60] ss:$84 sps:$4 sm:$0xff]   ;;  %v16027_v6 = vld [vmem:[#allocation13_spill] sm:$0xff] }
 0x531   :  { %v7759_v59 = vpop.f32.mrf.mxu1  ;;  %v7920_v26 = vpop.f32.mrf.mxu0  ;;  %8272 = vmatmul.mubr.bf16.gmra.mxu1 %v10814_v12  ;;  %9632 = vmatmul.mubr.bf16.gmra.mxu0 %v10818_v33  ;;  %v10823_v12 = vld [vmem:[%s15801_s0 + $0xa28] ss:$84 sps:$4 sm:$0xff]  }
 0x532   :  { %v15109_v31 = vadd.f32 %v7759_v59, %v14725_v20  ;;  %v15112_v53 = vadd.f32 %v7920_v26, %v14728_v3  ;;  %8279 = vmatprep.mubr.bf16.mxu1 %v10821_v58  ;;  %9635 = vmatprep.mubr.bf16.mxu0 %v10822_v7  ;;  %v16025_v33 = vld [vmem:[#allocation5_spill] sm:$0xff]  ;;  %v10826_v58 = vld [vmem:[%s15801_s0 + $0x100c] ss:$84 sps:$4 sm:$0xff]   ;;  %v10827_v7 = vld [vmem:[%s15801_s0 + $0xad0] ss:$84 sps:$4 sm:$0xff]  }
 0x533   :  { %v7761_v54 = vpop.f32.mrf.mxu1  ;;  %v7922_v52 = vpop.f32.mrf.mxu0 }
 0x535   :  { %v7762_v5 = vpop.f32.mrf.mxu1  ;;  %v7923_v18 = vpop.f32.mrf.mxu0 }
 0x536   :  { %v15121_v20 = vadd.f32 %v7762_v5, %v16025_v33  ;;  %v15124_v3 = vadd.f32 %v7923_v18, %v16027_v6 }
 0x537   :  { %v7764_v59 = vpop.f32.mrf.mxu1  ;;  %v7925_v26 = vpop.f32.mrf.mxu0 }
 0x538   :  { %16026 = vst [vmem:[#allocation10_spill] sm:$0xff] %v15121_v20  ;;  %16028 = vst [vmem:[#allocation3_spill] sm:$0xff] %v15124_v3  ;;  %v10824_v59 = vld [vmem:[%s15801_s0 + $0x1008] ss:$84 sps:$4 sm:$0xff]  }
 0x539   :  { %v7767_v54 = vpop.f32.mrf.mxu1  ;;  %v7928_v52 = vpop.f32.mrf.mxu0  ;;  %8280 = vmatmul.mubr.bf16.gmra.mxu1 %v10819_v43  ;;  %9636 = vmatmul.mubr.bf16.gmra.mxu0 %v10823_v12  ;;  %v10828_v43 = vld [vmem:[%s15801_s0 + $0xb78] ss:$84 sps:$4 sm:$0xff]   ;;  %v10831_v12 = vld [vmem:[%s15801_s0 + $0x10b4] ss:$84 sps:$4 sm:$0xff]  }
 0x53a   :  { %v15133_v5 = vadd.f32 %v7767_v54, %v14749_v13  ;;  %v15136_v18 = vadd.f32 %v7928_v52, %v14752_v9  ;;  %8287 = vmatprep.mubr.bf16.mxu1 %v10826_v58  ;;  %9639 = vmatprep.mubr.bf16.mxu0 %v10827_v7  ;;  %v10832_v58 = vld [vmem:[%s15801_s0 + $0xc20] ss:$84 sps:$4 sm:$0xff]  }
 0x53b   :  { %v7769_v33 = vpop.f32.mrf.mxu1  ;;  %v7930_v6 = vpop.f32.mrf.mxu0 }
 0x53d   :  { %v7770_v3 = vpop.f32.mrf.mxu1  ;;  %v7931_v20 = vpop.f32.mrf.mxu0 }
 0x53e   :  { %v15145_v13 = vadd.f32 %v7770_v3, %v14761_v62  ;;  %v15148_v9 = vadd.f32 %v7931_v20, %v14764_v55 }
 0x53f   :  { %v7772_v7 = vpop.f32.mrf.mxu1  ;;  %v7933_v26 = vpop.f32.mrf.mxu0 }
 0x540   :  { %v10829_v7 = vld [vmem:[%s15801_s0 + $0x10b0] ss:$84 sps:$4 sm:$0xff]  }
 0x541   :  { %v7936_v54 = vpop.f32.mrf.mxu0  ;;  %v8097_v52 = vpop.f32.mrf.mxu1  ;;  %8288 = vmatmul.mubr.bf16.gmra.mxu1 %v10824_v59  ;;  %9640 = vmatmul.mubr.bf16.gmra.mxu0 %v10828_v43  ;;  %v10833_v59 = vld [vmem:[%s15801_s0 + $0xcc8] ss:$84 sps:$4 sm:$0xff]  }
 0x542   :  { %v15157_v62 = vadd.f32 %v7936_v54, %v14773_v29  ;;  %v15160_v55 = vadd.f32 %v8097_v52, %v14776_v1  ;;  %8295 = vmatprep.mubr.bf16.mxu1 %v10831_v12  ;;  %9643 = vmatprep.mubr.bf16.mxu0 %v10832_v58  ;;  %v10836_v43 = vld [vmem:[%s15801_s0 + $0x115c] ss:$84 sps:$4 sm:$0xff]  }
 0x543   :  { %v7938_v20 = vpop.f32.mrf.mxu0  ;;  %v8099_v3 = vpop.f32.mrf.mxu1  ;;  %v10837_v12 = vld [vmem:[%s15801_s0 + $0xd70] ss:$84 sps:$4 sm:$0xff]  }
 0x545   :  { %v7939_v33 = vpop.f32.mrf.mxu0  ;;  %v8100_v6 = vpop.f32.mrf.mxu1 }
 0x546   :  { %v15169_v29 = vadd.f32 %v7939_v33, %v14785_v40  ;;  %v15172_v1 = vadd.f32 %v8100_v6, %v14788_v60 }
 0x547   :  { %v7941_v58 = vpop.f32.mrf.mxu0  ;;  %v8102_v26 = vpop.f32.mrf.mxu1 }
 0x548   :  { %v10834_v58 = vld [vmem:[%s15801_s0 + $0x1158] ss:$84 sps:$4 sm:$0xff]  }
 0x549   :  { %v7944_v54 = vpop.f32.mrf.mxu0  ;;  %v8105_v52 = vpop.f32.mrf.mxu1  ;;  %8296 = vmatmul.mubr.bf16.gmra.mxu1 %v10829_v7  ;;  %9644 = vmatmul.mubr.bf16.gmra.mxu0 %v10833_v59  ;;  %v10838_v7 = vld [vmem:[%s15801_s0 + $0xe18] ss:$84 sps:$4 sm:$0xff]  }
 0x54a   :  { %v15181_v40 = vadd.f32 %v7944_v54, %v14797_v16  ;;  %v15184_v60 = vadd.f32 %v8105_v52, %v14800_v27  ;;  %8303 = vmatprep.mubr.bf16.mxu1 %v10836_v43  ;;  %9647 = vmatprep.mubr.bf16.mxu0 %v10837_v12  ;;  %v10841_v59 = vld [vmem:[%s15801_s0 + $0x1204] ss:$84 sps:$4 sm:$0xff]   ;;  %v10842_v43 = vld [vmem:[%s15801_s0 + $0xec0] ss:$84 sps:$4 sm:$0xff]  }
 0x54b   :  { %v7946_v20 = vpop.f32.mrf.mxu0  ;;  %v8107_v3 = vpop.f32.mrf.mxu1 }
 0x54d   :  { %v7947_v33 = vpop.f32.mrf.mxu0  ;;  %v8108_v6 = vpop.f32.mrf.mxu1 }
 0x54e   :  { %v15193_v16 = vadd.f32 %v7947_v33, %v14809_v21  ;;  %v15196_v27 = vadd.f32 %v8108_v6, %v14812_v50 }
 0x54f   :  { %v7949_v12 = vpop.f32.mrf.mxu0  ;;  %v8110_v26 = vpop.f32.mrf.mxu1 }
 0x550   :  { %v10839_v12 = vld [vmem:[%s15801_s0 + $0x1200] ss:$84 sps:$4 sm:$0xff]  }
 0x551   :  { %v7952_v54 = vpop.f32.mrf.mxu0  ;;  %v8113_v52 = vpop.f32.mrf.mxu1  ;;  %8304 = vmatmul.mubr.bf16.gmra.mxu1 %v10834_v58  ;;  %9648 = vmatmul.mubr.bf16.gmra.mxu0 %v10838_v7  ;;  %v10843_v58 = vld [vmem:[%s15801_s0 + $0xf68] ss:$84 sps:$4 sm:$0xff]   ;;  %v16030_v7 = vld [vmem:[#allocation6_spill] sm:$0xff] }
 0x552   :  { %v15205_v21 = vadd.f32 %v7952_v54, %v14821_v32  ;;  %v15208_v50 = vadd.f32 %v8113_v52, %v14824_v17  ;;  %8311 = vmatprep.mubr.bf16.mxu1 %v10841_v59  ;;  %9651 = vmatprep.mubr.bf16.mxu0 %v10842_v43  ;;  %v10846_v59 = vld [vmem:[%s15801_s0 + $0x12ac] ss:$84 sps:$4 sm:$0xff]   ;;  %v10847_v43 = vld [vmem:[%s15801_s0 + $0x1010] ss:$84 sps:$4 sm:$0xff]  }
 0x553   :  { %v7954_v20 = vpop.f32.mrf.mxu0  ;;  %v8115_v3 = vpop.f32.mrf.mxu1 }
 0x555   :  { %v7955_v33 = vpop.f32.mrf.mxu0  ;;  %v8116_v6 = vpop.f32.mrf.mxu1 }
 0x556   :  { %v15217_v32 = vadd.f32 %v7955_v33, %v14833_v30  ;;  %v15220_v17 = vadd.f32 %v8116_v6, %v16030_v7 }
 0x557   :  { %v7957_v26 = vpop.f32.mrf.mxu0  ;;  %v8118_v54 = vpop.f32.mrf.mxu1 }
 0x558   :  { %16029 = vst [vmem:[#allocation11_spill] sm:$0xff] %v15217_v32  ;;  %v10844_v26 = vld [vmem:[%s15801_s0 + $0x12a8] ss:$84 sps:$4 sm:$0xff]  }
 0x559   :  { %v7960_v52 = vpop.f32.mrf.mxu0  ;;  %v8121_v20 = vpop.f32.mrf.mxu1  ;;  %8312 = vmatmul.mubr.bf16.gmra.mxu1 %v10839_v12  ;;  %9652 = vmatmul.mubr.bf16.gmra.mxu0 %v10843_v58  ;;  %v10848_v12 = vld [vmem:[%s15801_s0 + $0x10b8] ss:$84 sps:$4 sm:$0xff]   ;;  %v10851_v58 = vld [vmem:[%s15801_s0 + $0x1354] ss:$84 sps:$4 sm:$0xff]  }
 0x55a   :  { %v15229_v30 = vadd.f32 %v7960_v52, %v14845_v34  ;;  %v15232_v3 = vadd.f32 %v8121_v20, %v14848_v37  ;;  %8319 = vmatprep.mubr.bf16.mxu1 %v10846_v59  ;;  %9655 = vmatprep.mubr.bf16.mxu0 %v10847_v43  ;;  %v10852_v59 = vld [vmem:[%s15801_s0 + $0x1160] ss:$84 sps:$4 sm:$0xff]  }
 0x55b   :  { %v7962_v33 = vpop.f32.mrf.mxu0  ;;  %v8123_v6 = vpop.f32.mrf.mxu1 }
 0x55d   :  { %v7963_v7 = vpop.f32.mrf.mxu0  ;;  %v8124_v32 = vpop.f32.mrf.mxu1 }
 0x55e   :  { %v15241_v34 = vadd.f32 %v7963_v7, %v14857_v42  ;;  %v15244_v37 = vadd.f32 %v8124_v32, %v14860_v25 }
 0x55f   :  { %v7965_v43 = vpop.f32.mrf.mxu0  ;;  %v8126_v54 = vpop.f32.mrf.mxu1 }
 0x560   :  { %v10849_v43 = vld [vmem:[%s15801_s0 + $0x1350] ss:$84 sps:$4 sm:$0xff]  }
 0x561   :  { %v7968_v52 = vpop.f32.mrf.mxu0  ;;  %v8129_v20 = vpop.f32.mrf.mxu1  ;;  %8320 = vmatmul.mubr.bf16.gmra.mxu1 %v10844_v26  ;;  %9656 = vmatmul.mubr.bf16.gmra.mxu0 %v10848_v12  ;;  %v10853_v26 = vld [vmem:[%s15801_s0 + $0x1208] ss:$84 sps:$4 sm:$0xff]  }
 0x562   :  { %v15253_v42 = vadd.f32 %v7968_v52, %v14869_v4  ;;  %v15256_v25 = vadd.f32 %v8129_v20, %v14872_v11  ;;  %8327 = vmatprep.mubr.bf16.mxu1 %v10851_v58  ;;  %9659 = vmatprep.mubr.bf16.mxu0 %v10852_v59  ;;  %v10856_v12 = vld [vmem:[%s15801_s0 + $0x13fc] ss:$84 sps:$4 sm:$0xff]  }
 0x563   :  { %v7970_v32 = vpop.f32.mrf.mxu0  ;;  %v8131_v33 = vpop.f32.mrf.mxu1  ;;  %v10857_v58 = vld [vmem:[%s15801_s0 + $0x12b0] ss:$84 sps:$4 sm:$0xff]  }
 0x565   :  { %v7971_v6 = vpop.f32.mrf.mxu0  ;;  %v8132_v7 = vpop.f32.mrf.mxu1 }
 0x566   :  { %v15265_v4 = vadd.f32 %v7971_v6, %v14881_v19  ;;  %v15268_v11 = vadd.f32 %v8132_v7, %v14884_v63 }
 0x567   :  { %v7973_v59 = vpop.f32.mrf.mxu0  ;;  %v8134_v54 = vpop.f32.mrf.mxu1 }
 0x568   :  { %v10854_v59 = vld [vmem:[%s15801_s0 + $0x13f8] ss:$84 sps:$4 sm:$0xff]  }
 0x569   :  { %v7976_v52 = vpop.f32.mrf.mxu0  ;;  %v8137_v20 = vpop.f32.mrf.mxu1  ;;  %8328 = vmatmul.mubr.bf16.gmra.mxu1 %v10849_v43  ;;  %9660 = vmatmul.mubr.bf16.gmra.mxu0 %v10853_v26  ;;  %v10858_v43 = vld [vmem:[%s15801_s0 + $0x1358] ss:$84 sps:$4 sm:$0xff]  }
 0x56a   :  { %v15277_v19 = vadd.f32 %v7976_v52, %v14893_v44  ;;  %v15280_v63 = vadd.f32 %v8137_v20, %v14896_v35  ;;  %8335 = vmatprep.mubr.bf16.mxu1 %v10856_v12  ;;  %9663 = vmatprep.mubr.bf16.mxu0 %v10857_v58  ;;  %v10861_v26 = vld [vmem:[%s15801_s0 + $0x14a4] ss:$84 sps:$4 sm:$0xff]   ;;  %v10862_v12 = vld [vmem:[%s15801_s0 + $0x1400] ss:$84 sps:$4 sm:$0xff]  }
 0x56b   :  { %v7978_v32 = vpop.f32.mrf.mxu0  ;;  %v8139_v33 = vpop.f32.mrf.mxu1 }
 0x56d   :  { %v7979_v6 = vpop.f32.mrf.mxu0  ;;  %v8140_v7 = vpop.f32.mrf.mxu1 }
 0x56e   :  { %v15289_v44 = vadd.f32 %v7979_v6, %v14905_v0  ;;  %v15292_v35 = vadd.f32 %v8140_v7, %v14908_v14 }
 0x56f   :  { %v7981_v58 = vpop.f32.mrf.mxu0  ;;  %v8142_v54 = vpop.f32.mrf.mxu1 }
 0x570   :  { %v10859_v58 = vld [vmem:[%s15801_s0 + $0x14a0] ss:$84 sps:$4 sm:$0xff]  }
 0x571   :  { %v7984_v52 = vpop.f32.mrf.mxu0  ;;  %v8145_v20 = vpop.f32.mrf.mxu1  ;;  %8336 = vmatmul.mubr.bf16.gmra.mxu1 %v10854_v59  ;;  %9664 = vmatmul.mubr.bf16.gmra.mxu0 %v10858_v43  ;;  %v10863_v59 = vld [vmem:[%s15801_s0 + $0x14a8] ss:$84 sps:$4 sm:$0xff]  }
 0x572   :  { %v15301_v0 = vadd.f32 %v7984_v52, %v14917_v47  ;;  %v15304_v14 = vadd.f32 %v8145_v20, %v14920_v10  ;;  %8343 = vmatprep.mubr.bf16.mxu1 %v10861_v26  ;;  %9667 = vmatprep.mubr.bf16.mxu0 %v10862_v12 }
 0x573   :  { %v7986_v32 = vpop.f32.mrf.mxu0  ;;  %v8147_v33 = vpop.f32.mrf.mxu1 }
 0x574   :  { %16031 = vst [vmem:[#allocation4_spill] sm:$0xff] %v15301_v0 }
 0x575   :  { %v7987_v6 = vpop.f32.mrf.mxu0  ;;  %v8148_v7 = vpop.f32.mrf.mxu1 }
 0x576   :  { %v15313_v47 = vadd.f32 %v7987_v6, %v14929_v24  ;;  %v15316_v10 = vadd.f32 %v8148_v7, %v14932_v61 }
 0x577   :  { %v7989_v43 = vpop.f32.mrf.mxu0  ;;  %v8150_v26 = vpop.f32.mrf.mxu1 }
 0x579   :  { %v7992_v12 = vpop.f32.mrf.mxu0  ;;  %v8153_v54 = vpop.f32.mrf.mxu1  ;;  %8344 = vmatmul.mubr.bf16.gmra.mxu1 %v10859_v58  ;;  %9668 = vmatmul.mubr.bf16.gmra.mxu0 %v10863_v59 }
 0x57a   :  { %v15319_v52 = vadd.f32 %v7992_v12, %v14941_v41  ;;  %v15322_v20 = vadd.f32 %v8153_v54, %v14944_v22 }
 0x57b   :  { %v7994_v32 = vpop.f32.mrf.mxu0  ;;  %v8155_v33 = vpop.f32.mrf.mxu1 }
 0x57d   :  { %v7995_v0 = vpop.f32.mrf.mxu0  ;;  %v8156_v24 = vpop.f32.mrf.mxu1 }
 0x57e   :  { %v15325_v6 = vadd.f32 %v7995_v0, %v14953_v48  ;;  %v15328_v61 = vadd.f32 %v8156_v24, %v14956_v28 }
 0x57f   :  { %v7997_v7 = vpop.f32.mrf.mxu0  ;;  %v8158_v43 = vpop.f32.mrf.mxu1 }
 0x581   :  { %v8000_v58 = vpop.f32.mrf.mxu0  ;;  %v8161_v59 = vpop.f32.mrf.mxu1 }
 0x582   :  { %v15331_v41 = vadd.f32 %v8000_v58, %v14965_v23  ;;  %v15334_v22 = vadd.f32 %v8161_v59, %v14968_v15 }
 0x583   :  { %v8002_v26 = vpop.f32.mrf.mxu0  ;;  %v8163_v12 = vpop.f32.mrf.mxu1 }
 0x584   :  { %16032 = vst [vmem:[#allocation12_spill] sm:$0xff] %v15331_v41  ;;  %v16039_v41 = vld [vmem:[#allocation15_spill] sm:$0xff] }
 0x585   :  { %v8003_v54 = vpop.f32.mrf.mxu0  ;;  %v8164_v32 = vpop.f32.mrf.mxu1 }
 0x586   :  { %v15337_v48 = vadd.f32 %v8003_v54, %v14977_v46  ;;  %v15340_v28 = vadd.f32 %v8164_v32, %v14980_v57 }
 0x587   :  { %v8005_v0 = vpop.f32.mrf.mxu0  ;;  %v8166_v33 = vpop.f32.mrf.mxu1 }
 0x588   :  { %16033 = vst [vmem:[#allocation5_spill] sm:$0xff] %v15337_v48  ;;  %v16036_v33 = vld [vmem:[#allocation14_spill] sm:$0xff] }
 0x589   :  { %v8008_v24 = vpop.f32.mrf.mxu0  ;;  %v8169_v7 = vpop.f32.mrf.mxu1 }
 0x58a   :  { %v15343_v23 = vadd.f32 %v8008_v24, %v14989_v36  ;;  %v15346_v15 = vadd.f32 %v8169_v7, %v14992_v56  ;;  %v16038_v24 = vld [vmem:[#allocation7_spill] sm:$0xff] }
 0x58b   :  { %v8010_v43 = vpop.f32.mrf.mxu0  ;;  %v8171_v58 = vpop.f32.mrf.mxu1 }
 0x58c   :  { %16034 = vst [vmem:[#allocation13_spill] sm:$0xff] %v15343_v23  ;;  %v16044_v23 = vld [vmem:[#allocation17_spill] sm:$0xff] }
 0x58d   :  { %v8011_v59 = vpop.f32.mrf.mxu0  ;;  %v8172_v26 = vpop.f32.mrf.mxu1 }
 0x58e   :  { %v15349_v46 = vadd.f32 %v8011_v59, %v15001_v38  ;;  %v15352_v57 = vadd.f32 %v8172_v26, %v15004_v49  ;;  %v16041_v59 = vld [vmem:[#allocation8_spill] sm:$0xff] }
 0x58f   :  { %v8013_v12 = vpop.f32.mrf.mxu0  ;;  %v8174_v54 = vpop.f32.mrf.mxu1 }
 0x590   :  { %16035 = vst [vmem:[#allocation6_spill] sm:$0xff] %v15349_v46 }
 0x591   :  { %v8016_v32 = vpop.f32.mrf.mxu0  ;;  %v8177_v0 = vpop.f32.mrf.mxu1 }
 0x592   :  { %v15355_v36 = vadd.f32 %v8016_v32, %v16036_v33  ;;  %v15358_v56 = vadd.f32 %v8177_v0, %v16038_v24  ;;  %v16043_v33 = vld [vmem:[#allocation16_spill] sm:$0xff] }
 0x593   :  { %v8018_v7 = vpop.f32.mrf.mxu0  ;;  %v8179_v43 = vpop.f32.mrf.mxu1 }
 0x594   :  { %16037 = vst [vmem:[#allocation14_spill] sm:$0xff] %v15355_v36 }
 0x595   :  { %v8019_v58 = vpop.f32.mrf.mxu0  ;;  %v8180_v48 = vpop.f32.mrf.mxu1 }
 0x596   :  { %v15361_v38 = vadd.f32 %v8019_v58, %v16039_v41  ;;  %v15364_v49 = vadd.f32 %v8180_v48, %v16041_v59  ;;  %v16046_v58 = vld [vmem:[#allocation18_spill] sm:$0xff] }
 0x597   :  { %v8021_v26 = vpop.f32.mrf.mxu0  ;;  %v8182_v12 = vpop.f32.mrf.mxu1 }
 0x598   :  { %16040 = vst [vmem:[#allocation7_spill] sm:$0xff] %v15361_v38 }
 0x599   :  { %v8024_v54 = vpop.f32.mrf.mxu0  ;;  %v8185_v46 = vpop.f32.mrf.mxu1 }
 0x59a   :  { %v15367_v32 = vadd.f32 %v8024_v54, %v15037_v8  ;;  %v15370_v0 = vadd.f32 %v8185_v46, %v16043_v33 }
 0x59b   :  { %v8026_v24 = vpop.f32.mrf.mxu0  ;;  %v8187_v7 = vpop.f32.mrf.mxu1 }
 0x59c   :  { %16042 = vst [vmem:[#allocation15_spill] sm:$0xff] %v15367_v32  ;;  %v16048_v32 = vld [vmem:[#allocation19_spill] sm:$0xff] }
 0x59d   :  { %v8027_v43 = vpop.f32.mrf.mxu0  ;;  %v8188_v36 = vpop.f32.mrf.mxu1 }
 0x59e   :  { %v15373_v41 = vadd.f32 %v8027_v43, %v16044_v23  ;;  %v15376_v48 = vadd.f32 %v8188_v36, %v16046_v58  ;;  %v16050_v43 = vld [vmem:[#allocation20_spill] sm:$0xff] }
 0x59f   :  { %v8029_v59 = vpop.f32.mrf.mxu0  ;;  %v8190_v26 = vpop.f32.mrf.mxu1 }
 0x5a0   :  { %16045 = vst [vmem:[#allocation8_spill] sm:$0xff] %v15373_v41 }
 0x5a1   :  { %v8032_v12 = vpop.f32.mrf.mxu0  ;;  %v8193_v38 = vpop.f32.mrf.mxu1 }
 0x5a2   :  { %v15379_v8 = vadd.f32 %v8032_v12, %v15061_v45  ;;  %v15382_v46 = vadd.f32 %v8193_v38, %v15064_v51 }
 0x5a3   :  { %v8034_v54 = vpop.f32.mrf.mxu0  ;;  %v8195_v33 = vpop.f32.mrf.mxu1 }
 0x5a4   :  { %16047 = vst [vmem:[#allocation16_spill] sm:$0xff] %v15379_v8  ;;  %v16052_v8 = vld [vmem:[#allocation9_spill] sm:$0xff] }
 0x5a5   :  { %v8035_v24 = vpop.f32.mrf.mxu0  ;;  %v8196_v7 = vpop.f32.mrf.mxu1 }
 0x5a6   :  { %v15385_v23 = vadd.f32 %v8035_v24, %v16048_v32  ;;  %v15388_v36 = vadd.f32 %v8196_v7, %v16050_v43  ;;  %v16054_v24 = vld [vmem:[#allocation2_spill] sm:$0xff] }
 0x5a7   :  { %v8037_v58 = vpop.f32.mrf.mxu0  ;;  %v8198_v59 = vpop.f32.mrf.mxu1 }
 0x5a8   :  { %16049 = vst [vmem:[#allocation17_spill] sm:$0xff] %v15385_v23 }
 0x5a9   :  { %v8040_v26 = vpop.f32.mrf.mxu0  ;;  %v8201_v41 = vpop.f32.mrf.mxu1 }
 0x5aa   :  { %v15391_v45 = vadd.f32 %v8040_v26, %v15085_v39  ;;  %v15394_v51 = vadd.f32 %v8201_v41, %v15088_v2 }
 0x5ab   :  { %v8042_v38 = vpop.f32.mrf.mxu0  ;;  %v8203_v12 = vpop.f32.mrf.mxu1 }
 0x5ac   :  { %16051 = vst [vmem:[#allocation18_spill] sm:$0xff] %v15391_v45  ;;  %v16055_v45 = vld [vmem:[#allocation10_spill] sm:$0xff] }
 0x5ad   :  { %v8043_v54 = vpop.f32.mrf.mxu0  ;;  %v8204_v33 = vpop.f32.mrf.mxu1 }
 0x5ae   :  { %v15397_v32 = vadd.f32 %v8043_v54, %v16052_v8  ;;  %v15400_v7 = vadd.f32 %v8204_v33, %v16054_v24  ;;  %v16056_v54 = vld [vmem:[#allocation3_spill] sm:$0xff] }
 0x5af   :  { %v8045_v43 = vpop.f32.mrf.mxu0  ;;  %v8206_v58 = vpop.f32.mrf.mxu1 }
 0x5b0   :  { %16053 = vst [vmem:[#allocation19_spill] sm:$0xff] %v15397_v32 }
 0x5b1   :  { %v8048_v59 = vpop.f32.mrf.mxu0  ;;  %v8209_v23 = vpop.f32.mrf.mxu1 }
 0x5b2   :  { %v15403_v39 = vadd.f32 %v8048_v59, %v15109_v31  ;;  %v15406_v2 = vadd.f32 %v8209_v23, %v15112_v53 }
 0x5b3   :  { %v8050_v41 = vpop.f32.mrf.mxu0  ;;  %v8211_v26 = vpop.f32.mrf.mxu1 }
 0x5b5   :  { %v8051_v38 = vpop.f32.mrf.mxu0  ;;  %v8212_v12 = vpop.f32.mrf.mxu1 }
 0x5b6   :  { %v15409_v8 = vadd.f32 %v8051_v38, %v16055_v45  ;;  %v15412_v33 = vadd.f32 %v8212_v12, %v16056_v54 }
 0x5b7   :  { %v8053_v24 = vpop.f32.mrf.mxu0  ;;  %v8214_v43 = vpop.f32.mrf.mxu1 }
 0x5b9   :  { %v8056_v58 = vpop.f32.mrf.mxu0  ;;  %v15414_v32 = vpop.f32.mrf.mxu1 }
 0x5ba   :  { %v15417_v31 = vadd.f32 %v8056_v58, %v15133_v5 }
 0x5bb   :  { %v8058_v53 = vpop.f32.mrf.mxu0  ;;  %v8219_v23 = vpop.f32.mrf.mxu1 }
 0x5bd   :  { %v8059_v59 = vpop.f32.mrf.mxu0  ;;  %v15419_v41 = vpop.f32.mrf.mxu1 }
 0x5be   :  { %v15422_v26 = vadd.f32 %v8059_v59, %v15145_v13 }
 0x5bf   :  { %v8061_v45 = vpop.f32.mrf.mxu0  ;;  %v8222_v38 = vpop.f32.mrf.mxu1 }
 0x5c1   :  { %v8225_v12 = vpop.f32.mrf.mxu1  ;;  %v9609_v54 = vpop.f32.mrf.mxu0 }
 0x5c2   :  { %v15425_v24 = vadd.f32 %v8225_v12, %v15157_v62  ;;  %v8395_v43 = vadd.f32 %v9609_v54, %v15184_v60 }
 0x5c3   :  { %v8227_v5 = vpop.f32.mrf.mxu1  ;;  %v8386_v58 = vpop.f32.mrf.mxu0 }
 0x5c4   :  { %8644 = vst.msk [vmem:[%s15803_s3 + $0x10] sm:$0xff] %vm8641_vm0, %v8395_v43  ;;  %v8387_v13 = vadd.f32 %v8386_v58, %v15160_v55 }
 0x5c5   :  { %v8228_v53 = vpop.f32.mrf.mxu1  ;;  %v9610_v23 = vpop.f32.mrf.mxu0 }
 0x5c6   :  { %8642 = vst.msk [vmem:[%s15803_s3] sm:$0xff] %vm8641_vm0, %v8387_v13  ;;  %v15438_v62 = vadd.f32 %v8228_v53, %v15169_v29  ;;  %v8398_v60 = vadd.f32 %v9610_v23, %v15196_v27 }
 0x5c7   :  { %v8230_v59 = vpop.f32.mrf.mxu1  ;;  %v8389_v45 = vpop.f32.mrf.mxu0 }
 0x5c8   :  { %8645 = vst.msk [vmem:[%s15803_s3 + $0x18] sm:$0xff] %vm8641_vm0, %v8398_v60  ;;  %v8390_v55 = vadd.f32 %v8389_v45, %v15172_v1 }
 0x5c9   :  { %v15446_v38 = vpop.f32.mrf.mxu1  ;;  %v9613_v12 = vpop.f32.mrf.mxu0 }
 0x5ca   :  { %8643 = vst.msk [vmem:[%s15803_s3 + $0x8] sm:$0xff] %vm8641_vm0, %v8390_v55  ;;  %v8411_v29 = vadd.f32 %v9613_v12, %v15232_v3 }
 0x5cb   :  { %v8235_v27 = vpop.f32.mrf.mxu1  ;;  %v8402_v54 = vpop.f32.mrf.mxu0 }
 0x5cc   :  { %8648 = vst.msk [vmem:[%s15803_s3 + $0x30] sm:$0xff] %vm8641_vm0, %v8411_v29  ;;  %v8403_v43 = vadd.f32 %v8402_v54, %v15208_v50 }
 0x5cd   :  { %v15458_v1 = vpop.f32.mrf.mxu1  ;;  %v9614_v5 = vpop.f32.mrf.mxu0 }
 0x5ce   :  { %8646 = vst.msk [vmem:[%s15803_s3 + $0x20] sm:$0xff] %vm8641_vm0, %v8403_v43  ;;  %v8414_v58 = vadd.f32 %v9614_v5, %v15244_v37 }
 0x5cf   :  { %v8238_v3 = vpop.f32.mrf.mxu1  ;;  %v8405_v13 = vpop.f32.mrf.mxu0 }
 0x5d0   :  { %8649 = vst.msk [vmem:[%s15803_s3 + $0x38] sm:$0xff] %vm8641_vm0, %v8414_v58  ;;  %v8406_v53 = vadd.f32 %v8405_v13, %v15220_v17 }
 0x5d1   :  { %v15470_v50 = vpop.f32.mrf.mxu1  ;;  %v9617_v23 = vpop.f32.mrf.mxu0 }
 0x5d2   :  { %8647 = vst.msk [vmem:[%s15803_s3 + $0x28] sm:$0xff] %vm8641_vm0, %v8406_v53  ;;  %v8427_v60 = vadd.f32 %v9617_v23, %v15280_v63 }
 0x5d3   :  { %v8243_v37 = vpop.f32.mrf.mxu1  ;;  %v8418_v59 = vpop.f32.mrf.mxu0 }
 0x5d4   :  { %8652 = vst.msk [vmem:[%s15803_s3 + $0x50] sm:$0xff] %vm8641_vm0, %v8427_v60  ;;  %v8419_v45 = vadd.f32 %v8418_v59, %v15256_v25 }
 0x5d5   :  { %v15482_v17 = vpop.f32.mrf.mxu1  ;;  %v9618_v55 = vpop.f32.mrf.mxu0 }
 0x5d6   :  { %8650 = vst.msk [vmem:[%s15803_s3 + $0x40] sm:$0xff] %vm8641_vm0, %v8419_v45  ;;  %v8430_v12 = vadd.f32 %v9618_v55, %v15292_v35 }
 0x5d7   :  { %v8246_v63 = vpop.f32.mrf.mxu1  ;;  %v8421_v29 = vpop.f32.mrf.mxu0 }
 0x5d8   :  { %8653 = vst.msk [vmem:[%s15803_s3 + $0x58] sm:$0xff] %vm8641_vm0, %v8430_v12  ;;  %v8422_v27 = vadd.f32 %v8421_v29, %v15268_v11 }
 0x5d9   :  { %v15494_v25 = vpop.f32.mrf.mxu1  ;;  %v9621_v54 = vpop.f32.mrf.mxu0 }
 0x5da   :  { %8651 = vst.msk [vmem:[%s15803_s3 + $0x48] sm:$0xff] %vm8641_vm0, %v8422_v27  ;;  %v8443_v43 = vadd.f32 %v9621_v54, %v15322_v20 }
 0x5db   :  { %v8251_v35 = vpop.f32.mrf.mxu1  ;;  %v8434_v5 = vpop.f32.mrf.mxu0 }
 0x5dc   :  { %8656 = vst.msk [vmem:[%s15803_s3 + $0x70] sm:$0xff] %vm8641_vm0, %v8443_v43  ;;  %v8435_v58 = vadd.f32 %v8434_v5, %v15304_v14 }
 0x5dd   :  { %v15506_v11 = vpop.f32.mrf.mxu1  ;;  %v9622_v3 = vpop.f32.mrf.mxu0 }
 0x5de   :  { %8654 = vst.msk [vmem:[%s15803_s3 + $0x60] sm:$0xff] %vm8641_vm0, %v8435_v58  ;;  %v8446_v13 = vadd.f32 %v9622_v3, %v15328_v61 }
 0x5df   :  { %v8254_v20 = vpop.f32.mrf.mxu1  ;;  %v8437_v53 = vpop.f32.mrf.mxu0 }
 0x5e0   :  { %8657 = vst.msk [vmem:[%s15803_s3 + $0x78] sm:$0xff] %vm8641_vm0, %v8446_v13  ;;  %v8438_v23 = vadd.f32 %v8437_v53, %v15316_v10 }
 0x5e1   :  { %v15518_v14 = vpop.f32.mrf.mxu1  ;;  %v9625_v60 = vpop.f32.mrf.mxu0 }
 0x5e2   :  { %8655 = vst.msk [vmem:[%s15803_s3 + $0x68] sm:$0xff] %vm8641_vm0, %v8438_v23  ;;  %v8459_v37 = vadd.f32 %v9625_v60, %v15346_v15 }
 0x5e3   :  { %v8259_v61 = vpop.f32.mrf.mxu1  ;;  %v8450_v59 = vpop.f32.mrf.mxu0 }
 0x5e4   :  { %8660 = vst.msk [vmem:[%s15803_s3 + $0x90] sm:$0xff] %vm8641_vm0, %v8459_v37  ;;  %v8451_v45 = vadd.f32 %v8450_v59, %v15334_v22 }
 0x5e5   :  { %v15530_v10 = vpop.f32.mrf.mxu1  ;;  %v9626_v55 = vpop.f32.mrf.mxu0 }
 0x5e6   :  { %8658 = vst.msk [vmem:[%s15803_s3 + $0x80] sm:$0xff] %vm8641_vm0, %v8451_v45  ;;  %v8462_v12 = vadd.f32 %v9626_v55, %v15352_v57  ;;  %v8218_v45 = vadd.f32 %v15414_v32, %v15136_v18  ;;  %v8221_v18 = vadd.f32 %v15419_v41, %v15148_v9  ;;  %v8234_v9 = vadd.f32 %v15446_v38, %v15181_v40 }
 0x5e7   :  { %v8262_v15 = vpop.f32.mrf.mxu1  ;;  %v8453_v63 = vpop.f32.mrf.mxu0  ;;  %v8237_v40 = vadd.f32 %v15458_v1, %v15193_v16  ;;  %v8250_v16 = vadd.f32 %v15494_v25, %v15229_v30  ;;  %v8253_v25 = vadd.f32 %v15506_v11, %v15241_v34 }
 0x5e8   :  { %8661 = vst.msk [vmem:[%s15803_s3 + $0x98] sm:$0xff] %vm8641_vm0, %v8462_v12  ;;  %v8454_v29 = vadd.f32 %v8453_v63, %v15340_v28 }
 0x5e9   :  { %v15542_v22 = vpop.f32.mrf.mxu1  ;;  %v9629_v27 = vpop.f32.mrf.mxu0 }
 0x5ea   :  { %8659 = vst.msk [vmem:[%s15803_s3 + $0x88] sm:$0xff] %vm8641_vm0, %v8454_v29  ;;  %v8475_v54 = vadd.f32 %v9629_v27, %v15370_v0  ;;  %v8266_v34 = vadd.f32 %v15542_v22, %v15277_v19 }
 0x5eb   :  { %v8267_v57 = vpop.f32.mrf.mxu1  ;;  %v8466_v43 = vpop.f32.mrf.mxu0 }
 0x5ec   :  { %8664 = vst.msk [vmem:[%s15803_s3 + $0xb0] sm:$0xff] %vm8641_vm0, %v8475_v54  ;;  %v8467_v35 = vadd.f32 %v8466_v43, %v15358_v56 }
 0x5ed   :  { %v15554_v28 = vpop.f32.mrf.mxu1  ;;  %v9630_v5 = vpop.f32.mrf.mxu0 }
 0x5ee   :  { %8662 = vst.msk [vmem:[%s15803_s3 + $0xa0] sm:$0xff] %vm8641_vm0, %v8467_v35  ;;  %v8478_v58 = vadd.f32 %v9630_v5, %v15376_v48  ;;  %v8269_v19 = vadd.f32 %v15554_v28, %v15289_v44 }
 0x5ef   :  { %v8270_v0 = vpop.f32.mrf.mxu1  ;;  %v8469_v3 = vpop.f32.mrf.mxu0 }
 0x5f0   :  { %8665 = vst.msk [vmem:[%s15803_s3 + $0xb8] sm:$0xff] %vm8641_vm0, %v8478_v58  ;;  %v8470_v13 = vadd.f32 %v8469_v3, %v15364_v49 }
 0x5f1   :  { %v15566_v56 = vpop.f32.mrf.mxu1  ;;  %v9633_v20 = vpop.f32.mrf.mxu0 }
 0x5f2   :  { %8663 = vst.msk [vmem:[%s15803_s3 + $0xa8] sm:$0xff] %vm8641_vm0, %v8470_v13  ;;  %v8491_v53 = vadd.f32 %v9633_v20, %v15394_v51 }
 0x5f3   :  { %v8275_v48 = vpop.f32.mrf.mxu1  ;;  %v8482_v23 = vpop.f32.mrf.mxu0 }
 0x5f4   :  { %8668 = vst.msk [vmem:[%s15803_s3 + $0xd0] sm:$0xff] %vm8641_vm0, %v8491_v53  ;;  %v8483_v60 = vadd.f32 %v8482_v23, %v15382_v46  ;;  %v8242_v48 = vadd.f32 %v15470_v50, %v15205_v21  ;;  %v16057_v21 = vld [vmem:[#allocation11_spill] sm:$0xff] }
 0x5f5   :  { %v15578_v49 = vpop.f32.mrf.mxu1  ;;  %v9634_v37 = vpop.f32.mrf.mxu0  ;;  %v8245_v50 = vadd.f32 %v15482_v17, %v16057_v21  ;;  %v8258_v17 = vadd.f32 %v15518_v14, %v15253_v42  ;;  %v8261_v42 = vadd.f32 %v15530_v10, %v15265_v4  ;;  %v16058_v4 = vld [vmem:[#allocation4_spill] sm:$0xff] }
 0x5f6   :  { %8666 = vst.msk [vmem:[%s15803_s3 + $0xc0] sm:$0xff] %vm8641_vm0, %v8483_v60  ;;  %v8494_v61 = vadd.f32 %v9634_v37, %v15400_v7  ;;  %v8274_v10 = vadd.f32 %v15566_v56, %v16058_v4  ;;  %v8277_v56 = vadd.f32 %v15578_v49, %v15313_v47 }
 0x5f7   :  { %v8278_v51 = vpop.f32.mrf.mxu1  ;;  %v8485_v59 = vpop.f32.mrf.mxu0 }
 0x5f8   :  { %8669 = vst.msk [vmem:[%s15803_s3 + $0xd8] sm:$0xff] %vm8641_vm0, %v8494_v61  ;;  %v8486_v46 = vadd.f32 %v8485_v59, %v15388_v36 }
 0x5f9   :  { %v15592_v55 = vpop.f32.mrf.mxu1  ;;  %v9637_v12 = vpop.f32.mrf.mxu0 }
 0x5fa   :  { %8667 = vst.msk [vmem:[%s15803_s3 + $0xc8] sm:$0xff] %vm8641_vm0, %v8486_v46  ;;  %v8507_v7 = vadd.f32 %v9637_v12, %v8218_v45  ;;  %v8282_v44 = vadd.f32 %v15592_v55, %v15319_v52 }
 0x5fb   :  { %v8283_v15 = vpop.f32.mrf.mxu1  ;;  %v8498_v63 = vpop.f32.mrf.mxu0 }
 0x5fc   :  { %8672 = vst.msk [vmem:[%s15803_s3 + $0xf0] sm:$0xff] %vm8641_vm0, %v8507_v7  ;;  %v8499_v36 = vadd.f32 %v8498_v63, %v15406_v2 }
 0x5fd   :  { %v15605_v32 = vpop.f32.mrf.mxu1  ;;  %v9638_v29 = vpop.f32.mrf.mxu0 }
 0x5fe   :  { %8670 = vst.msk [vmem:[%s15803_s3 + $0xe0] sm:$0xff] %vm8641_vm0, %v8499_v36  ;;  %v8510_v27 = vadd.f32 %v9638_v29, %v8221_v18  ;;  %v8285_v52 = vadd.f32 %v15605_v32, %v15325_v6  ;;  %v16059_v6 = vld [vmem:[#allocation13_spill] sm:$0xff] }
 0x5ff   :  { %v8286_v54 = vpop.f32.mrf.mxu1  ;;  %v8501_v57 = vpop.f32.mrf.mxu0 }
 0x600   :  { %8673 = vst.msk [vmem:[%s15803_s3 + $0xf8] sm:$0xff] %vm8641_vm0, %v8510_v27  ;;  %v8502_v2 = vadd.f32 %v8501_v57, %v15412_v33 }
 0x601   :  { %v15618_v41 = vpop.f32.mrf.mxu1  ;;  %v9641_v43 = vpop.f32.mrf.mxu0 }
 0x602   :  { %8671 = vst.msk [vmem:[%s15803_s3 + $0xe8] sm:$0xff] %vm8641_vm0, %v8502_v2  ;;  %v8523_v35 = vadd.f32 %v9641_v43, %v8234_v9 }
 0x603   :  { %v8291_v5 = vpop.f32.mrf.mxu1  ;;  %v8514_v58 = vpop.f32.mrf.mxu0 }
 0x604   :  { %8676 = vst.msk [vmem:[%s15803_s3 + $0x110] sm:$0xff] %vm8641_vm0, %v8523_v35  ;;  %v8515_v33 = vadd.f32 %v8514_v58, %v15425_v24 }
 0x605   :  { %v15631_v38 = vpop.f32.mrf.mxu1  ;;  %v9642_v0 = vpop.f32.mrf.mxu0 }
 0x606   :  { %8674 = vst.msk [vmem:[%s15803_s3 + $0x100] sm:$0xff] %vm8641_vm0, %v8515_v33  ;;  %v8526_v3 = vadd.f32 %v9642_v0, %v8237_v40 }
 0x607   :  { %v8294_v13 = vpop.f32.mrf.mxu1  ;;  %v8517_v20 = vpop.f32.mrf.mxu0 }
 0x608   :  { %8677 = vst.msk [vmem:[%s15803_s3 + $0x118] sm:$0xff] %vm8641_vm0, %v8526_v3  ;;  %v8518_v24 = vadd.f32 %v8517_v20, %v15438_v62  ;;  %v16060_v20 = vld [vmem:[#allocation12_spill] sm:$0xff] }
 0x609   :  { %v8297_v1 = vpop.f32.mrf.mxu1  ;;  %v9645_v53 = vpop.f32.mrf.mxu0  ;;  %v8290_v47 = vadd.f32 %v15618_v41, %v16060_v20 }
 0x60a   :  { %8675 = vst.msk [vmem:[%s15803_s3 + $0x108] sm:$0xff] %vm8641_vm0, %v8518_v24  ;;  %v8539_v23 = vadd.f32 %v9645_v53, %v8250_v16  ;;  %v8298_v32 = vadd.f32 %v8297_v1, %v16059_v6  ;;  %v16061_v1 = vld [vmem:[#allocation6_spill] sm:$0xff] }
 0x60b   :  { %v8299_v60 = vpop.f32.mrf.mxu1  ;;  %v8530_v30 = vpop.f32.mrf.mxu0 }
 0x60c   :  { %8680 = vst.msk [vmem:[%s15803_s3 + $0x130] sm:$0xff] %vm8641_vm0, %v8539_v23  ;;  %v8531_v62 = vadd.f32 %v8530_v30, %v8242_v48  ;;  %v16062_v30 = vld [vmem:[#allocation5_spill] sm:$0xff] }
 0x60d   :  { %v8300_v37 = vpop.f32.mrf.mxu1  ;;  %v9646_v61 = vpop.f32.mrf.mxu0  ;;  %v8293_v41 = vadd.f32 %v15631_v38, %v16062_v30 }
 0x60e   :  { %8678 = vst.msk [vmem:[%s15803_s3 + $0x120] sm:$0xff] %vm8641_vm0, %v8531_v62  ;;  %v8542_v51 = vadd.f32 %v9646_v61, %v8253_v25  ;;  %v8301_v53 = vadd.f32 %v8300_v37, %v16061_v1  ;;  %v16063_v37 = vld [vmem:[#allocation15_spill] sm:$0xff] }
 0x60f   :  { %v8302_v59 = vpop.f32.mrf.mxu1  ;;  %v8533_v45 = vpop.f32.mrf.mxu0 }
 0x610   :  { %8681 = vst.msk [vmem:[%s15803_s3 + $0x138] sm:$0xff] %vm8641_vm0, %v8542_v51  ;;  %v8534_v11 = vadd.f32 %v8533_v45, %v8245_v50  ;;  %v16064_v45 = vld [vmem:[#allocation14_spill] sm:$0xff] }
 0x611   :  { %v8305_v46 = vpop.f32.mrf.mxu1  ;;  %v9649_v12 = vpop.f32.mrf.mxu0 }
 0x612   :  { %8679 = vst.msk [vmem:[%s15803_s3 + $0x128] sm:$0xff] %vm8641_vm0, %v8534_v11  ;;  %v8555_v7 = vadd.f32 %v9649_v12, %v8266_v34  ;;  %v8306_v38 = vadd.f32 %v8305_v46, %v16064_v45 }
 0x613   :  { %v8307_v15 = vpop.f32.mrf.mxu1  ;;  %v8546_v63 = vpop.f32.mrf.mxu0 }
 0x614   :  { %8684 = vst.msk [vmem:[%s15803_s3 + $0x150] sm:$0xff] %vm8641_vm0, %v8555_v7  ;;  %v8547_v22 = vadd.f32 %v8546_v63, %v8258_v17  ;;  %v16065_v17 = vld [vmem:[#allocation8_spill] sm:$0xff] }
 0x615   :  { %v8308_v18 = vpop.f32.mrf.mxu1  ;;  %v9650_v36 = vpop.f32.mrf.mxu0 }
 0x616   :  { %8682 = vst.msk [vmem:[%s15803_s3 + $0x140] sm:$0xff] %vm8641_vm0, %v8547_v22  ;;  %v8558_v14 = vadd.f32 %v9650_v36, %v8269_v19  ;;  %v16066_v22 = vld [vmem:[#allocation7_spill] sm:$0xff] }
 0x617   :  { %v8310_v29 = vpop.f32.mrf.mxu1  ;;  %v8549_v27 = vpop.f32.mrf.mxu0  ;;  %v8309_v46 = vadd.f32 %v8308_v18, %v16066_v22 }
 0x618   :  { %8685 = vst.msk [vmem:[%s15803_s3 + $0x158] sm:$0xff] %vm8641_vm0, %v8558_v14  ;;  %v8550_v28 = vadd.f32 %v8549_v27, %v8261_v42  ;;  %v16067_v29 = vld [vmem:[#allocation18_spill] sm:$0xff] }
 0x619   :  { %v8313_v54 = vpop.f32.mrf.mxu1  ;;  %v9653_v57 = vpop.f32.mrf.mxu0 }
 0x61a   :  { %8683 = vst.msk [vmem:[%s15803_s3 + $0x148] sm:$0xff] %vm8641_vm0, %v8550_v28  ;;  %v8571_v9 = vadd.f32 %v9653_v57, %v8282_v44  ;;  %v8314_v21 = vadd.f32 %v8313_v54, %v16063_v37  ;;  %v16068_v57 = vld [vmem:[#allocation16_spill] sm:$0xff] }
 0x61b   :  { %v8315_v2 = vpop.f32.mrf.mxu1  ;;  %v8562_v43 = vpop.f32.mrf.mxu0 }
 0x61c   :  { %8688 = vst.msk [vmem:[%s15803_s3 + $0x170] sm:$0xff] %vm8641_vm0, %v8571_v9  ;;  %v8563_v55 = vadd.f32 %v8562_v43, %v8274_v10  ;;  %v16069_v2 = vld [vmem:[#allocation19_spill] sm:$0xff] }
 0x61d   :  { %v8316_v35 = vpop.f32.mrf.mxu1  ;;  %v9654_v5 = vpop.f32.mrf.mxu0 }
 0x61e   :  { %8686 = vst.msk [vmem:[%s15803_s3 + $0x160] sm:$0xff] %vm8641_vm0, %v8563_v55  ;;  %v8574_v58 = vadd.f32 %v9654_v5, %v8285_v52  ;;  %v8317_v7 = vadd.f32 %v8316_v35, %v16065_v17  ;;  %v16070_v5 = vld [vmem:[#allocation17_spill] sm:$0xff] }
 0x61f   :  { %v8318_v40 = vpop.f32.mrf.mxu1  ;;  %v8565_v33 = vpop.f32.mrf.mxu0 }
 0x620   :  { %8689 = vst.msk [vmem:[%s15803_s3 + $0x178] sm:$0xff] %vm8641_vm0, %v8574_v58  ;;  %v8566_v0 = vadd.f32 %v8565_v33, %v8277_v56 }
 0x621   :  { %v8321_v3 = vpop.f32.mrf.mxu1  ;;  %v9657_v13 = vpop.f32.mrf.mxu0 }
 0x622   :  { %8687 = vst.msk [vmem:[%s15803_s3 + $0x168] sm:$0xff] %vm8641_vm0, %v8566_v0  ;;  %v8587_v49 = vadd.f32 %v9657_v13, %v8298_v32  ;;  %v8322_v18 = vadd.f32 %v8321_v3, %v16068_v57 }
 0x623   :  { %v8323_v16 = vpop.f32.mrf.mxu1  ;;  %v8578_v24 = vpop.f32.mrf.mxu0 }
 0x624   :  { %8692 = vst.msk [vmem:[%s15803_s3 + $0x190] sm:$0xff] %vm8641_vm0, %v8587_v49  ;;  %v8579_v48 = vadd.f32 %v8578_v24, %v8290_v47 }
 0x625   :  { %v8324_v23 = vpop.f32.mrf.mxu1  ;;  %v9658_v60 = vpop.f32.mrf.mxu0 }
 0x626   :  { %8690 = vst.msk [vmem:[%s15803_s3 + $0x180] sm:$0xff] %vm8641_vm0, %v8579_v48  ;;  %v8590_v25 = vadd.f32 %v9658_v60, %v8301_v53  ;;  %v8325_v56 = vadd.f32 %v8324_v23, %v16070_v5 }
 0x627   :  { %v8326_v62 = vpop.f32.mrf.mxu1  ;;  %v8581_v61 = vpop.f32.mrf.mxu0 }
 0x628   :  { %8693 = vst.msk [vmem:[%s15803_s3 + $0x198] sm:$0xff] %vm8641_vm0, %v8590_v25  ;;  %v8582_v50 = vadd.f32 %v8581_v61, %v8293_v41 }
 0x629   :  { %v8329_v51 = vpop.f32.mrf.mxu1  ;;  %v9661_v59 = vpop.f32.mrf.mxu0 }
 0x62a   :  { %8691 = vst.msk [vmem:[%s15803_s3 + $0x188] sm:$0xff] %vm8641_vm0, %v8582_v50  ;;  %v8603_v34 = vadd.f32 %v9661_v59, %v8314_v21  ;;  %v8330_v27 = vadd.f32 %v8329_v51, %v16067_v29 }
 0x62b   :  { %v8331_v11 = vpop.f32.mrf.mxu1  ;;  %v8594_v12 = vpop.f32.mrf.mxu0 }
 0x62c   :  { %8696 = vst.msk [vmem:[%s15803_s3 + $0x1b0] sm:$0xff] %vm8641_vm0, %v8603_v34  ;;  %v8595_v15 = vadd.f32 %v8594_v12, %v8306_v38 }
 0x62d   :  { %v8332_v63 = vpop.f32.mrf.mxu1  ;;  %v9662_v19 = vpop.f32.mrf.mxu0 }
 0x62e   :  { %8694 = vst.msk [vmem:[%s15803_s3 + $0x1a0] sm:$0xff] %vm8641_vm0, %v8595_v15  ;;  %v8606_v36 = vadd.f32 %v9662_v19, %v8317_v7  ;;  %v8333_v43 = vadd.f32 %v8332_v63, %v16069_v2 }
 0x62f   :  { %v8334_v42 = vpop.f32.mrf.mxu1  ;;  %v8597_v14 = vpop.f32.mrf.mxu0 }
 0x630   :  { %8697 = vst.msk [vmem:[%s15803_s3 + $0x1b8] sm:$0xff] %vm8641_vm0, %v8606_v36  ;;  %v8598_v44 = vadd.f32 %v8597_v14, %v8309_v46 }
 0x631   :  { %v8337_v28 = vpop.f32.mrf.mxu1  ;;  %v9665_v54 = vpop.f32.mrf.mxu0 }
 0x632   :  { %8695 = vst.msk [vmem:[%s15803_s3 + $0x1a8] sm:$0xff] %vm8641_vm0, %v8598_v44  ;;  %v8619_v4 = vadd.f32 %v9665_v54, %v8330_v27  ;;  %v8338_v3 = vadd.f32 %v8337_v28, %v15403_v39 }
 0x633   :  { %v8339_v10 = vpop.f32.mrf.mxu1  ;;  %v8610_v9 = vpop.f32.mrf.mxu0 }
 0x634   :  { %8700 = vst.msk [vmem:[%s15803_s3 + $0x1d0] sm:$0xff] %vm8641_vm0, %v8619_v4  ;;  %v8611_v52 = vadd.f32 %v8610_v9, %v8322_v18 }
 0x635   :  { %v8340_v55 = vpop.f32.mrf.mxu1  ;;  %v9666_v35 = vpop.f32.mrf.mxu0 }
 0x636   :  { %8698 = vst.msk [vmem:[%s15803_s3 + $0x1c0] sm:$0xff] %vm8641_vm0, %v8611_v52  ;;  %v8622_v58 = vadd.f32 %v9666_v35, %v8333_v43  ;;  %v8341_v53 = vadd.f32 %v8340_v55, %v15409_v8 }
 0x637   :  { %v8342_v40 = vpop.f32.mrf.mxu1  ;;  %v8613_v33 = vpop.f32.mrf.mxu0 }
 0x638   :  { %8701 = vst.msk [vmem:[%s15803_s3 + $0x1d8] sm:$0xff] %vm8641_vm0, %v8622_v58  ;;  %v8614_v6 = vadd.f32 %v8613_v33, %v8325_v56 }
 0x639   :  { %v8345_v32 = vpop.f32.mrf.mxu1  ;;  %v9669_v0 = vpop.f32.mrf.mxu0 }
 0x63a   :  { %8699 = vst.msk [vmem:[%s15803_s3 + $0x1c8] sm:$0xff] %vm8641_vm0, %v8614_v6  ;;  %v8346_v13 = vadd.f32 %v8345_v32, %v15417_v31 }
 0x63b   :  { %v8347_v20 = vpop.f32.mrf.mxu1  ;;  %v8626_v47 = vpop.f32.mrf.mxu0 }
 0x63c   :  { %v8635_v49 = vadd.f32 %v9669_v0, %v8346_v13  ;;  %v8627_v16 = vadd.f32 %v8626_v47, %v8338_v3 }
 0x63d   :  { %v8348_v24 = vpop.f32.mrf.mxu1  ;;  %v9670_v1 = vpop.f32.mrf.mxu0 }
 0x63e   :  { %8704 = vst.msk [vmem:[%s15803_s3 + $0x1f0] sm:$0xff] %vm8641_vm0, %v8635_v49  ;;  %8702 = vst.msk [vmem:[%s15803_s3 + $0x1e0] sm:$0xff] %vm8641_vm0, %v8627_v16  ;;  %v8349_v39 = vadd.f32 %v8348_v24, %v15422_v26 }
 0x63f   :  { %v8350_v31 = vpop.f32.mrf.mxu1  ;;  %v8629_v48 = vpop.f32.mrf.mxu0 }
 0x640   :  { %v8638_v23 = vadd.f32 %v9670_v1, %v8349_v39  ;;  %v8630_v60 = vadd.f32 %v8629_v48, %v8341_v53 }
 0x642   :  { %8705 = vst.msk [vmem:[%s15803_s3 + $0x1f8] sm:$0xff] %vm8641_vm0, %v8638_v23  ;;  %8703 = vst.msk [vmem:[%s15803_s3 + $0x1e8] sm:$0xff] %vm8641_vm0, %v8630_v60 }

</bundles_post_ra>
